<compile_context>
chip_gen: v6e
topology: v6e:2x2x1
jax: 0.10.0
libtpu: 0.0.40
codegen_flags: <defaults>
</compile_context>

<pallas_src>
import jax
import jax.numpy as jnp
from jax import lax
from jax.experimental import pallas as pl
from jax.experimental.pallas import tpu as pltpu

MIN_VALUE = 0.699405488968
MAX_VALUE = 0.920216312886


def _rup(v, m):
    return (v + m - 1) // m * m


def _make_kernel(K, Wp, M, min_v, max_v):
    def kernel(x_ref, w_ref, b_ref, o_ref):
        # x_ref: (1, M, Cin_p)        bf16, flattened spatially-padded image block
        # w_ref: (K*K, Cin_p, Cout_p) bf16, equivalent-conv weight (resident)
        # b_ref: (1, Cout_p)          f32 bias
        # o_ref: (1, M, Cout_p)       f32 output block; doubles as VMEM accumulator
        # tap (0,0): zero shift, initializes the accumulator
        o_ref[0] = jnp.dot(x_ref[0], w_ref[0],
                           preferred_element_type=jnp.float32)
        for dh in range(K):
            for dw in range(K):
                if dh == 0 and dw == 0:
                    continue
                s = dh * Wp + dw  # constant flat shift on the padded grid
                y = jnp.dot(x_ref[0], w_ref[dh * K + dw],
                            preferred_element_type=jnp.float32)
                # out[m] += y[m + s]; wrapped rows only hit discarded padding rows.
                o_ref[0] += pltpu.roll(y, shift=M - s, axis=0)
        # f32 epilogue: bias + clamp_min/clamp_max, then store (output is f32).
        o_ref[0] = jnp.clip(o_ref[0] + b_ref[...], min_v, max_v)

    return kernel


def conv_transpose_clamp(x, weight, bias, min_v=MIN_VALUE, max_v=MAX_VALUE):
    """x: (N, Cin, H, W) NCHW; weight: (Cin, Cout, K, K) torch ConvTranspose2d layout."""
    N, Cin, H, W = x.shape
    Cin_w, Cout, K, Kw = weight.shape
    assert Cin_w == Cin and K == Kw == 3
    pad = 1
    cp = K - 1 - pad  # equivalent regular-conv padding (= 1 here)

    Hp, Wp = H + 2 * cp, W + 2 * cp
    Cin_p, Cout_p = _rup(Cin, 128), _rup(Cout, 128)

    # Fold enough images into one block that the matmul M dimension feeds the MXU.
    img = Hp * Wp
    NB = min(N, pl.cdiv(256, img))
    Np = _rup(N, NB)
    n_blocks = Np // NB
    M = _rup(NB * img, 16)  # bf16 sublane-packing friendly

    # NCHW -> NHWC; pad batch + spatial border + channels in one pad; flatten; bf16.
    x_nhwc = jnp.transpose(x, (0, 2, 3, 1))
    xp = jnp.pad(x_nhwc, ((0, Np - N), (cp, cp), (cp, cp), (0, Cin_p - Cin)))
    xp = xp.reshape(n_blocks, NB * img, Cin_p)
    if M > NB * img:
        xp = jnp.pad(xp, ((0, 0), (0, M - NB * img), (0, 0)))
    xp = xp.astype(jnp.bfloat16)

    # Equivalent regular-conv weight: flip spatially, index as (kh, kw, cin, cout).
    w_eq = jnp.transpose(weight[:, :, ::-1, ::-1], (2, 3, 0, 1)).reshape(K * K, Cin, Cout)
    w_eq = jnp.pad(w_eq, ((0, 0), (0, Cin_p - Cin), (0, Cout_p - Cout))).astype(jnp.bfloat16)
    b = jnp.pad(bias, (0, Cout_p - Cout)).reshape(1, Cout_p).astype(jnp.float32)

    kernel = _make_kernel(K, Wp, M, min_v, max_v)
    out = pl.pallas_call(
        kernel,
        out_shape=jax.ShapeDtypeStruct((n_blocks, M, Cout_p), jnp.float32),
        grid_spec=pltpu.PrefetchScalarGridSpec(
            num_scalar_prefetch=0,
            grid=(n_blocks,),
            in_specs=[
                pl.BlockSpec((1, M, Cin_p), lambda i: (i, 0, 0)),
                pl.BlockSpec((K * K, Cin_p, Cout_p), lambda i: (0, 0, 0)),
                pl.BlockSpec((1, Cout_p), lambda i: (0, 0)),
            ],
            out_specs=pl.BlockSpec((1, M, Cout_p), lambda i: (i, 0, 0)),
        ),
        compiler_params=pltpu.CompilerParams(dimension_semantics=("parallel",)),
    )(xp, w_eq, b)

    # Drop padded rows/images/channels, un-flatten, back to NCHW.
    out = out[:, :NB * img, :].reshape(Np, Hp, Wp, Cout_p)[:N, :H, :W, :Cout]
    return jnp.transpose(out, (0, 3, 1, 2)).astype(x.dtype)


def reference(x, weight, bias, min_v=MIN_VALUE, max_v=MAX_VALUE):
    """Pure-JAX f32 reference: stride-1 transposed conv == conv w/ flipped kernel."""
    w_conv = jnp.transpose(weight[:, :, ::-1, ::-1], (1, 0, 2, 3))  # (Cout, Cin, K, K)
    y = lax.conv_general_dilated(
        x, w_conv, window_strides=(1, 1), padding=[(1, 1), (1, 1)],
        dimension_numbers=("NCHW", "OIHW", "NCHW"),
    )
    y = y + bias.reshape(1, -1, 1, 1)
    return jnp.clip(y, min_v, max_v)


if __name__ == "__main__":
    key = jax.random.PRNGKey(0)
    k_x, k_w, k_b = jax.random.split(key, 3)

    N, Cin, Cout, K = 2, 254, 317, 3
    H = W = 8  # small spatial size (original module used 28x28)

    x = jax.random.normal(k_x, (N, Cin, H, W), dtype=jnp.float32)
    fan = Cin * K * K
    bound = 1.0 / jnp.sqrt(fan)
    weight = jax.random.uniform(k_w, (Cin, Cout, K, K), jnp.float32, -bound, bound)
    bias = jax.random.uniform(k_b, (Cout,), jnp.float32, -bound, bound)

    out = jax.block_until_ready(conv_transpose_clamp(x, weight, bias))
    ref = jax.block_until_ready(reference(x, weight, bias))

    assert out.shape == (N, Cout, H, W), out.shape
    # bf16 matmul inputs (f32 accumulation) -> relaxed tolerance vs f32 reference.
    max_err = float(jnp.max(jnp.abs(out - ref)))
    assert jnp.allclose(out, ref, atol=2e-2, rtol=1e-2), max_err

    print("KERNEL_OK")
</pallas_src>

<mosaic_0001>
module attributes {stable_mosaic.version = 11 : i64} {
  func.func @kernel(%arg0: i32, %arg1: memref<1x208x256xbf16, #tpu.memory_space<vmem>>, %arg2: memref<9x256x384xbf16, #tpu.memory_space<vmem>>, %arg3: memref<1x384xf32, #tpu.memory_space<vmem>>, %arg4: memref<1x208x384xf32, #tpu.memory_space<vmem>>) attributes {dimension_semantics = [#tpu.dimension_semantics<parallel>], iteration_bounds = array<i64: 1>, scalar_prefetch = 0 : i64, scratch_operands = 0 : i64, tpu.core_type = #tpu.core_type<tc>, window_params = [{transform_indices = @transform_0, window_bounds = array<i64: 1, 208, 256>}, {pipeline_mode = #tpu.pipeline_mode<synchronous>, transform_indices = @transform_1, window_bounds = array<i64: 9, 256, 384>}, {pipeline_mode = #tpu.pipeline_mode<synchronous>, transform_indices = @transform_2, window_bounds = array<i64: 1, 384>}, {transform_indices = @transform_3, window_bounds = array<i64: 1, 208, 384>}]} {
    %c0 = arith.constant 0 : index
    %c0_0 = arith.constant 0 : index
    %c0_1 = arith.constant 0 : index
    %0 = vector.load %arg1[%c0, %c0_0, %c0_1] : memref<1x208x256xbf16, #tpu.memory_space<vmem>>, vector<1x208x256xbf16>
    %1 = vector.shape_cast %0 : vector<1x208x256xbf16> to vector<208x256xbf16>
    %c0_2 = arith.constant 0 : index
    %c0_3 = arith.constant 0 : index
    %c0_4 = arith.constant 0 : index
    %2 = vector.load %arg2[%c0_2, %c0_3, %c0_4] : memref<9x256x384xbf16, #tpu.memory_space<vmem>>, vector<1x256x384xbf16>
    %3 = vector.shape_cast %2 : vector<1x256x384xbf16> to vector<256x384xbf16>
    %cst = arith.constant dense<0.000000e+00> : vector<208x384xf32>
    %4 = tpu.matmul %1, %3, %cst {dimension_numbers = #tpu.dot_dimension_numbers<[1], [0], [0], [1], [0, 0, 1, 1], [], []>} : vector<208x256xbf16>, vector<256x384xbf16>, vector<208x384xf32> -> vector<208x384xf32>
    %c0_5 = arith.constant 0 : index
    %c0_6 = arith.constant 0 : index
    %c0_7 = arith.constant 0 : index
    %5 = vector.load %arg4[%c0_5, %c0_6, %c0_7] : memref<1x208x384xf32, #tpu.memory_space<vmem>>, vector<1x208x384xf32>
    %6 = vector.shape_cast %5 : vector<1x208x384xf32> to vector<208x384xf32>
    %7 = vector.shape_cast %4 : vector<208x384xf32> to vector<1x208x384xf32>
    tpu.vector_store %arg4[%c0_5, %c0_6, %c0_7], %7 {strides = array<i32>} : memref<1x208x384xf32, #tpu.memory_space<vmem>>, vector<1x208x384xf32>,
    %c0_8 = arith.constant 0 : index
    %c0_9 = arith.constant 0 : index
    %c0_10 = arith.constant 0 : index
    %8 = vector.load %arg1[%c0_8, %c0_9, %c0_10] : memref<1x208x256xbf16, #tpu.memory_space<vmem>>, vector<1x208x256xbf16>
    %9 = vector.shape_cast %8 : vector<1x208x256xbf16> to vector<208x256xbf16>
    %c1 = arith.constant 1 : index
    %c0_11 = arith.constant 0 : index
    %c0_12 = arith.constant 0 : index
    %10 = vector.load %arg2[%c1, %c0_11, %c0_12] : memref<9x256x384xbf16, #tpu.memory_space<vmem>>, vector<1x256x384xbf16>
    %11 = vector.shape_cast %10 : vector<1x256x384xbf16> to vector<256x384xbf16>
    %cst_13 = arith.constant dense<0.000000e+00> : vector<208x384xf32>
    %12 = tpu.matmul %9, %11, %cst_13 {dimension_numbers = #tpu.dot_dimension_numbers<[1], [0], [0], [1], [0, 0, 1, 1], [], []>} : vector<208x256xbf16>, vector<256x384xbf16>, vector<208x384xf32> -> vector<208x384xf32>
    %c0_14 = arith.constant 0 : index
    %c0_15 = arith.constant 0 : index
    %c0_16 = arith.constant 0 : index
    %13 = vector.load %arg4[%c0_14, %c0_15, %c0_16] : memref<1x208x384xf32, #tpu.memory_space<vmem>>, vector<1x208x384xf32>
    %14 = vector.shape_cast %13 : vector<1x208x384xf32> to vector<208x384xf32>
    %c207_i32 = arith.constant 207 : i32
    %15 = tpu.dynamic_rotate %12 by %c207_i32 dim 0 : vector<208x384xf32>, i32 -> vector<208x384xf32>
    %16 = arith.addf %14, %15 : vector<208x384xf32>
    %c0_17 = arith.constant 0 : index
    %c0_18 = arith.constant 0 : index
    %c0_19 = arith.constant 0 : index
    %17 = vector.load %arg4[%c0_17, %c0_18, %c0_19] : memref<1x208x384xf32, #tpu.memory_space<vmem>>, vector<1x208x384xf32>
    %18 = vector.shape_cast %17 : vector<1x208x384xf32> to vector<208x384xf32>
    %19 = vector.shape_cast %16 : vector<208x384xf32> to vector<1x208x384xf32>
    tpu.vector_store %arg4[%c0_17, %c0_18, %c0_19], %19 {strides = array<i32>} : memref<1x208x384xf32, #tpu.memory_space<vmem>>, vector<1x208x384xf32>,
    %c0_20 = arith.constant 0 : index
    %c0_21 = arith.constant 0 : index
    %c0_22 = arith.constant 0 : index
    %20 = vector.load %arg1[%c0_20, %c0_21, %c0_22] : memref<1x208x256xbf16, #tpu.memory_space<vmem>>, vector<1x208x256xbf16>
    %21 = vector.shape_cast %20 : vector<1x208x256xbf16> to vector<208x256xbf16>
    %c2 = arith.constant 2 : index
    %c0_23 = arith.constant 0 : index
    %c0_24 = arith.constant 0 : index
    %22 = vector.load %arg2[%c2, %c0_23, %c0_24] : memref<9x256x384xbf16, #tpu.memory_space<vmem>>, vector<1x256x384xbf16>
    %23 = vector.shape_cast %22 : vector<1x256x384xbf16> to vector<256x384xbf16>
    %cst_25 = arith.constant dense<0.000000e+00> : vector<208x384xf32>
    %24 = tpu.matmul %21, %23, %cst_25 {dimension_numbers = #tpu.dot_dimension_numbers<[1], [0], [0], [1], [0, 0, 1, 1], [], []>} : vector<208x256xbf16>, vector<256x384xbf16>, vector<208x384xf32> -> vector<208x384xf32>
    %c0_26 = arith.constant 0 : index
    %c0_27 = arith.constant 0 : index
    %c0_28 = arith.constant 0 : index
    %25 = vector.load %arg4[%c0_26, %c0_27, %c0_28] : memref<1x208x384xf32, #tpu.memory_space<vmem>>, vector<1x208x384xf32>
    %26 = vector.shape_cast %25 : vector<1x208x384xf32> to vector<208x384xf32>
    %c206_i32 = arith.constant 206 : i32
    %27 = tpu.dynamic_rotate %24 by %c206_i32 dim 0 : vector<208x384xf32>, i32 -> vector<208x384xf32>
    %28 = arith.addf %26, %27 : vector<208x384xf32>
    %c0_29 = arith.constant 0 : index
    %c0_30 = arith.constant 0 : index
    %c0_31 = arith.constant 0 : index
    %29 = vector.load %arg4[%c0_29, %c0_30, %c0_31] : memref<1x208x384xf32, #tpu.memory_space<vmem>>, vector<1x208x384xf32>
    %30 = vector.shape_cast %29 : vector<1x208x384xf32> to vector<208x384xf32>
    %31 = vector.shape_cast %28 : vector<208x384xf32> to vector<1x208x384xf32>
    tpu.vector_store %arg4[%c0_29, %c0_30, %c0_31], %31 {strides = array<i32>} : memref<1x208x384xf32, #tpu.memory_space<vmem>>, vector<1x208x384xf32>,
    %c0_32 = arith.constant 0 : index
    %c0_33 = arith.constant 0 : index
    %c0_34 = arith.constant 0 : index
    %32 = vector.load %arg1[%c0_32, %c0_33, %c0_34] : memref<1x208x256xbf16, #tpu.memory_space<vmem>>, vector<1x208x256xbf16>
    %33 = vector.shape_cast %32 : vector<1x208x256xbf16> to vector<208x256xbf16>
    %c3 = arith.constant 3 : index
    %c0_35 = arith.constant 0 : index
    %c0_36 = arith.constant 0 : index
    %34 = vector.load %arg2[%c3, %c0_35, %c0_36] : memref<9x256x384xbf16, #tpu.memory_space<vmem>>, vector<1x256x384xbf16>
    %35 = vector.shape_cast %34 : vector<1x256x384xbf16> to vector<256x384xbf16>
    %cst_37 = arith.constant dense<0.000000e+00> : vector<208x384xf32>
    %36 = tpu.matmul %33, %35, %cst_37 {dimension_numbers = #tpu.dot_dimension_numbers<[1], [0], [0], [1], [0, 0, 1, 1], [], []>} : vector<208x256xbf16>, vector<256x384xbf16>, vector<208x384xf32> -> vector<208x384xf32>
    %c0_38 = arith.constant 0 : index
    %c0_39 = arith.constant 0 : index
    %c0_40 = arith.constant 0 : index
    %37 = vector.load %arg4[%c0_38, %c0_39, %c0_40] : memref<1x208x384xf32, #tpu.memory_space<vmem>>, vector<1x208x384xf32>
    %38 = vector.shape_cast %37 : vector<1x208x384xf32> to vector<208x384xf32>
    %c198_i32 = arith.constant 198 : i32
    %39 = tpu.dynamic_rotate %36 by %c198_i32 dim 0 : vector<208x384xf32>, i32 -> vector<208x384xf32>
    %40 = arith.addf %38, %39 : vector<208x384xf32>
    %c0_41 = arith.constant 0 : index
    %c0_42 = arith.constant 0 : index
    %c0_43 = arith.constant 0 : index
    %41 = vector.load %arg4[%c0_41, %c0_42, %c0_43] : memref<1x208x384xf32, #tpu.memory_space<vmem>>, vector<1x208x384xf32>
    %42 = vector.shape_cast %41 : vector<1x208x384xf32> to vector<208x384xf32>
    %43 = vector.shape_cast %40 : vector<208x384xf32> to vector<1x208x384xf32>
    tpu.vector_store %arg4[%c0_41, %c0_42, %c0_43], %43 {strides = array<i32>} : memref<1x208x384xf32, #tpu.memory_space<vmem>>, vector<1x208x384xf32>,
    %c0_44 = arith.constant 0 : index
    %c0_45 = arith.constant 0 : index
    %c0_46 = arith.constant 0 : index
    %44 = vector.load %arg1[%c0_44, %c0_45, %c0_46] : memref<1x208x256xbf16, #tpu.memory_space<vmem>>, vector<1x208x256xbf16>
    %45 = vector.shape_cast %44 : vector<1x208x256xbf16> to vector<208x256xbf16>
    %c4 = arith.constant 4 : index
    %c0_47 = arith.constant 0 : index
    %c0_48 = arith.constant 0 : index
    %46 = vector.load %arg2[%c4, %c0_47, %c0_48] : memref<9x256x384xbf16, #tpu.memory_space<vmem>>, vector<1x256x384xbf16>
    %47 = vector.shape_cast %46 : vector<1x256x384xbf16> to vector<256x384xbf16>
    %cst_49 = arith.constant dense<0.000000e+00> : vector<208x384xf32>
    %48 = tpu.matmul %45, %47, %cst_49 {dimension_numbers = #tpu.dot_dimension_numbers<[1], [0], [0], [1], [0, 0, 1, 1], [], []>} : vector<208x256xbf16>, vector<256x384xbf16>, vector<208x384xf32> -> vector<208x384xf32>
    %c0_50 = arith.constant 0 : index
    %c0_51 = arith.constant 0 : index
    %c0_52 = arith.constant 0 : index
    %49 = vector.load %arg4[%c0_50, %c0_51, %c0_52] : memref<1x208x384xf32, #tpu.memory_space<vmem>>, vector<1x208x384xf32>
    %50 = vector.shape_cast %49 : vector<1x208x384xf32> to vector<208x384xf32>
    %c197_i32 = arith.constant 197 : i32
    %51 = tpu.dynamic_rotate %48 by %c197_i32 dim 0 : vector<208x384xf32>, i32 -> vector<208x384xf32>
    %52 = arith.addf %50, %51 : vector<208x384xf32>
    %c0_53 = arith.constant 0 : index
    %c0_54 = arith.constant 0 : index
    %c0_55 = arith.constant 0 : index
    %53 = vector.load %arg4[%c0_53, %c0_54, %c0_55] : memref<1x208x384xf32, #tpu.memory_space<vmem>>, vector<1x208x384xf32>
    %54 = vector.shape_cast %53 : vector<1x208x384xf32> to vector<208x384xf32>
    %55 = vector.shape_cast %52 : vector<208x384xf32> to vector<1x208x384xf32>
    tpu.vector_store %arg4[%c0_53, %c0_54, %c0_55], %55 {strides = array<i32>} : memref<1x208x384xf32, #tpu.memory_space<vmem>>, vector<1x208x384xf32>,
    %c0_56 = arith.constant 0 : index
    %c0_57 = arith.constant 0 : index
    %c0_58 = arith.constant 0 : index
    %56 = vector.load %arg1[%c0_56, %c0_57, %c0_58] : memref<1x208x256xbf16, #tpu.memory_space<vmem>>, vector<1x208x256xbf16>
    %57 = vector.shape_cast %56 : vector<1x208x256xbf16> to vector<208x256xbf16>
    %c5 = arith.constant 5 : index
    %c0_59 = arith.constant 0 : index
    %c0_60 = arith.constant 0 : index
    %58 = vector.load %arg2[%c5, %c0_59, %c0_60] : memref<9x256x384xbf16, #tpu.memory_space<vmem>>, vector<1x256x384xbf16>
    %59 = vector.shape_cast %58 : vector<1x256x384xbf16> to vector<256x384xbf16>
    %cst_61 = arith.constant dense<0.000000e+00> : vector<208x384xf32>
    %60 = tpu.matmul %57, %59, %cst_61 {dimension_numbers = #tpu.dot_dimension_numbers<[1], [0], [0], [1], [0, 0, 1, 1], [], []>} : vector<208x256xbf16>, vector<256x384xbf16>, vector<208x384xf32> -> vector<208x384xf32>
    %c0_62 = arith.constant 0 : index
    %c0_63 = arith.constant 0 : index
    %c0_64 = arith.constant 0 : index
    %61 = vector.load %arg4[%c0_62, %c0_63, %c0_64] : memref<1x208x384xf32, #tpu.memory_space<vmem>>, vector<1x208x384xf32>
    %62 = vector.shape_cast %61 : vector<1x208x384xf32> to vector<208x384xf32>
    %c196_i32 = arith.constant 196 : i32
    %63 = tpu.dynamic_rotate %60 by %c196_i32 dim 0 : vector<208x384xf32>, i32 -> vector<208x384xf32>
    %64 = arith.addf %62, %63 : vector<208x384xf32>
    %c0_65 = arith.constant 0 : index
    %c0_66 = arith.constant 0 : index
    %c0_67 = arith.constant 0 : index
    %65 = vector.load %arg4[%c0_65, %c0_66, %c0_67] : memref<1x208x384xf32, #tpu.memory_space<vmem>>, vector<1x208x384xf32>
    %66 = vector.shape_cast %65 : vector<1x208x384xf32> to vector<208x384xf32>
    %67 = vector.shape_cast %64 : vector<208x384xf32> to vector<1x208x384xf32>
    tpu.vector_store %arg4[%c0_65, %c0_66, %c0_67], %67 {strides = array<i32>} : memref<1x208x384xf32, #tpu.memory_space<vmem>>, vector<1x208x384xf32>,
    %c0_68 = arith.constant 0 : index
    %c0_69 = arith.constant 0 : index
    %c0_70 = arith.constant 0 : index
    %68 = vector.load %arg1[%c0_68, %c0_69, %c0_70] : memref<1x208x256xbf16, #tpu.memory_space<vmem>>, vector<1x208x256xbf16>
    %69 = vector.shape_cast %68 : vector<1x208x256xbf16> to vector<208x256xbf16>
    %c6 = arith.constant 6 : index
    %c0_71 = arith.constant 0 : index
    %c0_72 = arith.constant 0 : index
    %70 = vector.load %arg2[%c6, %c0_71, %c0_72] : memref<9x256x384xbf16, #tpu.memory_space<vmem>>, vector<1x256x384xbf16>
    %71 = vector.shape_cast %70 : vector<1x256x384xbf16> to vector<256x384xbf16>
    %cst_73 = arith.constant dense<0.000000e+00> : vector<208x384xf32>
    %72 = tpu.matmul %69, %71, %cst_73 {dimension_numbers = #tpu.dot_dimension_numbers<[1], [0], [0], [1], [0, 0, 1, 1], [], []>} : vector<208x256xbf16>, vector<256x384xbf16>, vector<208x384xf32> -> vector<208x384xf32>
    %c0_74 = arith.constant 0 : index
    %c0_75 = arith.constant 0 : index
    %c0_76 = arith.constant 0 : index
    %73 = vector.load %arg4[%c0_74, %c0_75, %c0_76] : memref<1x208x384xf32, #tpu.memory_space<vmem>>, vector<1x208x384xf32>
    %74 = vector.shape_cast %73 : vector<1x208x384xf32> to vector<208x384xf32>
    %c188_i32 = arith.constant 188 : i32
    %75 = tpu.dynamic_rotate %72 by %c188_i32 dim 0 : vector<208x384xf32>, i32 -> vector<208x384xf32>
    %76 = arith.addf %74, %75 : vector<208x384xf32>
    %c0_77 = arith.constant 0 : index
    %c0_78 = arith.constant 0 : index
    %c0_79 = arith.constant 0 : index
    %77 = vector.load %arg4[%c0_77, %c0_78, %c0_79] : memref<1x208x384xf32, #tpu.memory_space<vmem>>, vector<1x208x384xf32>
    %78 = vector.shape_cast %77 : vector<1x208x384xf32> to vector<208x384xf32>
    %79 = vector.shape_cast %76 : vector<208x384xf32> to vector<1x208x384xf32>
    tpu.vector_store %arg4[%c0_77, %c0_78, %c0_79], %79 {strides = array<i32>} : memref<1x208x384xf32, #tpu.memory_space<vmem>>, vector<1x208x384xf32>,
    %c0_80 = arith.constant 0 : index
    %c0_81 = arith.constant 0 : index
    %c0_82 = arith.constant 0 : index
    %80 = vector.load %arg1[%c0_80, %c0_81, %c0_82] : memref<1x208x256xbf16, #tpu.memory_space<vmem>>, vector<1x208x256xbf16>
    %81 = vector.shape_cast %80 : vector<1x208x256xbf16> to vector<208x256xbf16>
    %c7 = arith.constant 7 : index
    %c0_83 = arith.constant 0 : index
    %c0_84 = arith.constant 0 : index
    %82 = vector.load %arg2[%c7, %c0_83, %c0_84] : memref<9x256x384xbf16, #tpu.memory_space<vmem>>, vector<1x256x384xbf16>
    %83 = vector.shape_cast %82 : vector<1x256x384xbf16> to vector<256x384xbf16>
    %cst_85 = arith.constant dense<0.000000e+00> : vector<208x384xf32>
    %84 = tpu.matmul %81, %83, %cst_85 {dimension_numbers = #tpu.dot_dimension_numbers<[1], [0], [0], [1], [0, 0, 1, 1], [], []>} : vector<208x256xbf16>, vector<256x384xbf16>, vector<208x384xf32> -> vector<208x384xf32>
    %c0_86 = arith.constant 0 : index
    %c0_87 = arith.constant 0 : index
    %c0_88 = arith.constant 0 : index
    %85 = vector.load %arg4[%c0_86, %c0_87, %c0_88] : memref<1x208x384xf32, #tpu.memory_space<vmem>>, vector<1x208x384xf32>
    %86 = vector.shape_cast %85 : vector<1x208x384xf32> to vector<208x384xf32>
    %c187_i32 = arith.constant 187 : i32
    %87 = tpu.dynamic_rotate %84 by %c187_i32 dim 0 : vector<208x384xf32>, i32 -> vector<208x384xf32>
    %88 = arith.addf %86, %87 : vector<208x384xf32>
    %c0_89 = arith.constant 0 : index
    %c0_90 = arith.constant 0 : index
    %c0_91 = arith.constant 0 : index
    %89 = vector.load %arg4[%c0_89, %c0_90, %c0_91] : memref<1x208x384xf32, #tpu.memory_space<vmem>>, vector<1x208x384xf32>
    %90 = vector.shape_cast %89 : vector<1x208x384xf32> to vector<208x384xf32>
    %91 = vector.shape_cast %88 : vector<208x384xf32> to vector<1x208x384xf32>
    tpu.vector_store %arg4[%c0_89, %c0_90, %c0_91], %91 {strides = array<i32>} : memref<1x208x384xf32, #tpu.memory_space<vmem>>, vector<1x208x384xf32>,
    %c0_92 = arith.constant 0 : index
    %c0_93 = arith.constant 0 : index
    %c0_94 = arith.constant 0 : index
    %92 = vector.load %arg1[%c0_92, %c0_93, %c0_94] : memref<1x208x256xbf16, #tpu.memory_space<vmem>>, vector<1x208x256xbf16>
    %93 = vector.shape_cast %92 : vector<1x208x256xbf16> to vector<208x256xbf16>
    %c8 = arith.constant 8 : index
    %c0_95 = arith.constant 0 : index
    %c0_96 = arith.constant 0 : index
    %94 = vector.load %arg2[%c8, %c0_95, %c0_96] : memref<9x256x384xbf16, #tpu.memory_space<vmem>>, vector<1x256x384xbf16>
    %95 = vector.shape_cast %94 : vector<1x256x384xbf16> to vector<256x384xbf16>
    %cst_97 = arith.constant dense<0.000000e+00> : vector<208x384xf32>
    %96 = tpu.matmul %93, %95, %cst_97 {dimension_numbers = #tpu.dot_dimension_numbers<[1], [0], [0], [1], [0, 0, 1, 1], [], []>} : vector<208x256xbf16>, vector<256x384xbf16>, vector<208x384xf32> -> vector<208x384xf32>
    %c0_98 = arith.constant 0 : index
    %c0_99 = arith.constant 0 : index
    %c0_100 = arith.constant 0 : index
    %97 = vector.load %arg4[%c0_98, %c0_99, %c0_100] : memref<1x208x384xf32, #tpu.memory_space<vmem>>, vector<1x208x384xf32>
    %98 = vector.shape_cast %97 : vector<1x208x384xf32> to vector<208x384xf32>
    %c186_i32 = arith.constant 186 : i32
    %99 = tpu.dynamic_rotate %96 by %c186_i32 dim 0 : vector<208x384xf32>, i32 -> vector<208x384xf32>
    %100 = arith.addf %98, %99 : vector<208x384xf32>
    %c0_101 = arith.constant 0 : index
    %c0_102 = arith.constant 0 : index
    %c0_103 = arith.constant 0 : index
    %101 = vector.load %arg4[%c0_101, %c0_102, %c0_103] : memref<1x208x384xf32, #tpu.memory_space<vmem>>, vector<1x208x384xf32>
    %102 = vector.shape_cast %101 : vector<1x208x384xf32> to vector<208x384xf32>
    %103 = vector.shape_cast %100 : vector<208x384xf32> to vector<1x208x384xf32>
    tpu.vector_store %arg4[%c0_101, %c0_102, %c0_103], %103 {strides = array<i32>} : memref<1x208x384xf32, #tpu.memory_space<vmem>>, vector<1x208x384xf32>,
    %c0_104 = arith.constant 0 : index
    %c0_105 = arith.constant 0 : index
    %c0_106 = arith.constant 0 : index
    %104 = vector.load %arg4[%c0_104, %c0_105, %c0_106] : memref<1x208x384xf32, #tpu.memory_space<vmem>>, vector<1x208x384xf32>
    %105 = vector.shape_cast %104 : vector<1x208x384xf32> to vector<208x384xf32>
    %c0_107 = arith.constant 0 : index
    %c0_108 = arith.constant 0 : index
    %106 = vector.load %arg3[%c0_107, %c0_108] : memref<1x384xf32, #tpu.memory_space<vmem>>, vector<1x384xf32>
    %107 = vector.broadcast %106 : vector<1x384xf32> to vector<208x384xf32>
    %108 = arith.addf %105, %107 : vector<208x384xf32>
    %cst_109 = arith.constant 0.699405491 : f32
    %cst_110 = arith.constant 0.920216322 : f32
    %109 = vector.broadcast %cst_109 : f32 to vector<208x384xf32>
    %110 = arith.maximumf %109, %108 : vector<208x384xf32>
    %111 = vector.broadcast %cst_110 : f32 to vector<208x384xf32>
    %112 = arith.minimumf %111, %110 : vector<208x384xf32>
    %c0_111 = arith.constant 0 : index
    %c0_112 = arith.constant 0 : index
    %c0_113 = arith.constant 0 : index
    %113 = vector.load %arg4[%c0_111, %c0_112, %c0_113] : memref<1x208x384xf32, #tpu.memory_space<vmem>>, vector<1x208x384xf32>
    %114 = vector.shape_cast %113 : vector<1x208x384xf32> to vector<208x384xf32>
    %115 = vector.shape_cast %112 : vector<208x384xf32> to vector<1x208x384xf32>
    tpu.vector_store %arg4[%c0_111, %c0_112, %c0_113], %115 {strides = array<i32>} : memref<1x208x384xf32, #tpu.memory_space<vmem>>, vector<1x208x384xf32>,
    return
  }
  func.func @transform_0(%arg0: i32) -> (i32, i32, i32) {
    %c0_i32 = arith.constant 0 : i32
    %c0_i32_0 = arith.constant 0 : i32
    %c0_i32_1 = arith.constant 0 : i32
    return %arg0, %c0_i32, %c0_i32_0 : i32, i32, i32
  }
  func.func @transform_1(%arg0: i32) -> (i32, i32, i32) {
    %c0_i32 = arith.constant 0 : i32
    %c0_i32_0 = arith.constant 0 : i32
    %c0_i32_1 = arith.constant 0 : i32
    %c0_i32_2 = arith.constant 0 : i32
    return %c0_i32, %c0_i32_0, %c0_i32_1 : i32, i32, i32
  }
  func.func @transform_2(%arg0: i32) -> (i32, i32) {
    %c0_i32 = arith.constant 0 : i32
    %c0_i32_0 = arith.constant 0 : i32
    %c0_i32_1 = arith.constant 0 : i32
    return %c0_i32, %c0_i32_0 : i32, i32
  }
  func.func @transform_3(%arg0: i32) -> (i32, i32, i32) {
    %c0_i32 = arith.constant 0 : i32
    %c0_i32_0 = arith.constant 0 : i32
    %c0_i32_1 = arith.constant 0 : i32
    return %arg0, %c0_i32, %c0_i32_0 : i32, i32, i32
  }
}

</mosaic_0001>

<bundles_post_ra>
// kernel: tpu_custom_call.1
= control target key start
LH: loop header
LB: loop body
LE: loop exit
PB: predicated region body
PF: predicated region fallthrough
CT: control target
= control target key end

     0   :  { %8 = vsyncpa [#allocation3], 0  ;;  %s15970_s0 = inlined_call_operand.hbm [shape: bf16[1,208,256], index: 0, kind: input, shape index: {}]   ;;  %s15971_s1 = inlined_call_operand.hbm [shape: bf16[9,256,384], index: 1, kind: input, shape index: {}]   ;;  %s15972_s2 = inlined_call_operand.hbm [shape: f32[1,384], index: 2, kind: input, shape index: {}]   ;;  %s15973_s3 = inlined_call_operand.hbm [shape: f32[1,208,384], index: 3, kind: output, shape index: {}]  }
   0x1   :  { %9 = vsyncpa [#allocation6], 0 }
   0x2   :  { %10 = vsyncpa [#allocation4], 0  ;;  %s13200_s12 = smov [#allocation5]  }
   0x3   :  { %s28_s13 = sshll.u32 %s13200_s12, 4  ;;  %s29_s13 = int_to_ptr.vmem [resolvable:$true] %s28_s13 }
   0x4   :  { %s13122_s14 = scalar_lea.vmem %s29_s13, 55296  ;;  %p13127_p1 = scmp.lt.s32.totalorder %s29_s13, %s29_s13 }
   0x5   :  { %p13123_p0 = scmp.ne.s32.totalorder %s29_s13, %s13122_s14  ;;  %p13128_p2 = scmp.lt.s32.totalorder %s13122_s14, %s13122_s14 }
   0x7   :  { %p13129_p3 = por %p13128_p2, %p13127_p1 }
   0x9   :  { %p13130_p4 = pnand %p13129_p3, %p13123_p0 }
   0xb   :  { %13133 = shalt.err (!%p13130_p4)
}
   0xc   :  { %s13201_s15 = smov 192   ;;  %s13202_s16 = smov 12  }
   0xd   :  { %34 = dma.hbm_to_vmem [thread:$0]  %s15971_s1, 55296, %s29_s13, [#allocation6], %s13201_s15, %s13201_s15, %s13202_s16  }
   0xe   :  { %s13203_s19 = smov [#allocation2]  }
   0xf   :  { %s16_s20 = sshll.u32 %s13203_s19, 4  ;;  %s17_s20 = int_to_ptr.vmem [resolvable:$true] %s16_s20 }
  0x10   :  { %s13142_s21 = scalar_lea.vmem %s17_s20, 3328  ;;  %p13147_p6 = scmp.lt.s32.totalorder %s17_s20, %s17_s20 }
  0x11   :  { %p13143_p5 = scmp.ne.s32.totalorder %s17_s20, %s13142_s21  ;;  %p13148_p7 = scmp.lt.s32.totalorder %s13142_s21, %s13142_s21 }
  0x13   :  { %p13149_p8 = por %p13148_p7, %p13147_p6 }
  0x15   :  { %p13150_p9 = pnand %p13149_p8, %p13143_p5 }
  0x17   :  { %13153 = shalt.err (!%p13150_p9)
}
  0x18   :  { %s13204_s22 = smov 128   ;;  %s13205_s23 = smov 8  }
  0x19   :  { %22 = dma.hbm_to_vmem [thread:$0]  %s15970_s0, 3328, %s17_s20, [#allocation3], %s13204_s22, %s13204_s22, %s13205_s23  }
  0x1a   :  { %s13206_s26 = smov [#allocation7]  }
  0x1b   :  { %s41_s27 = sshll.u32 %s13206_s26, 4  ;;  %s42_s27 = int_to_ptr.vmem [resolvable:$true] %s41_s27 }
  0x1c   :  { %s13162_s1 = scalar_lea.vmem %s42_s27, 48  ;;  %s13166_s28 = scalar_lea.vmem %s42_s27, 64 }
  0x1d   :  { %p13163_p10 = scmp.ne.s32.totalorder %s42_s27, %s13162_s1  ;;  %p13167_p11 = scmp.lt.s32.totalorder %s42_s27, %s42_s27 }
  0x1e   :  { %p13168_p12 = scmp.lt.s32.totalorder %s13166_s28, %s13162_s1 }
  0x20   :  { %p13169_p13 = por %p13168_p12, %p13167_p11 }
  0x22   :  { %p13170_p0 = pnand %p13169_p13, %p13163_p10 }
  0x24   :  { %13173 = shalt.err (!%p13170_p0)
}
  0x25   :  { %44 = dma.hbm_to_vmem [thread:$0]  %s15972_s2, 48, %s42_s27, [#allocation6]  }
  0x26   :  { %13194 = dma.done.wait [#allocation3], 3328  }
  0x27   :  { %13195 = vsyncadd [#allocation3], 4294963968 }
  0x28   :  { %13196 = dma.done.wait [#allocation6], 55344  }
  0x29   :  { %13197 = vsyncadd [#allocation6], 4294911952  ;;  %v12216_v0 = vld [vmem:[#allocation5 + $0xac] ss:$12 sps:$4 sm:$0xff]   ;;  %v12218_v1 = vld [vmem:[#allocation5 + $0x170] ss:$12 sps:$4 sm:$0xff]  }
  0x2a   :  { %531 = vmatprep.subr.bf16.mxu0 %v12216_v0  ;;  %v12219_v2 = vld [vmem:[#allocation5 + $0xa8] ss:$12 sps:$4 sm:$0xff]   ;;  %11344 = vmatprep.subr.bf16.mxu1 %v12218_v1  ;;  %v12220_v3 = vld [vmem:[#allocation5 + $0xb0] ss:$12 sps:$4 sm:$0xff]   ;;  %v12223_v5 = vld [vmem:[#allocation5 + $0x158] ss:$12 sps:$4 sm:$0xff]  }
  0x2b   :  { %532 = vmatpush1.bf16.msra.mxu0 %v12219_v2  ;;  %v12221_v4 = vld [vmem:[#allocation5 + $0x94] ss:$12 sps:$4 sm:$0xff]   ;;  %11345 = vmatpush3.bf16.msra.mxu1 %v12220_v3  ;;  %v12224_v6 = vld [vmem:[#allocation5 + $0x90] ss:$12 sps:$4 sm:$0xff]   ;;  %v12225_v7 = vld [vmem:[#allocation5 + $0x98] ss:$12 sps:$4 sm:$0xff]  }
  0x2c   :  { %533 = vmatprep.subr.bf16.mxu0 %v12221_v4  ;;  %11346 = vmatprep.subr.bf16.mxu1 %v12223_v5  ;;  %v12226_v8 = vld [vmem:[#allocation5 + $0x7c] ss:$12 sps:$4 sm:$0xff]   ;;  %v12228_v9 = vld [vmem:[#allocation5 + $0x140] ss:$12 sps:$4 sm:$0xff]   ;;  %v12229_v10 = vld [vmem:[#allocation5 + $0x78] ss:$12 sps:$4 sm:$0xff]  }
  0x2d   :  { %v12230_v11 = vld [vmem:[#allocation5 + $0x80] ss:$12 sps:$4 sm:$0xff]   ;;  %v12231_v12 = vld [vmem:[#allocation5 + $0x64] ss:$12 sps:$4 sm:$0xff]   ;;  %v12233_v13 = vld [vmem:[#allocation5 + $0x128] ss:$12 sps:$4 sm:$0xff]  }
  0x2e   :  { %v12234_v14 = vld [vmem:[#allocation5 + $0x60] ss:$12 sps:$4 sm:$0xff]   ;;  %v12235_v15 = vld [vmem:[#allocation5 + $0x68] ss:$12 sps:$4 sm:$0xff]   ;;  %v12238_v17 = vld [vmem:[#allocation5 + $0x110] ss:$12 sps:$4 sm:$0xff]  }
  0x2f   :  { %534 = vmatpush1.bf16.msra.mxu0 %v12224_v6  ;;  %11347 = vmatpush3.bf16.msra.mxu1 %v12225_v7  ;;  %v12236_v16 = vld [vmem:[#allocation5 + $0x4c] ss:$12 sps:$4 sm:$0xff]   ;;  %v12239_v18 = vld [vmem:[#allocation5 + $0x48] ss:$12 sps:$4 sm:$0xff]   ;;  %v12240_v19 = vld [vmem:[#allocation5 + $0x50] ss:$12 sps:$4 sm:$0xff]  }
  0x30   :  { %535 = vmatprep.subr.bf16.mxu0 %v12226_v8  ;;  %11348 = vmatprep.subr.bf16.mxu1 %v12228_v9  ;;  %v12241_v20 = vld [vmem:[#allocation5 + $0x34] ss:$12 sps:$4 sm:$0xff]   ;;  %v12243_v21 = vld [vmem:[#allocation5 + $0xf8] ss:$12 sps:$4 sm:$0xff]   ;;  %v12244_v22 = vld [vmem:[#allocation5 + $0x30] ss:$12 sps:$4 sm:$0xff]  }
  0x31   :  { %v12245_v23 = vld [vmem:[#allocation5 + $0x38] ss:$12 sps:$4 sm:$0xff]   ;;  %v12246_v24 = vld [vmem:[#allocation5 + $0x1c] ss:$12 sps:$4 sm:$0xff]   ;;  %v12248_v25 = vld [vmem:[#allocation5 + $0xe0] ss:$12 sps:$4 sm:$0xff]  }
  0x32   :  { %v12249_v26 = vld [vmem:[#allocation5 + $0x18] ss:$12 sps:$4 sm:$0xff]   ;;  %v12250_v27 = vld [vmem:[#allocation5 + $0x20] ss:$12 sps:$4 sm:$0xff]   ;;  %v12253_v29 = vld [vmem:[#allocation5 + $0xc8] ss:$12 sps:$4 sm:$0xff]  }
  0x33   :  { %536 = vmatpush1.bf16.msra.mxu0 %v12229_v10  ;;  %11349 = vmatpush3.bf16.msra.mxu1 %v12230_v11  ;;  %v12251_v28 = vld [vmem:[#allocation5 + $0x4] ss:$12 sps:$4 sm:$0xff]   ;;  %v12254_v30 = vld [vmem:[#allocation5] ss:$12 sps:$4 sm:$0xff]   ;;  %v13239_v31 = vld [vmem:[#allocation2 + $0x4] ss:$8 sps:$4 sm:$0xff]  }
  0x34   :  { %537 = vmatprep.subr.bf16.mxu0 %v12231_v12  ;;  %11350 = vmatprep.subr.bf16.mxu1 %v12233_v13  ;;  %v12255_v32 = vld [vmem:[#allocation5 + $0x8] ss:$12 sps:$4 sm:$0xff]   ;;  %v12259_v33 = vld [vmem:[#allocation5 + $0x16c] ss:$12 sps:$4 sm:$0xff]   ;;  %v12267_v41 = vld [vmem:[#allocation5 + $0x150] ss:$12 sps:$4 sm:$0xff]  }
  0x35   :  { %v13241_v34 = vld [vmem:[#allocation2] ss:$8 sps:$4 sm:$0xff]   ;;  %726 = vmatprep.mubr.bf16.mxu1 %v13239_v31  ;;  %v12261_v36 = vld [vmem:[#allocation5 + $0x228] ss:$12 sps:$4 sm:$0xff]   ;;  %563 = vmatprep.mubr.bf16.mxu0 %v13239_v31  ;;  %v13245_v39 = vld [vmem:[#allocation2 + $0x14] ss:$8 sps:$4 sm:$0xff]  }
  0x36   :  { %v12263_v35 = vld [vmem:[#allocation5 + $0x22c] ss:$12 sps:$4 sm:$0xff]   ;;  %v12264_v37 = vld [vmem:[#allocation5 + $0x168] ss:$12 sps:$4 sm:$0xff]   ;;  %v12270_v42 = vld [vmem:[#allocation5 + $0x210] ss:$12 sps:$4 sm:$0xff]  }
  0x37   :  { %538 = vmatpush1.bf16.msra.mxu0 %v12234_v14  ;;  %11351 = vmatpush3.bf16.msra.mxu1 %v12235_v15  ;;  %v12265_v38 = vld [vmem:[#allocation5 + $0x154] ss:$12 sps:$4 sm:$0xff]   ;;  %v12273_v43 = vld [vmem:[#allocation5 + $0x13c] ss:$12 sps:$4 sm:$0xff]   ;;  %v12276_v46 = vld [vmem:[#allocation5 + $0x138] ss:$12 sps:$4 sm:$0xff]  }
  0x38   :  { %539 = vmatprep.subr.bf16.mxu0 %v12236_v16  ;;  %11352 = vmatprep.subr.bf16.mxu1 %v12238_v17  ;;  %v12272_v40 = vld [vmem:[#allocation5 + $0x214] ss:$12 sps:$4 sm:$0xff]   ;;  %v12282_v44 = vld [vmem:[#allocation5 + $0x1fc] ss:$12 sps:$4 sm:$0xff]   ;;  %v12277_v47 = vld [vmem:[#allocation5 + $0x124] ss:$12 sps:$4 sm:$0xff]  }
  0x39   :  { %v13249_v45 = vld [vmem:[#allocation2 + $0x10] ss:$8 sps:$4 sm:$0xff]   ;;  %v12280_v48 = vld [vmem:[#allocation5 + $0x1f8] ss:$12 sps:$4 sm:$0xff]   ;;  %v13251_v49 = vld [vmem:[#allocation2 + $0x24] ss:$8 sps:$4 sm:$0xff]  }
  0x3a   :  { %v12279_v50 = vld [vmem:[#allocation5 + $0x120] ss:$12 sps:$4 sm:$0xff]   ;;  %v12293_v51 = vld [vmem:[#allocation5 + $0x1e4] ss:$12 sps:$4 sm:$0xff]   ;;  %v12288_v55 = vld [vmem:[#allocation5 + $0x108] ss:$12 sps:$4 sm:$0xff]  }
  0x3b   :  { %540 = vmatpush1.bf16.msra.mxu0 %v12239_v18  ;;  %11353 = vmatpush3.bf16.msra.mxu1 %v12240_v19  ;;  %v12285_v52 = vld [vmem:[#allocation5 + $0x10c] ss:$12 sps:$4 sm:$0xff]   ;;  %v12289_v57 = vld [vmem:[#allocation5 + $0xf4] ss:$12 sps:$4 sm:$0xff]   ;;  %v12294_v60 = vld [vmem:[#allocation5 + $0xf0] ss:$12 sps:$4 sm:$0xff]  }
  0x3c   :  { %541 = vmatprep.subr.bf16.mxu0 %v12241_v20  ;;  %11354 = vmatprep.subr.bf16.mxu1 %v12243_v21  ;;  %v12291_v53 = vld [vmem:[#allocation5 + $0x1e0] ss:$12 sps:$4 sm:$0xff]   ;;  %v13255_v54 = vld [vmem:[#allocation2 + $0x20] ss:$8 sps:$4 sm:$0xff]   ;;  %v12301_v59 = vld [vmem:[#allocation5 + $0x1c8] ss:$12 sps:$4 sm:$0xff]  }
  0x3d   :  { %v12303_v56 = vld [vmem:[#allocation5 + $0x1cc] ss:$12 sps:$4 sm:$0xff]   ;;  %v12313_v61 = vld [vmem:[#allocation5 + $0x1b4] ss:$12 sps:$4 sm:$0xff]   ;;  %v12297_v62 = vld [vmem:[#allocation5 + $0xdc] ss:$12 sps:$4 sm:$0xff]  }
  0x3e   :  { %v13257_v58 = vld [vmem:[#allocation2 + $0x34] ss:$8 sps:$4 sm:$0xff]   ;;  %v13261_v63 = vld [vmem:[#allocation2 + $0x30] ss:$8 sps:$4 sm:$0xff]   ;;  %v12311_v0 = vld [vmem:[#allocation5 + $0x1b0] ss:$12 sps:$4 sm:$0xff]  }
  0x3f   :  { %542 = vmatpush1.bf16.msra.mxu0 %v12244_v22  ;;  %11355 = vmatpush3.bf16.msra.mxu1 %v12245_v23  ;;  %v12300_v1 = vld [vmem:[#allocation5 + $0xd8] ss:$12 sps:$4 sm:$0xff]   ;;  %v12319_v3 = vld [vmem:[#allocation5 + $0x19c] ss:$12 sps:$4 sm:$0xff]   ;;  %v12306_v7 = vld [vmem:[#allocation5 + $0xc0] ss:$12 sps:$4 sm:$0xff]  }
  0x40   :  { %543 = vmatprep.subr.bf16.mxu0 %v12246_v24  ;;  %11356 = vmatprep.subr.bf16.mxu1 %v12248_v25  ;;  %v12304_v2 = vld [vmem:[#allocation5 + $0xc4] ss:$12 sps:$4 sm:$0xff]   ;;  %v13263_v4 = vld [vmem:[#allocation2 + $0x44] ss:$8 sps:$4 sm:$0xff]   ;;  %v12322_v10 = vld [vmem:[#allocation5 + $0x180] ss:$12 sps:$4 sm:$0xff]  }
  0x41   :  { %v12317_v5 = vld [vmem:[#allocation5 + $0x198] ss:$12 sps:$4 sm:$0xff]   ;;  %v12310_v8 = vld [vmem:[#allocation5 + $0x2f0] ss:$12 sps:$4 sm:$0xff]   ;;  %v12329_v15 = vld [vmem:[#allocation5 + $0x2e8] ss:$12 sps:$4 sm:$0xff]  }
  0x42   :  { %v12324_v6 = vld [vmem:[#allocation5 + $0x184] ss:$12 sps:$4 sm:$0xff]   ;;  %v12331_v12 = vld [vmem:[#allocation5 + $0x2ec] ss:$12 sps:$4 sm:$0xff]   ;;  %v12338_v16 = vld [vmem:[#allocation5 + $0x2d4] ss:$12 sps:$4 sm:$0xff]  }
  0x43   :  { %544 = vmatpush1.bf16.msra.mxu0 %v12249_v26  ;;  %11357 = vmatpush3.bf16.msra.mxu1 %v12250_v27  ;;  %v13267_v9 = vld [vmem:[#allocation2 + $0x40] ss:$8 sps:$4 sm:$0xff]   ;;  %v13269_v13 = vld [vmem:[#allocation2 + $0x54] ss:$8 sps:$4 sm:$0xff]   ;;  %v13275_v19 = vld [vmem:[#allocation2 + $0x50] ss:$8 sps:$4 sm:$0xff]  }
  0x44   :  { %545 = vmatprep.subr.bf16.mxu0 %v12251_v28  ;;  %11358 = vmatprep.subr.bf16.mxu1 %v12253_v29  ;;  %v12314_v11 = vld [vmem:[#allocation5 + $0x230] ss:$12 sps:$4 sm:$0xff]   ;;  %v12321_v14 = vld [vmem:[#allocation5 + $0x2d8] ss:$12 sps:$4 sm:$0xff]   ;;  %v12335_v18 = vld [vmem:[#allocation5 + $0x2c0] ss:$12 sps:$4 sm:$0xff]  }
  0x45   :  { %v12325_v17 = vld [vmem:[#allocation5 + $0x218] ss:$12 sps:$4 sm:$0xff]   ;;  %v12336_v20 = vld [vmem:[#allocation5 + $0x2d0] ss:$12 sps:$4 sm:$0xff]   ;;  %v12339_v23 = vld [vmem:[#allocation5 + $0x200] ss:$12 sps:$4 sm:$0xff]  }
  0x46   :  { %v12345_v21 = vld [vmem:[#allocation5 + $0x2bc] ss:$12 sps:$4 sm:$0xff]   ;;  %v12343_v24 = vld [vmem:[#allocation5 + $0x2b8] ss:$12 sps:$4 sm:$0xff]   ;;  %v12350_v27 = vld [vmem:[#allocation5 + $0x2a0] ss:$12 sps:$4 sm:$0xff]  }
  0x47   :  { %546 = vmatpush1.bf16.msra.mxu0 %v12254_v30  ;;  %11359 = vmatpush3.bf16.msra.mxu1 %v12255_v32  ;;  %v13277_v22 = vld [vmem:[#allocation2 + $0x64] ss:$8 sps:$4 sm:$0xff]   ;;  %v12352_v26 = vld [vmem:[#allocation5 + $0x2a4] ss:$12 sps:$4 sm:$0xff]   ;;  %v12356_v30 = vld [vmem:[#allocation5 + $0x28c] ss:$12 sps:$4 sm:$0xff]  }
  0x48   :  { %547 = vmatprep.subr.bf16.mxu0 %v12259_v33  ;;  %1386 = vmatprep.subr.bf16.mxu1 %v12263_v35  ;;  %v12348_v25 = vld [vmem:[#allocation5 + $0x2a8] ss:$12 sps:$4 sm:$0xff]   ;;  %v12360_v29 = vld [vmem:[#allocation5 + $0x290] ss:$12 sps:$4 sm:$0xff]   ;;  %v13285_v33 = vld [vmem:[#allocation2 + $0x74] ss:$8 sps:$4 sm:$0xff]  }
  0x49   :  { %v12353_v28 = vld [vmem:[#allocation5 + $0x1e8] ss:$12 sps:$4 sm:$0xff]   ;;  %v13283_v32 = vld [vmem:[#allocation2 + $0x60] ss:$8 sps:$4 sm:$0xff]   ;;  %s13207_s0 = smov [#allocation8]  }
  0x4a   :  { %727 = vmatmul.mubr.bf16.vlgmr.msra.gmra.mxu1 %v13241_v34  ;;  %v12364_v35 = vld [vmem:[#allocation5 + $0x1d0] ss:$12 sps:$4 sm:$0xff]   ;;  %s10665_s2 = sshll.u32 %s13207_s0, 4  ;;  %s10666_s2 = int_to_ptr.vmem [resolvable:$true] %s10665_s2 }
  0x4b   :  { %548 = vmatpush2.bf16.msra.mxu0 %v12264_v37  ;;  %1387 = vmatpush1.bf16.msra.mxu1 %v12261_v36  ;;  %v12354_v36 = vld [vmem:[#allocation5 + $0x288] ss:$12 sps:$4 sm:$0xff]   ;;  %s13174_s4 = scalar_lea.vmem %s10666_s2, 9984  ;;  %p13179_p2 = scmp.lt.s32.totalorder %s10666_s2, %s10666_s2 }
  0x4c   :  { %549 = vmatprep.subr.bf16.mxu0 %v12265_v38  ;;  %734 = vmatprep.mubr.bf16.mxu1 %v13245_v39  ;;  %v12363_v37 = vld [vmem:[#allocation5 + $0x274] ss:$12 sps:$4 sm:$0xff]   ;;  %v12374_v38 = vld [vmem:[#allocation5 + $0x278] ss:$12 sps:$4 sm:$0xff]   ;;  %p13175_p1 = scmp.ne.s32.totalorder %s10666_s2, %s13174_s4  ;;  %p13180_p3 = scmp.lt.s32.totalorder %s13174_s4, %s13174_s4 }
  0x4d   :  { %1388 = vmatprep.subr.bf16.mxu1 %v12272_v40  ;;  %v13291_v40 = vld [vmem:[#allocation2 + $0x70] ss:$8 sps:$4 sm:$0xff]  }
  0x4e   :  { %p13181_p4 = por %p13180_p3, %p13179_p2 }
  0x4f   :  { %550 = vmatpush2.bf16.msra.mxu0 %v12267_v41  ;;  %1389 = vmatpush1.bf16.msra.mxu1 %v12270_v42  ;;  %v12361_v41 = vld [vmem:[#allocation5 + $0x270] ss:$12 sps:$4 sm:$0xff]  }
  0x50   :  { %551 = vmatprep.subr.bf16.mxu0 %v12273_v43  ;;  %1390 = vmatprep.subr.bf16.mxu1 %v12282_v44  ;;  %v12370_v42 = vld [vmem:[#allocation5 + $0x25c] ss:$12 sps:$4 sm:$0xff]   ;;  %v12378_v44 = vld [vmem:[#allocation5 + $0x1b8] ss:$12 sps:$4 sm:$0xff]   ;;  %p13182_p5 = pnand %p13181_p4, %p13175_p1 }
  0x51   :  { %v13293_v43 = vld [vmem:[#allocation2 + $0x84] ss:$8 sps:$4 sm:$0xff]  }
  0x52   :  { %735 = vmatmul.mubr.bf16.gmra.mxu1 %v13249_v45 }
  0x53   :  { %552 = vmatpush2.bf16.msra.mxu0 %v12276_v46  ;;  %1391 = vmatpush1.bf16.msra.mxu1 %v12280_v48  ;;  %v12368_v46 = vld [vmem:[#allocation5 + $0x258] ss:$12 sps:$4 sm:$0xff]   ;;  %v12382_v48 = vld [vmem:[#allocation5 + $0x260] ss:$12 sps:$4 sm:$0xff]  }
  0x54   :  { %553 = vmatprep.subr.bf16.mxu0 %v12277_v47  ;;  %742 = vmatprep.mubr.bf16.mxu1 %v13251_v49  ;;  %v12377_v47 = vld [vmem:[#allocation5 + $0x244] ss:$12 sps:$4 sm:$0xff]  }
  0x55   :  { %1392 = vmatprep.subr.bf16.mxu1 %v12293_v51  ;;  %v12375_v51 = vld [vmem:[#allocation5 + $0x240] ss:$12 sps:$4 sm:$0xff]  }
  0x57   :  { %554 = vmatpush2.bf16.msra.mxu0 %v12279_v50  ;;  %1393 = vmatpush1.bf16.msra.mxu1 %v12291_v53  ;;  %v12383_v50 = vld [vmem:[#allocation5 + $0x1a0] ss:$12 sps:$4 sm:$0xff]   ;;  %v12390_v53 = vld [vmem:[#allocation5 + $0x248] ss:$12 sps:$4 sm:$0xff]  }
  0x58   :  { %555 = vmatprep.subr.bf16.mxu0 %v12285_v52  ;;  %1394 = vmatprep.subr.bf16.mxu1 %v12303_v56  ;;  %v12381_v52 = vld [vmem:[#allocation5 + $0x3ac] ss:$12 sps:$4 sm:$0xff]  }
  0x59   :  { %v13299_v56 = vld [vmem:[#allocation2 + $0x80] ss:$8 sps:$4 sm:$0xff]  }
  0x5a   :  { %743 = vmatmul.mubr.bf16.gmra.mxu1 %v13255_v54 }
  0x5b   :  { %556 = vmatpush2.bf16.msra.mxu0 %v12288_v55  ;;  %750 = vmatprep.mubr.bf16.mxu1 %v13257_v58  ;;  %v12391_v55 = vld [vmem:[#allocation5 + $0x188] ss:$12 sps:$4 sm:$0xff]  }
  0x5c   :  { %557 = vmatprep.subr.bf16.mxu0 %v12289_v57  ;;  %1395 = vmatpush1.bf16.msra.mxu1 %v12301_v59  ;;  %v13301_v57 = vld [vmem:[#allocation2 + $0x94] ss:$8 sps:$4 sm:$0xff]   ;;  %v12398_v59 = vld [vmem:[#allocation5 + $0x470] ss:$12 sps:$4 sm:$0xff]  }
  0x5d   :  { %1396 = vmatprep.subr.bf16.mxu1 %v12313_v61  ;;  %v13309_v61 = vld [vmem:[#allocation2 + $0xa4] ss:$8 sps:$4 sm:$0xff]  }
  0x5f   :  { %558 = vmatpush2.bf16.msra.mxu0 %v12294_v60  ;;  %v13307_v60 = vld [vmem:[#allocation2 + $0x90] ss:$8 sps:$4 sm:$0xff]  }
  0x60   :  { %559 = vmatprep.subr.bf16.mxu0 %v12297_v62  ;;  %1397 = vmatpush1.bf16.msra.mxu1 %v12311_v0  ;;  %v13315_v62 = vld [vmem:[#allocation2 + $0xa0] ss:$8 sps:$4 sm:$0xff]   ;;  %v13317_v0 = vld [vmem:[#allocation2 + $0xb4] ss:$8 sps:$4 sm:$0xff]  }
  0x61   :  { %1398 = vmatprep.subr.bf16.mxu1 %v12319_v3  ;;  %v13331_v3 = vld [vmem:[#allocation2 + $0xc0] ss:$8 sps:$4 sm:$0xff]  }
  0x62   :  { %751 = vmatmul.mubr.bf16.gmra.mxu1 %v13261_v63 }
  0x63   :  { %560 = vmatpush2.bf16.msra.mxu0 %v12300_v1  ;;  %758 = vmatprep.mubr.bf16.mxu1 %v13263_v4  ;;  %v13323_v1 = vld [vmem:[#allocation2 + $0xb0] ss:$8 sps:$4 sm:$0xff]  }
  0x64   :  { %561 = vmatprep.subr.bf16.mxu0 %v12304_v2  ;;  %1399 = vmatpush1.bf16.msra.mxu1 %v12317_v5  ;;  %v13325_v2 = vld [vmem:[#allocation2 + $0xc4] ss:$8 sps:$4 sm:$0xff]  }
  0x65   :  { %1400 = vmatprep.subr.bf16.mxu1 %v12324_v6  ;;  %v12379_v5 = vld [vmem:[#allocation5 + $0x3a8] ss:$12 sps:$4 sm:$0xff]  }
  0x66   :  { %v12386_v6 = vld [vmem:[#allocation5 + $0x394] ss:$12 sps:$4 sm:$0xff]  }
  0x67   :  { %562 = vmatpush2.bf16.msra.mxu0 %v12306_v7  ;;  %v12384_v7 = vld [vmem:[#allocation5 + $0x390] ss:$12 sps:$4 sm:$0xff]  }
  0x68   :  { %11438 = vmatprep.subr.bf16.mxu0 %v12310_v8  ;;  %1401 = vmatpush1.bf16.msra.mxu1 %v12322_v10  ;;  %v12389_v8 = vld [vmem:[#allocation5 + $0x37c] ss:$12 sps:$4 sm:$0xff]   ;;  %v12387_v10 = vld [vmem:[#allocation5 + $0x378] ss:$12 sps:$4 sm:$0xff]  }
  0x69   :  { %1402 = vmatprep.subr.bf16.mxu1 %v12331_v12  ;;  %v12392_v12 = vld [vmem:[#allocation5 + $0x360] ss:$12 sps:$4 sm:$0xff]  }
  0x6a   :  { %564 = vmatmul.mubr.bf16.vlgmr.msra.gmra.mxu0 %v13241_v34  ;;  %759 = vmatmul.mubr.bf16.gmra.mxu1 %v13267_v9 }
  0x6b   :  { %11439 = vmatpush3.bf16.msra.mxu0 %v12314_v11  ;;  %573 = vmatprep.mubr.bf16.mxu0 %v13245_v39  ;;  %v12394_v11 = vld [vmem:[#allocation5 + $0x364] ss:$12 sps:$4 sm:$0xff]  }
  0x6c   :  { %766 = vmatprep.mubr.bf16.mxu1 %v13269_v13  ;;  %11440 = vmatprep.subr.bf16.mxu0 %v12321_v14  ;;  %v12397_v14 = vld [vmem:[#allocation5 + $0x34c] ss:$12 sps:$4 sm:$0xff]  }
  0x6d   :  { %1403 = vmatpush2.bf16.msra.mxu1 %v12329_v15  ;;  %v12395_v15 = vld [vmem:[#allocation5 + $0x348] ss:$12 sps:$4 sm:$0xff]  }
  0x6e   :  { %1404 = vmatprep.subr.bf16.mxu1 %v12338_v16  ;;  %v12401_v16 = vld [vmem:[#allocation5 + $0x334] ss:$12 sps:$4 sm:$0xff]  }
  0x6f   :  { %11441 = vmatpush3.bf16.msra.mxu0 %v12325_v17  ;;  %v12399_v17 = vld [vmem:[#allocation5 + $0x330] ss:$12 sps:$4 sm:$0xff]  }
  0x70   :  { %11442 = vmatprep.subr.bf16.mxu0 %v12335_v18  ;;  %v12405_v18 = vld [vmem:[#allocation5 + $0x31c] ss:$12 sps:$4 sm:$0xff]  }
  0x71   :  { %1405 = vmatpush2.bf16.msra.mxu1 %v12336_v20  ;;  %v12403_v20 = vld [vmem:[#allocation5 + $0x318] ss:$12 sps:$4 sm:$0xff]  }
  0x72   :  { %574 = vmatmul.mubr.bf16.gmra.mxu0 %v13249_v45  ;;  %1406 = vmatprep.subr.bf16.mxu1 %v12345_v21  ;;  %v12409_v21 = vld [vmem:[#allocation5 + $0x304] ss:$12 sps:$4 sm:$0xff]  }
  0x73   :  { %767 = vmatmul.mubr.bf16.gmra.mxu1 %v13275_v19  ;;  %583 = vmatprep.mubr.bf16.mxu0 %v13251_v49 }
  0x74   :  { %774 = vmatprep.mubr.bf16.mxu1 %v13277_v22  ;;  %11443 = vmatpush3.bf16.msra.mxu0 %v12339_v23  ;;  %v12413_v23 = vld [vmem:[#allocation5 + $0x46c] ss:$12 sps:$4 sm:$0xff]  }
  0x75   :  { %1407 = vmatpush2.bf16.msra.mxu1 %v12343_v24  ;;  %11444 = vmatprep.subr.bf16.mxu0 %v12348_v25  ;;  %v12406_v24 = vld [vmem:[#allocation5 + $0x458] ss:$12 sps:$4 sm:$0xff]   ;;  %v12411_v25 = vld [vmem:[#allocation5 + $0x468] ss:$12 sps:$4 sm:$0xff]  }
  0x76   :  { %1408 = vmatprep.subr.bf16.mxu1 %v12352_v26  ;;  %v12410_v26 = vld [vmem:[#allocation5 + $0x398] ss:$12 sps:$4 sm:$0xff]  }
  0x78   :  { %11445 = vmatpush3.bf16.msra.mxu0 %v12353_v28  ;;  %v12414_v28 = vld [vmem:[#allocation5 + $0x440] ss:$12 sps:$4 sm:$0xff]  }
  0x79   :  { %1409 = vmatpush2.bf16.msra.mxu1 %v12350_v27  ;;  %11446 = vmatprep.subr.bf16.mxu0 %v12360_v29  ;;  %v12417_v27 = vld [vmem:[#allocation5 + $0x454] ss:$12 sps:$4 sm:$0xff]   ;;  %v12419_v29 = vld [vmem:[#allocation5 + $0x438] ss:$12 sps:$4 sm:$0xff]  }
  0x7a   :  { %584 = vmatmul.mubr.bf16.gmra.mxu0 %v13255_v54  ;;  %1410 = vmatprep.subr.bf16.mxu1 %v12356_v30  ;;  %v12422_v30 = vld [vmem:[#allocation5 + $0x428] ss:$12 sps:$4 sm:$0xff]  }
  0x7b   :  { %775 = vmatmul.mubr.bf16.gmra.mxu1 %v13283_v32  ;;  %593 = vmatprep.mubr.bf16.mxu0 %v13257_v58 }
  0x7c   :  { %782 = vmatprep.mubr.bf16.mxu1 %v13285_v33  ;;  %11447 = vmatpush3.bf16.msra.mxu0 %v12364_v35  ;;  %v12430_v35 = vld [vmem:[#allocation5 + $0x410] ss:$12 sps:$4 sm:$0xff]  }
  0x7d   :  { %1411 = vmatpush2.bf16.msra.mxu1 %v12354_v36  ;;  %11448 = vmatprep.subr.bf16.mxu0 %v12374_v38  ;;  %v12427_v36 = vld [vmem:[#allocation5 + $0x408] ss:$12 sps:$4 sm:$0xff]   ;;  %v12434_v38 = vld [vmem:[#allocation5 + $0x350] ss:$12 sps:$4 sm:$0xff]  }
  0x7e   :  { %1412 = vmatprep.subr.bf16.mxu1 %v12363_v37  ;;  %v12433_v37 = vld [vmem:[#allocation5 + $0x3f4] ss:$12 sps:$4 sm:$0xff]  }
  0x80   :  { %11449 = vmatpush3.bf16.msra.mxu0 %v12378_v44  ;;  %v12442_v44 = vld [vmem:[#allocation5 + $0x338] ss:$12 sps:$4 sm:$0xff]  }
  0x81   :  { %1413 = vmatpush2.bf16.msra.mxu1 %v12361_v41  ;;  %11450 = vmatprep.subr.bf16.mxu0 %v12382_v48  ;;  %v13098_v41 = vld [vmem:[#allocation2 + $0x20] ss:$8 sps:$4 sm:$0xff]  }
  0x82   :  { %594 = vmatmul.mubr.bf16.gmra.mxu0 %v13261_v63  ;;  %1414 = vmatprep.subr.bf16.mxu1 %v12370_v42  ;;  %v12437_v42 = vld [vmem:[#allocation5 + $0x3dc] ss:$12 sps:$4 sm:$0xff]   ;;  %v12441_v48 = vld [vmem:[#allocation5 + $0x3c4] ss:$12 sps:$4 sm:$0xff]  }
  0x83   :  { %783 = vmatmul.mubr.bf16.gmra.mxu1 %v13291_v40  ;;  %603 = vmatprep.mubr.bf16.mxu0 %v13263_v4 }
  0x84   :  { %790 = vmatprep.mubr.bf16.mxu1 %v13293_v43  ;;  %11451 = vmatpush3.bf16.msra.mxu0 %v12383_v50  ;;  %v12452_v50 = vld [vmem:[#allocation5 + $0x320] ss:$12 sps:$4 sm:$0xff]  }
  0x85   :  { %1415 = vmatpush2.bf16.msra.mxu1 %v12368_v46  ;;  %11452 = vmatprep.subr.bf16.mxu0 %v12390_v53  ;;  %v12449_v46 = vld [vmem:[#allocation5 + $0x3e0] ss:$12 sps:$4 sm:$0xff]   ;;  %v13101_v53 = vld [vmem:[#allocation2 + $0x44] ss:$8 sps:$4 sm:$0xff]  }
  0x86   :  { %1416 = vmatprep.subr.bf16.mxu1 %v12377_v47  ;;  %v12435_v47 = vld [vmem:[#allocation5 + $0x3d8] ss:$12 sps:$4 sm:$0xff]  }
  0x88   :  { %11453 = vmatpush3.bf16.msra.mxu0 %v12391_v55  ;;  %v12439_v55 = vld [vmem:[#allocation5 + $0x3c0] ss:$12 sps:$4 sm:$0xff]  }
  0x89   :  { %1417 = vmatpush2.bf16.msra.mxu1 %v12375_v51  ;;  %11532 = vmatprep.subr.bf16.mxu0 %v12398_v59  ;;  %v12463_v51 = vld [vmem:[#allocation5 + $0x3c8] ss:$12 sps:$4 sm:$0xff]   ;;  %v12448_v59 = vld [vmem:[#allocation5 + $0x52c] ss:$12 sps:$4 sm:$0xff]  }
  0x8a   :  { %604 = vmatmul.mubr.bf16.gmra.mxu0 %v13267_v9  ;;  %2556 = vmatprep.subr.bf16.mxu1 %v12381_v52  ;;  %v13100_v52 = vld [vmem:[#allocation2 + $0x30] ss:$8 sps:$4 sm:$0xff]  }
  0x8b   :  { %791 = vmatmul.mubr.bf16.gmra.mxu1 %v13299_v56  ;;  %613 = vmatprep.mubr.bf16.mxu0 %v13269_v13 }
  0x8c   :  { %798 = vmatprep.mubr.bf16.mxu1 %v13301_v57 }
  0x92   :  { %614 = vmatmul.mubr.bf16.gmra.mxu0 %v13275_v19 }
  0x93   :  { %799 = vmatmul.mubr.bf16.gmra.mxu1 %v13307_v60  ;;  %623 = vmatprep.mubr.bf16.mxu0 %v13277_v22 }
  0x94   :  { %806 = vmatprep.mubr.bf16.mxu1 %v13309_v61 }
  0x9a   :  { %624 = vmatmul.mubr.bf16.gmra.mxu0 %v13283_v32 }
  0x9b   :  { %807 = vmatmul.mubr.bf16.gmra.mxu1 %v13315_v62  ;;  %633 = vmatprep.mubr.bf16.mxu0 %v13285_v33 }
  0x9c   :  { %814 = vmatprep.mubr.bf16.mxu1 %v13317_v0 }
  0xa2   :  { %634 = vmatmul.mubr.bf16.gmra.mxu0 %v13291_v40 }
  0xa3   :  { %815 = vmatmul.mubr.bf16.gmra.mxu1 %v13323_v1  ;;  %643 = vmatprep.mubr.bf16.mxu0 %v13293_v43 }
  0xa4   :  { %822 = vmatprep.mubr.bf16.mxu1 %v13325_v2 }
  0xaa   :  { %644 = vmatmul.mubr.bf16.gmra.mxu0 %v13299_v56 }
  0xab   :  { %823 = vmatmul.mubr.bf16.gmra.mxu1 %v13331_v3  ;;  %653 = vmatprep.mubr.bf16.mxu0 %v13301_v57 }
  0xac   :  { %1418 = vmatprep.mubr.bf16.mxu1 %v13239_v31 }
  0xb2   :  { %654 = vmatmul.mubr.bf16.gmra.mxu0 %v13307_v60 }
  0xb3   :  { %1419 = vmatmul.mubr.bf16.vlgmr.msra.gmra.mxu1 %v13241_v34  ;;  %663 = vmatprep.mubr.bf16.mxu0 %v13309_v61 }
  0xb4   :  { %2557 = vmatpush1.bf16.msra.mxu1 %v12379_v5  ;;  %1428 = vmatprep.mubr.bf16.mxu1 %v13245_v39  ;;  %v12464_v5 = vld [vmem:[#allocation5 + $0x308] ss:$12 sps:$4 sm:$0xff]  }
  0xb5   :  { %2558 = vmatprep.subr.bf16.mxu1 %v12386_v6  ;;  %v12477_v6 = vld [vmem:[#allocation5 + $0x5f0] ss:$12 sps:$4 sm:$0xff]  }
  0xb8   :  { %2559 = vmatpush1.bf16.msra.mxu1 %v12384_v7  ;;  %v13102_v7 = vld [vmem:[#allocation2 + $0x40] ss:$8 sps:$4 sm:$0xff]  }
  0xb9   :  { %2560 = vmatprep.subr.bf16.mxu1 %v12389_v8  ;;  %v13103_v8 = vld [vmem:[#allocation2 + $0x54] ss:$8 sps:$4 sm:$0xff]  }
  0xba   :  { %664 = vmatmul.mubr.bf16.gmra.mxu0 %v13315_v62 }
  0xbb   :  { %1429 = vmatmul.mubr.bf16.gmra.mxu1 %v13249_v45  ;;  %673 = vmatprep.mubr.bf16.mxu0 %v13317_v0 }
  0xbc   :  { %2561 = vmatpush1.bf16.msra.mxu1 %v12387_v10  ;;  %1438 = vmatprep.mubr.bf16.mxu1 %v13251_v49  ;;  %v13104_v10 = vld [vmem:[#allocation2 + $0x50] ss:$8 sps:$4 sm:$0xff]  }
  0xbd   :  { %2562 = vmatprep.subr.bf16.mxu1 %v12394_v11 }
  0xc0   :  { %2563 = vmatpush1.bf16.msra.mxu1 %v12392_v12 }
  0xc1   :  { %2564 = vmatprep.subr.bf16.mxu1 %v12397_v14 }
  0xc2   :  { %674 = vmatmul.mubr.bf16.gmra.mxu0 %v13323_v1 }
  0xc3   :  { %1439 = vmatmul.mubr.bf16.gmra.mxu1 %v13255_v54  ;;  %683 = vmatprep.mubr.bf16.mxu0 %v13325_v2  ;;  %v12407_v54 = vld [vmem:[#allocation5 + $0x300] ss:$12 sps:$4 sm:$0xff]  }
  0xc4   :  { %1448 = vmatprep.mubr.bf16.mxu1 %v13257_v58  ;;  %2565 = vmatpush1.bf16.msra.mxu1 %v12395_v15  ;;  %v12402_v58 = vld [vmem:[#allocation5 + $0x3b0] ss:$12 sps:$4 sm:$0xff]  }
  0xc5   :  { %2566 = vmatprep.subr.bf16.mxu1 %v12401_v16 }
  0xc8   :  { %2567 = vmatpush1.bf16.msra.mxu1 %v12399_v17  ;;  %v13386_v17 = vld [vmem:[#allocation2 + $0x14] ss:$8 sps:$4 sm:$0xff]  }
  0xc9   :  { %2568 = vmatprep.subr.bf16.mxu1 %v12405_v18 }
  0xca   :  { %684 = vmatmul.mubr.bf16.gmra.mxu0 %v13331_v3 }
  0xcb   :  { %1449 = vmatmul.mubr.bf16.gmra.mxu1 %v13261_v63  ;;  %1581 = vmatprep.mubr.bf16.mxu0 %v13239_v31  ;;  %v12415_v31 = vld [vmem:[#allocation5 + $0x450] ss:$12 sps:$4 sm:$0xff]  }
  0xcc   :  { %1458 = vmatprep.mubr.bf16.mxu1 %v13263_v4  ;;  %2569 = vmatpush1.bf16.msra.mxu1 %v12403_v20  ;;  %v12421_v63 = vld [vmem:[#allocation5 + $0x43c] ss:$12 sps:$4 sm:$0xff]   ;;  %v12418_v4 = vld [vmem:[#allocation5 + $0x380] ss:$12 sps:$4 sm:$0xff]  }
  0xcd   :  { %2570 = vmatprep.subr.bf16.mxu1 %v12409_v21  ;;  %v12455_v20 = vld [vmem:[#allocation5 + $0x514] ss:$12 sps:$4 sm:$0xff]  }
  0xd0   :  { %2571 = vmatpush1.bf16.msra.mxu1 %v12407_v54  ;;  %v13392_v54 = vld [vmem:[#allocation2 + $0x10] ss:$8 sps:$4 sm:$0xff]  }
  0xd1   :  { %2572 = vmatprep.subr.bf16.mxu1 %v12413_v23  ;;  %v12459_v23 = vld [vmem:[#allocation5 + $0x4fc] ss:$12 sps:$4 sm:$0xff]  }
  0xd2   :  { %1582 = vmatmul.mubr.bf16.vlgmr.msra.gmra.mxu0 %v13241_v34  ;;  %v12425_v34 = vld [vmem:[#allocation5 + $0x424] ss:$12 sps:$4 sm:$0xff]  }
  0xd3   :  { %1459 = vmatmul.mubr.bf16.gmra.mxu1 %v13267_v9  ;;  %11533 = vmatpush3.bf16.msra.mxu0 %v12402_v58  ;;  %v12426_v9 = vld [vmem:[#allocation5 + $0x368] ss:$12 sps:$4 sm:$0xff]  }
  0xd4   :  { %1468 = vmatprep.mubr.bf16.mxu1 %v13269_v13  ;;  %1589 = vmatprep.mubr.bf16.mxu0 %v13245_v39  ;;  %v12423_v39 = vld [vmem:[#allocation5 + $0x420] ss:$12 sps:$4 sm:$0xff]  }
  0xd5   :  { %11534 = vmatprep.subr.bf16.mxu0 %v12406_v24  ;;  %2573 = vmatpush2.bf16.msra.mxu1 %v12411_v25  ;;  %v12429_v13 = vld [vmem:[#allocation5 + $0x40c] ss:$12 sps:$4 sm:$0xff]  }
  0xd6   :  { %2574 = vmatprep.subr.bf16.mxu1 %v12417_v27  ;;  %v12457_v25 = vld [vmem:[#allocation5 + $0x4f8] ss:$12 sps:$4 sm:$0xff]  }
  0xd7   :  { %11535 = vmatpush3.bf16.msra.mxu0 %v12410_v26 }
  0xd8   :  { %11536 = vmatprep.subr.bf16.mxu0 %v12414_v28 }
  0xd9   :  { %2575 = vmatpush2.bf16.msra.mxu1 %v12415_v31  ;;  %v13105_v31 = vld [vmem:[#allocation2 + $0xb4] ss:$8 sps:$4 sm:$0xff]  }
  0xda   :  { %1590 = vmatmul.mubr.bf16.gmra.mxu0 %v13249_v45  ;;  %2576 = vmatprep.subr.bf16.mxu1 %v12421_v63  ;;  %v12438_v45 = vld [vmem:[#allocation5 + $0x3f8] ss:$12 sps:$4 sm:$0xff]   ;;  %v12465_v63 = vld [vmem:[#allocation5 + $0x4e0] ss:$12 sps:$4 sm:$0xff]  }
  0xdb   :  { %1469 = vmatmul.mubr.bf16.gmra.mxu1 %v13275_v19  ;;  %1597 = vmatprep.mubr.bf16.mxu0 %v13251_v49  ;;  %v13099_v49 = vld [vmem:[#allocation2 + $0x34] ss:$8 sps:$4 sm:$0xff]   ;;  %v12431_v19 = vld [vmem:[#allocation5 + $0x3f0] ss:$12 sps:$4 sm:$0xff]  }
  0xdc   :  { %1478 = vmatprep.mubr.bf16.mxu1 %v13277_v22  ;;  %11537 = vmatpush3.bf16.msra.mxu0 %v12418_v4  ;;  %v12473_v4 = vld [vmem:[#allocation5 + $0x4cc] ss:$12 sps:$4 sm:$0xff]  }
  0xdd   :  { %2577 = vmatpush2.bf16.msra.mxu1 %v12419_v29  ;;  %11538 = vmatprep.subr.bf16.mxu0 %v12422_v30  ;;  %v13399_v30 = vld [vmem:[#allocation2 + $0x20] ss:$8 sps:$4 sm:$0xff]  }
  0xde   :  { %2578 = vmatprep.subr.bf16.mxu1 %v12425_v34 }
  0xe0   :  { %11539 = vmatpush3.bf16.msra.mxu0 %v12426_v9 }
  0xe1   :  { %2579 = vmatpush2.bf16.msra.mxu1 %v12423_v39  ;;  %11540 = vmatprep.subr.bf16.mxu0 %v12430_v35  ;;  %v13401_v39 = vld [vmem:[#allocation2 + $0x34] ss:$8 sps:$4 sm:$0xff]   ;;  %v12480_v35 = vld [vmem:[#allocation5 + $0x4b4] ss:$12 sps:$4 sm:$0xff]  }
  0xe2   :  { %1598 = vmatmul.mubr.bf16.gmra.mxu0 %v13098_v41  ;;  %2580 = vmatprep.subr.bf16.mxu1 %v12429_v13 }
  0xe3   :  { %1479 = vmatmul.mubr.bf16.gmra.mxu1 %v13283_v32  ;;  %1605 = vmatprep.mubr.bf16.mxu0 %v13099_v49  ;;  %v13107_v49 = vld [vmem:[#allocation2 + $0xc4] ss:$8 sps:$4 sm:$0xff]  }
  0xe4   :  { %1488 = vmatprep.mubr.bf16.mxu1 %v13285_v33  ;;  %11541 = vmatpush3.bf16.msra.mxu0 %v12434_v38  ;;  %v13106_v38 = vld [vmem:[#allocation2 + $0xb0] ss:$8 sps:$4 sm:$0xff]  }
  0xe5   :  { %2581 = vmatpush2.bf16.msra.mxu1 %v12427_v36  ;;  %11542 = vmatprep.subr.bf16.mxu0 %v12438_v45  ;;  %v12478_v45 = vld [vmem:[#allocation5 + $0x4b0] ss:$12 sps:$4 sm:$0xff]  }
  0xe6   :  { %2582 = vmatprep.subr.bf16.mxu1 %v12433_v37 }
  0xe8   :  { %11543 = vmatpush3.bf16.msra.mxu0 %v12442_v44 }
  0xe9   :  { %2583 = vmatpush2.bf16.msra.mxu1 %v12431_v19  ;;  %11544 = vmatprep.subr.bf16.mxu0 %v12449_v46  ;;  %v12487_v19 = vld [vmem:[#allocation5 + $0x49c] ss:$12 sps:$4 sm:$0xff]  }
  0xea   :  { %1606 = vmatmul.mubr.bf16.gmra.mxu0 %v13100_v52  ;;  %2584 = vmatprep.subr.bf16.mxu1 %v12437_v42  ;;  %v13415_v52 = vld [vmem:[#allocation2 + $0x44] ss:$8 sps:$4 sm:$0xff]  }
  0xeb   :  { %1489 = vmatmul.mubr.bf16.gmra.mxu1 %v13291_v40  ;;  %1613 = vmatprep.mubr.bf16.mxu0 %v13101_v53  ;;  %v12485_v53 = vld [vmem:[#allocation5 + $0x498] ss:$12 sps:$4 sm:$0xff]  }
  0xec   :  { %1498 = vmatprep.mubr.bf16.mxu1 %v13293_v43  ;;  %11545 = vmatpush3.bf16.msra.mxu0 %v12452_v50  ;;  %v13411_v50 = vld [vmem:[#allocation2 + $0x30] ss:$8 sps:$4 sm:$0xff]  }
  0xed   :  { %2585 = vmatpush2.bf16.msra.mxu1 %v12435_v47  ;;  %11546 = vmatprep.subr.bf16.mxu0 %v12463_v51 }
  0xee   :  { %2586 = vmatprep.subr.bf16.mxu1 %v12441_v48 }
  0xf0   :  { %11547 = vmatpush3.bf16.msra.mxu0 %v12464_v5 }
  0xf1   :  { %2587 = vmatpush2.bf16.msra.mxu1 %v12439_v55  ;;  %11626 = vmatprep.subr.bf16.mxu0 %v12477_v6 }
  0xf2   :  { %1614 = vmatmul.mubr.bf16.gmra.mxu0 %v13102_v7  ;;  %3724 = vmatprep.subr.bf16.mxu1 %v12448_v59  ;;  %v12491_v59 = vld [vmem:[#allocation5 + $0x484] ss:$12 sps:$4 sm:$0xff]  }
  0xf3   :  { %1499 = vmatmul.mubr.bf16.gmra.mxu1 %v13299_v56  ;;  %1621 = vmatprep.mubr.bf16.mxu0 %v13103_v8  ;;  %v13108_v7 = vld [vmem:[#allocation2 + $0xc0] ss:$8 sps:$4 sm:$0xff]  }
  0xf4   :  { %1508 = vmatprep.mubr.bf16.mxu1 %v13301_v57 }
  0xfa   :  { %1622 = vmatmul.mubr.bf16.gmra.mxu0 %v13104_v10  ;;  %v12489_v10 = vld [vmem:[#allocation5 + $0x480] ss:$12 sps:$4 sm:$0xff]  }
  0xfb   :  { %1509 = vmatmul.mubr.bf16.gmra.mxu1 %v13307_v60  ;;  %1629 = vmatprep.mubr.bf16.mxu0 %v13277_v22 }
  0xfc   :  { %1518 = vmatprep.mubr.bf16.mxu1 %v13309_v61 }
 0x102   :  { %1630 = vmatmul.mubr.bf16.gmra.mxu0 %v13283_v32  ;;  %v13378_v32 = vld [vmem:[#allocation2 + $0x4] ss:$8 sps:$4 sm:$0xff]  }
 0x103   :  { %1519 = vmatmul.mubr.bf16.gmra.mxu1 %v13315_v62  ;;  %1637 = vmatprep.mubr.bf16.mxu0 %v13285_v33 }
 0x104   :  { %1528 = vmatprep.mubr.bf16.mxu1 %v13317_v0 }
 0x10a   :  { %1638 = vmatmul.mubr.bf16.gmra.mxu0 %v13291_v40  ;;  %v11360_v11 = vpop.f32.mrf.mxu1 }
 0x10b   :  { %1529 = vmatmul.mubr.bf16.gmra.mxu1 %v13323_v1  ;;  %1645 = vmatprep.mubr.bf16.mxu0 %v13293_v43  ;;  %v13384_v43 = vld [vmem:[#allocation2] ss:$8 sps:$4 sm:$0xff]  }
 0x10c   :  { %1538 = vmatprep.mubr.bf16.mxu1 %v13325_v2  ;;  %v11361_v22 = vpop.f32.mrf.mxu1  ;;  %v12446_v2 = vld [vmem:[#allocation5 + $0x528] ss:$12 sps:$4 sm:$0xff]  }
 0x10d   :  { %v11362_v12 = vadd.f32 %v11361_v22, %v11360_v11 }
 0x10e   :  { %v11363_v14 = vpop.f32.mrf.mxu1 }
 0x10f   :  { %833 = vst [vmem:[#allocation8 + $0x10] sm:$0xff] %v11362_v12  ;;  %v13424_v12 = vld [vmem:[#allocation2 + $0x40] ss:$8 sps:$4 sm:$0xff]  }
 0x110   :  { %v11364_v15 = vpop.f32.mrf.mxu1 }
 0x111   :  { %v11365_v16 = vadd.f32 %v11364_v15, %v11363_v14  ;;  %v12498_v14 = vld [vmem:[#allocation5 + $0x5ec] ss:$12 sps:$4 sm:$0xff]  }
 0x112   :  { %1646 = vmatmul.mubr.bf16.gmra.mxu0 %v13299_v56  ;;  %v11366_v33 = vpop.f32.mrf.mxu1 }
 0x113   :  { %1539 = vmatmul.mubr.bf16.gmra.mxu1 %v13331_v3  ;;  %1653 = vmatprep.mubr.bf16.mxu0 %v13301_v57  ;;  %836 = vst [vmem:[#allocation8 + $0x28] sm:$0xff] %v11365_v16  ;;  %v12453_v57 = vld [vmem:[#allocation5 + $0x510] ss:$12 sps:$4 sm:$0xff]  }
 0x114   :  { %2588 = vmatprep.mubr.bf16.mxu1 %v13378_v32  ;;  %v11367_v40 = vpop.f32.mrf.mxu1 }
 0x115   :  { %v11368_v0 = vadd.f32 %v11367_v40, %v11366_v33  ;;  %v12481_v40 = vld [vmem:[#allocation5 + $0x530] ss:$12 sps:$4 sm:$0xff]  }
 0x116   :  { %v11369_v1 = vpop.f32.mrf.mxu1 }
 0x117   :  { %839 = vst [vmem:[#allocation8 + $0x40] sm:$0xff] %v11368_v0 }
 0x118   :  { %v11370_v18 = vpop.f32.mrf.mxu1 }
 0x119   :  { %v11371_v56 = vadd.f32 %v11370_v18, %v11369_v1  ;;  %v12488_v1 = vld [vmem:[#allocation5 + $0x5d8] ss:$12 sps:$4 sm:$0xff]  }
 0x11a   :  { %1654 = vmatmul.mubr.bf16.gmra.mxu0 %v13307_v60  ;;  %v11372_v3 = vpop.f32.mrf.mxu1  ;;  %v13394_v60 = vld [vmem:[#allocation2 + $0x24] ss:$8 sps:$4 sm:$0xff]   ;;  %v12492_v18 = vld [vmem:[#allocation5 + $0x518] ss:$12 sps:$4 sm:$0xff]  }
 0x11b   :  { %2589 = vmatmul.mubr.bf16.vlgmr.msra.gmra.mxu1 %v13384_v43  ;;  %1661 = vmatprep.mubr.bf16.mxu0 %v13309_v61  ;;  %842 = vst [vmem:[#allocation8 + $0x58] sm:$0xff] %v11371_v56  ;;  %v12467_v61 = vld [vmem:[#allocation5 + $0x4e4] ss:$12 sps:$4 sm:$0xff]   ;;  %v12505_v56 = vld [vmem:[#allocation5 + $0x5d4] ss:$12 sps:$4 sm:$0xff]  }
 0x11c   :  { %3725 = vmatpush1.bf16.msra.mxu1 %v12446_v2  ;;  %2598 = vmatprep.mubr.bf16.mxu1 %v13386_v17  ;;  %v11373_v21 = vpop.f32.mrf.mxu1 }
 0x11d   :  { %3726 = vmatprep.subr.bf16.mxu1 %v12455_v20  ;;  %v11374_v58 = vadd.f32 %v11373_v21, %v11372_v3  ;;  %v12496_v20 = vld [vmem:[#allocation5 + $0x5e8] ss:$12 sps:$4 sm:$0xff]  }
 0x11e   :  { %v11375_v24 = vpop.f32.mrf.mxu1 }
 0x11f   :  { %845 = vst [vmem:[#allocation8 + $0x70] sm:$0xff] %v11374_v58 }
 0x120   :  { %3727 = vmatpush1.bf16.msra.mxu1 %v12453_v57  ;;  %v11376_v26 = vpop.f32.mrf.mxu1 }
 0x121   :  { %3728 = vmatprep.subr.bf16.mxu1 %v12459_v23  ;;  %v11377_v27 = vadd.f32 %v11376_v26, %v11375_v24  ;;  %v12502_v23 = vld [vmem:[#allocation5 + $0x5c0] ss:$12 sps:$4 sm:$0xff]   ;;  %v12503_v26 = vld [vmem:[#allocation5 + $0x5d0] ss:$12 sps:$4 sm:$0xff]  }
 0x122   :  { %1662 = vmatmul.mubr.bf16.gmra.mxu0 %v13315_v62  ;;  %v11378_v28 = vpop.f32.mrf.mxu1  ;;  %v12471_v62 = vld [vmem:[#allocation5 + $0x4c8] ss:$12 sps:$4 sm:$0xff]  }
 0x123   :  { %2599 = vmatmul.mubr.bf16.gmra.mxu1 %v13392_v54  ;;  %1669 = vmatprep.mubr.bf16.mxu0 %v13105_v31  ;;  %848 = vst [vmem:[#allocation8 + $0x88] sm:$0xff] %v11377_v27  ;;  %v12506_v31 = vld [vmem:[#allocation5 + $0x500] ss:$12 sps:$4 sm:$0xff]  }
 0x124   :  { %3729 = vmatpush1.bf16.msra.mxu1 %v12457_v25  ;;  %2608 = vmatprep.mubr.bf16.mxu1 %v13394_v60  ;;  %v11379_v29 = vpop.f32.mrf.mxu1  ;;  %v13440_v25 = vld [vmem:[#allocation2 + $0x50] ss:$8 sps:$4 sm:$0xff]  }
 0x125   :  { %3730 = vmatprep.subr.bf16.mxu1 %v12467_v61  ;;  %v11380_v34 = vadd.f32 %v11379_v29, %v11378_v28  ;;  %v12512_v61 = vld [vmem:[#allocation5 + $0x5bc] ss:$12 sps:$4 sm:$0xff]  }
 0x126   :  { %v11381_v9 = vpop.f32.mrf.mxu1  ;;  %v13444_v28 = vld [vmem:[#allocation2 + $0x64] ss:$8 sps:$4 sm:$0xff]  }
 0x127   :  { %851 = vst [vmem:[#allocation8 + $0xa0] sm:$0xff] %v11380_v34 }
 0x128   :  { %3731 = vmatpush1.bf16.msra.mxu1 %v12465_v63  ;;  %v11382_v13 = vpop.f32.mrf.mxu1 }
 0x129   :  { %3732 = vmatprep.subr.bf16.mxu1 %v12473_v4  ;;  %v11383_v36 = vadd.f32 %v11382_v13, %v11381_v9  ;;  %v12510_v4 = vld [vmem:[#allocation5 + $0x5b8] ss:$12 sps:$4 sm:$0xff]  }
 0x12a   :  { %v13403_v37 = vpop.f32.mrf.mxu0  ;;  %1670 = vmatmul.mubr.bf16.gmra.mxu0 %v13106_v38  ;;  %v11384_v41 = vpop.f32.mrf.mxu1  ;;  %v12519_v9 = vld [vmem:[#allocation5 + $0x5a4] ss:$12 sps:$4 sm:$0xff]   ;;  %v12517_v38 = vld [vmem:[#allocation5 + $0x5a0] ss:$12 sps:$4 sm:$0xff]  }
 0x12b   :  { %2609 = vmatmul.mubr.bf16.gmra.mxu1 %v13399_v30  ;;  %1677 = vmatprep.mubr.bf16.mxu0 %v13107_v49  ;;  %854 = vst [vmem:[#allocation8 + $0xb8] sm:$0xff] %v11383_v36 }
 0x12c   :  { %v13406_v42 = vpop.f32.mrf.mxu0  ;;  %2618 = vmatprep.mubr.bf16.mxu1 %v13401_v39  ;;  %3733 = vmatpush1.bf16.msra.mxu1 %v12471_v62  ;;  %v11385_v44 = vpop.f32.mrf.mxu1 }
 0x12d   :  { %3734 = vmatprep.subr.bf16.mxu1 %v12480_v35  ;;  %v11386_v46 = vadd.f32 %v11385_v44, %v11384_v41  ;;  %v12523_v41 = vld [vmem:[#allocation5 + $0x58c] ss:$12 sps:$4 sm:$0xff]  }
 0x12e   :  { %v13409_v47 = vpop.f32.mrf.mxu0  ;;  %v11387_v48 = vpop.f32.mrf.mxu1 }
 0x12f   :  { %857 = vst [vmem:[#allocation8 + $0xd0] sm:$0xff] %v11386_v46 }
 0x130   :  { %v13413_v51 = vpop.f32.mrf.mxu0  ;;  %3735 = vmatpush1.bf16.msra.mxu1 %v12478_v45  ;;  %v11388_v55 = vpop.f32.mrf.mxu1  ;;  %v12520_v45 = vld [vmem:[#allocation5 + $0x4e8] ss:$12 sps:$4 sm:$0xff]  }
 0x131   :  { %3736 = vmatprep.subr.bf16.mxu1 %v12487_v19  ;;  %v11389_v5 = vadd.f32 %v11388_v55, %v11387_v48  ;;  %v13456_v19 = vld [vmem:[#allocation2 + $0x60] ss:$8 sps:$4 sm:$0xff]   ;;  %v13460_v48 = vld [vmem:[#allocation2 + $0x74] ss:$8 sps:$4 sm:$0xff]  }
 0x132   :  { %v13417_v6 = vpop.f32.mrf.mxu0  ;;  %1678 = vmatmul.mubr.bf16.gmra.mxu0 %v13108_v7  ;;  %v12531_v55 = vld [vmem:[#allocation5 + $0x4d0] ss:$12 sps:$4 sm:$0xff]   ;;  %v12530_v7 = vld [vmem:[#allocation5 + $0x574] ss:$12 sps:$4 sm:$0xff]  }
 0x133   :  { %v11390_v8 = vpop.f32.mrf.mxu1  ;;  %2619 = vmatmul.mubr.bf16.gmra.mxu1 %v13411_v50  ;;  %2751 = vmatprep.mubr.bf16.mxu0 %v13378_v32  ;;  %860 = vst [vmem:[#allocation8 + $0xe8] sm:$0xff] %v11389_v5  ;;  %v13430_v32 = vld [vmem:[#allocation2 + $0x54] ss:$8 sps:$4 sm:$0xff]   ;;  %v12521_v5 = vld [vmem:[#allocation5 + $0x588] ss:$12 sps:$4 sm:$0xff]  }
 0x134   :  { %v13421_v11 = vpop.f32.mrf.mxu0  ;;  %2628 = vmatprep.mubr.bf16.mxu1 %v13415_v52  ;;  %3737 = vmatpush1.bf16.msra.mxu1 %v12485_v53 }
 0x135   :  { %v11391_v22 = vpop.f32.mrf.mxu1  ;;  %3738 = vmatprep.subr.bf16.mxu1 %v12491_v59 }
 0x136   :  { %v11392_v15 = vadd.f32 %v11391_v22, %v11390_v8  ;;  %v13426_v16 = vpop.f32.mrf.mxu0  ;;  %v12541_v8 = vld [vmem:[#allocation5 + $0x578] ss:$12 sps:$4 sm:$0xff]  }
 0x137   :  { %v11393_v33 = vpop.f32.mrf.mxu1 }
 0x138   :  { %863 = vst [vmem:[#allocation8 + $0x100] sm:$0xff] %v11392_v15  ;;  %v13428_v0 = vpop.f32.mrf.mxu0  ;;  %3739 = vmatpush1.bf16.msra.mxu1 %v12489_v10 }
 0x139   :  { %v11394_v2 = vpop.f32.mrf.mxu1  ;;  %3740 = vmatprep.subr.bf16.mxu1 %v12498_v14  ;;  %v12545_v14 = vld [vmem:[#allocation5 + $0x4b8] ss:$12 sps:$4 sm:$0xff]  }
 0x13a   :  { %v11395_v3 = vadd.f32 %v11394_v2, %v11393_v33  ;;  %v13432_v57 = vpop.f32.mrf.mxu0  ;;  %2752 = vmatmul.mubr.bf16.vlgmr.msra.gmra.mxu0 %v13384_v43  ;;  %v12528_v33 = vld [vmem:[#allocation5 + $0x570] ss:$12 sps:$4 sm:$0xff]  }
 0x13b   :  { %v11396_v21 = vpop.f32.mrf.mxu1  ;;  %2629 = vmatmul.mubr.bf16.gmra.mxu1 %v13424_v12  ;;  %11627 = vmatpush3.bf16.msra.mxu0 %v12481_v40  ;;  %v12549_v40 = vld [vmem:[#allocation5 + $0x560] ss:$12 sps:$4 sm:$0xff]   ;;  %v12537_v2 = vld [vmem:[#allocation5 + $0x55c] ss:$12 sps:$4 sm:$0xff]  }
 0x13c   :  { %866 = vst [vmem:[#allocation8 + $0x118] sm:$0xff] %v11395_v3  ;;  %v13436_v58 = vpop.f32.mrf.mxu0  ;;  %2638 = vmatprep.mubr.bf16.mxu1 %v13430_v32  ;;  %2759 = vmatprep.mubr.bf16.mxu0 %v13386_v17  ;;  %v12516_v17 = vld [vmem:[#allocation5 + $0x5a8] ss:$12 sps:$4 sm:$0xff]  }
 0x13d   :  { %v11397_v24 = vpop.f32.mrf.mxu1  ;;  %11628 = vmatprep.subr.bf16.mxu0 %v12488_v1  ;;  %3741 = vmatpush2.bf16.msra.mxu1 %v12496_v20  ;;  %v13474_v3 = vld [vmem:[#allocation2 + $0x70] ss:$8 sps:$4 sm:$0xff]  }
 0x13e   :  { %v11398_v43 = vadd.f32 %v11397_v24, %v11396_v21  ;;  %v13442_v27 = vpop.f32.mrf.mxu0  ;;  %3742 = vmatprep.subr.bf16.mxu1 %v12505_v56  ;;  %v13478_v21 = vld [vmem:[#allocation2 + $0x84] ss:$8 sps:$4 sm:$0xff]  }
 0x13f   :  { %v11399_v63 = vpop.f32.mrf.mxu1  ;;  %11629 = vmatpush3.bf16.msra.mxu0 %v12492_v18 }
 0x140   :  { %869 = vst [vmem:[#allocation8 + $0x130] sm:$0xff] %v11398_v43  ;;  %v13446_v29 = vpop.f32.mrf.mxu0  ;;  %11630 = vmatprep.subr.bf16.mxu0 %v12502_v23  ;;  %v12550_v23 = vld [vmem:[#allocation5 + $0x4a0] ss:$12 sps:$4 sm:$0xff]   ;;  %v12560_v43 = vld [vmem:[#allocation5 + $0x548] ss:$12 sps:$4 sm:$0xff]  }
 0x141   :  { %v11400_v34 = vpop.f32.mrf.mxu1  ;;  %3743 = vmatpush2.bf16.msra.mxu1 %v12503_v26  ;;  %v12535_v26 = vld [vmem:[#allocation5 + $0x558] ss:$12 sps:$4 sm:$0xff]  }
 0x142   :  { %v11401_v62 = vadd.f32 %v11400_v34, %v11399_v63  ;;  %v13448_v13 = vpop.f32.mrf.mxu0  ;;  %2760 = vmatmul.mubr.bf16.gmra.mxu0 %v13392_v54  ;;  %3744 = vmatprep.subr.bf16.mxu1 %v12512_v61  ;;  %v12527_v54 = vld [vmem:[#allocation5 + $0x590] ss:$12 sps:$4 sm:$0xff]   ;;  %v12542_v34 = vld [vmem:[#allocation5 + $0x540] ss:$12 sps:$4 sm:$0xff]  }
 0x143   :  { %v11402_v35 = vpop.f32.mrf.mxu1  ;;  %2639 = vmatmul.mubr.bf16.gmra.mxu1 %v13440_v25  ;;  %2767 = vmatprep.mubr.bf16.mxu0 %v13394_v60  ;;  %v12544_v61 = vld [vmem:[#allocation5 + $0x544] ss:$12 sps:$4 sm:$0xff]  }
 0x144   :  { %872 = vst [vmem:[#allocation8 + $0x148] sm:$0xff] %v11401_v62  ;;  %v13453_v36 = vpop.f32.mrf.mxu0  ;;  %2648 = vmatprep.mubr.bf16.mxu1 %v13444_v28  ;;  %11631 = vmatpush3.bf16.msra.mxu0 %v12506_v31 }
 0x145   :  { %v11403_v49 = vpop.f32.mrf.mxu1  ;;  %3745 = vmatpush2.bf16.msra.mxu1 %v12510_v4  ;;  %11632 = vmatprep.subr.bf16.mxu0 %v12516_v17  ;;  %v12561_v4 = vld [vmem:[#allocation5 + $0x488] ss:$12 sps:$4 sm:$0xff]  }
 0x146   :  { %v11404_v44 = vadd.f32 %v11403_v49, %v11402_v35  ;;  %v13458_v46 = vpop.f32.mrf.mxu0  ;;  %3746 = vmatprep.subr.bf16.mxu1 %v12519_v9  ;;  %v12574_v9 = vld [vmem:[#allocation5 + $0x770] ss:$12 sps:$4 sm:$0xff]   ;;  %v12548_v35 = vld [vmem:[#allocation5 + $0x6ac] ss:$12 sps:$4 sm:$0xff]  }
 0x147   :  { %v11405_v60 = vpop.f32.mrf.mxu1  ;;  %v13490_v49 = vld [vmem:[#allocation2 + $0x80] ss:$8 sps:$4 sm:$0xff]  }
 0x148   :  { %875 = vst [vmem:[#allocation8 + $0x160] sm:$0xff] %v11404_v44  ;;  %v13462_v53 = vpop.f32.mrf.mxu0  ;;  %11633 = vmatpush3.bf16.msra.mxu0 %v12520_v45 }
 0x149   :  { %v11406_v59 = vpop.f32.mrf.mxu1  ;;  %3747 = vmatpush2.bf16.msra.mxu1 %v12517_v38  ;;  %11634 = vmatprep.subr.bf16.mxu0 %v12527_v54  ;;  %v13494_v54 = vld [vmem:[#allocation2 + $0x94] ss:$8 sps:$4 sm:$0xff]  }
 0x14a   :  { %v11407_v10 = vadd.f32 %v11406_v59, %v11405_v60  ;;  %v13464_v22 = vpop.f32.mrf.mxu0  ;;  %2768 = vmatmul.mubr.bf16.gmra.mxu0 %v13399_v30  ;;  %3748 = vmatprep.subr.bf16.mxu1 %v12523_v41 }
 0x14b   :  { %v11408_v15 = vpop.f32.mrf.mxu1  ;;  %2649 = vmatmul.mubr.bf16.gmra.mxu1 %v13456_v19  ;;  %2775 = vmatprep.mubr.bf16.mxu0 %v13401_v39 }
 0x14c   :  { %878 = vst [vmem:[#allocation8 + $0x178] sm:$0xff] %v11407_v10  ;;  %v13469_v1 = vpop.f32.mrf.mxu0  ;;  %2658 = vmatprep.mubr.bf16.mxu1 %v13460_v48  ;;  %11635 = vmatpush3.bf16.msra.mxu0 %v12531_v55 }
 0x14d   :  { %v11409_v18 = vpop.f32.mrf.mxu1  ;;  %3749 = vmatpush2.bf16.msra.mxu1 %v12521_v5  ;;  %11636 = vmatprep.subr.bf16.mxu0 %v12541_v8 }
 0x14e   :  { %v11410_v30 = vadd.f32 %v11409_v18, %v11408_v15  ;;  %v13472_v20 = vpop.f32.mrf.mxu0  ;;  %3750 = vmatprep.subr.bf16.mxu1 %v12530_v7  ;;  %v13506_v15 = vld [vmem:[#allocation2 + $0x90] ss:$8 sps:$4 sm:$0xff]  }
 0x14f   :  { %v11411_v56 = vpop.f32.mrf.mxu1 }
 0x150   :  { %881 = vst [vmem:[#allocation8 + $0x190] sm:$0xff] %v11410_v30  ;;  %v13476_v39 = vpop.f32.mrf.mxu0  ;;  %11637 = vmatpush3.bf16.msra.mxu0 %v12545_v14 }
 0x151   :  { %v11412_v24 = vpop.f32.mrf.mxu1  ;;  %3751 = vmatpush2.bf16.msra.mxu1 %v12528_v33  ;;  %11638 = vmatprep.subr.bf16.mxu0 %v12549_v40  ;;  %v13510_v33 = vld [vmem:[#allocation2 + $0xa4] ss:$8 sps:$4 sm:$0xff]  }
 0x152   :  { %v11413_v31 = vadd.f32 %v11412_v24, %v11411_v56  ;;  %v13480_v63 = vpop.f32.mrf.mxu0  ;;  %2776 = vmatmul.mubr.bf16.gmra.mxu0 %v13411_v50  ;;  %3752 = vmatprep.subr.bf16.mxu1 %v12537_v2 }
 0x153   :  { %v11414_v17 = vpop.f32.mrf.mxu1  ;;  %2659 = vmatmul.mubr.bf16.gmra.mxu1 %v13474_v3  ;;  %2783 = vmatprep.mubr.bf16.mxu0 %v13415_v52 }
 0x154   :  { %884 = vst [vmem:[#allocation8 + $0x1a8] sm:$0xff] %v11413_v31  ;;  %v13485_v62 = vpop.f32.mrf.mxu0  ;;  %2668 = vmatprep.mubr.bf16.mxu1 %v13478_v21  ;;  %11639 = vmatpush3.bf16.msra.mxu0 %v12550_v23 }
 0x155   :  { %v11415_v38 = vpop.f32.mrf.mxu1  ;;  %3753 = vmatpush2.bf16.msra.mxu1 %v12535_v26  ;;  %11640 = vmatprep.subr.bf16.mxu0 %v12560_v43 }
 0x156   :  { %v11416_v50 = vadd.f32 %v11415_v38, %v11414_v17  ;;  %v13488_v45 = vpop.f32.mrf.mxu0  ;;  %3754 = vmatprep.subr.bf16.mxu1 %v12544_v61  ;;  %v13522_v61 = vld [vmem:[#allocation2 + $0xa0] ss:$8 sps:$4 sm:$0xff]  }
 0x157   :  { %v11417_v41 = vpop.f32.mrf.mxu1 }
 0x158   :  { %887 = vst [vmem:[#allocation8 + $0x1c0] sm:$0xff] %v11416_v50  ;;  %v13492_v52 = vpop.f32.mrf.mxu0  ;;  %11641 = vmatpush3.bf16.msra.mxu0 %v12561_v4 }
 0x159   :  { %v11418_v44 = vpop.f32.mrf.mxu1  ;;  %3755 = vmatpush2.bf16.msra.mxu1 %v12542_v34  ;;  %11720 = vmatprep.subr.bf16.mxu0 %v12574_v9 }
 0x15a   :  { %v11419_v60 = vadd.f32 %v11418_v44, %v11417_v41  ;;  %v13496_v55 = vpop.f32.mrf.mxu0  ;;  %2784 = vmatmul.mubr.bf16.gmra.mxu0 %v13424_v12  ;;  %4891 = vmatprep.subr.bf16.mxu1 %v12548_v35  ;;  %v13536_v41 = vld [vmem:[#allocation2 + $0xb0] ss:$8 sps:$4 sm:$0xff]   ;;  %v1842_v44 = vlaneseq }
 0x15b   :  { %v11420_v59 = vpop.f32.mrf.mxu1  ;;  %2669 = vmatmul.mubr.bf16.gmra.mxu1 %v13490_v49  ;;  %2791 = vmatprep.mubr.bf16.mxu0 %v13430_v32 }
 0x15c   :  { %890 = vst [vmem:[#allocation8 + $0x1d8] sm:$0xff] %v11419_v60  ;;  %v13501_v5 = vpop.f32.mrf.mxu0  ;;  %2678 = vmatprep.mubr.bf16.mxu1 %v13494_v54  ;;  %v13538_v60 = vld [vmem:[#allocation2 + $0xc4] ss:$8 sps:$4 sm:$0xff]  }
 0x15d   :  { %v11421_v7 = vpop.f32.mrf.mxu1 }
 0x15e   :  { %v11422_v8 = vadd.f32 %v11421_v7, %v11420_v59  ;;  %v13504_v10 = vpop.f32.mrf.mxu0 }
 0x15f   :  { %v11423_v14 = vpop.f32.mrf.mxu1 }
 0x160   :  { %893 = vst [vmem:[#allocation8 + $0x1f0] sm:$0xff] %v11422_v8  ;;  %v13508_v12 = vpop.f32.mrf.mxu0 }
 0x161   :  { %v11424_v40 = vpop.f32.mrf.mxu1 }
 0x162   :  { %v11425_v2 = vadd.f32 %v11424_v40, %v11423_v14  ;;  %v13512_v32 = vpop.f32.mrf.mxu0  ;;  %2792 = vmatmul.mubr.bf16.gmra.mxu0 %v13440_v25  ;;  %v13526_v25 = vld [vmem:[#allocation2 + $0xb4] ss:$8 sps:$4 sm:$0xff]   ;;  %v13544_v14 = vshrl.u32 %v1842_v44, 7 }
 0x163   :  { %v11426_v18 = vpop.f32.mrf.mxu1  ;;  %2679 = vmatmul.mubr.bf16.gmra.mxu1 %v13506_v15  ;;  %2799 = vmatprep.mubr.bf16.mxu0 %v13444_v28 }
 0x164   :  { %896 = vst [vmem:[#allocation8 + $0x208] sm:$0xff] %v11425_v2  ;;  %v13517_v30 = vpop.f32.mrf.mxu0  ;;  %2688 = vmatprep.mubr.bf16.mxu1 %v13510_v33  ;;  %vm1844_vm0 = vcmp.lt.s32.totalorder %v13544_v14, 7  ;;  %vm3012_vm1 = vcmp.lt.s32.totalorder %v13544_v14, 6  ;;  %vm5347_vm2 = vcmp.lt.s32.totalorder %v13544_v14, 5  ;;  %vm6515_vm3 = vcmp.lt.s32.totalorder %v13544_v14, 4 }
 0x165   :  { %v11427_v56 = vpop.f32.mrf.mxu1  ;;  %vm8850_vm4 = vcmp.lt.s32.totalorder %v13544_v14, 3  ;;  %vm10018_vm5 = vcmp.lt.s32.totalorder %v13544_v14, 2 }
 0x166   :  { %v11428_v23 = vadd.f32 %v11427_v56, %v11426_v18  ;;  %v13520_v24 = vpop.f32.mrf.mxu0 }
 0x167   :  { %v11429_v26 = vpop.f32.mrf.mxu1 }
 0x168   :  { %899 = vst [vmem:[#allocation8 + $0x220] sm:$0xff] %v11428_v23  ;;  %v13524_v43 = vpop.f32.mrf.mxu0 }
 0x169   :  { %v11430_v31 = vpop.f32.mrf.mxu1 }
 0x16a   :  { %v11431_v4 = vadd.f32 %v11430_v31, %v11429_v26  ;;  %v13528_v28 = vpop.f32.mrf.mxu0  ;;  %2800 = vmatmul.mubr.bf16.gmra.mxu0 %v13456_v19 }
 0x16b   :  { %v11432_v17 = vpop.f32.mrf.mxu1  ;;  %2689 = vmatmul.mubr.bf16.gmra.mxu1 %v13522_v61  ;;  %2807 = vmatprep.mubr.bf16.mxu0 %v13460_v48 }
 0x16c   :  { %902 = vst [vmem:[#allocation8 + $0x238] sm:$0xff] %v11431_v4  ;;  %v13533_v34 = vpop.f32.mrf.mxu0  ;;  %2698 = vmatprep.mubr.bf16.mxu1 %v13526_v25 }
 0x16d   :  { %v11433_v9 = vpop.f32.mrf.mxu1 }
 0x16e   :  { %v11434_v35 = vadd.f32 %v11433_v9, %v11432_v17  ;;  %v649_v38 = vpop.f32.mrf.mxu0 }
 0x16f   :  { %882 = vst [vmem:[#allocation8 + $0x198] sm:$0xff] %v649_v38  ;;  %v11435_v50 = vpop.f32.mrf.mxu1 }
 0x170   :  { %905 = vst [vmem:[#allocation8 + $0x250] sm:$0xff] %v11434_v35  ;;  %v651_v19 = vpop.f32.mrf.mxu0 }
 0x171   :  { %883 = vst [vmem:[#allocation8 + $0x1a0] sm:$0xff] %v651_v19  ;;  %v11436_v59 = vpop.f32.mrf.mxu1 }
 0x172   :  { %v11437_v48 = vadd.f32 %v11436_v59, %v11435_v50  ;;  %v655_v7 = vpop.f32.mrf.mxu0  ;;  %2808 = vmatmul.mubr.bf16.gmra.mxu0 %v13474_v3  ;;  %v13551_v3 = vld [vmem:[#allocation2 + $0xc0] ss:$8 sps:$4 sm:$0xff]  }
 0x173   :  { %885 = vst [vmem:[#allocation8 + $0x1b0] sm:$0xff] %v655_v7  ;;  %v13541_v8 = vpop.f32.mrf.mxu1  ;;  %2699 = vmatmul.mubr.bf16.gmra.mxu1 %v13536_v41  ;;  %2815 = vmatprep.mubr.bf16.mxu0 %v13478_v21 }
 0x174   :  { %908 = vst [vmem:[#allocation8 + $0x268] sm:$0xff] %v11437_v48  ;;  %v657_v40 = vpop.f32.mrf.mxu0  ;;  %2708 = vmatprep.mubr.bf16.mxu1 %v13538_v60  ;;  %v1764_v23 = vrot.slane %v13541_v8, 1  ;;  %v13567_v48 = vld [vmem:[#allocation2 + $0x4] ss:$8 sps:$4 sm:$0xff]  }
 0x175   :  { %886 = vst [vmem:[#allocation8 + $0x1b8] sm:$0xff] %v657_v40  ;;  %v13548_v2 = vpop.f32.mrf.mxu1 }
 0x176   :  { %v659_v18 = vpop.f32.mrf.mxu0  ;;  %v1765_v4 = vrot.slane %v13548_v2, 1 }
 0x177   :  { %888 = vst [vmem:[#allocation8 + $0x1c8] sm:$0xff] %v659_v18  ;;  %v1424_v56 = vpop.f32.mrf.mxu1 }
 0x178   :  { %v1767_v26 = vrot.slane %v1424_v56, 1  ;;  %v661_v31 = vpop.f32.mrf.mxu0 }
 0x179   :  { %889 = vst [vmem:[#allocation8 + $0x1d0] sm:$0xff] %v661_v31  ;;  %v1426_v21 = vpop.f32.mrf.mxu1 }
 0x17a   :  { %v1917_v17 = vsel %vm1844_vm0, %v1764_v23, %v1767_v26  ;;  %v1768_v9 = vrot.slane %v1426_v21, 1  ;;  %v665_v35 = vpop.f32.mrf.mxu0  ;;  %2816 = vmatmul.mubr.bf16.gmra.mxu0 %v13490_v49 }
 0x17b   :  { %v1923_v38 = vadd.f32 %v1917_v17, %v13403_v37  ;;  %891 = vst [vmem:[#allocation8 + $0x1e0] sm:$0xff] %v665_v35  ;;  %v1430_v50 = vpop.f32.mrf.mxu1  ;;  %2709 = vmatmul.mubr.bf16.gmra.mxu1 %v13551_v3  ;;  %2823 = vmatprep.mubr.bf16.mxu0 %v13494_v54  ;;  %v12546_v35 = vld [vmem:[#allocation5 + $0x6a8] ss:$12 sps:$4 sm:$0xff]  }
 0x17c   :  { %v1918_v44 = vsel %vm1844_vm0, %v1765_v4, %v1768_v9  ;;  %v1770_v19 = vrot.slane %v1430_v50, 1  ;;  %v667_v59 = vpop.f32.mrf.mxu0  ;;  %3756 = vmatprep.mubr.bf16.mxu1 %v13567_v48  ;;  %v12553_v50 = vld [vmem:[#allocation5 + $0x694] ss:$12 sps:$4 sm:$0xff]  }
 0x17d   :  { %2001 = vst [vmem:[#allocation8] sm:$0xff] %v1923_v38  ;;  %v1924_v37 = vadd.f32 %v1918_v44, %v13406_v42  ;;  %892 = vst [vmem:[#allocation8 + $0x1e8] sm:$0xff] %v667_v59  ;;  %v1432_v49 = vpop.f32.mrf.mxu1 }
 0x17e   :  { %v1914_v7 = vsel %vm1844_vm0, %v1767_v26, %v1770_v19  ;;  %v1771_v54 = vrot.slane %v1432_v49, 1  ;;  %v669_v40 = vpop.f32.mrf.mxu0 }
 0x17f   :  { %2002 = vst [vmem:[#allocation8 + $0x8] sm:$0xff] %v1924_v37  ;;  %v1926_v18 = vadd.f32 %v1914_v7, %v13409_v47  ;;  %894 = vst [vmem:[#allocation8 + $0x1f8] sm:$0xff] %v669_v40  ;;  %v1434_v56 = vpop.f32.mrf.mxu1  ;;  %v13581_v37 = vld [vmem:[#allocation2] ss:$8 sps:$4 sm:$0xff]   ;;  %v13587_v7 = vld [vmem:[#allocation2 + $0x14] ss:$8 sps:$4 sm:$0xff]  }
 0x180   :  { %v1915_v31 = vsel %vm1844_vm0, %v1768_v9, %v1771_v54  ;;  %v1773_v21 = vrot.slane %v1434_v56, 1  ;;  %v671_v17 = vpop.f32.mrf.mxu0 }
 0x181   :  { %2004 = vst [vmem:[#allocation8 + $0x18] sm:$0xff] %v1926_v18  ;;  %v1927_v42 = vadd.f32 %v1915_v31, %v13413_v51  ;;  %895 = vst [vmem:[#allocation8 + $0x200] sm:$0xff] %v671_v17  ;;  %v1436_v38 = vpop.f32.mrf.mxu1  ;;  %v12556_v18 = vld [vmem:[#allocation5 + $0x67c] ss:$12 sps:$4 sm:$0xff]  }
 0x182   :  { %v1911_v26 = vsel %vm1844_vm0, %v1770_v19, %v1773_v21  ;;  %v1774_v44 = vrot.slane %v1436_v38, 1  ;;  %v675_v59 = vpop.f32.mrf.mxu0  ;;  %2824 = vmatmul.mubr.bf16.gmra.mxu0 %v13506_v15  ;;  %v12551_v15 = vld [vmem:[#allocation5 + $0x690] ss:$12 sps:$4 sm:$0xff]  }
 0x183   :  { %2005 = vst [vmem:[#allocation8 + $0x20] sm:$0xff] %v1927_v42  ;;  %v1929_v47 = vadd.f32 %v1911_v26, %v13417_v6  ;;  %897 = vst [vmem:[#allocation8 + $0x210] sm:$0xff] %v675_v59  ;;  %v1440_v9 = vpop.f32.mrf.mxu1  ;;  %3757 = vmatmul.mubr.bf16.vlgmr.msra.gmra.mxu1 %v13581_v37  ;;  %2831 = vmatprep.mubr.bf16.mxu0 %v13510_v33  ;;  %v13596_v26 = vld [vmem:[#allocation2 + $0x24] ss:$8 sps:$4 sm:$0xff]   ;;  %v12564_v59 = vld [vmem:[#allocation5 + $0x664] ss:$12 sps:$4 sm:$0xff]  }
 0x184   :  { %v1912_v51 = vsel %vm1844_vm0, %v1771_v54, %v1774_v44  ;;  %v1776_v49 = vrot.slane %v1440_v9, 1  ;;  %4892 = vmatpush1.bf16.msra.mxu1 %v12546_v35  ;;  %v677_v19 = vpop.f32.mrf.mxu0  ;;  %3766 = vmatprep.mubr.bf16.mxu1 %v13587_v7 }
 0x185   :  { %2007 = vst [vmem:[#allocation8 + $0x30] sm:$0xff] %v1929_v47  ;;  %v1930_v6 = vadd.f32 %v1912_v51, %v13421_v11  ;;  %898 = vst [vmem:[#allocation8 + $0x218] sm:$0xff] %v677_v19  ;;  %v1442_v40 = vpop.f32.mrf.mxu1  ;;  %4893 = vmatprep.subr.bf16.mxu1 %v12553_v50  ;;  %v12554_v11 = vld [vmem:[#allocation5 + $0x678] ss:$12 sps:$4 sm:$0xff]   ;;  %v13603_v19 = vld [vmem:[#allocation2 + $0x10] ss:$8 sps:$4 sm:$0xff]  }
 0x186   :  { %v1908_v33 = vsel %vm1844_vm0, %v1773_v21, %v1776_v49  ;;  %v1777_v56 = vrot.slane %v1442_v40, 1  ;;  %v679_v54 = vpop.f32.mrf.mxu0  ;;  %v12570_v40 = vld [vmem:[#allocation5 + $0x64c] ss:$12 sps:$4 sm:$0xff]  }
 0x187   :  { %2008 = vst [vmem:[#allocation8 + $0x38] sm:$0xff] %v1930_v6  ;;  %v1932_v31 = vadd.f32 %v1908_v33, %v13426_v16  ;;  %900 = vst [vmem:[#allocation8 + $0x228] sm:$0xff] %v679_v54  ;;  %v1444_v17 = vpop.f32.mrf.mxu1  ;;  %v13613_v54 = vld [vmem:[#allocation2 + $0x20] ss:$8 sps:$4 sm:$0xff]  }
 0x188   :  { %v1909_v35 = vsel %vm1844_vm0, %v1774_v44, %v1777_v56  ;;  %v1779_v42 = vrot.slane %v1444_v17, 1  ;;  %v681_v38 = vpop.f32.mrf.mxu0  ;;  %4894 = vmatpush1.bf16.msra.mxu1 %v12551_v15 }
 0x189   :  { %2010 = vst [vmem:[#allocation8 + $0x48] sm:$0xff] %v1932_v31  ;;  %v1933_v50 = vadd.f32 %v1909_v35, %v13428_v0  ;;  %901 = vst [vmem:[#allocation8 + $0x230] sm:$0xff] %v681_v38  ;;  %v1446_v21 = vpop.f32.mrf.mxu1  ;;  %4895 = vmatprep.subr.bf16.mxu1 %v12556_v18  ;;  %v13618_v38 = vld [vmem:[#allocation2 + $0x34] ss:$8 sps:$4 sm:$0xff]  }
 0x18a   :  { %v1905_v16 = vsel %vm1844_vm0, %v1776_v49, %v1779_v42  ;;  %v1780_v47 = vrot.slane %v1446_v21, 1  ;;  %v685_v9 = vpop.f32.mrf.mxu0  ;;  %2832 = vmatmul.mubr.bf16.gmra.mxu0 %v13522_v61  ;;  %v12562_v61 = vld [vmem:[#allocation5 + $0x660] ss:$12 sps:$4 sm:$0xff]  }
 0x18b   :  { %2011 = vst [vmem:[#allocation8 + $0x50] sm:$0xff] %v1933_v50  ;;  %v1935_v44 = vadd.f32 %v1905_v16, %v13432_v57  ;;  %903 = vst [vmem:[#allocation8 + $0x240] sm:$0xff] %v685_v9  ;;  %v1450_v51 = vpop.f32.mrf.mxu1  ;;  %3767 = vmatmul.mubr.bf16.gmra.mxu1 %v13603_v19  ;;  %2839 = vmatprep.mubr.bf16.mxu0 %v13526_v25  ;;  %v12577_v21 = vld [vmem:[#allocation5 + $0x634] ss:$12 sps:$4 sm:$0xff]  }
 0x18c   :  { %v1906_v0 = vsel %vm1844_vm0, %v1777_v56, %v1780_v47  ;;  %v1782_v15 = vrot.slane %v1450_v51, 1  ;;  %v687_v49 = vpop.f32.mrf.mxu0  ;;  %4896 = vmatpush1.bf16.msra.mxu1 %v12554_v11  ;;  %3776 = vmatprep.mubr.bf16.mxu1 %v13596_v26  ;;  %v12568_v11 = vld [vmem:[#allocation5 + $0x648] ss:$12 sps:$4 sm:$0xff]  }
 0x18d   :  { %2013 = vst [vmem:[#allocation8 + $0x60] sm:$0xff] %v1935_v44  ;;  %v1936_v57 = vadd.f32 %v1906_v0, %v13436_v58  ;;  %904 = vst [vmem:[#allocation8 + $0x248] sm:$0xff] %v687_v49  ;;  %v1452_v6 = vpop.f32.mrf.mxu1  ;;  %4897 = vmatprep.subr.bf16.mxu1 %v12564_v59 }
 0x18e   :  { %v1902_v18 = vsel %vm1844_vm0, %v1779_v42, %v1782_v15  ;;  %v1783_v25 = vrot.slane %v1452_v6, 1  ;;  %v689_v33 = vpop.f32.mrf.mxu0 }
 0x18f   :  { %2014 = vst [vmem:[#allocation8 + $0x68] sm:$0xff] %v1936_v57  ;;  %v1938_v56 = vadd.f32 %v1902_v18, %v13442_v27  ;;  %906 = vst [vmem:[#allocation8 + $0x258] sm:$0xff] %v689_v33  ;;  %v1454_v31 = vpop.f32.mrf.mxu1  ;;  %v13633_v57 = vld [vmem:[#allocation2 + $0x30] ss:$8 sps:$4 sm:$0xff]  }
 0x190   :  { %v1903_v17 = vsel %vm1844_vm0, %v1780_v47, %v1783_v25  ;;  %v1785_v58 = vrot.slane %v1454_v31, 1  ;;  %v691_v35 = vpop.f32.mrf.mxu0  ;;  %4898 = vmatpush1.bf16.msra.mxu1 %v12562_v61  ;;  %v12582_v31 = vld [vmem:[#allocation5 + $0x618] ss:$12 sps:$4 sm:$0xff]  }
 0x191   :  { %2016 = vst [vmem:[#allocation8 + $0x78] sm:$0xff] %v1938_v56  ;;  %v1939_v42 = vadd.f32 %v1903_v17, %v13446_v29  ;;  %907 = vst [vmem:[#allocation8 + $0x260] sm:$0xff] %v691_v35  ;;  %v1456_v50 = vpop.f32.mrf.mxu1  ;;  %4899 = vmatprep.subr.bf16.mxu1 %v12570_v40  ;;  %v12575_v29 = vld [vmem:[#allocation5 + $0x630] ss:$12 sps:$4 sm:$0xff]  }
 0x192   :  { %v1899_v27 = vsel %vm1844_vm0, %v1782_v15, %v1785_v58  ;;  %v1786_v59 = vrot.slane %v1456_v50, 1  ;;  %v11454_v16 = vpop.f32.mrf.mxu0  ;;  %2840 = vmatmul.mubr.bf16.gmra.mxu0 %v13536_v41  ;;  %v12584_v15 = vld [vmem:[#allocation5 + $0x61c] ss:$12 sps:$4 sm:$0xff]  }
 0x193   :  { %2017 = vst [vmem:[#allocation8 + $0x80] sm:$0xff] %v1939_v42  ;;  %v1941_v47 = vadd.f32 %v1899_v27, %v13448_v13  ;;  %v1460_v9 = vpop.f32.mrf.mxu1  ;;  %3777 = vmatmul.mubr.bf16.gmra.mxu1 %v13613_v54  ;;  %2847 = vmatprep.mubr.bf16.mxu0 %v13538_v60  ;;  %v13640_v56 = vld [vmem:[#allocation2 + $0x44] ss:$8 sps:$4 sm:$0xff]  }
 0x194   :  { %v1900_v44 = vsel %vm1844_vm0, %v1783_v25, %v1786_v59  ;;  %v1788_v51 = vrot.slane %v1460_v9, 1  ;;  %v11455_v0 = vpop.f32.mrf.mxu0  ;;  %3786 = vmatprep.mubr.bf16.mxu1 %v13618_v38  ;;  %4900 = vmatpush1.bf16.msra.mxu1 %v12568_v11  ;;  %v12588_v11 = vld [vmem:[#allocation5 + $0x604] ss:$12 sps:$4 sm:$0xff]  }
 0x195   :  { %2019 = vst [vmem:[#allocation8 + $0x90] sm:$0xff] %v1941_v47  ;;  %v1942_v41 = vadd.f32 %v1900_v44, %v13453_v36  ;;  %v1462_v49 = vpop.f32.mrf.mxu1  ;;  %4901 = vmatprep.subr.bf16.mxu1 %v12577_v21  ;;  %v13636_v40 = vadd.f32 %v11455_v0, %v11454_v16 }
 0x196   :  { %v1896_v13 = vsel %vm1844_vm0, %v1785_v58, %v1788_v51  ;;  %v1789_v61 = vrot.slane %v1462_v49, 1  ;;  %v11457_v60 = vpop.f32.mrf.mxu0 }
 0x197   :  { %2020 = vst [vmem:[#allocation8 + $0x98] sm:$0xff] %v1942_v41  ;;  %v1944_v6 = vadd.f32 %v1896_v13, %v13458_v46  ;;  %v1464_v18 = vpop.f32.mrf.mxu1  ;;  %v1766_v21 = vrot.slane %v13636_v40, 1 }
 0x198   :  { %v1897_v25 = vsel %vm1844_vm0, %v1786_v59, %v1789_v61  ;;  %v1791_v33 = vrot.slane %v1464_v18, 1  ;;  %v11458_v36 = vpop.f32.mrf.mxu0  ;;  %4902 = vmatpush1.bf16.msra.mxu1 %v12575_v29  ;;  %v1688_v59 = vld [vmem:[#allocation8 + $0x10] sm:$0xff]  ;;  %v1762_v8 = vld [vmem:[#allocation8 + $0x260] sm:$0xff] }
 0x199   :  { %2022 = vst [vmem:[#allocation8 + $0xa8] sm:$0xff] %v1944_v6  ;;  %v1945_v17 = vadd.f32 %v1897_v25, %v13462_v53  ;;  %v1466_v58 = vpop.f32.mrf.mxu1  ;;  %v11459_v35 = vadd.f32 %v11458_v36, %v11457_v60  ;;  %4903 = vmatprep.subr.bf16.mxu1 %v12584_v15  ;;  %v12595_v15 = vld [vmem:[#allocation5 + $0x76c] ss:$12 sps:$4 sm:$0xff]   ;;  %v12578_v60 = vld [vmem:[#allocation5 + $0x6b0] ss:$12 sps:$4 sm:$0xff]  }
 0x19a   :  { %v1893_v46 = vsel %vm1844_vm0, %v1788_v51, %v1791_v33  ;;  %v1792_v42 = vrot.slane %v1466_v58, 1  ;;  %v11460_v50 = vpop.f32.mrf.mxu0  ;;  %2848 = vmatmul.mubr.bf16.gmra.mxu0 %v13551_v3  ;;  %v12586_v3 = vld [vmem:[#allocation5 + $0x600] ss:$12 sps:$4 sm:$0xff]  }
 0x19b   :  { %2023 = vst [vmem:[#allocation8 + $0xb0] sm:$0xff] %v1945_v17  ;;  %v1947_v27 = vadd.f32 %v1893_v46, %v13464_v22  ;;  %v1769_v16 = vrot.slane %v11459_v35, 1  ;;  %v1470_v47 = vpop.f32.mrf.mxu1  ;;  %3787 = vmatmul.mubr.bf16.gmra.mxu1 %v13633_v57  ;;  %3919 = vmatprep.mubr.bf16.mxu0 %v13567_v48  ;;  %v13658_v48 = vld [vmem:[#allocation2 + $0x40] ss:$8 sps:$4 sm:$0xff]   ;;  %v13665_v58 = vld [vmem:[#allocation2 + $0x54] ss:$8 sps:$4 sm:$0xff]  }
 0x19c   :  { %v1894_v53 = vsel %vm1844_vm0, %v1789_v61, %v1792_v42  ;;  %v1794_v9 = vrot.slane %v1470_v47, 1  ;;  %v11461_v29 = vpop.f32.mrf.mxu0  ;;  %3796 = vmatprep.mubr.bf16.mxu1 %v13640_v56  ;;  %4904 = vmatpush1.bf16.msra.mxu1 %v12582_v31  ;;  %v1691_v36 = vld [vmem:[#allocation8 + $0x28] sm:$0xff]  ;;  %v12585_v35 = vld [vmem:[#allocation5 + $0x758] ss:$12 sps:$4 sm:$0xff]  }
 0x19d   :  { %2025 = vst [vmem:[#allocation8 + $0xc0] sm:$0xff] %v1947_v27  ;;  %v1948_v44 = vadd.f32 %v1894_v53, %v13469_v1  ;;  %v1919_v22 = vsel %vm1844_vm0, %v1766_v21, %v1769_v16  ;;  %v1472_v51 = vpop.f32.mrf.mxu1  ;;  %v11462_v0 = vadd.f32 %v11461_v29, %v11460_v50  ;;  %4905 = vmatprep.subr.bf16.mxu1 %v12588_v11  ;;  %v12589_v50 = vld [vmem:[#allocation5 + $0x698] ss:$12 sps:$4 sm:$0xff]   ;;  %v12593_v27 = vld [vmem:[#allocation5 + $0x768] ss:$12 sps:$4 sm:$0xff]  }
 0x19e   :  { %v1925_v41 = vadd.f32 %v1919_v22, %v1688_v59  ;;  %v1890_v49 = vsel %vm1844_vm0, %v1791_v33, %v1794_v9  ;;  %v1795_v13 = vrot.slane %v1472_v51, 1  ;;  %v11463_v61 = vpop.f32.mrf.mxu0  ;;  %v12602_v59 = vld [vmem:[#allocation5 + $0x754] ss:$12 sps:$4 sm:$0xff]  }
 0x19f   :  { %2026 = vst [vmem:[#allocation8 + $0xc8] sm:$0xff] %v1948_v44  ;;  %v1950_v1 = vadd.f32 %v1890_v49, %v13472_v20  ;;  %v1772_v6 = vrot.slane %v11462_v0, 1  ;;  %v1474_v18 = vpop.f32.mrf.mxu1  ;;  %v13682_v49 = vld [vmem:[#allocation2 + $0x50] ss:$8 sps:$4 sm:$0xff]  }
 0x1a0   :  { %2003 = vst [vmem:[#allocation8 + $0x10] sm:$0xff] %v1925_v41  ;;  %v1891_v25 = vsel %vm1844_vm0, %v1792_v42, %v1795_v13  ;;  %v1797_v31 = vrot.slane %v1474_v18, 1  ;;  %v11464_v17 = vpop.f32.mrf.mxu0  ;;  %4906 = vmatpush1.bf16.msra.mxu1 %v12586_v3  ;;  %v1694_v3 = vld [vmem:[#allocation8 + $0x40] sm:$0xff]  ;;  %v13686_v18 = vld [vmem:[#allocation2 + $0x64] ss:$8 sps:$4 sm:$0xff]  }
 0x1a1   :  { %2028 = vst [vmem:[#allocation8 + $0xd8] sm:$0xff] %v1950_v1  ;;  %v1951_v33 = vadd.f32 %v1891_v25, %v13476_v39  ;;  %v1916_v11 = vsel %vm1844_vm0, %v1769_v16, %v1772_v6  ;;  %v1476_v20 = vpop.f32.mrf.mxu1  ;;  %v11465_v46 = vadd.f32 %v11464_v17, %v11463_v61  ;;  %4907 = vmatprep.subr.bf16.mxu1 %v12595_v15  ;;  %v12603_v17 = vld [vmem:[#allocation5 + $0x680] ss:$12 sps:$4 sm:$0xff]  }
 0x1a2   :  { %v1928_v42 = vadd.f32 %v1916_v11, %v1691_v36  ;;  %v1887_v47 = vsel %vm1844_vm0, %v1794_v9, %v1797_v31  ;;  %v1798_v53 = vrot.slane %v1476_v20, 1  ;;  %v11466_v29 = vpop.f32.mrf.mxu0  ;;  %3920 = vmatmul.mubr.bf16.vlgmr.msra.gmra.mxu0 %v13581_v37  ;;  %v12599_v37 = vld [vmem:[#allocation5 + $0x740] ss:$12 sps:$4 sm:$0xff]   ;;  %v12607_v20 = vld [vmem:[#allocation5 + $0x738] ss:$12 sps:$4 sm:$0xff]  }
 0x1a3   :  { %2029 = vst [vmem:[#allocation8 + $0xe0] sm:$0xff] %v1951_v33  ;;  %v1953_v39 = vadd.f32 %v1887_v47, %v13480_v63  ;;  %v1775_v44 = vrot.slane %v11465_v46, 1  ;;  %v1480_v16 = vpop.f32.mrf.mxu1  ;;  %3797 = vmatmul.mubr.bf16.gmra.mxu1 %v13658_v48  ;;  %11721 = vmatpush3.bf16.msra.mxu0 %v12578_v60  ;;  %v1697_v33 = vld [vmem:[#allocation8 + $0x58] sm:$0xff] }
 0x1a4   :  { %2006 = vst [vmem:[#allocation8 + $0x28] sm:$0xff] %v1928_v42  ;;  %v1888_v22 = vsel %vm1844_vm0, %v1795_v13, %v1798_v53  ;;  %v1800_v51 = vrot.slane %v1480_v16, 1  ;;  %v11467_v0 = vpop.f32.mrf.mxu0  ;;  %3806 = vmatprep.mubr.bf16.mxu1 %v13665_v58  ;;  %3927 = vmatprep.mubr.bf16.mxu0 %v13587_v7  ;;  %v12600_v13 = vld [vmem:[#allocation5 + $0x750] ss:$12 sps:$4 sm:$0xff]  }
 0x1a5   :  { %2031 = vst [vmem:[#allocation8 + $0xf0] sm:$0xff] %v1953_v39  ;;  %v1954_v63 = vadd.f32 %v1888_v22, %v13485_v62  ;;  %v1913_v9 = vsel %vm1844_vm0, %v1772_v6, %v1775_v44  ;;  %v1482_v15 = vpop.f32.mrf.mxu1  ;;  %v11468_v41 = vadd.f32 %v11467_v0, %v11466_v29  ;;  %11722 = vmatprep.subr.bf16.mxu0 %v12585_v35  ;;  %v12609_v62 = vld [vmem:[#allocation5 + $0x73c] ss:$12 sps:$4 sm:$0xff]   ;;  %v12616_v39 = vld [vmem:[#allocation5 + $0x724] ss:$12 sps:$4 sm:$0xff]   ;;  %v1700_v22 = vld [vmem:[#allocation8 + $0x70] sm:$0xff] }
 0x1a6   :  { %4908 = vmatpush2.bf16.msra.mxu1 %v12593_v27  ;;  %v1931_v61 = vadd.f32 %v1913_v9, %v1694_v3  ;;  %v1884_v60 = vsel %vm1844_vm0, %v1797_v31, %v1800_v51  ;;  %v1801_v1 = vrot.slane %v1482_v15, 1  ;;  %v11469_v7 = vpop.f32.mrf.mxu0  ;;  %v13706_v15 = vld [vmem:[#allocation2 + $0x60] ss:$8 sps:$4 sm:$0xff]  }
 0x1a7   :  { %4909 = vmatprep.subr.bf16.mxu1 %v12602_v59  ;;  %2032 = vst [vmem:[#allocation8 + $0xf8] sm:$0xff] %v1954_v63  ;;  %v1956_v6 = vadd.f32 %v1884_v60, %v13488_v45  ;;  %v1778_v25 = vrot.slane %v11468_v41, 1  ;;  %v1484_v36 = vpop.f32.mrf.mxu1  ;;  %11723 = vmatpush3.bf16.msra.mxu0 %v12589_v50  ;;  %v12613_v50 = vld [vmem:[#allocation5 + $0x728] ss:$12 sps:$4 sm:$0xff]   ;;  %v12620_v41 = vld [vmem:[#allocation5 + $0x70c] ss:$12 sps:$4 sm:$0xff]  }
 0x1a8   :  { %2009 = vst [vmem:[#allocation8 + $0x40] sm:$0xff] %v1931_v61  ;;  %v1885_v35 = vsel %vm1844_vm0, %v1798_v53, %v1801_v1  ;;  %v1803_v11 = vrot.slane %v1484_v36, 1  ;;  %v11470_v31 = vpop.f32.mrf.mxu0  ;;  %11724 = vmatprep.subr.bf16.mxu0 %v12599_v37  ;;  %v12617_v37 = vld [vmem:[#allocation5 + $0x668] ss:$12 sps:$4 sm:$0xff]  }
 0x1a9   :  { %2034 = vst [vmem:[#allocation8 + $0x108] sm:$0xff] %v1956_v6  ;;  %v1957_v46 = vadd.f32 %v1885_v35, %v13492_v52  ;;  %v1910_v27 = vsel %vm1844_vm0, %v1775_v44, %v1778_v25  ;;  %v1486_v45 = vpop.f32.mrf.mxu1  ;;  %v11471_v59 = vadd.f32 %v11470_v31, %v11469_v7  ;;  %v12628_v31 = vld [vmem:[#allocation5 + $0x650] ss:$12 sps:$4 sm:$0xff]  }
 0x1aa   :  { %4910 = vmatpush2.bf16.msra.mxu1 %v12600_v13  ;;  %v1934_v42 = vadd.f32 %v1910_v27, %v1697_v33  ;;  %v1881_v47 = vsel %vm1844_vm0, %v1800_v51, %v1803_v11  ;;  %v1804_v53 = vrot.slane %v1486_v45, 1  ;;  %v11472_v29 = vpop.f32.mrf.mxu0  ;;  %3928 = vmatmul.mubr.bf16.gmra.mxu0 %v13603_v19  ;;  %v12614_v19 = vld [vmem:[#allocation5 + $0x720] ss:$12 sps:$4 sm:$0xff]   ;;  %v12624_v13 = vld [vmem:[#allocation5 + $0x710] ss:$12 sps:$4 sm:$0xff]  }
 0x1ab   :  { %4911 = vmatprep.subr.bf16.mxu1 %v12609_v62  ;;  %2035 = vst [vmem:[#allocation8 + $0x110] sm:$0xff] %v1957_v46  ;;  %v1959_v52 = vadd.f32 %v1881_v47, %v13496_v55  ;;  %v1781_v3 = vrot.slane %v11471_v59, 1  ;;  %v1490_v16 = vpop.f32.mrf.mxu1  ;;  %3807 = vmatmul.mubr.bf16.gmra.mxu1 %v13682_v49  ;;  %v12618_v27 = vld [vmem:[#allocation5 + $0x708] ss:$12 sps:$4 sm:$0xff]   ;;  %v12638_v59 = vld [vmem:[#allocation5 + $0x6f8] ss:$12 sps:$4 sm:$0xff]  }
 0x1ac   :  { %3935 = vmatprep.mubr.bf16.mxu0 %v13596_v26  ;;  %2012 = vst [vmem:[#allocation8 + $0x58] sm:$0xff] %v1934_v42  ;;  %v1882_v44 = vsel %vm1844_vm0, %v1801_v1, %v1804_v53  ;;  %v1806_v51 = vrot.slane %v1490_v16, 1  ;;  %v11473_v0 = vpop.f32.mrf.mxu0  ;;  %3816 = vmatprep.mubr.bf16.mxu1 %v13686_v18  ;;  %v12627_v45 = vld [vmem:[#allocation5 + $0x6f4] ss:$12 sps:$4 sm:$0xff]  }
 0x1ad   :  { %11725 = vmatpush3.bf16.msra.mxu0 %v12603_v17  ;;  %2037 = vst [vmem:[#allocation8 + $0x120] sm:$0xff] %v1959_v52  ;;  %v1960_v55 = vadd.f32 %v1882_v44, %v13501_v5  ;;  %v1907_v63 = vsel %vm1844_vm0, %v1778_v25, %v1781_v3  ;;  %v1492_v9 = vpop.f32.mrf.mxu1  ;;  %v11474_v26 = vadd.f32 %v11473_v0, %v11472_v29  ;;  %v13711_v25 = vld [vmem:[#allocation2 + $0x74] ss:$8 sps:$4 sm:$0xff]  }
 0x1ae   :  { %4912 = vmatpush2.bf16.msra.mxu1 %v12607_v20  ;;  %11726 = vmatprep.subr.bf16.mxu0 %v12613_v50  ;;  %v1937_v61 = vadd.f32 %v1907_v63, %v1700_v22  ;;  %v1878_v60 = vsel %vm1844_vm0, %v1803_v11, %v1806_v51  ;;  %v1807_v1 = vrot.slane %v1492_v9, 1  ;;  %v11475_v7 = vpop.f32.mrf.mxu0  ;;  %v1703_v17 = vld [vmem:[#allocation8 + $0x88] sm:$0xff]  ;;  %v1706_v22 = vld [vmem:[#allocation8 + $0xa0] sm:$0xff] }
 0x1af   :  { %4913 = vmatprep.subr.bf16.mxu1 %v12616_v39  ;;  %2038 = vst [vmem:[#allocation8 + $0x128] sm:$0xff] %v1960_v55  ;;  %v1962_v5 = vadd.f32 %v1878_v60, %v13504_v10  ;;  %v1784_v62 = vrot.slane %v11474_v26, 1  ;;  %v1494_v6 = vpop.f32.mrf.mxu1  ;;  %v12649_v16 = vld [vmem:[#allocation5 + $0x6e0] ss:$12 sps:$4 sm:$0xff]   ;;  %v12634_v26 = vld [vmem:[#allocation5 + $0x6dc] ss:$12 sps:$4 sm:$0xff]  }
 0x1b0   :  { %2015 = vst [vmem:[#allocation8 + $0x70] sm:$0xff] %v1937_v61  ;;  %v1879_v36 = vsel %vm1844_vm0, %v1804_v53, %v1807_v1  ;;  %v1809_v35 = vrot.slane %v1494_v6, 1  ;;  %v11476_v33 = vpop.f32.mrf.mxu0  ;;  %v13733_v61 = vld [vmem:[#allocation2 + $0x70] ss:$8 sps:$4 sm:$0xff]  }
 0x1b1   :  { %11727 = vmatpush3.bf16.msra.mxu0 %v12617_v37  ;;  %2040 = vst [vmem:[#allocation8 + $0x138] sm:$0xff] %v1962_v5  ;;  %v1963_v11 = vadd.f32 %v1879_v36, %v13508_v12  ;;  %v1904_v20 = vsel %vm1844_vm0, %v1781_v3, %v1784_v62  ;;  %v1496_v10 = vpop.f32.mrf.mxu1  ;;  %v11477_v46 = vadd.f32 %v11476_v33, %v11475_v7  ;;  %v12642_v12 = vld [vmem:[#allocation5 + $0x638] ss:$12 sps:$4 sm:$0xff]   ;;  %v12625_v3 = vld [vmem:[#allocation5 + $0x6f0] ss:$12 sps:$4 sm:$0xff]  }
 0x1b2   :  { %4914 = vmatpush2.bf16.msra.mxu1 %v12614_v19  ;;  %11728 = vmatprep.subr.bf16.mxu0 %v12624_v13  ;;  %v1940_v50 = vadd.f32 %v1904_v20, %v1703_v17  ;;  %v1875_v42 = vsel %vm1844_vm0, %v1806_v51, %v1809_v35  ;;  %v1810_v47 = vrot.slane %v1496_v10, 1  ;;  %v11478_v53 = vpop.f32.mrf.mxu0  ;;  %v13737_v5 = vld [vmem:[#allocation2 + $0x84] ss:$8 sps:$4 sm:$0xff]   ;;  %v12632_v33 = vld [vmem:[#allocation5 + $0x6d8] ss:$12 sps:$4 sm:$0xff]  }
 0x1b3   :  { %3936 = vmatmul.mubr.bf16.gmra.mxu0 %v13613_v54  ;;  %4915 = vmatprep.subr.bf16.mxu1 %v12620_v41  ;;  %2041 = vst [vmem:[#allocation8 + $0x140] sm:$0xff] %v1963_v11  ;;  %v1965_v29 = vadd.f32 %v1875_v42, %v13512_v32  ;;  %v1787_v39 = vrot.slane %v11477_v46, 1  ;;  %v1500_v52 = vpop.f32.mrf.mxu1  ;;  %v1709_v36 = vld [vmem:[#allocation8 + $0xb8] sm:$0xff] }
 0x1b4   :  { %3817 = vmatmul.mubr.bf16.gmra.mxu1 %v13706_v15  ;;  %3943 = vmatprep.mubr.bf16.mxu0 %v13618_v38  ;;  %2018 = vst [vmem:[#allocation8 + $0x88] sm:$0xff] %v1940_v50  ;;  %v1876_v44 = vsel %vm1844_vm0, %v1807_v1, %v1810_v47  ;;  %v1812_v51 = vrot.slane %v1500_v52, 1  ;;  %v11479_v54 = vpop.f32.mrf.mxu0  ;;  %v12639_v42 = vld [vmem:[#allocation5 + $0x6c0] ss:$12 sps:$4 sm:$0xff]  }
 0x1b5   :  { %3826 = vmatprep.mubr.bf16.mxu1 %v13711_v25  ;;  %11729 = vmatpush3.bf16.msra.mxu0 %v12628_v31  ;;  %2043 = vst [vmem:[#allocation8 + $0x150] sm:$0xff] %v1965_v29  ;;  %v1966_v32 = vadd.f32 %v1876_v44, %v13517_v30  ;;  %v1901_v0 = vsel %vm1844_vm0, %v1784_v62, %v1787_v39  ;;  %v1502_v19 = vpop.f32.mrf.mxu1  ;;  %v12653_v62 = vld [vmem:[#allocation5 + $0x620] ss:$12 sps:$4 sm:$0xff]   ;;  %v12663_v31 = vld [vmem:[#allocation5 + $0x6c8] ss:$12 sps:$4 sm:$0xff]  }
 0x1b6   :  { %v11480_v38 = vadd.f32 %v11479_v54, %v11478_v53  ;;  %4916 = vmatpush2.bf16.msra.mxu1 %v12618_v27  ;;  %11730 = vmatprep.subr.bf16.mxu0 %v12638_v59  ;;  %v1943_v37 = vadd.f32 %v1901_v0, %v1706_v22  ;;  %v1872_v55 = vsel %vm1844_vm0, %v1809_v35, %v1812_v51  ;;  %v1813_v63 = vrot.slane %v1502_v19, 1  ;;  %v11481_v9 = vpop.f32.mrf.mxu0  ;;  %v12648_v29 = vld [vmem:[#allocation5 + $0x82c] ss:$12 sps:$4 sm:$0xff]   ;;  %v1737_v44 = vld [vmem:[#allocation8 + $0x198] sm:$0xff] }
 0x1b7   :  { %4917 = vmatprep.subr.bf16.mxu1 %v12627_v45  ;;  %2044 = vst [vmem:[#allocation8 + $0x158] sm:$0xff] %v1966_v32  ;;  %v1968_v41 = vadd.f32 %v1872_v55, %v13520_v24  ;;  %v1504_v30 = vpop.f32.mrf.mxu1  ;;  %v1712_v45 = vld [vmem:[#allocation8 + $0xd0] sm:$0xff] }
 0x1b8   :  { %v1790_v13 = vrot.slane %v11480_v38, 1  ;;  %2021 = vst [vmem:[#allocation8 + $0xa0] sm:$0xff] %v1943_v37  ;;  %v1873_v60 = vsel %vm1844_vm0, %v1810_v47, %v1813_v63  ;;  %v1815_v1 = vrot.slane %v1504_v30, 1  ;;  %v11482_v7 = vpop.f32.mrf.mxu0  ;;  %v12664_v47 = vld [vmem:[#allocation5 + $0x608] ss:$12 sps:$4 sm:$0xff]  }
 0x1b9   :  { %11731 = vmatpush3.bf16.msra.mxu0 %v12642_v12  ;;  %2046 = vst [vmem:[#allocation8 + $0x168] sm:$0xff] %v1968_v41  ;;  %v1969_v6 = vadd.f32 %v1873_v60, %v13524_v43  ;;  %v1506_v17 = vpop.f32.mrf.mxu1  ;;  %v11483_v35 = vadd.f32 %v11482_v7, %v11481_v9  ;;  %v12641_v43 = vld [vmem:[#allocation5 + $0x6c4] ss:$12 sps:$4 sm:$0xff]   ;;  %v1740_v7 = vld [vmem:[#allocation8 + $0x1b0] sm:$0xff] }
 0x1ba   :  { %v1898_v24 = vsel %vm1844_vm0, %v1787_v39, %v1790_v13  ;;  %4918 = vmatpush2.bf16.msra.mxu1 %v12625_v3  ;;  %11732 = vmatprep.subr.bf16.mxu0 %v12649_v16  ;;  %v1869_v20 = vsel %vm1844_vm0, %v1812_v51, %v1815_v1  ;;  %v1816_v10 = vrot.slane %v1506_v17, 1  ;;  %v11484_v46 = vpop.f32.mrf.mxu0  ;;  %v1738_v38 = vld [vmem:[#allocation8 + $0x1a0] sm:$0xff]  ;;  %v1715_v41 = vld [vmem:[#allocation8 + $0xe8] sm:$0xff] }
 0x1bb   :  { %v1946_v11 = vadd.f32 %v1898_v24, %v1709_v36  ;;  %3944 = vmatmul.mubr.bf16.gmra.mxu0 %v13633_v57  ;;  %4919 = vmatprep.subr.bf16.mxu1 %v12634_v26  ;;  %2047 = vst [vmem:[#allocation8 + $0x170] sm:$0xff] %v1969_v6  ;;  %v1971_v27 = vadd.f32 %v1869_v20, %v13528_v28  ;;  %v1793_v59 = vrot.slane %v11483_v35, 1  ;;  %v1510_v50 = vpop.f32.mrf.mxu1  ;;  %v12677_v28 = vld [vmem:[#allocation5 + $0x8f0] ss:$12 sps:$4 sm:$0xff]   ;;  %v13760_v9 = vld [vmem:[#allocation2 + $0x94] ss:$8 sps:$4 sm:$0xff]  }
 0x1bc   :  { %3827 = vmatmul.mubr.bf16.gmra.mxu1 %v13733_v61  ;;  %3951 = vmatprep.mubr.bf16.mxu0 %v13640_v56  ;;  %v1870_v53 = vsel %vm1844_vm0, %v1813_v63, %v1816_v10  ;;  %v1818_v12 = vrot.slane %v1510_v50, 1  ;;  %v11485_v57 = vpop.f32.mrf.mxu0 }
 0x1bd   :  { %2024 = vst [vmem:[#allocation8 + $0xb8] sm:$0xff] %v1946_v11  ;;  %3836 = vmatprep.mubr.bf16.mxu1 %v13737_v5  ;;  %11733 = vmatpush3.bf16.msra.mxu0 %v12653_v62  ;;  %2049 = vst [vmem:[#allocation8 + $0x180] sm:$0xff] %v1971_v27  ;;  %v1972_v39 = vadd.f32 %v1870_v53, %v13533_v34  ;;  %v1895_v52 = vsel %vm1844_vm0, %v1790_v13, %v1793_v59  ;;  %v1512_v56 = vpop.f32.mrf.mxu1  ;;  %v13756_v34 = vld [vmem:[#allocation2 + $0x80] ss:$8 sps:$4 sm:$0xff]  }
 0x1be   :  { %v11486_v3 = vadd.f32 %v11485_v57, %v11484_v46  ;;  %4920 = vmatpush2.bf16.msra.mxu1 %v12632_v33  ;;  %11734 = vmatprep.subr.bf16.mxu0 %v12663_v31  ;;  %v1949_v16 = vadd.f32 %v1895_v52, %v1712_v45  ;;  %v1866_v22 = vsel %vm1844_vm0, %v1815_v1, %v1818_v12  ;;  %v1819_v51 = vrot.slane %v1512_v56, 1  ;;  %v11487_v54 = vpop.f32.mrf.mxu0  ;;  %v1741_v33 = vld [vmem:[#allocation8 + $0x1b8] sm:$0xff] }
 0x1bf   :  { %4921 = vmatprep.subr.bf16.mxu1 %v12641_v43  ;;  %2050 = vst [vmem:[#allocation8 + $0x188] sm:$0xff] %v1972_v39  ;;  %v1974_v32 = vadd.f32 %v1866_v22, %v1737_v44  ;;  %v1514_v19 = vpop.f32.mrf.mxu1  ;;  %v13776_v57 = vld [vmem:[#allocation2 + $0x90] ss:$8 sps:$4 sm:$0xff]   ;;  %v13780_v56 = vld [vmem:[#allocation2 + $0xa4] ss:$8 sps:$4 sm:$0xff]  }
 0x1c0   :  { %v1796_v0 = vrot.slane %v11486_v3, 1  ;;  %2027 = vst [vmem:[#allocation8 + $0xd0] sm:$0xff] %v1949_v16  ;;  %v1867_v37 = vsel %vm1844_vm0, %v1816_v10, %v1819_v51  ;;  %v1821_v55 = vrot.slane %v1514_v19, 1  ;;  %v11488_v63 = vpop.f32.mrf.mxu0  ;;  %v1718_v10 = vld [vmem:[#allocation8 + $0x100] sm:$0xff]  ;;  %v1721_v16 = vld [vmem:[#allocation8 + $0x118] sm:$0xff] }
 0x1c1   :  { %11735 = vmatpush3.bf16.msra.mxu0 %v12664_v47  ;;  %2052 = vst [vmem:[#allocation8 + $0x198] sm:$0xff] %v1974_v32  ;;  %v1975_v26 = vadd.f32 %v1867_v37, %v1738_v38  ;;  %v1516_v30 = vpop.f32.mrf.mxu1  ;;  %v11489_v60 = vadd.f32 %v11488_v63, %v11487_v54  ;;  %v1746_v32 = vld [vmem:[#allocation8 + $0x1e0] sm:$0xff] }
 0x1c2   :  { %v1892_v13 = vsel %vm1844_vm0, %v1793_v59, %v1796_v0  ;;  %4922 = vmatpush2.bf16.msra.mxu1 %v12639_v42  ;;  %11814 = vmatprep.subr.bf16.mxu0 %v12677_v28  ;;  %v1863_v62 = vsel %vm1844_vm0, %v1818_v12, %v1821_v55  ;;  %v1822_v6 = vrot.slane %v1516_v30, 1  ;;  %v11490_v36 = vpop.f32.mrf.mxu0  ;;  %v1743_v59 = vld [vmem:[#allocation8 + $0x1c8] sm:$0xff] }
 0x1c3   :  { %v1952_v1 = vadd.f32 %v1892_v13, %v1715_v41  ;;  %3952 = vmatmul.mubr.bf16.gmra.mxu0 %v13658_v48  ;;  %6059 = vmatprep.subr.bf16.mxu1 %v12648_v29  ;;  %2053 = vst [vmem:[#allocation8 + $0x1a0] sm:$0xff] %v1975_v26  ;;  %v1977_v24 = vadd.f32 %v1863_v62, %v1740_v7  ;;  %v1799_v17 = vrot.slane %v11489_v60, 1  ;;  %v1520_v35 = vpop.f32.mrf.mxu1  ;;  %v1744_v29 = vld [vmem:[#allocation8 + $0x1d0] sm:$0xff]  ;;  %v1747_v26 = vld [vmem:[#allocation8 + $0x1e8] sm:$0xff] }
 0x1c4   :  { %3837 = vmatmul.mubr.bf16.gmra.mxu1 %v13756_v34  ;;  %3959 = vmatprep.mubr.bf16.mxu0 %v13665_v58  ;;  %v1864_v31 = vsel %vm1844_vm0, %v1819_v51, %v1822_v6  ;;  %v1824_v11 = vrot.slane %v1520_v35, 1  ;;  %v11491_v20 = vpop.f32.mrf.mxu0 }
 0x1c5   :  { %2030 = vst [vmem:[#allocation8 + $0xe8] sm:$0xff] %v1952_v1  ;;  %3846 = vmatprep.mubr.bf16.mxu1 %v13760_v9  ;;  %2055 = vst [vmem:[#allocation8 + $0x1b0] sm:$0xff] %v1977_v24  ;;  %v1978_v48 = vadd.f32 %v1864_v31, %v1741_v33  ;;  %v1889_v46 = vsel %vm1844_vm0, %v1796_v0, %v1799_v17  ;;  %v1522_v43 = vpop.f32.mrf.mxu1  ;;  %v11492_v27 = vadd.f32 %v11491_v20, %v11490_v36  ;;  %v1749_v36 = vld [vmem:[#allocation8 + $0x1f8] sm:$0xff]  ;;  %v1750_v20 = vld [vmem:[#allocation8 + $0x200] sm:$0xff] }
 0x1c6   :  { %v1955_v45 = vadd.f32 %v1889_v46, %v1718_v10  ;;  %v1860_v58 = vsel %vm1844_vm0, %v1821_v55, %v1824_v11  ;;  %v1825_v50 = vrot.slane %v1522_v43, 1  ;;  %v11493_v42 = vpop.f32.mrf.mxu0  ;;  %v13800_v43 = vld [vmem:[#allocation2 + $0xb4] ss:$8 sps:$4 sm:$0xff]  }
 0x1c7   :  { %2056 = vst [vmem:[#allocation8 + $0x1b8] sm:$0xff] %v1978_v48  ;;  %v1980_v47 = vadd.f32 %v1860_v58, %v1743_v59  ;;  %v1802_v53 = vrot.slane %v11492_v27, 1  ;;  %v1524_v12 = vpop.f32.mrf.mxu1 }
 0x1c8   :  { %2033 = vst [vmem:[#allocation8 + $0x100] sm:$0xff] %v1955_v45  ;;  %v1861_v28 = vsel %vm1844_vm0, %v1822_v6, %v1825_v50  ;;  %v1827_v39 = vrot.slane %v1524_v12, 1  ;;  %v11494_v52 = vpop.f32.mrf.mxu0  ;;  %v1727_v45 = vld [vmem:[#allocation8 + $0x148] sm:$0xff] }
 0x1c9   :  { %2058 = vst [vmem:[#allocation8 + $0x1c8] sm:$0xff] %v1980_v47  ;;  %v1981_v3 = vadd.f32 %v1861_v28, %v1744_v29  ;;  %v1886_v44 = vsel %vm1844_vm0, %v1799_v17, %v1802_v53  ;;  %v1526_v22 = vpop.f32.mrf.mxu1  ;;  %v11495_v51 = vadd.f32 %v11494_v52, %v11493_v42  ;;  %v1752_v47 = vld [vmem:[#allocation8 + $0x210] sm:$0xff] }
 0x1ca   :  { %v1958_v54 = vadd.f32 %v1886_v44, %v1721_v16  ;;  %v1857_v0 = vsel %vm1844_vm0, %v1824_v11, %v1827_v39  ;;  %v1828_v19 = vrot.slane %v1526_v22, 1  ;;  %v11496_v38 = vpop.f32.mrf.mxu0  ;;  %v13796_v11 = vld [vmem:[#allocation2 + $0xa0] ss:$8 sps:$4 sm:$0xff]  }
 0x1cb   :  { %3960 = vmatmul.mubr.bf16.gmra.mxu0 %v13682_v49  ;;  %2059 = vst [vmem:[#allocation8 + $0x1d0] sm:$0xff] %v1981_v3  ;;  %v1983_v37 = vadd.f32 %v1857_v0, %v1746_v32  ;;  %v1805_v55 = vrot.slane %v11495_v51, 1  ;;  %v1530_v63 = vpop.f32.mrf.mxu1  ;;  %v1724_v49 = vld [vmem:[#allocation8 + $0x130] sm:$0xff]  ;;  %v1753_v3 = vld [vmem:[#allocation8 + $0x218] sm:$0xff] }
 0x1cc   :  { %3847 = vmatmul.mubr.bf16.gmra.mxu1 %v13776_v57  ;;  %3967 = vmatprep.mubr.bf16.mxu0 %v13686_v18  ;;  %2036 = vst [vmem:[#allocation8 + $0x118] sm:$0xff] %v1958_v54  ;;  %v1858_v41 = vsel %vm1844_vm0, %v1825_v50, %v1828_v19  ;;  %v1830_v13 = vrot.slane %v1530_v63, 1  ;;  %v11497_v30 = vpop.f32.mrf.mxu0 }
 0x1cd   :  { %3856 = vmatprep.mubr.bf16.mxu1 %v13780_v56  ;;  %2061 = vst [vmem:[#allocation8 + $0x1e0] sm:$0xff] %v1983_v37  ;;  %v1984_v60 = vadd.f32 %v1858_v41, %v1747_v26  ;;  %v1883_v1 = vsel %vm1844_vm0, %v1802_v53, %v1805_v55  ;;  %v1532_v7 = vpop.f32.mrf.mxu1  ;;  %v11498_v62 = vadd.f32 %v11497_v30, %v11496_v38  ;;  %v1755_v38 = vld [vmem:[#allocation8 + $0x228] sm:$0xff]  ;;  %v1756_v30 = vld [vmem:[#allocation8 + $0x230] sm:$0xff] }
 0x1ce   :  { %v1961_v6 = vadd.f32 %v1883_v1, %v1724_v49  ;;  %v1854_v18 = vsel %vm1844_vm0, %v1827_v39, %v1830_v13  ;;  %v1831_v24 = vrot.slane %v1532_v7, 1  ;;  %v11499_v17 = vpop.f32.mrf.mxu0  ;;  %v13820_v7 = vld [vmem:[#allocation2 + $0xc4] ss:$8 sps:$4 sm:$0xff]  }
 0x1cf   :  { %2062 = vst [vmem:[#allocation8 + $0x1e8] sm:$0xff] %v1984_v60  ;;  %v1986_v35 = vadd.f32 %v1854_v18, %v1749_v36  ;;  %v1808_v33 = vrot.slane %v11498_v62, 1  ;;  %v1534_v31 = vpop.f32.mrf.mxu1 }
 0x1d0   :  { %2039 = vst [vmem:[#allocation8 + $0x130] sm:$0xff] %v1961_v6  ;;  %v1855_v48 = vsel %vm1844_vm0, %v1828_v19, %v1831_v24  ;;  %v1833_v10 = vrot.slane %v1534_v31, 1  ;;  %v11500_v46 = vpop.f32.mrf.mxu0  ;;  %v1733_v6 = vld [vmem:[#allocation8 + $0x178] sm:$0xff] }
 0x1d1   :  { %2064 = vst [vmem:[#allocation8 + $0x1f8] sm:$0xff] %v1986_v35  ;;  %v1987_v27 = vadd.f32 %v1855_v48, %v1750_v20  ;;  %v1880_v59 = vsel %vm1844_vm0, %v1805_v55, %v1808_v33  ;;  %v1536_v58 = vpop.f32.mrf.mxu1  ;;  %v11501_v50 = vadd.f32 %v11500_v46, %v11499_v17  ;;  %v1758_v35 = vld [vmem:[#allocation8 + $0x240] sm:$0xff] }
 0x1d2   :  { %v1964_v42 = vadd.f32 %v1880_v59, %v1727_v45  ;;  %v1851_v53 = vsel %vm1844_vm0, %v1830_v13, %v1833_v10  ;;  %v1834_v12 = vrot.slane %v1536_v58, 1  ;;  %v11502_v29 = vpop.f32.mrf.mxu0  ;;  %v13816_v13 = vld [vmem:[#allocation2 + $0xb0] ss:$8 sps:$4 sm:$0xff]   ;;  %v1759_v58 = vld [vmem:[#allocation8 + $0x248] sm:$0xff] }
 0x1d3   :  { %3968 = vmatmul.mubr.bf16.gmra.mxu0 %v13706_v15  ;;  %2065 = vst [vmem:[#allocation8 + $0x200] sm:$0xff] %v1987_v27  ;;  %v1989_v28 = vadd.f32 %v1851_v53, %v1752_v47  ;;  %v1811_v39 = vrot.slane %v11501_v50, 1  ;;  %v1540_v52 = vpop.f32.mrf.mxu1  ;;  %v1730_v15 = vld [vmem:[#allocation8 + $0x160] sm:$0xff]  ;;  %v1736_v53 = vld [vmem:[#allocation8 + $0x190] sm:$0xff] }
 0x1d4   :  { %3857 = vmatmul.mubr.bf16.gmra.mxu1 %v13796_v11  ;;  %3975 = vmatprep.mubr.bf16.mxu0 %v13711_v25  ;;  %2042 = vst [vmem:[#allocation8 + $0x148] sm:$0xff] %v1964_v42  ;;  %v1852_v16 = vsel %vm1844_vm0, %v1831_v24, %v1834_v12  ;;  %v1836_v44 = vrot.slane %v1540_v52, 1  ;;  %v11503_v22 = vpop.f32.mrf.mxu0  ;;  %v13847_v52 = vld [vmem:[#allocation2 + $0xc0] ss:$8 sps:$4 sm:$0xff]  }
 0x1d5   :  { %3866 = vmatprep.mubr.bf16.mxu1 %v13800_v43  ;;  %2067 = vst [vmem:[#allocation8 + $0x210] sm:$0xff] %v1989_v28  ;;  %v1990_v51 = vadd.f32 %v1852_v16, %v1753_v3  ;;  %v1877_v54 = vsel %vm1844_vm0, %v1808_v33, %v1811_v39  ;;  %v1542_v32 = vpop.f32.mrf.mxu1  ;;  %v11504_v0 = vadd.f32 %v11503_v22, %v11502_v29  ;;  %v1761_v33 = vld [vmem:[#allocation8 + $0x258] sm:$0xff] }
 0x1d6   :  { %v1967_v19 = vadd.f32 %v1877_v54, %v1730_v15  ;;  %v1848_v25 = vsel %vm1844_vm0, %v1833_v10, %v1836_v44  ;;  %v1837_v37 = vrot.slane %v1542_v32, 1  ;;  %v11505_v55 = vpop.f32.mrf.mxu0  ;;  %v13850_v22 = vld [vmem:[#allocation2 + $0x4] ss:$8 sps:$4 sm:$0xff]  }
 0x1d7   :  { %2068 = vst [vmem:[#allocation8 + $0x218] sm:$0xff] %v1990_v51  ;;  %v1992_v63 = vadd.f32 %v1848_v25, %v1755_v38  ;;  %v1814_v26 = vrot.slane %v11504_v0, 1  ;;  %v1544_v41 = vpop.f32.mrf.mxu1  ;;  %v1739_v51 = vld [vmem:[#allocation8 + $0x1a8] sm:$0xff]  ;;  %v2856_v38 = vld [vmem:[#allocation8] sm:$0xff] }
 0x1d8   :  { %2045 = vst [vmem:[#allocation8 + $0x160] sm:$0xff] %v1967_v19  ;;  %v1849_v60 = vsel %vm1844_vm0, %v1834_v12, %v1837_v37  ;;  %v1839_v49 = vrot.slane %v1544_v41, 1  ;;  %v11506_v1 = vpop.f32.mrf.mxu0 }
 0x1d9   :  { %2070 = vst [vmem:[#allocation8 + $0x228] sm:$0xff] %v1992_v63  ;;  %v1993_v62 = vadd.f32 %v1849_v60, %v1756_v30  ;;  %v1874_v36 = vsel %vm1844_vm0, %v1811_v39, %v1814_v26  ;;  %v1546_v18 = vpop.f32.mrf.mxu1  ;;  %v11507_v24 = vadd.f32 %v11506_v1, %v11505_v55  ;;  %v2857_v30 = vld [vmem:[#allocation8 + $0x8] sm:$0xff] }
 0x1da   :  { %v1970_v17 = vadd.f32 %v1874_v36, %v1733_v6  ;;  %v1845_v31 = vsel %vm1844_vm0, %v1836_v44, %v1839_v49  ;;  %v1920_v20 = vsel %vm1844_vm0, %v1839_v49, %v1764_v23  ;;  %v1840_v48 = vrot.slane %v1546_v18, 1  ;;  %v11508_v10 = vpop.f32.mrf.mxu0 }
 0x1db   :  { %3976 = vmatmul.mubr.bf16.gmra.mxu0 %v13733_v61  ;;  %2071 = vst [vmem:[#allocation8 + $0x230] sm:$0xff] %v1993_v62  ;;  %v1995_v46 = vadd.f32 %v1845_v31, %v1758_v35  ;;  %v1998_v27 = vadd.f32 %v1920_v20, %v1761_v33  ;;  %v1817_v45 = vrot.slane %v11507_v24, 1  ;;  %v13831_v59 = vpop.f32.mrf.mxu1  ;;  %v2859_v24 = vld [vmem:[#allocation8 + $0x18] sm:$0xff] }
 0x1dc   :  { %3867 = vmatmul.mubr.bf16.gmra.mxu1 %v13816_v13  ;;  %3983 = vmatprep.mubr.bf16.mxu0 %v13737_v5  ;;  %2048 = vst [vmem:[#allocation8 + $0x178] sm:$0xff] %v1970_v17  ;;  %v1846_v23 = vsel %vm1844_vm0, %v1837_v37, %v1840_v48  ;;  %v1921_v61 = vsel %vm1844_vm0, %v1840_v48, %v1765_v4  ;;  %v11509_v50 = vpop.f32.mrf.mxu0  ;;  %v2934_v3 = vrot.slane %v13831_v59, 2 }
 0x1dd   :  { %3876 = vmatprep.mubr.bf16.mxu1 %v13820_v7  ;;  %2073 = vst [vmem:[#allocation8 + $0x240] sm:$0xff] %v1995_v46  ;;  %2076 = vst [vmem:[#allocation8 + $0x258] sm:$0xff] %v1998_v27  ;;  %v1996_v42 = vadd.f32 %v1846_v23, %v1759_v58  ;;  %v1999_v47 = vadd.f32 %v1921_v61, %v1762_v8  ;;  %v1871_v5 = vsel %vm1844_vm0, %v1814_v26, %v1817_v45  ;;  %v13844_v29 = vpop.f32.mrf.mxu1  ;;  %v2860_v46 = vld [vmem:[#allocation8 + $0x20] sm:$0xff]  ;;  %v1745_v61 = vld [vmem:[#allocation8 + $0x1d8] sm:$0xff] }
 0x1de   :  { %v11510_v12 = vadd.f32 %v11509_v50, %v11508_v10  ;;  %v1973_v28 = vadd.f32 %v1871_v5, %v1736_v53  ;;  %v11511_v39 = vpop.f32.mrf.mxu0  ;;  %v2935_v19 = vrot.slane %v13844_v29, 2  ;;  %v13871_v10 = vld [vmem:[#allocation2] ss:$8 sps:$4 sm:$0xff]   ;;  %v12646_v8 = vld [vmem:[#allocation5 + $0x828] ss:$12 sps:$4 sm:$0xff]  }
 0x1df   :  { %2074 = vst [vmem:[#allocation8 + $0x248] sm:$0xff] %v1996_v42  ;;  %2077 = vst [vmem:[#allocation8 + $0x260] sm:$0xff] %v1999_v47  ;;  %v2594_v4 = vpop.f32.mrf.mxu1  ;;  %v13875_v23 = vld [vmem:[#allocation2 + $0x14] ss:$8 sps:$4 sm:$0xff]   ;;  %v12656_v5 = vld [vmem:[#allocation5 + $0x814] ss:$12 sps:$4 sm:$0xff]  }
 0x1e0   :  { %v1820_v2 = vrot.slane %v11510_v12, 1  ;;  %2051 = vst [vmem:[#allocation8 + $0x190] sm:$0xff] %v1973_v28  ;;  %v2937_v16 = vrot.slane %v2594_v4, 2  ;;  %v11512_v44 = vpop.f32.mrf.mxu0  ;;  %v2862_v28 = vld [vmem:[#allocation8 + $0x30] sm:$0xff] }
 0x1e1   :  { %v11513_v54 = vadd.f32 %v11512_v44, %v11511_v39  ;;  %v2596_v32 = vpop.f32.mrf.mxu1 }
 0x1e2   :  { %v1868_v15 = vsel %vm1844_vm0, %v1817_v45, %v1820_v2  ;;  %v3085_v25 = vsel %vm3012_vm1, %v2934_v3, %v2937_v16  ;;  %v2938_v37 = vrot.slane %v2596_v32, 2  ;;  %v11514_v55 = vpop.f32.mrf.mxu0 }
 0x1e3   :  { %v1976_v0 = vadd.f32 %v1868_v15, %v1739_v51  ;;  %3984 = vmatmul.mubr.bf16.gmra.mxu0 %v13756_v34  ;;  %v3091_v63 = vadd.f32 %v3085_v25, %v2856_v38  ;;  %v1823_v26 = vrot.slane %v11513_v54, 1  ;;  %v2600_v41 = vpop.f32.mrf.mxu1  ;;  %v1742_v34 = vld [vmem:[#allocation8 + $0x1c0] sm:$0xff]  ;;  %v2863_v15 = vld [vmem:[#allocation8 + $0x38] sm:$0xff] }
 0x1e4   :  { %3877 = vmatmul.mubr.bf16.gmra.mxu1 %v13847_v52  ;;  %3991 = vmatprep.mubr.bf16.mxu0 %v13760_v9  ;;  %v3086_v60 = vsel %vm3012_vm1, %v2935_v19, %v2938_v37  ;;  %v2940_v49 = vrot.slane %v2600_v41, 2  ;;  %v11515_v1 = vpop.f32.mrf.mxu0  ;;  %v12654_v38 = vld [vmem:[#allocation5 + $0x810] ss:$12 sps:$4 sm:$0xff]  }
 0x1e5   :  { %2054 = vst [vmem:[#allocation8 + $0x1a8] sm:$0xff] %v1976_v0  ;;  %4923 = vmatprep.mubr.bf16.mxu1 %v13850_v22  ;;  %3169 = vst [vmem:[#allocation8] sm:$0xff] %v3091_v63  ;;  %v1865_v62 = vsel %vm1844_vm0, %v1820_v2, %v1823_v26  ;;  %v3092_v6 = vadd.f32 %v3086_v60, %v2857_v30  ;;  %v11516_v36 = vadd.f32 %v11515_v1, %v11514_v55  ;;  %v2602_v18 = vpop.f32.mrf.mxu1  ;;  %v2865_v41 = vld [vmem:[#allocation8 + $0x48] sm:$0xff] }
 0x1e6   :  { %v1979_v9 = vadd.f32 %v1865_v62, %v1742_v34  ;;  %v3082_v17 = vsel %vm3012_vm1, %v2937_v16, %v2940_v49  ;;  %v2941_v35 = vrot.slane %v2602_v18, 2  ;;  %v11517_v33 = vpop.f32.mrf.mxu0 }
 0x1e7   :  { %3170 = vst [vmem:[#allocation8 + $0x8] sm:$0xff] %v3092_v6  ;;  %v3094_v31 = vadd.f32 %v3082_v17, %v2859_v24  ;;  %v1826_v20 = vrot.slane %v11516_v36, 1  ;;  %v2604_v48 = vpop.f32.mrf.mxu1  ;;  %v13891_v6 = vld [vmem:[#allocation2 + $0x10] ss:$8 sps:$4 sm:$0xff]   ;;  %v2866_v36 = vld [vmem:[#allocation8 + $0x50] sm:$0xff] }
 0x1e8   :  { %2057 = vst [vmem:[#allocation8 + $0x1c0] sm:$0xff] %v1979_v9  ;;  %v3083_v27 = vsel %vm3012_vm1, %v2938_v37, %v2941_v35  ;;  %v2943_v45 = vrot.slane %v2604_v48, 2  ;;  %v11518_v58 = vpop.f32.mrf.mxu0  ;;  %v12657_v17 = vld [vmem:[#allocation5 + $0x7f8] ss:$12 sps:$4 sm:$0xff]  }
 0x1e9   :  { %3172 = vst [vmem:[#allocation8 + $0x18] sm:$0xff] %v3094_v31  ;;  %v1862_v50 = vsel %vm1844_vm0, %v1823_v26, %v1826_v20  ;;  %v3095_v42 = vadd.f32 %v3083_v27, %v2860_v46  ;;  %v11519_v47 = vadd.f32 %v11518_v58, %v11517_v33  ;;  %v2606_v53 = vpop.f32.mrf.mxu1  ;;  %v1751_v33 = vld [vmem:[#allocation8 + $0x208] sm:$0xff]  ;;  %v2868_v58 = vld [vmem:[#allocation8 + $0x60] sm:$0xff] }
 0x1ea   :  { %v1982_v12 = vadd.f32 %v1862_v50, %v1745_v61  ;;  %v3079_v39 = vsel %vm3012_vm1, %v2940_v49, %v2943_v45  ;;  %v2944_v2 = vrot.slane %v2606_v53, 2  ;;  %v11520_v4 = vpop.f32.mrf.mxu0  ;;  %v12667_v27 = vld [vmem:[#allocation5 + $0x7e4] ss:$12 sps:$4 sm:$0xff]  }
 0x1eb   :  { %3992 = vmatmul.mubr.bf16.gmra.mxu0 %v13776_v57  ;;  %3173 = vst [vmem:[#allocation8 + $0x20] sm:$0xff] %v3095_v42  ;;  %v3097_v16 = vadd.f32 %v3079_v39, %v2862_v28  ;;  %v1829_v44 = vrot.slane %v11519_v47, 1  ;;  %v2610_v51 = vpop.f32.mrf.mxu1  ;;  %v1748_v57 = vld [vmem:[#allocation8 + $0x1f0] sm:$0xff] }
 0x1ec   :  { %4924 = vmatmul.mubr.bf16.vlgmr.msra.gmra.mxu1 %v13871_v10  ;;  %3999 = vmatprep.mubr.bf16.mxu0 %v13780_v56  ;;  %2060 = vst [vmem:[#allocation8 + $0x1d8] sm:$0xff] %v1982_v12  ;;  %v3080_v54 = vsel %vm3012_vm1, %v2941_v35, %v2944_v2  ;;  %v2946_v32 = vrot.slane %v2610_v51, 2  ;;  %v11521_v0 = vpop.f32.mrf.mxu0  ;;  %v12659_v56 = vld [vmem:[#allocation5 + $0x7fc] ss:$12 sps:$4 sm:$0xff]  }
 0x1ed   :  { %6060 = vmatpush1.bf16.msra.mxu1 %v12646_v8  ;;  %4933 = vmatprep.mubr.bf16.mxu1 %v13875_v23  ;;  %3175 = vst [vmem:[#allocation8 + $0x30] sm:$0xff] %v3097_v16  ;;  %v1859_v25 = vsel %vm1844_vm0, %v1826_v20, %v1829_v44  ;;  %v3098_v37 = vadd.f32 %v3080_v54, %v2863_v15  ;;  %v2612_v63 = vpop.f32.mrf.mxu1  ;;  %v13895_v35 = vld [vmem:[#allocation2 + $0x24] ss:$8 sps:$4 sm:$0xff]  }
 0x1ee   :  { %v11522_v55 = vadd.f32 %v11521_v0, %v11520_v4  ;;  %6061 = vmatprep.subr.bf16.mxu1 %v12656_v5  ;;  %v1985_v26 = vadd.f32 %v1859_v25, %v1748_v57  ;;  %v3076_v30 = vsel %vm3012_vm1, %v2943_v45, %v2946_v32  ;;  %v2947_v60 = vrot.slane %v2612_v63, 2  ;;  %v11523_v49 = vpop.f32.mrf.mxu0  ;;  %v2869_v5 = vld [vmem:[#allocation8 + $0x68] sm:$0xff]  ;;  %v2871_v54 = vld [vmem:[#allocation8 + $0x78] sm:$0xff]  ;;  %v2872_v63 = vld [vmem:[#allocation8 + $0x80] sm:$0xff] }
 0x1ef   :  { %3176 = vst [vmem:[#allocation8 + $0x38] sm:$0xff] %v3098_v37  ;;  %v3100_v1 = vadd.f32 %v3076_v30, %v2865_v41  ;;  %v2614_v62 = vpop.f32.mrf.mxu1  ;;  %v13915_v30 = vld [vmem:[#allocation2 + $0x34] ss:$8 sps:$4 sm:$0xff]  }
 0x1f0   :  { %v1832_v34 = vrot.slane %v11522_v55, 1  ;;  %2063 = vst [vmem:[#allocation8 + $0x1f0] sm:$0xff] %v1985_v26  ;;  %v3077_v18 = vsel %vm3012_vm1, %v2944_v2, %v2947_v60  ;;  %v2949_v9 = vrot.slane %v2614_v62, 2  ;;  %v11524_v24 = vpop.f32.mrf.mxu0  ;;  %v12665_v2 = vld [vmem:[#allocation5 + $0x7e0] ss:$12 sps:$4 sm:$0xff]  }
 0x1f1   :  { %6062 = vmatpush1.bf16.msra.mxu1 %v12654_v38  ;;  %3178 = vst [vmem:[#allocation8 + $0x48] sm:$0xff] %v3100_v1  ;;  %v3101_v20 = vadd.f32 %v3077_v18, %v2866_v36  ;;  %v11525_v48 = vadd.f32 %v11524_v24, %v11523_v49  ;;  %v2616_v46 = vpop.f32.mrf.mxu1  ;;  %v13911_v55 = vld [vmem:[#allocation2 + $0x20] ss:$8 sps:$4 sm:$0xff]   ;;  %v1757_v49 = vld [vmem:[#allocation8 + $0x238] sm:$0xff] }
 0x1f2   :  { %v1856_v31 = vsel %vm1844_vm0, %v1829_v44, %v1832_v34  ;;  %6063 = vmatprep.subr.bf16.mxu1 %v12659_v56  ;;  %v3073_v8 = vsel %vm3012_vm1, %v2946_v32, %v2949_v9  ;;  %v2950_v61 = vrot.slane %v2616_v46, 2  ;;  %v11526_v50 = vpop.f32.mrf.mxu0  ;;  %v12680_v18 = vld [vmem:[#allocation5 + $0x7b4] ss:$12 sps:$4 sm:$0xff]  }
 0x1f3   :  { %v1988_v45 = vadd.f32 %v1856_v31, %v1751_v33  ;;  %4000 = vmatmul.mubr.bf16.gmra.mxu0 %v13796_v11  ;;  %3179 = vst [vmem:[#allocation8 + $0x50] sm:$0xff] %v3101_v20  ;;  %v3103_v42 = vadd.f32 %v3073_v8, %v2868_v58  ;;  %v1835_v47 = vrot.slane %v11525_v48, 1  ;;  %v2620_v53 = vpop.f32.mrf.mxu1  ;;  %v1754_v11 = vld [vmem:[#allocation8 + $0x220] sm:$0xff]  ;;  %v2874_v24 = vld [vmem:[#allocation8 + $0x90] sm:$0xff] }
 0x1f4   :  { %4934 = vmatmul.mubr.bf16.gmra.mxu1 %v13891_v6  ;;  %4007 = vmatprep.mubr.bf16.mxu0 %v13800_v43  ;;  %v3074_v12 = vsel %vm3012_vm1, %v2947_v60, %v2950_v61  ;;  %v2952_v28 = vrot.slane %v2620_v53, 2  ;;  %v11527_v39 = vpop.f32.mrf.mxu0  ;;  %v12673_v43 = vld [vmem:[#allocation5 + $0x7cc] ss:$12 sps:$4 sm:$0xff]   ;;  %v12671_v60 = vld [vmem:[#allocation5 + $0x7c8] ss:$12 sps:$4 sm:$0xff]  }
 0x1f5   :  { %2066 = vst [vmem:[#allocation8 + $0x208] sm:$0xff] %v1988_v45  ;;  %6064 = vmatpush1.bf16.msra.mxu1 %v12657_v17  ;;  %4943 = vmatprep.mubr.bf16.mxu1 %v13895_v35  ;;  %3181 = vst [vmem:[#allocation8 + $0x60] sm:$0xff] %v3103_v42  ;;  %v1853_v4 = vsel %vm1844_vm0, %v1832_v34, %v1835_v47  ;;  %v3104_v16 = vadd.f32 %v3074_v12, %v2869_v5  ;;  %v2622_v51 = vpop.f32.mrf.mxu1  ;;  %v12687_v5 = vld [vmem:[#allocation5 + $0x79c] ss:$12 sps:$4 sm:$0xff]  }
 0x1f6   :  { %v11528_v44 = vadd.f32 %v11527_v39, %v11526_v50  ;;  %6065 = vmatprep.subr.bf16.mxu1 %v12667_v27  ;;  %v1991_v15 = vadd.f32 %v1853_v4, %v1754_v11  ;;  %v3070_v32 = vsel %vm3012_vm1, %v2949_v9, %v2952_v28  ;;  %v2953_v0 = vrot.slane %v2622_v51, 2  ;;  %v11529_v38 = vpop.f32.mrf.mxu0  ;;  %v2875_v27 = vld [vmem:[#allocation8 + $0x98] sm:$0xff]  ;;  %v1763_v50 = vld [vmem:[#allocation8 + $0x268] sm:$0xff] }
 0x1f7   :  { %3182 = vst [vmem:[#allocation8 + $0x68] sm:$0xff] %v3104_v16  ;;  %v3106_v57 = vadd.f32 %v3070_v32, %v2871_v54  ;;  %v2624_v37 = vpop.f32.mrf.mxu1  ;;  %v2877_v39 = vld [vmem:[#allocation8 + $0xa8] sm:$0xff]  ;;  %v13937_v51 = vld [vmem:[#allocation2 + $0x30] ss:$8 sps:$4 sm:$0xff]   ;;  %v13941_v32 = vld [vmem:[#allocation2 + $0x44] ss:$8 sps:$4 sm:$0xff]  }
 0x1f8   :  { %v1838_v25 = vrot.slane %v11528_v44, 1  ;;  %2069 = vst [vmem:[#allocation8 + $0x220] sm:$0xff] %v1991_v15  ;;  %v3071_v56 = vsel %vm3012_vm1, %v2950_v61, %v2953_v0  ;;  %v2955_v26 = vrot.slane %v2624_v37, 2  ;;  %v11530_v41 = vpop.f32.mrf.mxu0  ;;  %v12678_v61 = vld [vmem:[#allocation5 + $0x7b0] ss:$12 sps:$4 sm:$0xff]  }
 0x1f9   :  { %6066 = vmatpush1.bf16.msra.mxu1 %v12665_v2  ;;  %3184 = vst [vmem:[#allocation8 + $0x78] sm:$0xff] %v3106_v57  ;;  %v3107_v34 = vadd.f32 %v3071_v56, %v2872_v63  ;;  %v11531_v62 = vadd.f32 %v11530_v41, %v11529_v38  ;;  %v2626_v36 = vpop.f32.mrf.mxu1  ;;  %v12691_v37 = vld [vmem:[#allocation5 + $0x784] ss:$12 sps:$4 sm:$0xff]  }
 0x1fa   :  { %v1850_v1 = vsel %vm1844_vm0, %v1835_v47, %v1838_v25  ;;  %6067 = vmatprep.subr.bf16.mxu1 %v12673_v43  ;;  %v3067_v17 = vsel %vm3012_vm1, %v2952_v28, %v2955_v26  ;;  %v2956_v33 = vrot.slane %v2626_v36, 2  ;;  %v11548_v31 = vpop.f32.mrf.mxu0  ;;  %v2880_v63 = vld [vmem:[#allocation8 + $0xc0] sm:$0xff] }
 0x1fb   :  { %v1994_v9 = vadd.f32 %v1850_v1, %v1757_v49  ;;  %4008 = vmatmul.mubr.bf16.gmra.mxu0 %v13816_v13  ;;  %3185 = vst [vmem:[#allocation8 + $0x80] sm:$0xff] %v3107_v34  ;;  %v3109_v20 = vadd.f32 %v3067_v17, %v2874_v24  ;;  %v1841_v48 = vrot.slane %v11531_v62, 1  ;;  %v2630_v46 = vpop.f32.mrf.mxu1  ;;  %v1760_v13 = vld [vmem:[#allocation8 + $0x250] sm:$0xff]  ;;  %v2881_v62 = vld [vmem:[#allocation8 + $0xc8] sm:$0xff] }
 0x1fc   :  { %4944 = vmatmul.mubr.bf16.gmra.mxu1 %v13911_v55  ;;  %4015 = vmatprep.mubr.bf16.mxu0 %v13820_v7  ;;  %v3068_v45 = vsel %vm3012_vm1, %v2953_v0, %v2956_v33  ;;  %v2958_v58 = vrot.slane %v2630_v46, 2  ;;  %v11549_v8 = vpop.f32.mrf.mxu0  ;;  %v12685_v0 = vld [vmem:[#allocation5 + $0x798] ss:$12 sps:$4 sm:$0xff]   ;;  %v2883_v46 = vld [vmem:[#allocation8 + $0xd8] sm:$0xff] }
 0x1fd   :  { %2072 = vst [vmem:[#allocation8 + $0x238] sm:$0xff] %v1994_v9  ;;  %4953 = vmatprep.mubr.bf16.mxu1 %v13915_v30  ;;  %6068 = vmatpush1.bf16.msra.mxu1 %v12671_v60  ;;  %3187 = vst [vmem:[#allocation8 + $0x90] sm:$0xff] %v3109_v20  ;;  %v1847_v42 = vsel %vm1844_vm0, %v1838_v25, %v1841_v48  ;;  %v1922_v7 = vsel %vm1844_vm0, %v1841_v48, %v1766_v21  ;;  %v2632_v53 = vpop.f32.mrf.mxu1  ;;  %v2878_v21 = vld [vmem:[#allocation8 + $0xb0] sm:$0xff] }
 0x1fe   :  { %v3110_v47 = vadd.f32 %v3068_v45, %v2875_v27  ;;  %6069 = vmatprep.subr.bf16.mxu1 %v12680_v18  ;;  %v1997_v12 = vadd.f32 %v1847_v42, %v1760_v13  ;;  %v2000_v28 = vadd.f32 %v1922_v7, %v1763_v50  ;;  %v3064_v2 = vsel %vm3012_vm1, %v2955_v26, %v2958_v58  ;;  %v11551_v4 = vpop.f32.mrf.mxu0  ;;  %v2858_v17 = vld [vmem:[#allocation8 + $0x10] sm:$0xff]  ;;  %v12681_v42 = vld [vmem:[#allocation5 + $0x830] ss:$12 sps:$4 sm:$0xff]   ;;  %v2884_v7 = vld [vmem:[#allocation8 + $0xe0] sm:$0xff] }
 0x1ff   :  { %v2959_v11 = vrot.slane %v2632_v53, 2  ;;  %v3112_v16 = vadd.f32 %v3064_v2, %v2877_v39  ;;  %v13935_v44 = vadd.f32 %v11549_v8, %v11548_v31  ;;  %v2634_v40 = vpop.f32.mrf.mxu1  ;;  %v12698_v20 = vld [vmem:[#allocation5 + $0x8ec] ss:$12 sps:$4 sm:$0xff]  }
 0x200   :  { %3188 = vst [vmem:[#allocation8 + $0x98] sm:$0xff] %v3110_v47  ;;  %2075 = vst [vmem:[#allocation8 + $0x250] sm:$0xff] %v1997_v12  ;;  %v2961_v15 = vrot.slane %v2634_v40, 2  ;;  %v11552_v54 = vpop.f32.mrf.mxu0  ;;  %v13958_v50 = vld [vmem:[#allocation2 + $0x40] ss:$8 sps:$4 sm:$0xff]  }
 0x201   :  { %2078 = vst [vmem:[#allocation8 + $0x268] sm:$0xff] %v2000_v28  ;;  %v3065_v43 = vsel %vm3012_vm1, %v2956_v33, %v2959_v11  ;;  %6070 = vmatpush1.bf16.msra.mxu1 %v12678_v61  ;;  %3190 = vst [vmem:[#allocation8 + $0xa8] sm:$0xff] %v3112_v16  ;;  %v2636_v57 = vpop.f32.mrf.mxu1  ;;  %v11553_v25 = vadd.f32 %v11552_v54, %v11551_v4  ;;  %v2936_v60 = vrot.slane %v13935_v44, 2  ;;  %v13962_v12 = vld [vmem:[#allocation2 + $0x54] ss:$8 sps:$4 sm:$0xff]  }
 0x202   :  { %v3113_v38 = vadd.f32 %v3065_v43, %v2878_v21  ;;  %6071 = vmatprep.subr.bf16.mxu1 %v12687_v5  ;;  %v3061_v56 = vsel %vm3012_vm1, %v2958_v58, %v2961_v15  ;;  %v2962_v26 = vrot.slane %v2636_v57, 2  ;;  %v11554_v41 = vpop.f32.mrf.mxu0  ;;  %v2861_v39 = vld [vmem:[#allocation8 + $0x28] sm:$0xff]  ;;  %v12688_v16 = vld [vmem:[#allocation5 + $0x8d8] ss:$12 sps:$4 sm:$0xff]   ;;  %v12696_v40 = vld [vmem:[#allocation5 + $0x8e8] ss:$12 sps:$4 sm:$0xff]  }
 0x203   :  { %4016 = vmatmul.mubr.bf16.gmra.mxu0 %v13847_v52  ;;  %v3115_v49 = vadd.f32 %v3061_v56, %v2880_v63  ;;  %v2939_v1 = vrot.slane %v11553_v25, 2  ;;  %v2640_v34 = vpop.f32.mrf.mxu1  ;;  %v12689_v52 = vld [vmem:[#allocation5 + $0x780] ss:$12 sps:$4 sm:$0xff]   ;;  %v2886_v43 = vld [vmem:[#allocation8 + $0xf0] sm:$0xff] }
 0x204   :  { %3191 = vst [vmem:[#allocation8 + $0xb0] sm:$0xff] %v3113_v38  ;;  %4954 = vmatmul.mubr.bf16.gmra.mxu1 %v13937_v51  ;;  %5086 = vmatprep.mubr.bf16.mxu0 %v13850_v22  ;;  %v3062_v36 = vsel %vm3012_vm1, %v2959_v11, %v2962_v26  ;;  %v2964_v18 = vrot.slane %v2640_v34, 2  ;;  %v11555_v9 = vpop.f32.mrf.mxu0  ;;  %v12705_v38 = vld [vmem:[#allocation5 + $0x8d4] ss:$12 sps:$4 sm:$0xff]   ;;  %v12692_v63 = vld [vmem:[#allocation5 + $0x818] ss:$12 sps:$4 sm:$0xff]  }
 0x205   :  { %4963 = vmatprep.mubr.bf16.mxu1 %v13941_v32  ;;  %6072 = vmatpush1.bf16.msra.mxu1 %v12685_v0  ;;  %3193 = vst [vmem:[#allocation8 + $0xc0] sm:$0xff] %v3115_v49  ;;  %v3116_v24 = vadd.f32 %v3062_v36, %v2881_v62  ;;  %v3087_v33 = vsel %vm3012_vm1, %v2936_v60, %v2939_v1  ;;  %v2642_v31 = vpop.f32.mrf.mxu1  ;;  %v2887_v56 = vld [vmem:[#allocation8 + $0xf8] sm:$0xff]  ;;  %v2864_v34 = vld [vmem:[#allocation8 + $0x40] sm:$0xff] }
 0x206   :  { %v11556_v22 = vadd.f32 %v11555_v9, %v11554_v41  ;;  %6073 = vmatprep.subr.bf16.mxu1 %v12691_v37  ;;  %v3093_v48 = vadd.f32 %v3087_v33, %v2858_v17  ;;  %v3058_v27 = vsel %vm3012_vm1, %v2961_v15, %v2964_v18  ;;  %v2965_v45 = vrot.slane %v2642_v31, 2  ;;  %v11557_v58 = vpop.f32.mrf.mxu0  ;;  %v12703_v9 = vld [vmem:[#allocation5 + $0x8d0] ss:$12 sps:$4 sm:$0xff]  }
 0x207   :  { %3194 = vst [vmem:[#allocation8 + $0xc8] sm:$0xff] %v3116_v24  ;;  %v3118_v8 = vadd.f32 %v3058_v27, %v2883_v46  ;;  %v2644_v13 = vpop.f32.mrf.mxu1  ;;  %v2889_v24 = vld [vmem:[#allocation8 + $0x108] sm:$0xff]  ;;  %v13978_v46 = vld [vmem:[#allocation2 + $0x50] ss:$8 sps:$4 sm:$0xff]   ;;  %v2890_v27 = vld [vmem:[#allocation8 + $0x110] sm:$0xff] }
 0x208   :  { %v2942_v61 = vrot.slane %v11556_v22, 2  ;;  %3171 = vst [vmem:[#allocation8 + $0x10] sm:$0xff] %v3093_v48  ;;  %v3059_v47 = vsel %vm3012_vm1, %v2962_v26, %v2965_v45  ;;  %v2967_v53 = vrot.slane %v2644_v13, 2  ;;  %v11558_v5 = vpop.f32.mrf.mxu0  ;;  %v12706_v13 = vld [vmem:[#allocation5 + $0x800] ss:$12 sps:$4 sm:$0xff]  }
 0x209   :  { %6074 = vmatpush1.bf16.msra.mxu1 %v12689_v52  ;;  %3196 = vst [vmem:[#allocation8 + $0xd8] sm:$0xff] %v3118_v8  ;;  %v3119_v28 = vadd.f32 %v3059_v47, %v2884_v7  ;;  %v2646_v11 = vpop.f32.mrf.mxu1  ;;  %v11559_v4 = vadd.f32 %v11558_v5, %v11557_v58  ;;  %v2867_v7 = vld [vmem:[#allocation8 + $0x58] sm:$0xff] }
 0x20a   :  { %v3084_v2 = vsel %vm3012_vm1, %v2939_v1, %v2942_v61  ;;  %6075 = vmatprep.subr.bf16.mxu1 %v12698_v20  ;;  %v3055_v15 = vsel %vm3012_vm1, %v2964_v18, %v2967_v53  ;;  %v2968_v54 = vrot.slane %v2646_v11, 2  ;;  %v11560_v0 = vpop.f32.mrf.mxu0  ;;  %v2892_v11 = vld [vmem:[#allocation8 + $0x120] sm:$0xff] }
 0x20b   :  { %v3096_v21 = vadd.f32 %v3084_v2, %v2861_v39  ;;  %5087 = vmatmul.mubr.bf16.vlgmr.msra.gmra.mxu0 %v13871_v10  ;;  %3197 = vst [vmem:[#allocation8 + $0xe0] sm:$0xff] %v3119_v28  ;;  %v3121_v57 = vadd.f32 %v3055_v15, %v2886_v43  ;;  %v2945_v25 = vrot.slane %v11559_v4, 2  ;;  %v2650_v37 = vpop.f32.mrf.mxu1  ;;  %v12702_v10 = vld [vmem:[#allocation5 + $0x8c0] ss:$12 sps:$4 sm:$0xff]   ;;  %v12710_v28 = vld [vmem:[#allocation5 + $0x8b8] ss:$12 sps:$4 sm:$0xff]  }
 0x20c   :  { %4964 = vmatmul.mubr.bf16.gmra.mxu1 %v13958_v50  ;;  %11815 = vmatpush3.bf16.msra.mxu0 %v12681_v42  ;;  %v3056_v26 = vsel %vm3012_vm1, %v2965_v45, %v2968_v54  ;;  %v2970_v41 = vrot.slane %v2650_v37, 2  ;;  %v11561_v49 = vpop.f32.mrf.mxu0  ;;  %v12716_v39 = vld [vmem:[#allocation5 + $0x8a8] ss:$12 sps:$4 sm:$0xff]  }
 0x20d   :  { %3174 = vst [vmem:[#allocation8 + $0x28] sm:$0xff] %v3096_v21  ;;  %4973 = vmatprep.mubr.bf16.mxu1 %v13962_v12  ;;  %5094 = vmatprep.mubr.bf16.mxu0 %v13875_v23  ;;  %3199 = vst [vmem:[#allocation8 + $0xf0] sm:$0xff] %v3121_v57  ;;  %v3122_v1 = vadd.f32 %v3056_v26, %v2887_v56  ;;  %v3081_v62 = vsel %vm3012_vm1, %v2942_v61, %v2945_v25  ;;  %v2652_v36 = vpop.f32.mrf.mxu1  ;;  %v12712_v23 = vld [vmem:[#allocation5 + $0x8bc] ss:$12 sps:$4 sm:$0xff]   ;;  %v12719_v21 = vld [vmem:[#allocation5 + $0x8a4] ss:$12 sps:$4 sm:$0xff]  }
 0x20e   :  { %v11562_v18 = vadd.f32 %v11561_v49, %v11560_v0  ;;  %11816 = vmatprep.subr.bf16.mxu0 %v12688_v16  ;;  %6076 = vmatpush2.bf16.msra.mxu1 %v12696_v40  ;;  %v3099_v52 = vadd.f32 %v3081_v62, %v2864_v34  ;;  %v3052_v17 = vsel %vm3012_vm1, %v2967_v53, %v2970_v41  ;;  %v2971_v33 = vrot.slane %v2652_v36, 2  ;;  %v11563_v31 = vpop.f32.mrf.mxu0  ;;  %v13982_v61 = vld [vmem:[#allocation2 + $0x64] ss:$8 sps:$4 sm:$0xff]   ;;  %v2893_v0 = vld [vmem:[#allocation8 + $0x128] sm:$0xff] }
 0x20f   :  { %6077 = vmatprep.subr.bf16.mxu1 %v12705_v38  ;;  %3200 = vst [vmem:[#allocation8 + $0xf8] sm:$0xff] %v3122_v1  ;;  %v3124_v22 = vadd.f32 %v3052_v17, %v2889_v24  ;;  %v2654_v48 = vpop.f32.mrf.mxu1  ;;  %v12727_v49 = vld [vmem:[#allocation5 + $0x890] ss:$12 sps:$4 sm:$0xff]  }
 0x210   :  { %v2948_v20 = vrot.slane %v11562_v18, 2  ;;  %11817 = vmatpush3.bf16.msra.mxu0 %v12692_v63  ;;  %3177 = vst [vmem:[#allocation8 + $0x40] sm:$0xff] %v3099_v52  ;;  %v3053_v45 = vsel %vm3012_vm1, %v2968_v54, %v2971_v33  ;;  %v2973_v58 = vrot.slane %v2654_v48, 2  ;;  %v11564_v8 = vpop.f32.mrf.mxu0  ;;  %v2870_v63 = vld [vmem:[#allocation8 + $0x70] sm:$0xff]  ;;  %v2895_v1 = vld [vmem:[#allocation8 + $0x138] sm:$0xff] }
 0x211   :  { %11818 = vmatprep.subr.bf16.mxu0 %v12702_v10  ;;  %3202 = vst [vmem:[#allocation8 + $0x108] sm:$0xff] %v3124_v22  ;;  %v3125_v42 = vadd.f32 %v3053_v45, %v2890_v27  ;;  %v2656_v53 = vpop.f32.mrf.mxu1  ;;  %v11565_v5 = vadd.f32 %v11564_v8, %v11563_v31  ;;  %v12723_v18 = vld [vmem:[#allocation5 + $0x88c] ss:$12 sps:$4 sm:$0xff]   ;;  %v12731_v48 = vld [vmem:[#allocation5 + $0x7d0] ss:$12 sps:$4 sm:$0xff]  }
 0x212   :  { %v3078_v47 = vsel %vm3012_vm1, %v2945_v25, %v2948_v20  ;;  %6078 = vmatpush2.bf16.msra.mxu1 %v12703_v9  ;;  %v3049_v4 = vsel %vm3012_vm1, %v2970_v41, %v2973_v58  ;;  %v2974_v16 = vrot.slane %v2656_v53, 2  ;;  %v11566_v40 = vpop.f32.mrf.mxu0  ;;  %v13998_v17 = vld [vmem:[#allocation2 + $0x60] ss:$8 sps:$4 sm:$0xff]  }
 0x213   :  { %v3102_v2 = vadd.f32 %v3078_v47, %v2867_v7  ;;  %5095 = vmatmul.mubr.bf16.gmra.mxu0 %v13891_v6  ;;  %6079 = vmatprep.subr.bf16.mxu1 %v12712_v23  ;;  %3203 = vst [vmem:[#allocation8 + $0x110] sm:$0xff] %v3125_v42  ;;  %v3127_v43 = vadd.f32 %v3049_v4, %v2892_v11  ;;  %v2951_v15 = vrot.slane %v11565_v5, 2  ;;  %v2660_v54 = vpop.f32.mrf.mxu1  ;;  %v12720_v6 = vld [vmem:[#allocation5 + $0x7e8] ss:$12 sps:$4 sm:$0xff]   ;;  %v2873_v45 = vld [vmem:[#allocation8 + $0x88] sm:$0xff] }
 0x214   :  { %4974 = vmatmul.mubr.bf16.gmra.mxu1 %v13978_v46  ;;  %5102 = vmatprep.mubr.bf16.mxu0 %v13895_v35  ;;  %v3050_v38 = vsel %vm3012_vm1, %v2971_v33, %v2974_v16  ;;  %v2976_v57 = vrot.slane %v2660_v54, 2  ;;  %v11567_v25 = vpop.f32.mrf.mxu0  ;;  %v12717_v35 = vld [vmem:[#allocation5 + $0x8a0] ss:$12 sps:$4 sm:$0xff]   ;;  %v2896_v33 = vld [vmem:[#allocation8 + $0x140] sm:$0xff]  ;;  %v2898_v53 = vld [vmem:[#allocation8 + $0x150] sm:$0xff] }
 0x215   :  { %3180 = vst [vmem:[#allocation8 + $0x58] sm:$0xff] %v3102_v2  ;;  %4983 = vmatprep.mubr.bf16.mxu1 %v13982_v61  ;;  %11819 = vmatpush3.bf16.msra.mxu0 %v12706_v13  ;;  %3205 = vst [vmem:[#allocation8 + $0x120] sm:$0xff] %v3127_v43  ;;  %v3128_v37 = vadd.f32 %v3050_v38, %v2893_v0  ;;  %v3075_v56 = vsel %vm3012_vm1, %v2948_v20, %v2951_v15  ;;  %v2662_v26 = vpop.f32.mrf.mxu1  ;;  %v14002_v20 = vld [vmem:[#allocation2 + $0x74] ss:$8 sps:$4 sm:$0xff]   ;;  %v12721_v42 = vld [vmem:[#allocation5 + $0x888] ss:$12 sps:$4 sm:$0xff]  }
 0x216   :  { %v11568_v41 = vadd.f32 %v11567_v25, %v11566_v40  ;;  %6080 = vmatpush2.bf16.msra.mxu1 %v12710_v28  ;;  %11820 = vmatprep.subr.bf16.mxu0 %v12716_v39  ;;  %v3105_v10 = vadd.f32 %v3075_v56, %v2870_v63  ;;  %v3046_v34 = vsel %vm3012_vm1, %v2973_v58, %v2976_v57  ;;  %v2977_v62 = vrot.slane %v2662_v26, 2  ;;  %v11569_v36 = vpop.f32.mrf.mxu0  ;;  %v12741_v7 = vld [vmem:[#allocation5 + $0x878] ss:$12 sps:$4 sm:$0xff]   ;;  %v12730_v2 = vld [vmem:[#allocation5 + $0x874] ss:$12 sps:$4 sm:$0xff]   ;;  %v2901_v63 = vld [vmem:[#allocation8 + $0x168] sm:$0xff] }
 0x217   :  { %6081 = vmatprep.subr.bf16.mxu1 %v12719_v21  ;;  %3206 = vst [vmem:[#allocation8 + $0x128] sm:$0xff] %v3128_v37  ;;  %v3130_v9 = vadd.f32 %v3046_v34, %v2895_v1  ;;  %v2664_v24 = vpop.f32.mrf.mxu1  ;;  %v2899_v40 = vld [vmem:[#allocation8 + $0x158] sm:$0xff]  ;;  %v2876_v0 = vld [vmem:[#allocation8 + $0xa0] sm:$0xff] }
 0x218   :  { %v2954_v52 = vrot.slane %v11568_v41, 2  ;;  %3183 = vst [vmem:[#allocation8 + $0x70] sm:$0xff] %v3105_v10  ;;  %v3047_v31 = vsel %vm3012_vm1, %v2974_v16, %v2977_v62  ;;  %v2979_v23 = vrot.slane %v2664_v24, 2  ;;  %v11570_v22 = vpop.f32.mrf.mxu0  ;;  %v14018_v34 = vld [vmem:[#allocation2 + $0x70] ss:$8 sps:$4 sm:$0xff]  }
 0x219   :  { %11821 = vmatpush3.bf16.msra.mxu0 %v12720_v6  ;;  %3208 = vst [vmem:[#allocation8 + $0x138] sm:$0xff] %v3130_v9  ;;  %v3131_v27 = vadd.f32 %v3047_v31, %v2896_v33  ;;  %v2666_v8 = vpop.f32.mrf.mxu1  ;;  %v11571_v13 = vadd.f32 %v11570_v22, %v11569_v36  ;;  %v12752_v6 = vld [vmem:[#allocation5 + $0x860] ss:$12 sps:$4 sm:$0xff]  }
 0x21a   :  { %v3072_v58 = vsel %vm3012_vm1, %v2951_v15, %v2954_v52  ;;  %6082 = vmatpush2.bf16.msra.mxu1 %v12717_v35  ;;  %11822 = vmatprep.subr.bf16.mxu0 %v12727_v49  ;;  %v3043_v5 = vsel %vm3012_vm1, %v2976_v57, %v2979_v23  ;;  %v2980_v28 = vrot.slane %v2666_v8, 2  ;;  %v11572_v39 = vpop.f32.mrf.mxu0  ;;  %v12737_v35 = vld [vmem:[#allocation5 + $0x85c] ss:$12 sps:$4 sm:$0xff]   ;;  %v12756_v24 = vld [vmem:[#allocation5 + $0x7a0] ss:$12 sps:$4 sm:$0xff]  }
 0x21b   :  { %v3108_v47 = vadd.f32 %v3072_v58, %v2873_v45  ;;  %5103 = vmatmul.mubr.bf16.gmra.mxu0 %v13911_v55  ;;  %6083 = vmatprep.subr.bf16.mxu1 %v12723_v18  ;;  %3209 = vst [vmem:[#allocation8 + $0x140] sm:$0xff] %v3131_v27  ;;  %v3133_v11 = vadd.f32 %v3043_v5, %v2898_v53  ;;  %v2957_v4 = vrot.slane %v11571_v13, 2  ;;  %v2670_v16 = vpop.f32.mrf.mxu1  ;;  %v12745_v55 = vld [vmem:[#allocation5 + $0x7b8] ss:$12 sps:$4 sm:$0xff]   ;;  %v2879_v31 = vld [vmem:[#allocation8 + $0xb8] sm:$0xff] }
 0x21c   :  { %4984 = vmatmul.mubr.bf16.gmra.mxu1 %v13998_v17  ;;  %5110 = vmatprep.mubr.bf16.mxu0 %v13915_v30  ;;  %v3044_v21 = vsel %vm3012_vm1, %v2977_v62, %v2980_v28  ;;  %v2982_v43 = vrot.slane %v2670_v16, 2  ;;  %v11573_v15 = vpop.f32.mrf.mxu0  ;;  %v12728_v30 = vld [vmem:[#allocation5 + $0x870] ss:$12 sps:$4 sm:$0xff]   ;;  %v2902_v62 = vld [vmem:[#allocation8 + $0x170] sm:$0xff]  ;;  %v2904_v8 = vld [vmem:[#allocation8 + $0x180] sm:$0xff] }
 0x21d   :  { %3186 = vst [vmem:[#allocation8 + $0x88] sm:$0xff] %v3108_v47  ;;  %4993 = vmatprep.mubr.bf16.mxu1 %v14002_v20  ;;  %11823 = vmatpush3.bf16.msra.mxu0 %v12731_v48  ;;  %3211 = vst [vmem:[#allocation8 + $0x150] sm:$0xff] %v3133_v11  ;;  %v3134_v54 = vadd.f32 %v3044_v21, %v2899_v40  ;;  %v3069_v38 = vsel %vm3012_vm1, %v2954_v52, %v2957_v4  ;;  %v2672_v57 = vpop.f32.mrf.mxu1  ;;  %v14022_v52 = vld [vmem:[#allocation2 + $0x84] ss:$8 sps:$4 sm:$0xff]   ;;  %v12735_v27 = vld [vmem:[#allocation5 + $0x858] ss:$12 sps:$4 sm:$0xff]  }
 0x21e   :  { %v11574_v25 = vadd.f32 %v11573_v15, %v11572_v39  ;;  %6084 = vmatpush2.bf16.msra.mxu1 %v12721_v42  ;;  %11824 = vmatprep.subr.bf16.mxu0 %v12741_v7  ;;  %v3111_v37 = vadd.f32 %v3069_v38, %v2876_v0  ;;  %v3040_v56 = vsel %vm3012_vm1, %v2979_v23, %v2982_v43  ;;  %v2983_v26 = vrot.slane %v2672_v57, 2  ;;  %v11575_v41 = vpop.f32.mrf.mxu0  ;;  %v12766_v45 = vld [vmem:[#allocation5 + $0x848] ss:$12 sps:$4 sm:$0xff]   ;;  %v12744_v47 = vld [vmem:[#allocation5 + $0x844] ss:$12 sps:$4 sm:$0xff]   ;;  %v2907_v0 = vld [vmem:[#allocation8 + $0x198] sm:$0xff] }
 0x21f   :  { %6085 = vmatprep.subr.bf16.mxu1 %v12730_v2  ;;  %3212 = vst [vmem:[#allocation8 + $0x158] sm:$0xff] %v3134_v54  ;;  %v3136_v49 = vadd.f32 %v3040_v56, %v2901_v63  ;;  %v2674_v1 = vpop.f32.mrf.mxu1  ;;  %v2905_v39 = vld [vmem:[#allocation8 + $0x188] sm:$0xff]  ;;  %v2882_v40 = vld [vmem:[#allocation8 + $0xd0] sm:$0xff] }
 0x220   :  { %v2960_v10 = vrot.slane %v11574_v25, 2  ;;  %3189 = vst [vmem:[#allocation8 + $0xa0] sm:$0xff] %v3111_v37  ;;  %v3041_v36 = vsel %vm3012_vm1, %v2980_v28, %v2983_v26  ;;  %v2985_v18 = vrot.slane %v2674_v1, 2  ;;  %v11576_v9 = vpop.f32.mrf.mxu0  ;;  %v14038_v56 = vld [vmem:[#allocation2 + $0x80] ss:$8 sps:$4 sm:$0xff]  }
 0x221   :  { %11825 = vmatpush3.bf16.msra.mxu0 %v12745_v55  ;;  %3214 = vst [vmem:[#allocation8 + $0x168] sm:$0xff] %v3136_v49  ;;  %v3137_v33 = vadd.f32 %v3041_v36, %v2902_v62  ;;  %v2676_v22 = vpop.f32.mrf.mxu1  ;;  %v11577_v48 = vadd.f32 %v11576_v9, %v11575_v41  ;;  %v12780_v55 = vld [vmem:[#allocation5 + $0xa70] ss:$12 sps:$4 sm:$0xff]  }
 0x222   :  { %v3066_v23 = vsel %vm3012_vm1, %v2957_v4, %v2960_v10  ;;  %6086 = vmatpush2.bf16.msra.mxu1 %v12728_v30  ;;  %11826 = vmatprep.subr.bf16.mxu0 %v12752_v6  ;;  %v3037_v13 = vsel %vm3012_vm1, %v2982_v43, %v2985_v18  ;;  %v2986_v42 = vrot.slane %v2676_v22, 2  ;;  %v11578_v7 = vpop.f32.mrf.mxu0  ;;  %v12751_v30 = vld [vmem:[#allocation5 + $0x9ac] ss:$12 sps:$4 sm:$0xff]  }
 0x223   :  { %v3114_v58 = vadd.f32 %v3066_v23, %v2879_v31  ;;  %5111 = vmatmul.mubr.bf16.gmra.mxu0 %v13937_v51  ;;  %6087 = vmatprep.subr.bf16.mxu1 %v12737_v35  ;;  %3215 = vst [vmem:[#allocation8 + $0x170] sm:$0xff] %v3137_v33  ;;  %v3139_v53 = vadd.f32 %v3037_v13, %v2904_v8  ;;  %v2963_v5 = vrot.slane %v11577_v48, 2  ;;  %v2680_v28 = vpop.f32.mrf.mxu1  ;;  %v12767_v51 = vld [vmem:[#allocation5 + $0x788] ss:$12 sps:$4 sm:$0xff]   ;;  %v2885_v62 = vld [vmem:[#allocation8 + $0xe8] sm:$0xff] }
 0x224   :  { %4994 = vmatmul.mubr.bf16.gmra.mxu1 %v14018_v34  ;;  %5118 = vmatprep.mubr.bf16.mxu0 %v13941_v32  ;;  %v3038_v2 = vsel %vm3012_vm1, %v2983_v26, %v2986_v42  ;;  %v2988_v11 = vrot.slane %v2680_v28, 2  ;;  %v11579_v4 = vpop.f32.mrf.mxu0  ;;  %v12742_v32 = vld [vmem:[#allocation5 + $0x840] ss:$12 sps:$4 sm:$0xff]   ;;  %v2908_v26 = vld [vmem:[#allocation8 + $0x1a0] sm:$0xff]  ;;  %v2910_v33 = vld [vmem:[#allocation8 + $0x1b0] sm:$0xff] }
 0x225   :  { %3192 = vst [vmem:[#allocation8 + $0xb8] sm:$0xff] %v3114_v58  ;;  %5003 = vmatprep.mubr.bf16.mxu1 %v14022_v52  ;;  %11827 = vmatpush3.bf16.msra.mxu0 %v12756_v24  ;;  %3217 = vst [vmem:[#allocation8 + $0x180] sm:$0xff] %v3139_v53  ;;  %v3140_v16 = vadd.f32 %v3038_v2, %v2905_v39  ;;  %v3063_v21 = vsel %vm3012_vm1, %v2960_v10, %v2963_v5  ;;  %v2682_v43 = vpop.f32.mrf.mxu1  ;;  %v14042_v10 = vld [vmem:[#allocation2 + $0x94] ss:$8 sps:$4 sm:$0xff]   ;;  %v2911_v58 = vld [vmem:[#allocation8 + $0x1b8] sm:$0xff] }
 0x226   :  { %v11580_v15 = vadd.f32 %v11579_v4, %v11578_v7  ;;  %6088 = vmatpush2.bf16.msra.mxu1 %v12735_v27  ;;  %11828 = vmatprep.subr.bf16.mxu0 %v12766_v45  ;;  %v3117_v54 = vadd.f32 %v3063_v21, %v2882_v40  ;;  %v3034_v38 = vsel %vm3012_vm1, %v2985_v18, %v2988_v11  ;;  %v2989_v57 = vrot.slane %v2682_v43, 2  ;;  %v11581_v25 = vpop.f32.mrf.mxu0  ;;  %v2888_v7 = vld [vmem:[#allocation8 + $0x100] sm:$0xff]  ;;  %v2913_v39 = vld [vmem:[#allocation8 + $0x1c8] sm:$0xff]  ;;  %v2914_v21 = vld [vmem:[#allocation8 + $0x1d0] sm:$0xff] }
 0x227   :  { %6089 = vmatprep.subr.bf16.mxu1 %v12744_v47  ;;  %3218 = vst [vmem:[#allocation8 + $0x188] sm:$0xff] %v3140_v16  ;;  %v3142_v6 = vadd.f32 %v3034_v38, %v2907_v0  ;;  %v2684_v63 = vpop.f32.mrf.mxu1  ;;  %v14058_v40 = vld [vmem:[#allocation2 + $0x90] ss:$8 sps:$4 sm:$0xff]  }
 0x228   :  { %v2966_v37 = vrot.slane %v11580_v15, 2  ;;  %3195 = vst [vmem:[#allocation8 + $0xd0] sm:$0xff] %v3117_v54  ;;  %v3035_v41 = vsel %vm3012_vm1, %v2986_v42, %v2989_v57  ;;  %v2991_v35 = vrot.slane %v2684_v63, 2  ;;  %v11582_v49 = vpop.f32.mrf.mxu0  ;;  %v2891_v0 = vld [vmem:[#allocation8 + $0x118] sm:$0xff] }
 0x229   :  { %11829 = vmatpush3.bf16.msra.mxu0 %v12767_v51  ;;  %3220 = vst [vmem:[#allocation8 + $0x198] sm:$0xff] %v3142_v6  ;;  %v3143_v1 = vadd.f32 %v3035_v41, %v2908_v26  ;;  %v2686_v18 = vpop.f32.mrf.mxu1  ;;  %v11583_v9 = vadd.f32 %v11582_v49, %v11581_v25  ;;  %v2916_v6 = vld [vmem:[#allocation8 + $0x1e0] sm:$0xff] }
 0x22a   :  { %v3060_v36 = vsel %vm3012_vm1, %v2963_v5, %v2966_v37  ;;  %6090 = vmatpush2.bf16.msra.mxu1 %v12742_v32  ;;  %11908 = vmatprep.subr.bf16.mxu0 %v12780_v55  ;;  %v3031_v31 = vsel %vm3012_vm1, %v2988_v11, %v2991_v35  ;;  %v2992_v23 = vrot.slane %v2686_v18, 2  ;;  %v11584_v22 = vpop.f32.mrf.mxu0  ;;  %v14062_v55 = vld [vmem:[#allocation2 + $0xa4] ss:$8 sps:$4 sm:$0xff]  }
 0x22b   :  { %v3120_v24 = vadd.f32 %v3060_v36, %v2885_v62  ;;  %5119 = vmatmul.mubr.bf16.gmra.mxu0 %v13958_v50  ;;  %7227 = vmatprep.subr.bf16.mxu1 %v12751_v30  ;;  %3221 = vst [vmem:[#allocation8 + $0x1a0] sm:$0xff] %v3143_v1  ;;  %v3145_v48 = vadd.f32 %v3031_v31, %v2910_v33  ;;  %v2969_v27 = vrot.slane %v11583_v9, 2  ;;  %v2690_v45 = vpop.f32.mrf.mxu1  ;;  %v2917_v1 = vld [vmem:[#allocation8 + $0x1e8] sm:$0xff] }
 0x22c   :  { %5004 = vmatmul.mubr.bf16.gmra.mxu1 %v14038_v56  ;;  %5126 = vmatprep.mubr.bf16.mxu0 %v13962_v12  ;;  %v3032_v8 = vsel %vm3012_vm1, %v2989_v57, %v2992_v23  ;;  %v2994_v13 = vrot.slane %v2690_v45, 2  ;;  %v11585_v42 = vpop.f32.mrf.mxu0 }
 0x22d   :  { %3198 = vst [vmem:[#allocation8 + $0xe8] sm:$0xff] %v3120_v24  ;;  %5013 = vmatprep.mubr.bf16.mxu1 %v14042_v10  ;;  %3223 = vst [vmem:[#allocation8 + $0x1b0] sm:$0xff] %v3145_v48  ;;  %v3146_v50 = vadd.f32 %v3032_v8, %v2911_v58  ;;  %v3057_v47 = vsel %vm3012_vm1, %v2966_v37, %v2969_v27  ;;  %v2692_v53 = vpop.f32.mrf.mxu1  ;;  %v11586_v5 = vadd.f32 %v11585_v42, %v11584_v22  ;;  %v2919_v22 = vld [vmem:[#allocation8 + $0x1f8] sm:$0xff]  ;;  %v2920_v42 = vld [vmem:[#allocation8 + $0x200] sm:$0xff] }
 0x22e   :  { %v3123_v28 = vadd.f32 %v3057_v47, %v2888_v7  ;;  %v3028_v12 = vsel %vm3012_vm1, %v2991_v35, %v2994_v13  ;;  %v2995_v2 = vrot.slane %v2692_v53, 2  ;;  %v11587_v11 = vpop.f32.mrf.mxu0  ;;  %v14082_v53 = vld [vmem:[#allocation2 + $0xb4] ss:$8 sps:$4 sm:$0xff]  }
 0x22f   :  { %3224 = vst [vmem:[#allocation8 + $0x1b8] sm:$0xff] %v3146_v50  ;;  %v3148_v4 = vadd.f32 %v3028_v12, %v2913_v39  ;;  %v2972_v51 = vrot.slane %v11586_v5, 2  ;;  %v2694_v16 = vpop.f32.mrf.mxu1 }
 0x230   :  { %3201 = vst [vmem:[#allocation8 + $0x100] sm:$0xff] %v3123_v28  ;;  %v3029_v43 = vsel %vm3012_vm1, %v2992_v23, %v2995_v2  ;;  %v2997_v15 = vrot.slane %v2694_v16, 2  ;;  %v11588_v32 = vpop.f32.mrf.mxu0  ;;  %v2897_v28 = vld [vmem:[#allocation8 + $0x148] sm:$0xff] }
 0x231   :  { %3226 = vst [vmem:[#allocation8 + $0x1c8] sm:$0xff] %v3148_v4  ;;  %v3149_v54 = vadd.f32 %v3029_v43, %v2914_v21  ;;  %v3054_v38 = vsel %vm3012_vm1, %v2969_v27, %v2972_v51  ;;  %v2696_v57 = vpop.f32.mrf.mxu1  ;;  %v11589_v25 = vadd.f32 %v11588_v32, %v11587_v11  ;;  %v2922_v4 = vld [vmem:[#allocation8 + $0x210] sm:$0xff] }
 0x232   :  { %v3126_v30 = vadd.f32 %v3054_v38, %v2891_v0  ;;  %v3025_v37 = vsel %vm3012_vm1, %v2994_v13, %v2997_v15  ;;  %v2998_v63 = vrot.slane %v2696_v57, 2  ;;  %v11590_v26 = vpop.f32.mrf.mxu0  ;;  %v14078_v13 = vld [vmem:[#allocation2 + $0xa0] ss:$8 sps:$4 sm:$0xff]  }
 0x233   :  { %5127 = vmatmul.mubr.bf16.gmra.mxu0 %v13978_v46  ;;  %3227 = vst [vmem:[#allocation8 + $0x1d0] sm:$0xff] %v3149_v54  ;;  %v3151_v41 = vadd.f32 %v3025_v37, %v2916_v6  ;;  %v2975_v35 = vrot.slane %v11589_v25, 2  ;;  %v2700_v49 = vpop.f32.mrf.mxu1  ;;  %v2894_v46 = vld [vmem:[#allocation8 + $0x130] sm:$0xff]  ;;  %v2923_v54 = vld [vmem:[#allocation8 + $0x218] sm:$0xff] }
 0x234   :  { %5014 = vmatmul.mubr.bf16.gmra.mxu1 %v14058_v40  ;;  %5134 = vmatprep.mubr.bf16.mxu0 %v13982_v61  ;;  %3204 = vst [vmem:[#allocation8 + $0x118] sm:$0xff] %v3126_v30  ;;  %v3026_v62 = vsel %vm3012_vm1, %v2995_v2, %v2998_v63  ;;  %v3000_v36 = vrot.slane %v2700_v49, 2  ;;  %v11591_v18 = vpop.f32.mrf.mxu0 }
 0x235   :  { %5023 = vmatprep.mubr.bf16.mxu1 %v14062_v55  ;;  %3229 = vst [vmem:[#allocation8 + $0x1e0] sm:$0xff] %v3151_v41  ;;  %v3152_v9 = vadd.f32 %v3026_v62, %v2917_v1  ;;  %v3051_v24 = vsel %vm3012_vm1, %v2972_v51, %v2975_v35  ;;  %v2702_v33 = vpop.f32.mrf.mxu1  ;;  %v11592_v31 = vadd.f32 %v11591_v18, %v11590_v26  ;;  %v2925_v26 = vld [vmem:[#allocation8 + $0x228] sm:$0xff]  ;;  %v2926_v18 = vld [vmem:[#allocation8 + $0x230] sm:$0xff] }
 0x236   :  { %v3129_v23 = vadd.f32 %v3051_v24, %v2894_v46  ;;  %v3022_v61 = vsel %vm3012_vm1, %v2997_v15, %v3000_v36  ;;  %v3001_v48 = vrot.slane %v2702_v33, 2  ;;  %v11593_v27 = vpop.f32.mrf.mxu0  ;;  %v14102_v33 = vld [vmem:[#allocation2 + $0xc4] ss:$8 sps:$4 sm:$0xff]  }
 0x237   :  { %3230 = vst [vmem:[#allocation8 + $0x1e8] sm:$0xff] %v3152_v9  ;;  %v3154_v45 = vadd.f32 %v3022_v61, %v2919_v22  ;;  %v2978_v58 = vrot.slane %v11592_v31, 2  ;;  %v2704_v8 = vpop.f32.mrf.mxu1 }
 0x238   :  { %3207 = vst [vmem:[#allocation8 + $0x130] sm:$0xff] %v3129_v23  ;;  %v3023_v50 = vsel %vm3012_vm1, %v2998_v63, %v3001_v48  ;;  %v3003_v7 = vrot.slane %v2704_v8, 2  ;;  %v11594_v47 = vpop.f32.mrf.mxu0  ;;  %v2903_v23 = vld [vmem:[#allocation8 + $0x178] sm:$0xff] }
 0x239   :  { %3232 = vst [vmem:[#allocation8 + $0x1f8] sm:$0xff] %v3154_v45  ;;  %v3155_v5 = vadd.f32 %v3023_v50, %v2920_v42  ;;  %v3048_v39 = vsel %vm3012_vm1, %v2975_v35, %v2978_v58  ;;  %v2706_v12 = vpop.f32.mrf.mxu1  ;;  %v11595_v2 = vadd.f32 %v11594_v47, %v11593_v27  ;;  %v2928_v45 = vld [vmem:[#allocation8 + $0x240] sm:$0xff] }
 0x23a   :  { %v3132_v11 = vadd.f32 %v3048_v39, %v2897_v28  ;;  %v3019_v51 = vsel %vm3012_vm1, %v3000_v36, %v3003_v7  ;;  %v3004_v16 = vrot.slane %v2706_v12, 2  ;;  %v11596_v21 = vpop.f32.mrf.mxu0  ;;  %v14098_v36 = vld [vmem:[#allocation2 + $0xb0] ss:$8 sps:$4 sm:$0xff]  }
 0x23b   :  { %5135 = vmatmul.mubr.bf16.gmra.mxu0 %v13998_v17  ;;  %3233 = vst [vmem:[#allocation8 + $0x200] sm:$0xff] %v3155_v5  ;;  %v3157_v43 = vadd.f32 %v3019_v51, %v2922_v4  ;;  %v2981_v15 = vrot.slane %v11595_v2, 2  ;;  %v2710_v32 = vpop.f32.mrf.mxu1  ;;  %v2900_v17 = vld [vmem:[#allocation8 + $0x160] sm:$0xff]  ;;  %v2929_v5 = vld [vmem:[#allocation8 + $0x248] sm:$0xff] }
 0x23c   :  { %5024 = vmatmul.mubr.bf16.gmra.mxu1 %v14078_v13  ;;  %5142 = vmatprep.mubr.bf16.mxu0 %v14002_v20  ;;  %3210 = vst [vmem:[#allocation8 + $0x148] sm:$0xff] %v3132_v11  ;;  %v3020_v0 = vsel %vm3012_vm1, %v3001_v48, %v3004_v16  ;;  %v3006_v38 = vrot.slane %v2710_v32, 2  ;;  %v11597_v57 = vpop.f32.mrf.mxu0  ;;  %v2931_v32 = vld [vmem:[#allocation8 + $0x258] sm:$0xff] }
 0x23d   :  { %5033 = vmatprep.mubr.bf16.mxu1 %v14082_v53  ;;  %3235 = vst [vmem:[#allocation8 + $0x210] sm:$0xff] %v3157_v43  ;;  %v3158_v25 = vadd.f32 %v3020_v0, %v2923_v54  ;;  %v3045_v30 = vsel %vm3012_vm1, %v2978_v58, %v2981_v15  ;;  %v2712_v6 = vpop.f32.mrf.mxu1  ;;  %v11598_v37 = vadd.f32 %v11597_v57, %v11596_v21  ;;  %v14131_v57 = vld [vmem:[#allocation2 + $0x4] ss:$8 sps:$4 sm:$0xff]  }
 0x23e   :  { %v3135_v63 = vadd.f32 %v3045_v30, %v2900_v17  ;;  %v3016_v20 = vsel %vm3012_vm1, %v3003_v7, %v3006_v38  ;;  %v3007_v41 = vrot.slane %v2712_v6, 2  ;;  %v11599_v35 = vpop.f32.mrf.mxu0 }
 0x23f   :  { %3236 = vst [vmem:[#allocation8 + $0x218] sm:$0xff] %v3158_v25  ;;  %v3160_v49 = vadd.f32 %v3016_v20, %v2925_v26  ;;  %v2984_v1 = vrot.slane %v11598_v37, 2  ;;  %v2714_v62 = vpop.f32.mrf.mxu1  ;;  %v2909_v25 = vld [vmem:[#allocation8 + $0x1a8] sm:$0xff]  ;;  %v2932_v37 = vld [vmem:[#allocation8 + $0x260] sm:$0xff] }
 0x240   :  { %3213 = vst [vmem:[#allocation8 + $0x160] sm:$0xff] %v3135_v63  ;;  %v3017_v9 = vsel %vm3012_vm1, %v3004_v16, %v3007_v41  ;;  %v3009_v46 = vrot.slane %v2714_v62, 2  ;;  %v11600_v24 = vpop.f32.mrf.mxu0 }
 0x241   :  { %3238 = vst [vmem:[#allocation8 + $0x228] sm:$0xff] %v3160_v49  ;;  %v3161_v31 = vadd.f32 %v3017_v9, %v2926_v18  ;;  %v3042_v22 = vsel %vm3012_vm1, %v2981_v15, %v2984_v1  ;;  %v2716_v61 = vpop.f32.mrf.mxu1  ;;  %v11601_v48 = vadd.f32 %v11600_v24, %v11599_v35  ;;  %v14124_v15 = vld [vmem:[#allocation2 + $0xc0] ss:$8 sps:$4 sm:$0xff]  }
 0x242   :  { %v3138_v27 = vadd.f32 %v3042_v22, %v2903_v23  ;;  %v3013_v58 = vsel %vm3012_vm1, %v3006_v38, %v3009_v46  ;;  %v3010_v8 = vrot.slane %v2716_v61, 2  ;;  %v11602_v42 = vpop.f32.mrf.mxu0 }
 0x243   :  { %5143 = vmatmul.mubr.bf16.gmra.mxu0 %v14018_v34  ;;  %3239 = vst [vmem:[#allocation8 + $0x230] sm:$0xff] %v3161_v31  ;;  %v3163_v50 = vadd.f32 %v3013_v58, %v2928_v45  ;;  %v2987_v7 = vrot.slane %v11601_v48, 2  ;;  %v14109_v47 = vpop.f32.mrf.mxu1  ;;  %v2906_v34 = vld [vmem:[#allocation8 + $0x190] sm:$0xff] }
 0x244   :  { %5034 = vmatmul.mubr.bf16.gmra.mxu1 %v14098_v36  ;;  %5150 = vmatprep.mubr.bf16.mxu0 %v14022_v52  ;;  %3216 = vst [vmem:[#allocation8 + $0x178] sm:$0xff] %v3138_v27  ;;  %v3014_v28 = vsel %vm3012_vm1, %v3007_v41, %v3010_v8  ;;  %v11603_v39 = vpop.f32.mrf.mxu0  ;;  %v3088_v52 = vsel %vm3012_vm1, %v3009_v46, %v2934_v3  ;;  %v4102_v0 = vrot.slane %v14109_v47, 2 }
 0x245   :  { %5043 = vmatprep.mubr.bf16.mxu1 %v14102_v33  ;;  %3241 = vst [vmem:[#allocation8 + $0x240] sm:$0xff] %v3163_v50  ;;  %v3164_v12 = vadd.f32 %v3014_v28, %v2929_v5  ;;  %v3039_v2 = vsel %vm3012_vm1, %v2984_v1, %v2987_v7  ;;  %v11604_v11 = vadd.f32 %v11603_v39, %v11602_v42  ;;  %v14118_v4 = vpop.f32.mrf.mxu1  ;;  %v14152_v42 = vld [vmem:[#allocation2] ss:$8 sps:$4 sm:$0xff]   ;;  %v12749_v39 = vld [vmem:[#allocation5 + $0x9a8] ss:$12 sps:$4 sm:$0xff]  }
 0x246   :  { %v3141_v51 = vadd.f32 %v3039_v2, %v2906_v34  ;;  %v11605_v16 = vpop.f32.mrf.mxu0  ;;  %v3089_v54 = vsel %vm3012_vm1, %v3010_v8, %v2935_v19  ;;  %v3166_v3 = vadd.f32 %v3088_v52, %v2931_v32  ;;  %v4103_v29 = vrot.slane %v14118_v4, 2  ;;  %v4025_v50 = vld [vmem:[#allocation8 + $0x8] sm:$0xff]  ;;  %v2915_v34 = vld [vmem:[#allocation8 + $0x1d8] sm:$0xff] }
 0x247   :  { %3242 = vst [vmem:[#allocation8 + $0x248] sm:$0xff] %v3164_v12  ;;  %v2990_v21 = vrot.slane %v11604_v11, 2  ;;  %v3762_v43 = vpop.f32.mrf.mxu1  ;;  %v3167_v41 = vadd.f32 %v3089_v54, %v2932_v37  ;;  %v14156_v12 = vld [vmem:[#allocation2 + $0x14] ss:$8 sps:$4 sm:$0xff]  }
 0x248   :  { %3219 = vst [vmem:[#allocation8 + $0x190] sm:$0xff] %v3141_v51  ;;  %v4105_v59 = vrot.slane %v3762_v43, 2  ;;  %v11606_v38 = vpop.f32.mrf.mxu0  ;;  %v4027_v43 = vld [vmem:[#allocation8 + $0x18] sm:$0xff] }
 0x249   :  { %v3036_v17 = vsel %vm3012_vm1, %v2987_v7, %v2990_v21  ;;  %v11607_v30 = vadd.f32 %v11606_v38, %v11605_v16  ;;  %v3764_v6 = vpop.f32.mrf.mxu1  ;;  %v12759_v16 = vld [vmem:[#allocation5 + $0x994] ss:$12 sps:$4 sm:$0xff]  }
 0x24a   :  { %v3144_v63 = vadd.f32 %v3036_v17, %v2909_v25  ;;  %v4252_v19 = vsel %vm3012_vm1, %v4102_v0, %v4105_v59  ;;  %v4106_v26 = vrot.slane %v3764_v6, 2  ;;  %v11608_v20 = vpop.f32.mrf.mxu0  ;;  %v4028_v17 = vld [vmem:[#allocation8 + $0x20] sm:$0xff] }
 0x24b   :  { %5151 = vmatmul.mubr.bf16.gmra.mxu0 %v14038_v56  ;;  %v4333_v35 = vadd.f32 %v4252_v19, %v3166_v3  ;;  %v2993_v49 = vrot.slane %v11607_v30, 2  ;;  %v3768_v1 = vpop.f32.mrf.mxu1  ;;  %v2912_v56 = vld [vmem:[#allocation8 + $0x1c0] sm:$0xff] }
 0x24c   :  { %5044 = vmatmul.mubr.bf16.gmra.mxu1 %v14124_v15  ;;  %5158 = vmatprep.mubr.bf16.mxu0 %v14042_v10  ;;  %3222 = vst [vmem:[#allocation8 + $0x1a8] sm:$0xff] %v3144_v63  ;;  %v4253_v62 = vsel %vm3012_vm1, %v4103_v29, %v4106_v26  ;;  %v4108_v18 = vrot.slane %v3768_v1, 2  ;;  %v11609_v9 = vpop.f32.mrf.mxu0  ;;  %v4024_v10 = vld [vmem:[#allocation8] sm:$0xff]  ;;  %v12757_v63 = vld [vmem:[#allocation5 + $0x990] ss:$12 sps:$4 sm:$0xff]  }
 0x24d   :  { %6091 = vmatprep.mubr.bf16.mxu1 %v14131_v57  ;;  %4411 = vst [vmem:[#allocation8 + $0x258] sm:$0xff] %v4333_v35  ;;  %v3033_v46 = vsel %vm3012_vm1, %v2990_v21, %v2993_v49  ;;  %v4334_v24 = vadd.f32 %v4253_v62, %v3167_v41  ;;  %v11610_v31 = vadd.f32 %v11609_v9, %v11608_v20  ;;  %v3770_v23 = vpop.f32.mrf.mxu1 }
 0x24e   :  { %v3147_v22 = vadd.f32 %v3033_v46, %v2912_v56  ;;  %v4249_v61 = vsel %vm3012_vm1, %v4105_v59, %v4108_v18  ;;  %v4109_v48 = vrot.slane %v3770_v23, 2  ;;  %v11611_v27 = vpop.f32.mrf.mxu0  ;;  %v4097_v47 = vld [vmem:[#allocation8 + $0x248] sm:$0xff] }
 0x24f   :  { %4412 = vst [vmem:[#allocation8 + $0x260] sm:$0xff] %v4334_v24  ;;  %v4258_v45 = vadd.f32 %v4249_v61, %v4024_v10  ;;  %v2996_v58 = vrot.slane %v11610_v31, 2  ;;  %v3772_v8 = vpop.f32.mrf.mxu1  ;;  %v14172_v24 = vld [vmem:[#allocation2 + $0x10] ss:$8 sps:$4 sm:$0xff]   ;;  %v12760_v61 = vld [vmem:[#allocation5 + $0x978] ss:$12 sps:$4 sm:$0xff]  }
 0x250   :  { %3225 = vst [vmem:[#allocation8 + $0x1c0] sm:$0xff] %v3147_v22  ;;  %v4250_v7 = vsel %vm3012_vm1, %v4106_v26, %v4109_v48  ;;  %v4111_v5 = vrot.slane %v3772_v8, 2  ;;  %v11612_v28 = vpop.f32.mrf.mxu0  ;;  %v4031_v31 = vld [vmem:[#allocation8 + $0x38] sm:$0xff] }
 0x251   :  { %4336 = vst [vmem:[#allocation8] sm:$0xff] %v4258_v45  ;;  %v3030_v2 = vsel %vm3012_vm1, %v2993_v49, %v2996_v58  ;;  %v4259_v11 = vadd.f32 %v4250_v7, %v4025_v50  ;;  %v11613_v52 = vadd.f32 %v11612_v28, %v11611_v27  ;;  %v3774_v51 = vpop.f32.mrf.mxu1  ;;  %v4030_v49 = vld [vmem:[#allocation8 + $0x30] sm:$0xff]  ;;  %v2921_v27 = vld [vmem:[#allocation8 + $0x208] sm:$0xff] }
 0x252   :  { %v3150_v21 = vadd.f32 %v3030_v2, %v2915_v34  ;;  %v4246_v32 = vsel %vm3012_vm1, %v4108_v18, %v4111_v5  ;;  %v4112_v54 = vrot.slane %v3774_v51, 2  ;;  %v11614_v59 = vpop.f32.mrf.mxu0  ;;  %v12770_v7 = vld [vmem:[#allocation5 + $0x964] ss:$12 sps:$4 sm:$0xff]  }
 0x253   :  { %5159 = vmatmul.mubr.bf16.gmra.mxu0 %v14058_v40  ;;  %4337 = vst [vmem:[#allocation8 + $0x8] sm:$0xff] %v4259_v11  ;;  %v4261_v38 = vadd.f32 %v4246_v32, %v4027_v43  ;;  %v2999_v3 = vrot.slane %v11613_v52, 2  ;;  %v3778_v25 = vpop.f32.mrf.mxu1  ;;  %v2918_v40 = vld [vmem:[#allocation8 + $0x1f0] sm:$0xff]  ;;  %v4033_v28 = vld [vmem:[#allocation8 + $0x48] sm:$0xff] }
 0x254   :  { %6092 = vmatmul.mubr.bf16.vlgmr.msra.gmra.mxu1 %v14152_v42  ;;  %5166 = vmatprep.mubr.bf16.mxu0 %v14062_v55  ;;  %3228 = vst [vmem:[#allocation8 + $0x1d8] sm:$0xff] %v3150_v21  ;;  %v4247_v30 = vsel %vm3012_vm1, %v4109_v48, %v4112_v54  ;;  %v4114_v6 = vrot.slane %v3778_v25, 2  ;;  %v11615_v37 = vpop.f32.mrf.mxu0  ;;  %v12762_v55 = vld [vmem:[#allocation5 + $0x97c] ss:$12 sps:$4 sm:$0xff]  }
 0x255   :  { %7228 = vmatpush1.bf16.msra.mxu1 %v12749_v39  ;;  %6101 = vmatprep.mubr.bf16.mxu1 %v14156_v12  ;;  %4339 = vst [vmem:[#allocation8 + $0x18] sm:$0xff] %v4261_v38  ;;  %v3027_v19 = vsel %vm3012_vm1, %v2996_v58, %v2999_v3  ;;  %v4262_v26 = vadd.f32 %v4247_v30, %v4028_v17  ;;  %v3780_v41 = vpop.f32.mrf.mxu1  ;;  %v14176_v48 = vld [vmem:[#allocation2 + $0x24] ss:$8 sps:$4 sm:$0xff]   ;;  %v4036_v30 = vld [vmem:[#allocation8 + $0x60] sm:$0xff] }
 0x256   :  { %v11616_v20 = vadd.f32 %v11615_v37, %v11614_v59  ;;  %7229 = vmatprep.subr.bf16.mxu1 %v12759_v16  ;;  %v3153_v35 = vadd.f32 %v3027_v19, %v2918_v40  ;;  %v4243_v1 = vsel %vm3012_vm1, %v4111_v5, %v4114_v6  ;;  %v4115_v62 = vrot.slane %v3780_v41, 2  ;;  %v11617_v18 = vpop.f32.mrf.mxu0  ;;  %v4034_v16 = vld [vmem:[#allocation8 + $0x50] sm:$0xff]  ;;  %v4037_v41 = vld [vmem:[#allocation8 + $0x68] sm:$0xff] }
 0x257   :  { %4340 = vst [vmem:[#allocation8 + $0x20] sm:$0xff] %v4262_v26  ;;  %v4264_v9 = vadd.f32 %v4243_v1, %v4030_v49  ;;  %v3782_v46 = vpop.f32.mrf.mxu1  ;;  %v14196_v1 = vld [vmem:[#allocation2 + $0x34] ss:$8 sps:$4 sm:$0xff]  }
 0x258   :  { %v3002_v56 = vrot.slane %v11616_v20, 2  ;;  %3231 = vst [vmem:[#allocation8 + $0x1f0] sm:$0xff] %v3153_v35  ;;  %v4244_v23 = vsel %vm3012_vm1, %v4112_v54, %v4115_v62  ;;  %v4117_v22 = vrot.slane %v3782_v46, 2  ;;  %v11618_v10 = vpop.f32.mrf.mxu0  ;;  %v12768_v54 = vld [vmem:[#allocation5 + $0x960] ss:$12 sps:$4 sm:$0xff]  }
 0x259   :  { %7230 = vmatpush1.bf16.msra.mxu1 %v12757_v63  ;;  %4342 = vst [vmem:[#allocation8 + $0x30] sm:$0xff] %v4264_v9  ;;  %v4265_v58 = vadd.f32 %v4244_v23, %v4031_v31  ;;  %v11619_v8 = vadd.f32 %v11618_v10, %v11617_v18  ;;  %v3784_v50 = vpop.f32.mrf.mxu1  ;;  %v14192_v20 = vld [vmem:[#allocation2 + $0x20] ss:$8 sps:$4 sm:$0xff]   ;;  %v2927_v18 = vld [vmem:[#allocation8 + $0x238] sm:$0xff] }
 0x25a   :  { %v3024_v45 = vsel %vm3012_vm1, %v2999_v3, %v3002_v56  ;;  %7231 = vmatprep.subr.bf16.mxu1 %v12762_v55  ;;  %v4240_v39 = vsel %vm3012_vm1, %v4114_v6, %v4117_v22  ;;  %v4118_v34 = vrot.slane %v3784_v50, 2  ;;  %v11620_v2 = vpop.f32.mrf.mxu0  ;;  %v12783_v23 = vld [vmem:[#allocation5 + $0x934] ss:$12 sps:$4 sm:$0xff]  }
 0x25b   :  { %v3156_v5 = vadd.f32 %v3024_v45, %v2921_v27  ;;  %5167 = vmatmul.mubr.bf16.gmra.mxu0 %v14078_v13  ;;  %4343 = vst [vmem:[#allocation8 + $0x38] sm:$0xff] %v4265_v58  ;;  %v4267_v11 = vadd.f32 %v4240_v39, %v4033_v28  ;;  %v3005_v52 = vrot.slane %v11619_v8, 2  ;;  %v3788_v51 = vpop.f32.mrf.mxu1  ;;  %v2924_v13 = vld [vmem:[#allocation8 + $0x220] sm:$0xff]  ;;  %v4039_v10 = vld [vmem:[#allocation8 + $0x78] sm:$0xff] }
 0x25c   :  { %6102 = vmatmul.mubr.bf16.gmra.mxu1 %v14172_v24  ;;  %5174 = vmatprep.mubr.bf16.mxu0 %v14082_v53  ;;  %v4241_v21 = vsel %vm3012_vm1, %v4115_v62, %v4118_v34  ;;  %v4120_v43 = vrot.slane %v3788_v51, 2  ;;  %v11621_v32 = vpop.f32.mrf.mxu0  ;;  %v12776_v53 = vld [vmem:[#allocation5 + $0x94c] ss:$12 sps:$4 sm:$0xff]   ;;  %v12774_v62 = vld [vmem:[#allocation5 + $0x948] ss:$12 sps:$4 sm:$0xff]  }
 0x25d   :  { %3234 = vst [vmem:[#allocation8 + $0x208] sm:$0xff] %v3156_v5  ;;  %7232 = vmatpush1.bf16.msra.mxu1 %v12760_v61  ;;  %6111 = vmatprep.mubr.bf16.mxu1 %v14176_v48  ;;  %4345 = vst [vmem:[#allocation8 + $0x48] sm:$0xff] %v4267_v11  ;;  %v3021_v59 = vsel %vm3012_vm1, %v3002_v56, %v3005_v52  ;;  %v4268_v38 = vadd.f32 %v4241_v21, %v4034_v16  ;;  %v3790_v25 = vpop.f32.mrf.mxu1  ;;  %v4042_v16 = vld [vmem:[#allocation8 + $0x90] sm:$0xff] }
 0x25e   :  { %v11622_v3 = vadd.f32 %v11621_v32, %v11620_v2  ;;  %7233 = vmatprep.subr.bf16.mxu1 %v12770_v7  ;;  %v3159_v17 = vadd.f32 %v3021_v59, %v2924_v13  ;;  %v4237_v6 = vsel %vm3012_vm1, %v4117_v22, %v4120_v43  ;;  %v4121_v37 = vrot.slane %v3790_v25, 2  ;;  %v11623_v63 = vpop.f32.mrf.mxu0  ;;  %v4040_v7 = vld [vmem:[#allocation8 + $0x80] sm:$0xff] }
 0x25f   :  { %4346 = vst [vmem:[#allocation8 + $0x50] sm:$0xff] %v4268_v38  ;;  %v4270_v40 = vadd.f32 %v4237_v6, %v4036_v30  ;;  %v3792_v26 = vpop.f32.mrf.mxu1  ;;  %v14214_v38 = vld [vmem:[#allocation2 + $0x30] ss:$8 sps:$4 sm:$0xff]   ;;  %v14218_v30 = vld [vmem:[#allocation2 + $0x44] ss:$8 sps:$4 sm:$0xff]  }
 0x260   :  { %v3008_v19 = vrot.slane %v11622_v3, 2  ;;  %3237 = vst [vmem:[#allocation8 + $0x220] sm:$0xff] %v3159_v17  ;;  %v4238_v55 = vsel %vm3012_vm1, %v4118_v34, %v4121_v37  ;;  %v4123_v35 = vrot.slane %v3792_v26, 2  ;;  %v11624_v49 = vpop.f32.mrf.mxu0  ;;  %v12781_v34 = vld [vmem:[#allocation5 + $0x930] ss:$12 sps:$4 sm:$0xff]  }
 0x261   :  { %7234 = vmatpush1.bf16.msra.mxu1 %v12768_v54  ;;  %4348 = vst [vmem:[#allocation8 + $0x60] sm:$0xff] %v4270_v40  ;;  %v4271_v56 = vadd.f32 %v4238_v55, %v4037_v41  ;;  %v11625_v46 = vadd.f32 %v11624_v49, %v11623_v63  ;;  %v3794_v31 = vpop.f32.mrf.mxu1  ;;  %v4043_v3 = vld [vmem:[#allocation8 + $0x98] sm:$0xff]  ;;  %v12788_v6 = vld [vmem:[#allocation5 + $0x918] ss:$12 sps:$4 sm:$0xff]   ;;  %v4045_v41 = vld [vmem:[#allocation8 + $0xa8] sm:$0xff] }
 0x262   :  { %v3018_v9 = vsel %vm3012_vm1, %v3005_v52, %v3008_v19  ;;  %7235 = vmatprep.subr.bf16.mxu1 %v12776_v53  ;;  %v4234_v61 = vsel %vm3012_vm1, %v4120_v43, %v4123_v35  ;;  %v4124_v27 = vrot.slane %v3794_v31, 2  ;;  %v11642_v45 = vpop.f32.mrf.mxu0  ;;  %v12794_v26 = vld [vmem:[#allocation5 + $0x904] ss:$12 sps:$4 sm:$0xff]  }
 0x263   :  { %v3162_v22 = vadd.f32 %v3018_v9, %v2927_v18  ;;  %5175 = vmatmul.mubr.bf16.gmra.mxu0 %v14098_v36  ;;  %4349 = vst [vmem:[#allocation8 + $0x68] sm:$0xff] %v4271_v56  ;;  %v4273_v58 = vadd.f32 %v4234_v61, %v4039_v10  ;;  %v3011_v8 = vrot.slane %v11625_v46, 2  ;;  %v3798_v50 = vpop.f32.mrf.mxu1  ;;  %v2930_v36 = vld [vmem:[#allocation8 + $0x250] sm:$0xff] }
 0x264   :  { %6112 = vmatmul.mubr.bf16.gmra.mxu1 %v14192_v20  ;;  %5182 = vmatprep.mubr.bf16.mxu0 %v14102_v33  ;;  %v4235_v5 = vsel %vm3012_vm1, %v4121_v37, %v4124_v27  ;;  %v4126_v28 = vrot.slane %v3798_v50, 2  ;;  %v11643_v39 = vpop.f32.mrf.mxu0  ;;  %v12790_v33 = vld [vmem:[#allocation5 + $0x91c] ss:$12 sps:$4 sm:$0xff]   ;;  %v4046_v46 = vld [vmem:[#allocation8 + $0xb0] sm:$0xff] }
 0x265   :  { %3240 = vst [vmem:[#allocation8 + $0x238] sm:$0xff] %v3162_v22  ;;  %6121 = vmatprep.mubr.bf16.mxu1 %v14196_v1  ;;  %7236 = vmatpush1.bf16.msra.mxu1 %v12774_v62  ;;  %4351 = vst [vmem:[#allocation8 + $0x78] sm:$0xff] %v4273_v58  ;;  %v3015_v2 = vsel %vm3012_vm1, %v3008_v19, %v3011_v8  ;;  %v4274_v11 = vadd.f32 %v4235_v5, %v4040_v7  ;;  %v3800_v52 = vpop.f32.mrf.mxu1  ;;  %v2933_v62 = vld [vmem:[#allocation8 + $0x268] sm:$0xff] }
 0x266   :  { %7237 = vmatprep.subr.bf16.mxu1 %v12783_v23  ;;  %v3165_v51 = vadd.f32 %v3015_v2, %v2930_v36  ;;  %v4231_v21 = vsel %vm3012_vm1, %v4123_v35, %v4126_v28  ;;  %v4127_v43 = vrot.slane %v3800_v52, 2  ;;  %v11645_v32 = vpop.f32.mrf.mxu0  ;;  %v14212_v13 = vadd.f32 %v11643_v39, %v11642_v45  ;;  %v12801_v45 = vld [vmem:[#allocation5 + $0xa6c] ss:$12 sps:$4 sm:$0xff]   ;;  %v12784_v2 = vld [vmem:[#allocation5 + $0x9b0] ss:$12 sps:$4 sm:$0xff]  }
 0x267   :  { %4352 = vst [vmem:[#allocation8 + $0x80] sm:$0xff] %v4274_v11  ;;  %v4276_v54 = vadd.f32 %v4231_v21, %v4042_v16  ;;  %v3802_v59 = vpop.f32.mrf.mxu1  ;;  %v3090_v37 = vsel %vm3012_vm1, %v3011_v8, %v2936_v60  ;;  %v4048_v8 = vld [vmem:[#allocation8 + $0xc0] sm:$0xff]  ;;  %v14239_v36 = vld [vmem:[#allocation2 + $0x40] ss:$8 sps:$4 sm:$0xff]  }
 0x268   :  { %3243 = vst [vmem:[#allocation8 + $0x250] sm:$0xff] %v3165_v51  ;;  %v4232_v25 = vsel %vm3012_vm1, %v4124_v27, %v4127_v43  ;;  %v4129_v53 = vrot.slane %v3802_v59, 2  ;;  %v11646_v17 = vpop.f32.mrf.mxu0  ;;  %v4104_v44 = vrot.slane %v14212_v13, 2  ;;  %v3168_v56 = vadd.f32 %v3090_v37, %v2933_v62  ;;  %v4049_v11 = vld [vmem:[#allocation8 + $0xc8] sm:$0xff] }
 0x269   :  { %7238 = vmatpush1.bf16.msra.mxu1 %v12781_v34  ;;  %4354 = vst [vmem:[#allocation8 + $0x90] sm:$0xff] %v4276_v54  ;;  %v4277_v63 = vadd.f32 %v4232_v25, %v4043_v3  ;;  %v3804_v40 = vpop.f32.mrf.mxu1  ;;  %v11647_v19 = vadd.f32 %v11646_v17, %v11645_v32  ;;  %v14243_v16 = vld [vmem:[#allocation2 + $0x54] ss:$8 sps:$4 sm:$0xff]   ;;  %v12799_v25 = vld [vmem:[#allocation5 + $0xa68] ss:$12 sps:$4 sm:$0xff]   ;;  %v4051_v17 = vld [vmem:[#allocation8 + $0xd8] sm:$0xff] }
 0x26a   :  { %7239 = vmatprep.subr.bf16.mxu1 %v12790_v33  ;;  %v4228_v55 = vsel %vm3012_vm1, %v4126_v28, %v4129_v53  ;;  %v4130_v35 = vrot.slane %v3804_v40, 2  ;;  %v11648_v49 = vpop.f32.mrf.mxu0  ;;  %v12791_v3 = vld [vmem:[#allocation5 + $0xa58] ss:$12 sps:$4 sm:$0xff]   ;;  %v12808_v40 = vld [vmem:[#allocation5 + $0xa54] ss:$12 sps:$4 sm:$0xff]  }
 0x26b   :  { %5183 = vmatmul.mubr.bf16.gmra.mxu0 %v14124_v15  ;;  %4355 = vst [vmem:[#allocation8 + $0x98] sm:$0xff] %v4277_v63  ;;  %v4279_v18 = vadd.f32 %v4228_v55, %v4045_v41  ;;  %v4107_v60 = vrot.slane %v11647_v19, 2  ;;  %v3808_v9 = vpop.f32.mrf.mxu1  ;;  %v12792_v15 = vld [vmem:[#allocation5 + $0x900] ss:$12 sps:$4 sm:$0xff]   ;;  %v12795_v55 = vld [vmem:[#allocation5 + $0x998] ss:$12 sps:$4 sm:$0xff]  }
 0x26c   :  { %6122 = vmatmul.mubr.bf16.gmra.mxu1 %v14214_v38  ;;  %6254 = vmatprep.mubr.bf16.mxu0 %v14131_v57  ;;  %v4229_v31 = vsel %vm3012_vm1, %v4127_v43, %v4130_v35  ;;  %v4132_v23 = vrot.slane %v3808_v9, 2  ;;  %v11649_v22 = vpop.f32.mrf.mxu0  ;;  %v4026_v43 = vld [vmem:[#allocation8 + $0x10] sm:$0xff]  ;;  %v4029_v9 = vld [vmem:[#allocation8 + $0x28] sm:$0xff] }
 0x26d   :  { %6131 = vmatprep.mubr.bf16.mxu1 %v14218_v30  ;;  %7240 = vmatpush1.bf16.msra.mxu1 %v12788_v6  ;;  %4357 = vst [vmem:[#allocation8 + $0xa8] sm:$0xff] %v4279_v18  ;;  %v4280_v10 = vadd.f32 %v4229_v31, %v4046_v46  ;;  %v4254_v61 = vsel %vm3012_vm1, %v4104_v44, %v4107_v60  ;;  %v3810_v27 = vpop.f32.mrf.mxu1 }
 0x26e   :  { %v11650_v57 = vadd.f32 %v11649_v22, %v11648_v49  ;;  %7241 = vmatprep.subr.bf16.mxu1 %v12794_v26  ;;  %v4335_v58 = vadd.f32 %v4254_v61, %v3168_v56  ;;  %v4225_v50 = vsel %vm3012_vm1, %v4129_v53, %v4132_v23  ;;  %v4133_v7 = vrot.slane %v3810_v27, 2  ;;  %v11651_v5 = vpop.f32.mrf.mxu0 }
 0x26f   :  { %4358 = vst [vmem:[#allocation8 + $0xb0] sm:$0xff] %v4280_v10  ;;  %v4282_v28 = vadd.f32 %v4225_v50, %v4048_v8  ;;  %v3812_v34 = vpop.f32.mrf.mxu1  ;;  %v14259_v8 = vld [vmem:[#allocation2 + $0x50] ss:$8 sps:$4 sm:$0xff]  }
 0x270   :  { %v4110_v39 = vrot.slane %v11650_v57, 2  ;;  %4413 = vst [vmem:[#allocation8 + $0x268] sm:$0xff] %v4335_v58  ;;  %v4226_v52 = vsel %vm3012_vm1, %v4130_v35, %v4133_v7  ;;  %v4135_v33 = vrot.slane %v3812_v34, 2  ;;  %v11652_v51 = vpop.f32.mrf.mxu0  ;;  %v4052_v35 = vld [vmem:[#allocation8 + $0xe0] sm:$0xff]  ;;  %v4055_v50 = vld [vmem:[#allocation8 + $0xf8] sm:$0xff] }
 0x271   :  { %7242 = vmatpush1.bf16.msra.mxu1 %v12792_v15  ;;  %4360 = vst [vmem:[#allocation8 + $0xc0] sm:$0xff] %v4282_v28  ;;  %v4283_v21 = vadd.f32 %v4226_v52, %v4049_v11  ;;  %v3814_v54 = vpop.f32.mrf.mxu1  ;;  %v11653_v59 = vadd.f32 %v11652_v51, %v11651_v5  ;;  %v4054_v15 = vld [vmem:[#allocation8 + $0xf0] sm:$0xff]  ;;  %v12809_v34 = vld [vmem:[#allocation5 + $0x980] ss:$12 sps:$4 sm:$0xff]   ;;  %v4032_v11 = vld [vmem:[#allocation8 + $0x40] sm:$0xff] }
 0x272   :  { %v4251_v32 = vsel %vm3012_vm1, %v4107_v60, %v4110_v39  ;;  %7243 = vmatprep.subr.bf16.mxu1 %v12801_v45  ;;  %v4222_v6 = vsel %vm3012_vm1, %v4132_v23, %v4135_v33  ;;  %v4136_v37 = vrot.slane %v3814_v54, 2  ;;  %v12806_v23 = vld [vmem:[#allocation5 + $0xa50] ss:$12 sps:$4 sm:$0xff]  }
 0x273   :  { %v4260_v53 = vadd.f32 %v4251_v32, %v4026_v43  ;;  %v11654_v63 = vpop.f32.mrf.mxu0  ;;  %6255 = vmatmul.mubr.bf16.vlgmr.msra.gmra.mxu0 %v14152_v42  ;;  %4361 = vst [vmem:[#allocation8 + $0xc8] sm:$0xff] %v4283_v21  ;;  %v4285_v19 = vadd.f32 %v4222_v6, %v4051_v17  ;;  %v4113_v26 = vrot.slane %v11653_v59, 2  ;;  %v12805_v42 = vld [vmem:[#allocation5 + $0xa40] ss:$12 sps:$4 sm:$0xff]   ;;  %v12813_v21 = vld [vmem:[#allocation5 + $0xa38] ss:$12 sps:$4 sm:$0xff]  }
 0x274   :  { %v3818_v41 = vpop.f32.mrf.mxu1  ;;  %6132 = vmatmul.mubr.bf16.gmra.mxu1 %v14239_v36  ;;  %11909 = vmatpush3.bf16.msra.mxu0 %v12784_v2  ;;  %v4223_v49 = vsel %vm3012_vm1, %v4133_v7, %v4136_v37  ;;  %v12819_v43 = vld [vmem:[#allocation5 + $0xa28] ss:$12 sps:$4 sm:$0xff]   ;;  %v4057_v54 = vld [vmem:[#allocation8 + $0x108] sm:$0xff] }
 0x275   :  { %4338 = vst [vmem:[#allocation8 + $0x10] sm:$0xff] %v4260_v53  ;;  %v4138_v62 = vrot.slane %v3818_v41, 2  ;;  %v11655_v18 = vpop.f32.mrf.mxu0  ;;  %6141 = vmatprep.mubr.bf16.mxu1 %v14243_v16  ;;  %6262 = vmatprep.mubr.bf16.mxu0 %v14156_v12  ;;  %4363 = vst [vmem:[#allocation8 + $0xd8] sm:$0xff] %v4285_v19  ;;  %v4286_v60 = vadd.f32 %v4223_v49, %v4052_v35  ;;  %v4248_v56 = vsel %vm3012_vm1, %v4110_v39, %v4113_v26  ;;  %v12815_v12 = vld [vmem:[#allocation5 + $0xa3c] ss:$12 sps:$4 sm:$0xff]  }
 0x276   :  { %v3820_v46 = vpop.f32.mrf.mxu1  ;;  %v11656_v31 = vadd.f32 %v11655_v18, %v11654_v63  ;;  %11910 = vmatprep.subr.bf16.mxu0 %v12791_v3  ;;  %7244 = vmatpush2.bf16.msra.mxu1 %v12799_v25  ;;  %v4263_v22 = vadd.f32 %v4248_v56, %v4029_v9  ;;  %v14263_v39 = vld [vmem:[#allocation2 + $0x64] ss:$8 sps:$4 sm:$0xff]   ;;  %v12822_v53 = vld [vmem:[#allocation5 + $0xa24] ss:$12 sps:$4 sm:$0xff]  }
 0x277   :  { %v4219_v10 = vsel %vm3012_vm1, %v4135_v33, %v4138_v62  ;;  %v4139_v61 = vrot.slane %v3820_v46, 2  ;;  %v11657_v27 = vpop.f32.mrf.mxu0  ;;  %7245 = vmatprep.subr.bf16.mxu1 %v12808_v40  ;;  %4364 = vst [vmem:[#allocation8 + $0xe0] sm:$0xff] %v4286_v60  ;;  %v4058_v63 = vld [vmem:[#allocation8 + $0x110] sm:$0xff]  ;;  %v12830_v18 = vld [vmem:[#allocation5 + $0xa10] ss:$12 sps:$4 sm:$0xff]   ;;  %v4060_v60 = vld [vmem:[#allocation8 + $0x120] sm:$0xff] }
 0x278   :  { %v4288_v57 = vadd.f32 %v4219_v10, %v4054_v15  ;;  %v4116_v45 = vrot.slane %v11656_v31, 2  ;;  %v3822_v58 = vpop.f32.mrf.mxu1  ;;  %11911 = vmatpush3.bf16.msra.mxu0 %v12795_v55  ;;  %4341 = vst [vmem:[#allocation8 + $0x28] sm:$0xff] %v4263_v22  ;;  %v4035_v55 = vld [vmem:[#allocation8 + $0x58] sm:$0xff]  ;;  %v12826_v31 = vld [vmem:[#allocation5 + $0xa0c] ss:$12 sps:$4 sm:$0xff]  }
 0x279   :  { %v4220_v7 = vsel %vm3012_vm1, %v4136_v37, %v4139_v61  ;;  %v4141_v5 = vrot.slane %v3822_v58, 2  ;;  %v11658_v28 = vpop.f32.mrf.mxu0  ;;  %11912 = vmatprep.subr.bf16.mxu0 %v12805_v42  ;;  %v14279_v10 = vld [vmem:[#allocation2 + $0x60] ss:$8 sps:$4 sm:$0xff]  }
 0x27a   :  { %4366 = vst [vmem:[#allocation8 + $0xf0] sm:$0xff] %v4288_v57  ;;  %v4289_v2 = vadd.f32 %v4220_v7, %v4055_v50  ;;  %v4245_v52 = vsel %vm3012_vm1, %v4113_v26, %v4116_v45  ;;  %v3824_v33 = vpop.f32.mrf.mxu1  ;;  %v11659_v51 = vadd.f32 %v11658_v28, %v11657_v27  ;;  %7246 = vmatpush2.bf16.msra.mxu1 %v12806_v23  ;;  %v12834_v58 = vld [vmem:[#allocation5 + $0x950] ss:$12 sps:$4 sm:$0xff]   ;;  %v4038_v7 = vld [vmem:[#allocation8 + $0x70] sm:$0xff] }
 0x27b   :  { %v4266_v32 = vadd.f32 %v4245_v52, %v4032_v11  ;;  %v4216_v59 = vsel %vm3012_vm1, %v4138_v62, %v4141_v5  ;;  %v4142_v3 = vrot.slane %v3824_v33, 2  ;;  %v11660_v25 = vpop.f32.mrf.mxu0  ;;  %6263 = vmatmul.mubr.bf16.gmra.mxu0 %v14172_v24  ;;  %7247 = vmatprep.subr.bf16.mxu1 %v12815_v12  ;;  %v12823_v24 = vld [vmem:[#allocation5 + $0x968] ss:$12 sps:$4 sm:$0xff]   ;;  %v12844_v11 = vld [vmem:[#allocation5 + $0x9f8] ss:$12 sps:$4 sm:$0xff]   ;;  %v4063_v33 = vld [vmem:[#allocation8 + $0x138] sm:$0xff] }
 0x27c   :  { %4367 = vst [vmem:[#allocation8 + $0xf8] sm:$0xff] %v4289_v2  ;;  %v4291_v17 = vadd.f32 %v4216_v59, %v4057_v54  ;;  %v4119_v6 = vrot.slane %v11659_v51, 2  ;;  %v3828_v37 = vpop.f32.mrf.mxu1  ;;  %6142 = vmatmul.mubr.bf16.gmra.mxu1 %v14259_v8  ;;  %6270 = vmatprep.mubr.bf16.mxu0 %v14176_v48  ;;  %v12820_v48 = vld [vmem:[#allocation5 + $0xa20] ss:$12 sps:$4 sm:$0xff]   ;;  %v12824_v2 = vld [vmem:[#allocation5 + $0xa08] ss:$12 sps:$4 sm:$0xff]  }
 0x27d   :  { %4344 = vst [vmem:[#allocation8 + $0x40] sm:$0xff] %v4266_v32  ;;  %v4217_v40 = vsel %vm3012_vm1, %v4139_v61, %v4142_v3  ;;  %v4144_v19 = vrot.slane %v3828_v37, 2  ;;  %v11661_v26 = vpop.f32.mrf.mxu0  ;;  %6151 = vmatprep.mubr.bf16.mxu1 %v14263_v39  ;;  %11913 = vmatpush3.bf16.msra.mxu0 %v12809_v34  ;;  %v4061_v61 = vld [vmem:[#allocation8 + $0x128] sm:$0xff]  ;;  %v12833_v32 = vld [vmem:[#allocation5 + $0x9f4] ss:$12 sps:$4 sm:$0xff]  }
 0x27e   :  { %4369 = vst [vmem:[#allocation8 + $0x108] sm:$0xff] %v4291_v17  ;;  %v4292_v41 = vadd.f32 %v4217_v40, %v4058_v63  ;;  %v4242_v35 = vsel %vm3012_vm1, %v4116_v45, %v4119_v6  ;;  %v3830_v49 = vpop.f32.mrf.mxu1  ;;  %v11662_v62 = vadd.f32 %v11661_v26, %v11660_v25  ;;  %7248 = vmatpush2.bf16.msra.mxu1 %v12813_v21  ;;  %v14283_v45 = vld [vmem:[#allocation2 + $0x74] ss:$8 sps:$4 sm:$0xff]  }
 0x27f   :  { %11914 = vmatprep.subr.bf16.mxu0 %v12819_v43  ;;  %v4269_v42 = vadd.f32 %v4242_v35, %v4035_v55  ;;  %v4213_v9 = vsel %vm3012_vm1, %v4141_v5, %v4144_v19  ;;  %v4145_v56 = vrot.slane %v3830_v49, 2  ;;  %v11663_v46 = vpop.f32.mrf.mxu0  ;;  %7249 = vmatprep.subr.bf16.mxu1 %v12822_v53  ;;  %v4064_v25 = vld [vmem:[#allocation8 + $0x140] sm:$0xff]  ;;  %v4041_v63 = vld [vmem:[#allocation8 + $0x88] sm:$0xff]  ;;  %v4066_v55 = vld [vmem:[#allocation8 + $0x150] sm:$0xff] }
 0x280   :  { %4370 = vst [vmem:[#allocation8 + $0x110] sm:$0xff] %v4292_v41  ;;  %v4294_v23 = vadd.f32 %v4213_v9, %v4060_v60  ;;  %v4122_v22 = vrot.slane %v11662_v62, 2  ;;  %v3832_v15 = vpop.f32.mrf.mxu1  ;;  %v14299_v9 = vld [vmem:[#allocation2 + $0x70] ss:$8 sps:$4 sm:$0xff]  }
 0x281   :  { %4347 = vst [vmem:[#allocation8 + $0x58] sm:$0xff] %v4269_v42  ;;  %v4214_v27 = vsel %vm3012_vm1, %v4142_v3, %v4145_v56  ;;  %v4147_v12 = vrot.slane %v3832_v15, 2  ;;  %v11664_v57 = vpop.f32.mrf.mxu0  ;;  %11915 = vmatpush3.bf16.msra.mxu0 %v12823_v24  ;;  %v12855_v24 = vld [vmem:[#allocation5 + $0x9e0] ss:$12 sps:$4 sm:$0xff]  }
 0x282   :  { %4372 = vst [vmem:[#allocation8 + $0x120] sm:$0xff] %v4294_v23  ;;  %v4295_v50 = vadd.f32 %v4214_v27, %v4061_v61  ;;  %v4239_v5 = vsel %vm3012_vm1, %v4119_v6, %v4122_v22  ;;  %v3834_v28 = vpop.f32.mrf.mxu1  ;;  %v11665_v34 = vadd.f32 %v11664_v57, %v11663_v46  ;;  %7250 = vmatpush2.bf16.msra.mxu1 %v12820_v48  ;;  %v12840_v48 = vld [vmem:[#allocation5 + $0x9dc] ss:$12 sps:$4 sm:$0xff]   ;;  %v12859_v15 = vld [vmem:[#allocation5 + $0x920] ss:$12 sps:$4 sm:$0xff]  }
 0x283   :  { %11916 = vmatprep.subr.bf16.mxu0 %v12830_v18  ;;  %v4272_v52 = vadd.f32 %v4239_v5, %v4038_v7  ;;  %v4210_v51 = vsel %vm3012_vm1, %v4144_v19, %v4147_v12  ;;  %v4148_v21 = vrot.slane %v3834_v28, 2  ;;  %v11666_v43 = vpop.f32.mrf.mxu0  ;;  %6271 = vmatmul.mubr.bf16.gmra.mxu0 %v14192_v20  ;;  %v12848_v20 = vld [vmem:[#allocation5 + $0x938] ss:$12 sps:$4 sm:$0xff]   ;;  %v12869_v7 = vld [vmem:[#allocation5 + $0x9c8] ss:$12 sps:$4 sm:$0xff]   ;;  %v4069_v28 = vld [vmem:[#allocation8 + $0x168] sm:$0xff] }
 0x284   :  { %7251 = vmatprep.subr.bf16.mxu1 %v12826_v31  ;;  %4373 = vst [vmem:[#allocation8 + $0x128] sm:$0xff] %v4295_v50  ;;  %v4297_v54 = vadd.f32 %v4210_v51, %v4063_v33  ;;  %v4125_v59 = vrot.slane %v11665_v34, 2  ;;  %v3838_v3 = vpop.f32.mrf.mxu1  ;;  %6152 = vmatmul.mubr.bf16.gmra.mxu1 %v14279_v10  ;;  %v4044_v27 = vld [vmem:[#allocation8 + $0xa0] sm:$0xff] }
 0x285   :  { %6278 = vmatprep.mubr.bf16.mxu0 %v14196_v1  ;;  %4350 = vst [vmem:[#allocation8 + $0x70] sm:$0xff] %v4272_v52  ;;  %v4211_v53 = vsel %vm3012_vm1, %v4145_v56, %v4148_v21  ;;  %v4150_v17 = vrot.slane %v3838_v3, 2  ;;  %v11667_v6 = vpop.f32.mrf.mxu0  ;;  %6161 = vmatprep.mubr.bf16.mxu1 %v14283_v45  ;;  %v12831_v1 = vld [vmem:[#allocation5 + $0x9f0] ss:$12 sps:$4 sm:$0xff]   ;;  %v12838_v50 = vld [vmem:[#allocation5 + $0x9d8] ss:$12 sps:$4 sm:$0xff]  }
 0x286   :  { %11917 = vmatpush3.bf16.msra.mxu0 %v12834_v58  ;;  %4375 = vst [vmem:[#allocation8 + $0x138] sm:$0xff] %v4297_v54  ;;  %v4298_v37 = vadd.f32 %v4211_v53, %v4064_v25  ;;  %v4236_v40 = vsel %vm3012_vm1, %v4122_v22, %v4125_v59  ;;  %v3840_v19 = vpop.f32.mrf.mxu1  ;;  %v11668_v26 = vadd.f32 %v11667_v6, %v11666_v43  ;;  %v4067_v56 = vld [vmem:[#allocation8 + $0x158] sm:$0xff]  ;;  %v12847_v52 = vld [vmem:[#allocation5 + $0x9c4] ss:$12 sps:$4 sm:$0xff]   ;;  %v4070_v43 = vld [vmem:[#allocation8 + $0x170] sm:$0xff] }
 0x287   :  { %7252 = vmatpush2.bf16.msra.mxu1 %v12824_v2  ;;  %11918 = vmatprep.subr.bf16.mxu0 %v12844_v11  ;;  %v4275_v41 = vadd.f32 %v4236_v40, %v4041_v63  ;;  %v4207_v35 = vsel %vm3012_vm1, %v4147_v12, %v4150_v17  ;;  %v4151_v49 = vrot.slane %v3840_v19, 2  ;;  %v11669_v62 = vpop.f32.mrf.mxu0  ;;  %v14303_v22 = vld [vmem:[#allocation2 + $0x84] ss:$8 sps:$4 sm:$0xff]   ;;  %v4072_v63 = vld [vmem:[#allocation8 + $0x180] sm:$0xff] }
 0x288   :  { %7253 = vmatprep.subr.bf16.mxu1 %v12833_v32  ;;  %4376 = vst [vmem:[#allocation8 + $0x140] sm:$0xff] %v4298_v37  ;;  %v4300_v18 = vadd.f32 %v4207_v35, %v4066_v55  ;;  %v4128_v42 = vrot.slane %v11668_v26, 2  ;;  %v3842_v60 = vpop.f32.mrf.mxu1  ;;  %v4047_v25 = vld [vmem:[#allocation8 + $0xb8] sm:$0xff]  ;;  %v14319_v35 = vld [vmem:[#allocation2 + $0x80] ss:$8 sps:$4 sm:$0xff]  }
 0x289   :  { %4353 = vst [vmem:[#allocation8 + $0x88] sm:$0xff] %v4275_v41  ;;  %v4208_v46 = vsel %vm3012_vm1, %v4148_v21, %v4151_v49  ;;  %v4153_v31 = vrot.slane %v3842_v60, 2  ;;  %v11670_v23 = vpop.f32.mrf.mxu0 }
 0x28a   :  { %11919 = vmatpush3.bf16.msra.mxu0 %v12848_v20  ;;  %4378 = vst [vmem:[#allocation8 + $0x150] sm:$0xff] %v4300_v18  ;;  %v4301_v61 = vadd.f32 %v4208_v46, %v4067_v56  ;;  %v4233_v12 = vsel %vm3012_vm1, %v4125_v59, %v4128_v42  ;;  %v3844_v57 = vpop.f32.mrf.mxu1  ;;  %v11671_v58 = vadd.f32 %v11670_v23, %v11669_v62  ;;  %v12883_v20 = vld [vmem:[#allocation5 + $0xbf0] ss:$12 sps:$4 sm:$0xff]   ;;  %v4050_v56 = vld [vmem:[#allocation8 + $0xd0] sm:$0xff] }
 0x28b   :  { %7254 = vmatpush2.bf16.msra.mxu1 %v12831_v1  ;;  %11920 = vmatprep.subr.bf16.mxu0 %v12855_v24  ;;  %v4278_v5 = vadd.f32 %v4233_v12, %v4044_v27  ;;  %v4204_v34 = vsel %vm3012_vm1, %v4150_v17, %v4153_v31  ;;  %v4154_v2 = vrot.slane %v3844_v57, 2  ;;  %v11672_v11 = vpop.f32.mrf.mxu0  ;;  %v12854_v1 = vld [vmem:[#allocation5 + $0xb2c] ss:$12 sps:$4 sm:$0xff]  }
 0x28c   :  { %6279 = vmatmul.mubr.bf16.gmra.mxu0 %v14214_v38  ;;  %7255 = vmatprep.subr.bf16.mxu1 %v12840_v48  ;;  %4379 = vst [vmem:[#allocation8 + $0x158] sm:$0xff] %v4301_v61  ;;  %v4303_v33 = vadd.f32 %v4204_v34, %v4069_v28  ;;  %v4131_v51 = vrot.slane %v11671_v58, 2  ;;  %v3848_v21 = vpop.f32.mrf.mxu1  ;;  %v12870_v38 = vld [vmem:[#allocation5 + $0x908] ss:$12 sps:$4 sm:$0xff]   ;;  %v4075_v61 = vld [vmem:[#allocation8 + $0x198] sm:$0xff] }
 0x28d   :  { %6162 = vmatmul.mubr.bf16.gmra.mxu1 %v14299_v9  ;;  %6286 = vmatprep.mubr.bf16.mxu0 %v14218_v30  ;;  %4356 = vst [vmem:[#allocation8 + $0xa0] sm:$0xff] %v4278_v5  ;;  %v4205_v32 = vsel %vm3012_vm1, %v4151_v49, %v4154_v2  ;;  %v4156_v54 = vrot.slane %v3848_v21, 2  ;;  %v11673_v59 = vpop.f32.mrf.mxu0  ;;  %v12845_v30 = vld [vmem:[#allocation5 + $0x9c0] ss:$12 sps:$4 sm:$0xff]   ;;  %v4076_v5 = vld [vmem:[#allocation8 + $0x1a0] sm:$0xff] }
 0x28e   :  { %6171 = vmatprep.mubr.bf16.mxu1 %v14303_v22  ;;  %11921 = vmatpush3.bf16.msra.mxu0 %v12859_v15  ;;  %4381 = vst [vmem:[#allocation8 + $0x168] sm:$0xff] %v4303_v33  ;;  %v4304_v3 = vadd.f32 %v4205_v32, %v4070_v43  ;;  %v4230_v53 = vsel %vm3012_vm1, %v4128_v42, %v4131_v51  ;;  %v3850_v17 = vpop.f32.mrf.mxu1  ;;  %v4073_v49 = vld [vmem:[#allocation8 + $0x188] sm:$0xff]  ;;  %v4078_v43 = vld [vmem:[#allocation8 + $0x1b0] sm:$0xff] }
 0x28f   :  { %v11674_v6 = vadd.f32 %v11673_v59, %v11672_v11  ;;  %7256 = vmatpush2.bf16.msra.mxu1 %v12838_v50  ;;  %11922 = vmatprep.subr.bf16.mxu0 %v12869_v7  ;;  %v4281_v37 = vadd.f32 %v4230_v53, %v4047_v25  ;;  %v4201_v40 = vsel %vm3012_vm1, %v4153_v31, %v4156_v54  ;;  %v4157_v19 = vrot.slane %v3850_v17, 2  ;;  %v11675_v26 = vpop.f32.mrf.mxu0  ;;  %v14323_v42 = vld [vmem:[#allocation2 + $0x94] ss:$8 sps:$4 sm:$0xff]   ;;  %v14339_v25 = vld [vmem:[#allocation2 + $0x90] ss:$8 sps:$4 sm:$0xff]  }
 0x290   :  { %7257 = vmatprep.subr.bf16.mxu1 %v12847_v52  ;;  %4382 = vst [vmem:[#allocation8 + $0x170] sm:$0xff] %v4304_v3  ;;  %v4306_v24 = vadd.f32 %v4201_v40, %v4072_v63  ;;  %v3852_v55 = vpop.f32.mrf.mxu1  ;;  %v4053_v11 = vld [vmem:[#allocation8 + $0xe8] sm:$0xff]  ;;  %v4079_v53 = vld [vmem:[#allocation8 + $0x1b8] sm:$0xff]  ;;  %v4056_v63 = vld [vmem:[#allocation8 + $0x100] sm:$0xff] }
 0x291   :  { %v4134_v41 = vrot.slane %v11674_v6, 2  ;;  %4359 = vst [vmem:[#allocation8 + $0xb8] sm:$0xff] %v4281_v37  ;;  %v4202_v62 = vsel %vm3012_vm1, %v4154_v2, %v4157_v19  ;;  %v4159_v48 = vrot.slane %v3852_v55, 2  ;;  %v11676_v18 = vpop.f32.mrf.mxu0 }
 0x292   :  { %11923 = vmatpush3.bf16.msra.mxu0 %v12870_v38  ;;  %4384 = vst [vmem:[#allocation8 + $0x180] sm:$0xff] %v4306_v24  ;;  %v4307_v60 = vadd.f32 %v4202_v62, %v4073_v49  ;;  %v3854_v31 = vpop.f32.mrf.mxu1  ;;  %v11677_v23 = vadd.f32 %v11676_v18, %v11675_v26  ;;  %v4081_v24 = vld [vmem:[#allocation8 + $0x1c8] sm:$0xff] }
 0x293   :  { %v4227_v46 = vsel %vm3012_vm1, %v4131_v51, %v4134_v41  ;;  %7258 = vmatpush2.bf16.msra.mxu1 %v12845_v30  ;;  %12002 = vmatprep.subr.bf16.mxu0 %v12883_v20  ;;  %v4198_v27 = vsel %vm3012_vm1, %v4156_v54, %v4159_v48  ;;  %v4160_v12 = vrot.slane %v3854_v31, 2  ;;  %v11678_v57 = vpop.f32.mrf.mxu0  ;;  %v14343_v20 = vld [vmem:[#allocation2 + $0xa4] ss:$8 sps:$4 sm:$0xff]  }
 0x294   :  { %v4284_v15 = vadd.f32 %v4227_v46, %v4050_v56  ;;  %6287 = vmatmul.mubr.bf16.gmra.mxu0 %v14239_v36  ;;  %8394 = vmatprep.subr.bf16.mxu1 %v12854_v1  ;;  %4385 = vst [vmem:[#allocation8 + $0x188] sm:$0xff] %v4307_v60  ;;  %v4309_v58 = vadd.f32 %v4198_v27, %v4075_v61  ;;  %v4137_v50 = vrot.slane %v11677_v23, 2  ;;  %v3858_v7 = vpop.f32.mrf.mxu1  ;;  %v4082_v60 = vld [vmem:[#allocation8 + $0x1d0] sm:$0xff] }
 0x295   :  { %6172 = vmatmul.mubr.bf16.gmra.mxu1 %v14319_v35  ;;  %6294 = vmatprep.mubr.bf16.mxu0 %v14243_v16  ;;  %v4199_v28 = vsel %vm3012_vm1, %v4157_v19, %v4160_v12  ;;  %v4162_v34 = vrot.slane %v3858_v7, 2  ;;  %v11679_v2 = vpop.f32.mrf.mxu0 }
 0x296   :  { %4362 = vst [vmem:[#allocation8 + $0xd0] sm:$0xff] %v4284_v15  ;;  %6181 = vmatprep.mubr.bf16.mxu1 %v14323_v42  ;;  %4387 = vst [vmem:[#allocation8 + $0x198] sm:$0xff] %v4309_v58  ;;  %v4310_v36 = vadd.f32 %v4199_v28, %v4076_v5  ;;  %v4224_v52 = vsel %vm3012_vm1, %v4134_v41, %v4137_v50  ;;  %v3860_v33 = vpop.f32.mrf.mxu1  ;;  %v11680_v51 = vadd.f32 %v11679_v2, %v11678_v57  ;;  %v4084_v57 = vld [vmem:[#allocation8 + $0x1e0] sm:$0xff]  ;;  %v4085_v2 = vld [vmem:[#allocation8 + $0x1e8] sm:$0xff] }
 0x297   :  { %v4287_v21 = vadd.f32 %v4224_v52, %v4053_v11  ;;  %v4195_v16 = vsel %vm3012_vm1, %v4159_v48, %v4162_v34  ;;  %v4163_v32 = vrot.slane %v3860_v33, 2  ;;  %v11681_v54 = vpop.f32.mrf.mxu0  ;;  %v14363_v33 = vld [vmem:[#allocation2 + $0xb4] ss:$8 sps:$4 sm:$0xff]  }
 0x298   :  { %4388 = vst [vmem:[#allocation8 + $0x1a0] sm:$0xff] %v4310_v36  ;;  %v4312_v59 = vadd.f32 %v4195_v16, %v4078_v43  ;;  %v4140_v38 = vrot.slane %v11680_v51, 2  ;;  %v3862_v3 = vpop.f32.mrf.mxu1 }
 0x299   :  { %4365 = vst [vmem:[#allocation8 + $0xe8] sm:$0xff] %v4287_v21  ;;  %v4196_v17 = vsel %vm3012_vm1, %v4160_v12, %v4163_v32  ;;  %v4165_v6 = vrot.slane %v3862_v3, 2  ;;  %v11682_v30 = vpop.f32.mrf.mxu0  ;;  %v4062_v21 = vld [vmem:[#allocation8 + $0x130] sm:$0xff] }
 0x29a   :  { %4390 = vst [vmem:[#allocation8 + $0x1b0] sm:$0xff] %v4312_v59  ;;  %v4313_v37 = vadd.f32 %v4196_v17, %v4079_v53  ;;  %v4221_v40 = vsel %vm3012_vm1, %v4137_v50, %v4140_v38  ;;  %v3864_v19 = vpop.f32.mrf.mxu1  ;;  %v11683_v26 = vadd.f32 %v11682_v30, %v11681_v54  ;;  %v4087_v59 = vld [vmem:[#allocation8 + $0x1f8] sm:$0xff] }
 0x29b   :  { %v4290_v1 = vadd.f32 %v4221_v40, %v4056_v63  ;;  %v4192_v41 = vsel %vm3012_vm1, %v4162_v34, %v4165_v6  ;;  %v4166_v55 = vrot.slane %v3864_v19, 2  ;;  %v11684_v49 = vpop.f32.mrf.mxu0  ;;  %v14359_v34 = vld [vmem:[#allocation2 + $0xa0] ss:$8 sps:$4 sm:$0xff]  }
 0x29c   :  { %6295 = vmatmul.mubr.bf16.gmra.mxu0 %v14259_v8  ;;  %4391 = vst [vmem:[#allocation8 + $0x1b8] sm:$0xff] %v4313_v37  ;;  %v4315_v62 = vadd.f32 %v4192_v41, %v4081_v24  ;;  %v4143_v48 = vrot.slane %v11683_v26, 2  ;;  %v3868_v18 = vpop.f32.mrf.mxu1  ;;  %v4059_v8 = vld [vmem:[#allocation8 + $0x118] sm:$0xff]  ;;  %v4088_v37 = vld [vmem:[#allocation8 + $0x200] sm:$0xff] }
 0x29d   :  { %6182 = vmatmul.mubr.bf16.gmra.mxu1 %v14339_v25  ;;  %6302 = vmatprep.mubr.bf16.mxu0 %v14263_v39  ;;  %4368 = vst [vmem:[#allocation8 + $0x100] sm:$0xff] %v4290_v1  ;;  %v4193_v56 = vsel %vm3012_vm1, %v4163_v32, %v4166_v55  ;;  %v4168_v46 = vrot.slane %v3868_v18, 2  ;;  %v11685_v31 = vpop.f32.mrf.mxu0 }
 0x29e   :  { %6191 = vmatprep.mubr.bf16.mxu1 %v14343_v20  ;;  %4393 = vst [vmem:[#allocation8 + $0x1c8] sm:$0xff] %v4315_v62  ;;  %v4316_v23 = vadd.f32 %v4193_v56, %v4082_v60  ;;  %v4218_v15 = vsel %vm3012_vm1, %v4140_v38, %v4143_v48  ;;  %v3870_v61 = vpop.f32.mrf.mxu1  ;;  %v11686_v27 = vadd.f32 %v11685_v31, %v11684_v49  ;;  %v4090_v49 = vld [vmem:[#allocation8 + $0x210] sm:$0xff]  ;;  %v4091_v31 = vld [vmem:[#allocation8 + $0x218] sm:$0xff] }
 0x29f   :  { %v4293_v12 = vadd.f32 %v4218_v15, %v4059_v8  ;;  %v4189_v39 = vsel %vm3012_vm1, %v4165_v6, %v4168_v46  ;;  %v4169_v58 = vrot.slane %v3870_v61, 2  ;;  %v11687_v50 = vpop.f32.mrf.mxu0  ;;  %v14383_v61 = vld [vmem:[#allocation2 + $0xc4] ss:$8 sps:$4 sm:$0xff]  }
 0x2a0   :  { %4394 = vst [vmem:[#allocation8 + $0x1d0] sm:$0xff] %v4316_v23  ;;  %v4318_v7 = vadd.f32 %v4189_v39, %v4084_v57  ;;  %v4146_v5 = vrot.slane %v11686_v27, 2  ;;  %v3872_v28 = vpop.f32.mrf.mxu1 }
 0x2a1   :  { %4371 = vst [vmem:[#allocation8 + $0x118] sm:$0xff] %v4293_v12  ;;  %v4190_v36 = vsel %vm3012_vm1, %v4166_v55, %v4169_v58  ;;  %v4171_v11 = vrot.slane %v3872_v28, 2  ;;  %v11688_v52 = vpop.f32.mrf.mxu0  ;;  %v4068_v12 = vld [vmem:[#allocation8 + $0x160] sm:$0xff] }
 0x2a2   :  { %4396 = vst [vmem:[#allocation8 + $0x1e0] sm:$0xff] %v4318_v7  ;;  %v4319_v51 = vadd.f32 %v4190_v36, %v4085_v2  ;;  %v4215_v43 = vsel %vm3012_vm1, %v4143_v48, %v4146_v5  ;;  %v3874_v16 = vpop.f32.mrf.mxu1  ;;  %v11689_v32 = vadd.f32 %v11688_v52, %v11687_v50  ;;  %v4093_v7 = vld [vmem:[#allocation8 + $0x228] sm:$0xff] }
 0x2a3   :  { %v4296_v54 = vadd.f32 %v4215_v43, %v4062_v21  ;;  %v4186_v38 = vsel %vm3012_vm1, %v4168_v46, %v4171_v11  ;;  %v4172_v3 = vrot.slane %v3874_v16, 2  ;;  %v11690_v53 = vpop.f32.mrf.mxu0  ;;  %v14379_v46 = vld [vmem:[#allocation2 + $0xb0] ss:$8 sps:$4 sm:$0xff]   ;;  %v4094_v16 = vld [vmem:[#allocation8 + $0x230] sm:$0xff] }
 0x2a4   :  { %6303 = vmatmul.mubr.bf16.gmra.mxu0 %v14279_v10  ;;  %4397 = vst [vmem:[#allocation8 + $0x1e8] sm:$0xff] %v4319_v51  ;;  %v4321_v17 = vadd.f32 %v4186_v38, %v4087_v59  ;;  %v4149_v6 = vrot.slane %v11689_v32, 2  ;;  %v3878_v30 = vpop.f32.mrf.mxu1  ;;  %v4065_v10 = vld [vmem:[#allocation8 + $0x148] sm:$0xff]  ;;  %v4071_v38 = vld [vmem:[#allocation8 + $0x178] sm:$0xff] }
 0x2a5   :  { %6192 = vmatmul.mubr.bf16.gmra.mxu1 %v14359_v34  ;;  %6310 = vmatprep.mubr.bf16.mxu0 %v14283_v45  ;;  %4374 = vst [vmem:[#allocation8 + $0x130] sm:$0xff] %v4296_v54  ;;  %v4187_v63 = vsel %vm3012_vm1, %v4169_v58, %v4172_v3  ;;  %v4174_v40 = vrot.slane %v3878_v30, 2  ;;  %v11691_v19 = vpop.f32.mrf.mxu0  ;;  %v14410_v30 = vld [vmem:[#allocation2 + $0xc0] ss:$8 sps:$4 sm:$0xff]  }
 0x2a6   :  { %6201 = vmatprep.mubr.bf16.mxu1 %v14363_v33  ;;  %4399 = vst [vmem:[#allocation8 + $0x1f8] sm:$0xff] %v4321_v17  ;;  %v4322_v26 = vadd.f32 %v4187_v63, %v4088_v37  ;;  %v4212_v1 = vsel %vm3012_vm1, %v4146_v5, %v4149_v6  ;;  %v3880_v24 = vpop.f32.mrf.mxu1  ;;  %v11692_v41 = vadd.f32 %v11691_v19, %v11690_v53  ;;  %v4096_v5 = vld [vmem:[#allocation8 + $0x240] sm:$0xff]  ;;  %v14413_v19 = vld [vmem:[#allocation2 + $0x4] ss:$8 sps:$4 sm:$0xff]  }
 0x2a7   :  { %v4299_v55 = vadd.f32 %v4212_v1, %v4065_v10  ;;  %v4183_v45 = vsel %vm3012_vm1, %v4171_v11, %v4174_v40  ;;  %v4175_v62 = vrot.slane %v3880_v24, 2  ;;  %v11693_v48 = vpop.f32.mrf.mxu0 }
 0x2a8   :  { %4400 = vst [vmem:[#allocation8 + $0x200] sm:$0xff] %v4322_v26  ;;  %v4324_v18 = vadd.f32 %v4183_v45, %v4090_v49  ;;  %v4152_v60 = vrot.slane %v11692_v41, 2  ;;  %v3882_v56 = vpop.f32.mrf.mxu1  ;;  %v4074_v26 = vld [vmem:[#allocation8 + $0x190] sm:$0xff]  ;;  %v5266_v49 = vld [vmem:[#allocation8 + $0x258] sm:$0xff] }
 0x2a9   :  { %4377 = vst [vmem:[#allocation8 + $0x148] sm:$0xff] %v4299_v55  ;;  %v4184_v23 = vsel %vm3012_vm1, %v4172_v3, %v4175_v62  ;;  %v4177_v8 = vrot.slane %v3882_v56, 2  ;;  %v11694_v15 = vpop.f32.mrf.mxu0 }
 0x2aa   :  { %4402 = vst [vmem:[#allocation8 + $0x210] sm:$0xff] %v4324_v18  ;;  %v4325_v27 = vadd.f32 %v4184_v23, %v4091_v31  ;;  %v4209_v57 = vsel %vm3012_vm1, %v4149_v6, %v4152_v60  ;;  %v3884_v39 = vpop.f32.mrf.mxu1  ;;  %v11695_v58 = vadd.f32 %v11694_v15, %v11693_v48  ;;  %v5267_v31 = vld [vmem:[#allocation8 + $0x260] sm:$0xff] }
 0x2ab   :  { %v4302_v50 = vadd.f32 %v4209_v57, %v4068_v12  ;;  %v4180_v28 = vsel %vm3012_vm1, %v4174_v40, %v4177_v8  ;;  %v4255_v2 = vsel %vm3012_vm1, %v4177_v8, %v4102_v0  ;;  %v4178_v36 = vrot.slane %v3884_v39, 2  ;;  %v11696_v11 = vpop.f32.mrf.mxu0 }
 0x2ac   :  { %6311 = vmatmul.mubr.bf16.gmra.mxu0 %v14299_v9  ;;  %4403 = vst [vmem:[#allocation8 + $0x218] sm:$0xff] %v4325_v27  ;;  %v4327_v52 = vadd.f32 %v4180_v28, %v4093_v7  ;;  %v4330_v51 = vadd.f32 %v4255_v2, %v4096_v5  ;;  %v4155_v21 = vrot.slane %v11695_v58, 2  ;;  %v14394_v43 = vpop.f32.mrf.mxu1  ;;  %v5191_v58 = vld [vmem:[#allocation8] sm:$0xff] }
 0x2ad   :  { %6202 = vmatmul.mubr.bf16.gmra.mxu1 %v14379_v46  ;;  %6318 = vmatprep.mubr.bf16.mxu0 %v14303_v22  ;;  %4380 = vst [vmem:[#allocation8 + $0x160] sm:$0xff] %v4302_v50  ;;  %v4181_v0 = vsel %vm3012_vm1, %v4175_v62, %v4178_v36  ;;  %v4256_v9 = vsel %vm3012_vm1, %v4178_v36, %v4103_v29  ;;  %v11697_v32 = vpop.f32.mrf.mxu0  ;;  %v5269_v37 = vrot.slane %v14394_v43, 3 }
 0x2ae   :  { %6211 = vmatprep.mubr.bf16.mxu1 %v14383_v61  ;;  %4405 = vst [vmem:[#allocation8 + $0x228] sm:$0xff] %v4327_v52  ;;  %4408 = vst [vmem:[#allocation8 + $0x240] sm:$0xff] %v4330_v51  ;;  %v4328_v54 = vadd.f32 %v4181_v0, %v4094_v16  ;;  %v4331_v59 = vadd.f32 %v4256_v9, %v4097_v47  ;;  %v4206_v22 = vsel %vm3012_vm1, %v4152_v60, %v4155_v21  ;;  %v14407_v53 = vpop.f32.mrf.mxu1  ;;  %v5192_v52 = vld [vmem:[#allocation8 + $0x8] sm:$0xff]  ;;  %v12852_v47 = vld [vmem:[#allocation5 + $0xb28] ss:$12 sps:$4 sm:$0xff]  }
 0x2af   :  { %v11698_v3 = vadd.f32 %v11697_v32, %v11696_v11  ;;  %v4305_v17 = vadd.f32 %v4206_v22, %v4071_v38  ;;  %v11699_v6 = vpop.f32.mrf.mxu0  ;;  %v5270_v55 = vrot.slane %v14407_v53, 3  ;;  %v14434_v11 = vld [vmem:[#allocation2] ss:$8 sps:$4 sm:$0xff]   ;;  %v14438_v0 = vld [vmem:[#allocation2 + $0x14] ss:$8 sps:$4 sm:$0xff]  }
 0x2b0   :  { %4406 = vst [vmem:[#allocation8 + $0x230] sm:$0xff] %v4328_v54  ;;  %4409 = vst [vmem:[#allocation8 + $0x248] sm:$0xff] %v4331_v59  ;;  %v4929_v29 = vpop.f32.mrf.mxu1  ;;  %v4080_v9 = vld [vmem:[#allocation8 + $0x1c0] sm:$0xff]  ;;  %v12862_v22 = vld [vmem:[#allocation5 + $0xb14] ss:$12 sps:$4 sm:$0xff]  }
 0x2b1   :  { %v4158_v4 = vrot.slane %v11698_v3, 2  ;;  %4383 = vst [vmem:[#allocation8 + $0x178] sm:$0xff] %v4305_v17  ;;  %v5272_v63 = vrot.slane %v4929_v29, 3  ;;  %v11700_v40 = vpop.f32.mrf.mxu0  ;;  %v5194_v17 = vld [vmem:[#allocation8 + $0x18] sm:$0xff] }
 0x2b2   :  { %v11701_v1 = vadd.f32 %v11700_v40, %v11699_v6  ;;  %v4931_v24 = vpop.f32.mrf.mxu1 }
 0x2b3   :  { %v4203_v10 = vsel %vm3012_vm1, %v4155_v21, %v4158_v4  ;;  %v5420_v45 = vsel %vm5347_vm2, %v5269_v37, %v5272_v63  ;;  %v5273_v62 = vrot.slane %v4931_v24, 3  ;;  %v11702_v48 = vpop.f32.mrf.mxu0 }
 0x2b4   :  { %v4308_v41 = vadd.f32 %v4203_v10, %v4074_v26  ;;  %6319 = vmatmul.mubr.bf16.gmra.mxu0 %v14319_v35  ;;  %v5501_v18 = vadd.f32 %v5420_v45, %v5266_v49  ;;  %v4161_v60 = vrot.slane %v11701_v1, 2  ;;  %v4935_v56 = vpop.f32.mrf.mxu1  ;;  %v4077_v35 = vld [vmem:[#allocation8 + $0x1a8] sm:$0xff]  ;;  %v5195_v10 = vld [vmem:[#allocation8 + $0x20] sm:$0xff] }
 0x2b5   :  { %6212 = vmatmul.mubr.bf16.gmra.mxu1 %v14410_v30  ;;  %6326 = vmatprep.mubr.bf16.mxu0 %v14323_v42  ;;  %v5421_v23 = vsel %vm5347_vm2, %v5270_v55, %v5273_v62  ;;  %v5275_v8 = vrot.slane %v4935_v56, 3  ;;  %v11703_v15 = vpop.f32.mrf.mxu0  ;;  %v12860_v49 = vld [vmem:[#allocation5 + $0xb10] ss:$12 sps:$4 sm:$0xff]   ;;  %v5197_v56 = vld [vmem:[#allocation8 + $0x30] sm:$0xff] }
 0x2b6   :  { %4386 = vst [vmem:[#allocation8 + $0x190] sm:$0xff] %v4308_v41  ;;  %7259 = vmatprep.mubr.bf16.mxu1 %v14413_v19  ;;  %5579 = vst [vmem:[#allocation8 + $0x258] sm:$0xff] %v5501_v18  ;;  %v4200_v27 = vsel %vm3012_vm1, %v4158_v4, %v4161_v60  ;;  %v5502_v12 = vadd.f32 %v5421_v23, %v5267_v31  ;;  %v11704_v57 = vadd.f32 %v11703_v15, %v11702_v48  ;;  %v4937_v39 = vpop.f32.mrf.mxu1 }
 0x2b7   :  { %v4311_v42 = vadd.f32 %v4200_v27, %v4077_v35  ;;  %v5417_v50 = vsel %vm5347_vm2, %v5272_v63, %v5275_v8  ;;  %v5276_v7 = vrot.slane %v4937_v39, 3  ;;  %v11705_v5 = vpop.f32.mrf.mxu0  ;;  %v5264_v43 = vld [vmem:[#allocation8 + $0x248] sm:$0xff] }
 0x2b8   :  { %5580 = vst [vmem:[#allocation8 + $0x260] sm:$0xff] %v5502_v12  ;;  %v5426_v28 = vadd.f32 %v5417_v50, %v5191_v58  ;;  %v4164_v2 = vrot.slane %v11704_v57, 2  ;;  %v4939_v36 = vpop.f32.mrf.mxu1  ;;  %v14454_v12 = vld [vmem:[#allocation2 + $0x10] ss:$8 sps:$4 sm:$0xff]   ;;  %v12863_v50 = vld [vmem:[#allocation5 + $0xaf8] ss:$12 sps:$4 sm:$0xff]  }
 0x2b9   :  { %4389 = vst [vmem:[#allocation8 + $0x1a8] sm:$0xff] %v4311_v42  ;;  %v5418_v51 = vsel %vm5347_vm2, %v5273_v62, %v5276_v7  ;;  %v5278_v21 = vrot.slane %v4939_v36, 3  ;;  %v11706_v16 = vpop.f32.mrf.mxu0  ;;  %v5198_v57 = vld [vmem:[#allocation8 + $0x38] sm:$0xff] }
 0x2ba   :  { %5504 = vst [vmem:[#allocation8] sm:$0xff] %v5426_v28  ;;  %v4197_v32 = vsel %vm3012_vm1, %v4161_v60, %v4164_v2  ;;  %v5427_v54 = vadd.f32 %v5418_v51, %v5192_v52  ;;  %v11707_v59 = vadd.f32 %v11706_v16, %v11705_v5  ;;  %v4941_v38 = vpop.f32.mrf.mxu1  ;;  %v4086_v5 = vld [vmem:[#allocation8 + $0x1f0] sm:$0xff]  ;;  %v12873_v51 = vld [vmem:[#allocation5 + $0xae4] ss:$12 sps:$4 sm:$0xff]  }
 0x2bb   :  { %v4314_v3 = vadd.f32 %v4197_v32, %v4080_v9  ;;  %v5414_v6 = vsel %vm5347_vm2, %v5275_v8, %v5278_v21  ;;  %v5279_v4 = vrot.slane %v4941_v38, 3  ;;  %v11708_v29 = vpop.f32.mrf.mxu0  ;;  %v5200_v16 = vld [vmem:[#allocation8 + $0x48] sm:$0xff] }
 0x2bc   :  { %6327 = vmatmul.mubr.bf16.gmra.mxu0 %v14339_v25  ;;  %5505 = vst [vmem:[#allocation8 + $0x8] sm:$0xff] %v5427_v54  ;;  %v5429_v63 = vadd.f32 %v5414_v6, %v5194_v17  ;;  %v4167_v40 = vrot.slane %v11707_v59, 2  ;;  %v4945_v26 = vpop.f32.mrf.mxu1  ;;  %v4083_v25 = vld [vmem:[#allocation8 + $0x1d8] sm:$0xff] }
 0x2bd   :  { %7260 = vmatmul.mubr.bf16.vlgmr.msra.gmra.mxu1 %v14434_v11  ;;  %6334 = vmatprep.mubr.bf16.mxu0 %v14343_v20  ;;  %4392 = vst [vmem:[#allocation8 + $0x1c0] sm:$0xff] %v4314_v3  ;;  %v5415_v1 = vsel %vm5347_vm2, %v5276_v7, %v5279_v4  ;;  %v5281_v24 = vrot.slane %v4945_v26, 3  ;;  %v11709_v41 = vpop.f32.mrf.mxu0  ;;  %v12865_v20 = vld [vmem:[#allocation5 + $0xafc] ss:$12 sps:$4 sm:$0xff]  }
 0x2be   :  { %8395 = vmatpush1.bf16.msra.mxu1 %v12852_v47  ;;  %7269 = vmatprep.mubr.bf16.mxu1 %v14438_v0  ;;  %5507 = vst [vmem:[#allocation8 + $0x18] sm:$0xff] %v5429_v63  ;;  %v4194_v45 = vsel %vm3012_vm1, %v4164_v2, %v4167_v40  ;;  %v5430_v62 = vadd.f32 %v5415_v1, %v5195_v10  ;;  %v4947_v18 = vpop.f32.mrf.mxu1  ;;  %v14458_v7 = vld [vmem:[#allocation2 + $0x24] ss:$8 sps:$4 sm:$0xff]   ;;  %v5203_v1 = vld [vmem:[#allocation8 + $0x60] sm:$0xff] }
 0x2bf   :  { %v11710_v48 = vadd.f32 %v11709_v41, %v11708_v29  ;;  %8396 = vmatprep.subr.bf16.mxu1 %v12862_v22  ;;  %v4317_v60 = vadd.f32 %v4194_v45, %v4083_v25  ;;  %v5411_v31 = vsel %vm5347_vm2, %v5278_v21, %v5281_v24  ;;  %v5282_v23 = vrot.slane %v4947_v18, 3  ;;  %v11711_v8 = vpop.f32.mrf.mxu0  ;;  %v5201_v22 = vld [vmem:[#allocation8 + $0x50] sm:$0xff]  ;;  %v5204_v18 = vld [vmem:[#allocation8 + $0x68] sm:$0xff] }
 0x2c0   :  { %5508 = vst [vmem:[#allocation8 + $0x20] sm:$0xff] %v5430_v62  ;;  %v5432_v15 = vadd.f32 %v5411_v31, %v5197_v56  ;;  %v4949_v27 = vpop.f32.mrf.mxu1  ;;  %v14478_v31 = vld [vmem:[#allocation2 + $0x34] ss:$8 sps:$4 sm:$0xff]  }
 0x2c1   :  { %v4170_v35 = vrot.slane %v11710_v48, 2  ;;  %4395 = vst [vmem:[#allocation8 + $0x1d8] sm:$0xff] %v4317_v60  ;;  %v5412_v39 = vsel %vm5347_vm2, %v5279_v4, %v5282_v23  ;;  %v5284_v42 = vrot.slane %v4949_v27, 3  ;;  %v11712_v58 = vpop.f32.mrf.mxu0  ;;  %v12871_v4 = vld [vmem:[#allocation5 + $0xae0] ss:$12 sps:$4 sm:$0xff]  }
 0x2c2   :  { %8397 = vmatpush1.bf16.msra.mxu1 %v12860_v49  ;;  %5510 = vst [vmem:[#allocation8 + $0x30] sm:$0xff] %v5432_v15  ;;  %v5433_v2 = vadd.f32 %v5412_v39, %v5198_v57  ;;  %v11713_v36 = vadd.f32 %v11712_v58, %v11711_v8  ;;  %v4951_v52 = vpop.f32.mrf.mxu1  ;;  %v14474_v48 = vld [vmem:[#allocation2 + $0x20] ss:$8 sps:$4 sm:$0xff]   ;;  %v4092_v8 = vld [vmem:[#allocation8 + $0x220] sm:$0xff]  ;;  %v12886_v39 = vld [vmem:[#allocation5 + $0xab4] ss:$12 sps:$4 sm:$0xff]  }
 0x2c3   :  { %v4191_v28 = vsel %vm3012_vm1, %v4167_v40, %v4170_v35  ;;  %8398 = vmatprep.subr.bf16.mxu1 %v12865_v20  ;;  %v5408_v47 = vsel %vm5347_vm2, %v5281_v24, %v5284_v42  ;;  %v5285_v9 = vrot.slane %v4951_v52, 3  ;;  %v11714_v32 = vpop.f32.mrf.mxu0  ;;  %v5206_v58 = vld [vmem:[#allocation8 + $0x78] sm:$0xff] }
 0x2c4   :  { %v4320_v21 = vadd.f32 %v4191_v28, %v4086_v5  ;;  %6335 = vmatmul.mubr.bf16.gmra.mxu0 %v14359_v34  ;;  %5511 = vst [vmem:[#allocation8 + $0x38] sm:$0xff] %v5433_v2  ;;  %v5435_v54 = vadd.f32 %v5408_v47, %v5200_v16  ;;  %v4173_v59 = vrot.slane %v11713_v36, 2  ;;  %v4955_v38 = vpop.f32.mrf.mxu1  ;;  %v4089_v34 = vld [vmem:[#allocation8 + $0x208] sm:$0xff] }
 0x2c5   :  { %7270 = vmatmul.mubr.bf16.gmra.mxu1 %v14454_v12  ;;  %6342 = vmatprep.mubr.bf16.mxu0 %v14363_v33  ;;  %v5409_v3 = vsel %vm5347_vm2, %v5282_v23, %v5285_v9  ;;  %v5287_v17 = vrot.slane %v4955_v38, 3  ;;  %v11715_v6 = vpop.f32.mrf.mxu0  ;;  %v12879_v33 = vld [vmem:[#allocation5 + $0xacc] ss:$12 sps:$4 sm:$0xff]   ;;  %v12877_v23 = vld [vmem:[#allocation5 + $0xac8] ss:$12 sps:$4 sm:$0xff]  }
 0x2c6   :  { %4398 = vst [vmem:[#allocation8 + $0x1f0] sm:$0xff] %v4320_v21  ;;  %8399 = vmatpush1.bf16.msra.mxu1 %v12863_v50  ;;  %7279 = vmatprep.mubr.bf16.mxu1 %v14458_v7  ;;  %5513 = vst [vmem:[#allocation8 + $0x48] sm:$0xff] %v5435_v54  ;;  %v4188_v29 = vsel %vm3012_vm1, %v4170_v35, %v4173_v59  ;;  %v5436_v63 = vadd.f32 %v5409_v3, %v5201_v22  ;;  %v4957_v26 = vpop.f32.mrf.mxu1  ;;  %v12893_v22 = vld [vmem:[#allocation5 + $0xa9c] ss:$12 sps:$4 sm:$0xff]  }
 0x2c7   :  { %v11716_v40 = vadd.f32 %v11715_v6, %v11714_v32  ;;  %8400 = vmatprep.subr.bf16.mxu1 %v12873_v51  ;;  %v4323_v10 = vadd.f32 %v4188_v29, %v4089_v34  ;;  %v5405_v24 = vsel %vm5347_vm2, %v5284_v42, %v5287_v17  ;;  %v5288_v41 = vrot.slane %v4957_v26, 3  ;;  %v11717_v49 = vpop.f32.mrf.mxu0  ;;  %v5207_v51 = vld [vmem:[#allocation8 + $0x80] sm:$0xff]  ;;  %v4098_v32 = vld [vmem:[#allocation8 + $0x250] sm:$0xff] }
 0x2c8   :  { %5514 = vst [vmem:[#allocation8 + $0x50] sm:$0xff] %v5436_v63  ;;  %v5438_v25 = vadd.f32 %v5405_v24, %v5203_v1  ;;  %v4959_v62 = vpop.f32.mrf.mxu1  ;;  %v5209_v6 = vld [vmem:[#allocation8 + $0x90] sm:$0xff]  ;;  %v14500_v26 = vld [vmem:[#allocation2 + $0x30] ss:$8 sps:$4 sm:$0xff]  }
 0x2c9   :  { %v4176_v45 = vrot.slane %v11716_v40, 2  ;;  %4401 = vst [vmem:[#allocation8 + $0x208] sm:$0xff] %v4323_v10  ;;  %v5406_v20 = vsel %vm5347_vm2, %v5285_v9, %v5288_v41  ;;  %v5290_v60 = vrot.slane %v4959_v62, 3  ;;  %v11718_v56 = vpop.f32.mrf.mxu0  ;;  %v12884_v9 = vld [vmem:[#allocation5 + $0xab0] ss:$12 sps:$4 sm:$0xff]  }
 0x2ca   :  { %8401 = vmatpush1.bf16.msra.mxu1 %v12871_v4  ;;  %5516 = vst [vmem:[#allocation8 + $0x60] sm:$0xff] %v5438_v25  ;;  %v5439_v35 = vadd.f32 %v5406_v20, %v5204_v18  ;;  %v11719_v27 = vadd.f32 %v11718_v56, %v11717_v49  ;;  %v4961_v57 = vpop.f32.mrf.mxu1  ;;  %v14504_v24 = vld [vmem:[#allocation2 + $0x44] ss:$8 sps:$4 sm:$0xff]   ;;  %v12897_v62 = vld [vmem:[#allocation5 + $0xa84] ss:$12 sps:$4 sm:$0xff]  }
 0x2cb   :  { %v4185_v15 = vsel %vm3012_vm1, %v4173_v59, %v4176_v45  ;;  %8402 = vmatprep.subr.bf16.mxu1 %v12879_v33  ;;  %v5402_v50 = vsel %vm5347_vm2, %v5287_v17, %v5290_v60  ;;  %v5291_v5 = vrot.slane %v4961_v57, 3  ;;  %v11736_v28 = vpop.f32.mrf.mxu0  ;;  %v5212_v18 = vld [vmem:[#allocation8 + $0xa8] sm:$0xff] }
 0x2cc   :  { %v4326_v42 = vadd.f32 %v4185_v15, %v4092_v8  ;;  %6343 = vmatmul.mubr.bf16.gmra.mxu0 %v14379_v46  ;;  %5517 = vst [vmem:[#allocation8 + $0x68] sm:$0xff] %v5439_v35  ;;  %v5441_v2 = vadd.f32 %v5402_v50, %v5206_v58  ;;  %v4179_v36 = vrot.slane %v11719_v27, 2  ;;  %v4965_v52 = vpop.f32.mrf.mxu1  ;;  %v4095_v46 = vld [vmem:[#allocation8 + $0x238] sm:$0xff]  ;;  %v5213_v27 = vld [vmem:[#allocation8 + $0xb0] sm:$0xff]  ;;  %v5268_v50 = vld [vmem:[#allocation8 + $0x268] sm:$0xff] }
 0x2cd   :  { %7280 = vmatmul.mubr.bf16.gmra.mxu1 %v14474_v48  ;;  %6350 = vmatprep.mubr.bf16.mxu0 %v14383_v61  ;;  %v5403_v21 = vsel %vm5347_vm2, %v5288_v41, %v5291_v5  ;;  %v5293_v16 = vrot.slane %v4965_v52, 3  ;;  %v11737_v47 = vpop.f32.mrf.mxu0  ;;  %v12891_v41 = vld [vmem:[#allocation5 + $0xa98] ss:$12 sps:$4 sm:$0xff]  }
 0x2ce   :  { %4404 = vst [vmem:[#allocation8 + $0x220] sm:$0xff] %v4326_v42  ;;  %7289 = vmatprep.mubr.bf16.mxu1 %v14478_v31  ;;  %8403 = vmatpush1.bf16.msra.mxu1 %v12877_v23  ;;  %5519 = vst [vmem:[#allocation8 + $0x78] sm:$0xff] %v5441_v2  ;;  %v4182_v54 = vsel %vm3012_vm1, %v4176_v45, %v4179_v36  ;;  %v4257_v61 = vsel %vm3012_vm1, %v4179_v36, %v4104_v44  ;;  %v4967_v38 = vpop.f32.mrf.mxu1  ;;  %v5210_v44 = vld [vmem:[#allocation8 + $0x98] sm:$0xff]  ;;  %v12904_v2 = vld [vmem:[#allocation5 + $0xbec] ss:$12 sps:$4 sm:$0xff]  }
 0x2cf   :  { %v5442_v59 = vadd.f32 %v5403_v21, %v5207_v51  ;;  %8404 = vmatprep.subr.bf16.mxu1 %v12886_v39  ;;  %v4329_v3 = vadd.f32 %v4182_v54, %v4095_v46  ;;  %v4332_v17 = vadd.f32 %v4257_v61, %v4098_v32  ;;  %v5399_v4 = vsel %vm5347_vm2, %v5290_v60, %v5293_v16  ;;  %v11739_v29 = vpop.f32.mrf.mxu0  ;;  %v5215_v52 = vld [vmem:[#allocation8 + $0xc0] sm:$0xff]  ;;  %v14521_v32 = vld [vmem:[#allocation2 + $0x40] ss:$8 sps:$4 sm:$0xff]  }
 0x2d0   :  { %v5294_v34 = vrot.slane %v4967_v38, 3  ;;  %v5444_v63 = vadd.f32 %v5399_v4, %v5209_v6  ;;  %v14498_v40 = vadd.f32 %v11737_v47, %v11736_v28  ;;  %v4969_v13 = vpop.f32.mrf.mxu1  ;;  %v12887_v54 = vld [vmem:[#allocation5 + $0xb30] ss:$12 sps:$4 sm:$0xff]   ;;  %v5193_v6 = vld [vmem:[#allocation8 + $0x10] sm:$0xff] }
 0x2d1   :  { %5520 = vst [vmem:[#allocation8 + $0x80] sm:$0xff] %v5442_v59  ;;  %4407 = vst [vmem:[#allocation8 + $0x238] sm:$0xff] %v4329_v3  ;;  %v5296_v10 = vrot.slane %v4969_v13, 3  ;;  %v11740_v1 = vpop.f32.mrf.mxu0  ;;  %v5216_v61 = vld [vmem:[#allocation8 + $0xc8] sm:$0xff]  ;;  %v12902_v13 = vld [vmem:[#allocation5 + $0xbe8] ss:$12 sps:$4 sm:$0xff]  }
 0x2d2   :  { %4410 = vst [vmem:[#allocation8 + $0x250] sm:$0xff] %v4332_v17  ;;  %v5400_v33 = vsel %vm5347_vm2, %v5291_v5, %v5294_v34  ;;  %8405 = vmatpush1.bf16.msra.mxu1 %v12884_v9  ;;  %5522 = vst [vmem:[#allocation8 + $0x90] sm:$0xff] %v5444_v63  ;;  %v4971_v25 = vpop.f32.mrf.mxu1  ;;  %v11741_v45 = vadd.f32 %v11740_v1, %v11739_v29  ;;  %v5271_v23 = vrot.slane %v14498_v40, 3  ;;  %v14525_v3 = vld [vmem:[#allocation2 + $0x54] ss:$8 sps:$4 sm:$0xff]  }
 0x2d3   :  { %v5445_v49 = vadd.f32 %v5400_v33, %v5210_v44  ;;  %8406 = vmatprep.subr.bf16.mxu1 %v12893_v22  ;;  %v5396_v20 = vsel %vm5347_vm2, %v5293_v16, %v5296_v10  ;;  %v5297_v60 = vrot.slane %v4971_v25, 3  ;;  %v11742_v56 = vpop.f32.mrf.mxu0  ;;  %v12894_v63 = vld [vmem:[#allocation5 + $0xbd8] ss:$12 sps:$4 sm:$0xff]   ;;  %v5218_v33 = vld [vmem:[#allocation8 + $0xd8] sm:$0xff] }
 0x2d4   :  { %6351 = vmatmul.mubr.bf16.gmra.mxu0 %v14410_v30  ;;  %v5447_v8 = vadd.f32 %v5396_v20, %v5212_v18  ;;  %v5274_v15 = vrot.slane %v11741_v45, 3  ;;  %v4975_v35 = vpop.f32.mrf.mxu1  ;;  %v12895_v30 = vld [vmem:[#allocation5 + $0xa80] ss:$12 sps:$4 sm:$0xff]   ;;  %v12898_v18 = vld [vmem:[#allocation5 + $0xb18] ss:$12 sps:$4 sm:$0xff]  }
 0x2d5   :  { %5523 = vst [vmem:[#allocation8 + $0x98] sm:$0xff] %v5445_v49  ;;  %7290 = vmatmul.mubr.bf16.gmra.mxu1 %v14500_v26  ;;  %7422 = vmatprep.mubr.bf16.mxu0 %v14413_v19  ;;  %v5397_v57 = vsel %vm5347_vm2, %v5294_v34, %v5297_v60  ;;  %v5299_v39 = vrot.slane %v4975_v35, 3  ;;  %v11743_v42 = vpop.f32.mrf.mxu0  ;;  %v12911_v49 = vld [vmem:[#allocation5 + $0xbd4] ss:$12 sps:$4 sm:$0xff]   ;;  %v5219_v20 = vld [vmem:[#allocation8 + $0xe0] sm:$0xff]  ;;  %v5196_v35 = vld [vmem:[#allocation8 + $0x28] sm:$0xff] }
 0x2d6   :  { %7299 = vmatprep.mubr.bf16.mxu1 %v14504_v24  ;;  %8407 = vmatpush1.bf16.msra.mxu1 %v12891_v41  ;;  %5525 = vst [vmem:[#allocation8 + $0xa8] sm:$0xff] %v5447_v8  ;;  %v5448_v58 = vadd.f32 %v5397_v57, %v5213_v27  ;;  %v5422_v5 = vsel %vm5347_vm2, %v5271_v23, %v5274_v15  ;;  %v4977_v28 = vpop.f32.mrf.mxu1 }
 0x2d7   :  { %v11744_v19 = vadd.f32 %v11743_v42, %v11742_v56  ;;  %8408 = vmatprep.subr.bf16.mxu1 %v12897_v62  ;;  %v5503_v36 = vadd.f32 %v5422_v5, %v5268_v50  ;;  %v5393_v51 = vsel %vm5347_vm2, %v5296_v10, %v5299_v39  ;;  %v5300_v21 = vrot.slane %v4977_v28, 3  ;;  %v11745_v16 = vpop.f32.mrf.mxu0  ;;  %v12909_v42 = vld [vmem:[#allocation5 + $0xbd0] ss:$12 sps:$4 sm:$0xff]  }
 0x2d8   :  { %5526 = vst [vmem:[#allocation8 + $0xb0] sm:$0xff] %v5448_v58  ;;  %v5450_v47 = vadd.f32 %v5393_v51, %v5215_v52  ;;  %v4979_v46 = vpop.f32.mrf.mxu1  ;;  %v5221_v58 = vld [vmem:[#allocation8 + $0xf0] sm:$0xff]  ;;  %v14541_v52 = vld [vmem:[#allocation2 + $0x50] ss:$8 sps:$4 sm:$0xff]  }
 0x2d9   :  { %v5277_v9 = vrot.slane %v11744_v19, 3  ;;  %5581 = vst [vmem:[#allocation8 + $0x268] sm:$0xff] %v5503_v36  ;;  %v5394_v59 = vsel %vm5347_vm2, %v5297_v60, %v5300_v21  ;;  %v5302_v38 = vrot.slane %v4979_v46, 3  ;;  %v11746_v22 = vpop.f32.mrf.mxu0  ;;  %v5222_v51 = vld [vmem:[#allocation8 + $0xf8] sm:$0xff] }
 0x2da   :  { %8409 = vmatpush1.bf16.msra.mxu1 %v12895_v30  ;;  %5528 = vst [vmem:[#allocation8 + $0xc0] sm:$0xff] %v5450_v47  ;;  %v5451_v17 = vadd.f32 %v5394_v59, %v5216_v61  ;;  %v4981_v34 = vpop.f32.mrf.mxu1  ;;  %v11747_v29 = vadd.f32 %v11746_v22, %v11745_v16  ;;  %v12912_v46 = vld [vmem:[#allocation5 + $0xb00] ss:$12 sps:$4 sm:$0xff]   ;;  %v5199_v61 = vld [vmem:[#allocation8 + $0x40] sm:$0xff] }
 0x2db   :  { %v5419_v4 = vsel %vm5347_vm2, %v5274_v15, %v5277_v9  ;;  %8410 = vmatprep.subr.bf16.mxu1 %v12904_v2  ;;  %v5390_v10 = vsel %vm5347_vm2, %v5299_v39, %v5302_v38  ;;  %v5303_v1 = vrot.slane %v4981_v34, 3  ;;  %v11748_v41 = vpop.f32.mrf.mxu0  ;;  %v5224_v34 = vld [vmem:[#allocation8 + $0x108] sm:$0xff] }
 0x2dc   :  { %v5428_v44 = vadd.f32 %v5419_v4, %v5193_v6  ;;  %7423 = vmatmul.mubr.bf16.vlgmr.msra.gmra.mxu0 %v14434_v11  ;;  %5529 = vst [vmem:[#allocation8 + $0xc8] sm:$0xff] %v5451_v17  ;;  %v5453_v25 = vadd.f32 %v5390_v10, %v5218_v33  ;;  %v5280_v45 = vrot.slane %v11747_v29, 3  ;;  %v4985_v62 = vpop.f32.mrf.mxu1  ;;  %v12908_v11 = vld [vmem:[#allocation5 + $0xbc0] ss:$12 sps:$4 sm:$0xff]   ;;  %v12916_v17 = vld [vmem:[#allocation5 + $0xbb8] ss:$12 sps:$4 sm:$0xff]  }
 0x2dd   :  { %7300 = vmatmul.mubr.bf16.gmra.mxu1 %v14521_v32  ;;  %12003 = vmatpush3.bf16.msra.mxu0 %v12887_v54  ;;  %v5391_v60 = vsel %vm5347_vm2, %v5300_v21, %v5303_v1  ;;  %v5305_v56 = vrot.slane %v4985_v62, 3  ;;  %v11749_v8 = vpop.f32.mrf.mxu0  ;;  %v12922_v6 = vld [vmem:[#allocation5 + $0xba8] ss:$12 sps:$4 sm:$0xff]  }
 0x2de   :  { %5506 = vst [vmem:[#allocation8 + $0x10] sm:$0xff] %v5428_v44  ;;  %7309 = vmatprep.mubr.bf16.mxu1 %v14525_v3  ;;  %7430 = vmatprep.mubr.bf16.mxu0 %v14438_v0  ;;  %5531 = vst [vmem:[#allocation8 + $0xd8] sm:$0xff] %v5453_v25  ;;  %v5454_v15 = vadd.f32 %v5391_v60, %v5219_v20  ;;  %v5416_v27 = vsel %vm5347_vm2, %v5277_v9, %v5280_v45  ;;  %v4987_v57 = vpop.f32.mrf.mxu1  ;;  %v12918_v0 = vld [vmem:[#allocation5 + $0xbbc] ss:$12 sps:$4 sm:$0xff]   ;;  %v12925_v44 = vld [vmem:[#allocation5 + $0xba4] ss:$12 sps:$4 sm:$0xff]  }
 0x2df   :  { %v11750_v39 = vadd.f32 %v11749_v8, %v11748_v41  ;;  %12004 = vmatprep.subr.bf16.mxu0 %v12894_v63  ;;  %8411 = vmatpush2.bf16.msra.mxu1 %v12902_v13  ;;  %v5431_v30 = vadd.f32 %v5416_v27, %v5196_v35  ;;  %v5387_v50 = vsel %vm5347_vm2, %v5302_v38, %v5305_v56  ;;  %v5306_v5 = vrot.slane %v4987_v57, 3  ;;  %v11751_v28 = vpop.f32.mrf.mxu0  ;;  %v14545_v9 = vld [vmem:[#allocation2 + $0x64] ss:$8 sps:$4 sm:$0xff]  }
 0x2e0   :  { %8412 = vmatprep.subr.bf16.mxu1 %v12911_v49  ;;  %5532 = vst [vmem:[#allocation8 + $0xe0] sm:$0xff] %v5454_v15  ;;  %v5456_v19 = vadd.f32 %v5387_v50, %v5221_v58  ;;  %v4989_v36 = vpop.f32.mrf.mxu1  ;;  %v5225_v41 = vld [vmem:[#allocation8 + $0x110] sm:$0xff]  ;;  %v12933_v8 = vld [vmem:[#allocation5 + $0xb90] ss:$12 sps:$4 sm:$0xff]   ;;  %v5227_v15 = vld [vmem:[#allocation8 + $0x120] sm:$0xff] }
 0x2e1   :  { %v5283_v2 = vrot.slane %v11750_v39, 3  ;;  %12005 = vmatpush3.bf16.msra.mxu0 %v12898_v18  ;;  %5509 = vst [vmem:[#allocation8 + $0x28] sm:$0xff] %v5431_v30  ;;  %v5388_v21 = vsel %vm5347_vm2, %v5303_v1, %v5306_v5  ;;  %v5308_v16 = vrot.slane %v4989_v36, 3  ;;  %v11752_v47 = vpop.f32.mrf.mxu0  ;;  %v5202_v18 = vld [vmem:[#allocation8 + $0x58] sm:$0xff]  ;;  %v12929_v39 = vld [vmem:[#allocation5 + $0xb8c] ss:$12 sps:$4 sm:$0xff]  }
 0x2e2   :  { %12006 = vmatprep.subr.bf16.mxu0 %v12908_v11  ;;  %5534 = vst [vmem:[#allocation8 + $0xf0] sm:$0xff] %v5456_v19  ;;  %v5457_v54 = vadd.f32 %v5388_v21, %v5222_v51  ;;  %v4991_v38 = vpop.f32.mrf.mxu1  ;;  %v11753_v22 = vadd.f32 %v11752_v47, %v11751_v28  ;;  %v14561_v50 = vld [vmem:[#allocation2 + $0x60] ss:$8 sps:$4 sm:$0xff]  }
 0x2e3   :  { %v5413_v59 = vsel %vm5347_vm2, %v5280_v45, %v5283_v2  ;;  %8413 = vmatpush2.bf16.msra.mxu1 %v12909_v42  ;;  %v5384_v29 = vsel %vm5347_vm2, %v5305_v56, %v5308_v16  ;;  %v5309_v63 = vrot.slane %v4991_v38, 3  ;;  %v11754_v13 = vpop.f32.mrf.mxu0  ;;  %v12937_v36 = vld [vmem:[#allocation5 + $0xad0] ss:$12 sps:$4 sm:$0xff]   ;;  %v5205_v21 = vld [vmem:[#allocation8 + $0x70] sm:$0xff] }
 0x2e4   :  { %v5434_v4 = vadd.f32 %v5413_v59, %v5199_v61  ;;  %7431 = vmatmul.mubr.bf16.gmra.mxu0 %v14454_v12  ;;  %8414 = vmatprep.subr.bf16.mxu1 %v12918_v0  ;;  %5535 = vst [vmem:[#allocation8 + $0xf8] sm:$0xff] %v5457_v54  ;;  %v5459_v33 = vadd.f32 %v5384_v29, %v5224_v34  ;;  %v5286_v10 = vrot.slane %v11753_v22, 3  ;;  %v4995_v1 = vpop.f32.mrf.mxu1  ;;  %v12926_v12 = vld [vmem:[#allocation5 + $0xae8] ss:$12 sps:$4 sm:$0xff]   ;;  %v12947_v61 = vld [vmem:[#allocation5 + $0xb78] ss:$12 sps:$4 sm:$0xff]  }
 0x2e5   :  { %7310 = vmatmul.mubr.bf16.gmra.mxu1 %v14541_v52  ;;  %7438 = vmatprep.mubr.bf16.mxu0 %v14458_v7  ;;  %v5385_v49 = vsel %vm5347_vm2, %v5306_v5, %v5309_v63  ;;  %v5311_v25 = vrot.slane %v4995_v1, 3  ;;  %v11755_v45 = vpop.f32.mrf.mxu0  ;;  %v12923_v7 = vld [vmem:[#allocation5 + $0xba0] ss:$12 sps:$4 sm:$0xff]   ;;  %v12927_v54 = vld [vmem:[#allocation5 + $0xb88] ss:$12 sps:$4 sm:$0xff]  }
 0x2e6   :  { %5512 = vst [vmem:[#allocation8 + $0x40] sm:$0xff] %v5434_v4  ;;  %7319 = vmatprep.mubr.bf16.mxu1 %v14545_v9  ;;  %12007 = vmatpush3.bf16.msra.mxu0 %v12912_v46  ;;  %5537 = vst [vmem:[#allocation8 + $0x108] sm:$0xff] %v5459_v33  ;;  %v5460_v62 = vadd.f32 %v5385_v49, %v5225_v41  ;;  %v5410_v20 = vsel %vm5347_vm2, %v5283_v2, %v5286_v10  ;;  %v4997_v60 = vpop.f32.mrf.mxu1  ;;  %v5228_v5 = vld [vmem:[#allocation8 + $0x128] sm:$0xff]  ;;  %v5230_v38 = vld [vmem:[#allocation8 + $0x138] sm:$0xff] }
 0x2e7   :  { %v11756_v56 = vadd.f32 %v11755_v45, %v11754_v13  ;;  %8415 = vmatpush2.bf16.msra.mxu1 %v12916_v17  ;;  %12008 = vmatprep.subr.bf16.mxu0 %v12922_v6  ;;  %v5437_v11 = vadd.f32 %v5410_v20, %v5202_v18  ;;  %v5381_v35 = vsel %vm5347_vm2, %v5308_v16, %v5311_v25  ;;  %v5312_v27 = vrot.slane %v4997_v60, 3  ;;  %v11757_v57 = vpop.f32.mrf.mxu0  ;;  %v14565_v2 = vld [vmem:[#allocation2 + $0x74] ss:$8 sps:$4 sm:$0xff]   ;;  %v12936_v4 = vld [vmem:[#allocation5 + $0xb74] ss:$12 sps:$4 sm:$0xff]  }
 0x2e8   :  { %8416 = vmatprep.subr.bf16.mxu1 %v12925_v44  ;;  %5538 = vst [vmem:[#allocation8 + $0x110] sm:$0xff] %v5460_v62  ;;  %v5462_v42 = vadd.f32 %v5381_v35, %v5227_v15  ;;  %v4999_v58 = vpop.f32.mrf.mxu1  ;;  %v5231_v13 = vld [vmem:[#allocation8 + $0x140] sm:$0xff]  ;;  %v5208_v41 = vld [vmem:[#allocation8 + $0x88] sm:$0xff]  ;;  %v5233_v18 = vld [vmem:[#allocation8 + $0x150] sm:$0xff] }
 0x2e9   :  { %v5289_v30 = vrot.slane %v11756_v56, 3  ;;  %5515 = vst [vmem:[#allocation8 + $0x58] sm:$0xff] %v5437_v11  ;;  %v5382_v28 = vsel %vm5347_vm2, %v5309_v63, %v5312_v27  ;;  %v5314_v0 = vrot.slane %v4999_v58, 3  ;;  %v11758_v19 = vpop.f32.mrf.mxu0  ;;  %v14581_v35 = vld [vmem:[#allocation2 + $0x70] ss:$8 sps:$4 sm:$0xff]  }
 0x2ea   :  { %12009 = vmatpush3.bf16.msra.mxu0 %v12926_v12  ;;  %5540 = vst [vmem:[#allocation8 + $0x120] sm:$0xff] %v5462_v42  ;;  %v5463_v51 = vadd.f32 %v5382_v28, %v5228_v5  ;;  %v5001_v47 = vpop.f32.mrf.mxu1  ;;  %v11759_v46 = vadd.f32 %v11758_v19, %v11757_v57  ;;  %v12958_v12 = vld [vmem:[#allocation5 + $0xb60] ss:$12 sps:$4 sm:$0xff]   ;;  %v5211_v28 = vld [vmem:[#allocation8 + $0xa0] sm:$0xff] }
 0x2eb   :  { %v5407_v16 = vsel %vm5347_vm2, %v5286_v10, %v5289_v30  ;;  %8417 = vmatpush2.bf16.msra.mxu1 %v12923_v7  ;;  %12010 = vmatprep.subr.bf16.mxu0 %v12933_v8  ;;  %v5378_v22 = vsel %vm5347_vm2, %v5311_v25, %v5314_v0  ;;  %v5315_v17 = vrot.slane %v5001_v47, 3  ;;  %v11760_v6 = vpop.f32.mrf.mxu0  ;;  %v12943_v7 = vld [vmem:[#allocation5 + $0xb5c] ss:$12 sps:$4 sm:$0xff]   ;;  %v12962_v58 = vld [vmem:[#allocation5 + $0xaa0] ss:$12 sps:$4 sm:$0xff]  }
 0x2ec   :  { %v5440_v59 = vadd.f32 %v5407_v16, %v5205_v21  ;;  %7439 = vmatmul.mubr.bf16.gmra.mxu0 %v14474_v48  ;;  %8418 = vmatprep.subr.bf16.mxu1 %v12929_v39  ;;  %5541 = vst [vmem:[#allocation8 + $0x128] sm:$0xff] %v5463_v51  ;;  %v5465_v34 = vadd.f32 %v5378_v22, %v5230_v38  ;;  %v5292_v29 = vrot.slane %v11759_v46, 3  ;;  %v5005_v63 = vpop.f32.mrf.mxu1  ;;  %v12951_v48 = vld [vmem:[#allocation5 + $0xab8] ss:$12 sps:$4 sm:$0xff]   ;;  %v12972_v21 = vld [vmem:[#allocation5 + $0xb48] ss:$12 sps:$4 sm:$0xff]  }
 0x2ed   :  { %7320 = vmatmul.mubr.bf16.gmra.mxu1 %v14561_v50  ;;  %7446 = vmatprep.mubr.bf16.mxu0 %v14478_v31  ;;  %v5379_v44 = vsel %vm5347_vm2, %v5312_v27, %v5315_v17  ;;  %v5317_v33 = vrot.slane %v5005_v63, 3  ;;  %v11761_v10 = vpop.f32.mrf.mxu0  ;;  %v12934_v31 = vld [vmem:[#allocation5 + $0xb70] ss:$12 sps:$4 sm:$0xff]   ;;  %v12941_v51 = vld [vmem:[#allocation5 + $0xb58] ss:$12 sps:$4 sm:$0xff]  }
 0x2ee   :  { %5518 = vst [vmem:[#allocation8 + $0x70] sm:$0xff] %v5440_v59  ;;  %7329 = vmatprep.mubr.bf16.mxu1 %v14565_v2  ;;  %12011 = vmatpush3.bf16.msra.mxu0 %v12937_v36  ;;  %5543 = vst [vmem:[#allocation8 + $0x138] sm:$0xff] %v5465_v34  ;;  %v5466_v1 = vadd.f32 %v5379_v44, %v5231_v13  ;;  %v5404_v49 = vsel %vm5347_vm2, %v5289_v30, %v5292_v29  ;;  %v5007_v25 = vpop.f32.mrf.mxu1  ;;  %v5234_v27 = vld [vmem:[#allocation8 + $0x158] sm:$0xff]  ;;  %v5236_v47 = vld [vmem:[#allocation8 + $0x168] sm:$0xff] }
 0x2ef   :  { %v11762_v45 = vadd.f32 %v11761_v10, %v11760_v6  ;;  %8419 = vmatpush2.bf16.msra.mxu1 %v12927_v54  ;;  %12012 = vmatprep.subr.bf16.mxu0 %v12947_v61  ;;  %v5443_v62 = vadd.f32 %v5404_v49, %v5208_v41  ;;  %v5375_v20 = vsel %vm5347_vm2, %v5314_v0, %v5317_v33  ;;  %v5318_v60 = vrot.slane %v5007_v25, 3  ;;  %v11763_v56 = vpop.f32.mrf.mxu0  ;;  %v14585_v30 = vld [vmem:[#allocation2 + $0x84] ss:$8 sps:$4 sm:$0xff]   ;;  %v12950_v59 = vld [vmem:[#allocation5 + $0xb44] ss:$12 sps:$4 sm:$0xff]  }
 0x2f0   :  { %8420 = vmatprep.subr.bf16.mxu1 %v12936_v4  ;;  %5544 = vst [vmem:[#allocation8 + $0x140] sm:$0xff] %v5466_v1  ;;  %v5468_v8 = vadd.f32 %v5375_v20, %v5233_v18  ;;  %v5009_v15 = vpop.f32.mrf.mxu1  ;;  %v5237_v6 = vld [vmem:[#allocation8 + $0x170] sm:$0xff]  ;;  %v5214_v13 = vld [vmem:[#allocation8 + $0xb8] sm:$0xff]  ;;  %v5239_v41 = vld [vmem:[#allocation8 + $0x180] sm:$0xff] }
 0x2f1   :  { %v5295_v11 = vrot.slane %v11762_v45, 3  ;;  %5521 = vst [vmem:[#allocation8 + $0x88] sm:$0xff] %v5443_v62  ;;  %v5376_v57 = vsel %vm5347_vm2, %v5315_v17, %v5318_v60  ;;  %v5320_v39 = vrot.slane %v5009_v15, 3  ;;  %v11764_v42 = vpop.f32.mrf.mxu0  ;;  %v14601_v20 = vld [vmem:[#allocation2 + $0x80] ss:$8 sps:$4 sm:$0xff]  }
 0x2f2   :  { %12013 = vmatpush3.bf16.msra.mxu0 %v12951_v48  ;;  %5546 = vst [vmem:[#allocation8 + $0x150] sm:$0xff] %v5468_v8  ;;  %v5469_v5 = vadd.f32 %v5376_v57, %v5234_v27  ;;  %v5011_v19 = vpop.f32.mrf.mxu1  ;;  %v11765_v36 = vadd.f32 %v11764_v42, %v11763_v56  ;;  %v12986_v48 = vld [vmem:[#allocation5 + $0xd70] ss:$12 sps:$4 sm:$0xff]   ;;  %v5217_v27 = vld [vmem:[#allocation8 + $0xd0] sm:$0xff] }
 0x2f3   :  { %v5401_v0 = vsel %vm5347_vm2, %v5292_v29, %v5295_v11  ;;  %8421 = vmatpush2.bf16.msra.mxu1 %v12934_v31  ;;  %12014 = vmatprep.subr.bf16.mxu0 %v12958_v12  ;;  %v5372_v46 = vsel %vm5347_vm2, %v5317_v33, %v5320_v39  ;;  %v5321_v54 = vrot.slane %v5011_v19, 3  ;;  %v11766_v61 = vpop.f32.mrf.mxu0  ;;  %v12957_v31 = vld [vmem:[#allocation5 + $0xcac] ss:$12 sps:$4 sm:$0xff]  }
 0x2f4   :  { %v5446_v16 = vadd.f32 %v5401_v0, %v5211_v28  ;;  %7447 = vmatmul.mubr.bf16.gmra.mxu0 %v14500_v26  ;;  %8422 = vmatprep.subr.bf16.mxu1 %v12943_v7  ;;  %5547 = vst [vmem:[#allocation8 + $0x158] sm:$0xff] %v5469_v5  ;;  %v5471_v38 = vadd.f32 %v5372_v46, %v5236_v47  ;;  %v5298_v22 = vrot.slane %v11765_v36, 3  ;;  %v5015_v17 = vpop.f32.mrf.mxu1  ;;  %v12973_v26 = vld [vmem:[#allocation5 + $0xa88] ss:$12 sps:$4 sm:$0xff]   ;;  %v5242_v5 = vld [vmem:[#allocation8 + $0x198] sm:$0xff] }
 0x2f5   :  { %7330 = vmatmul.mubr.bf16.gmra.mxu1 %v14581_v35  ;;  %7454 = vmatprep.mubr.bf16.mxu0 %v14504_v24  ;;  %v5373_v4 = vsel %vm5347_vm2, %v5318_v60, %v5321_v54  ;;  %v5323_v34 = vrot.slane %v5015_v17, 3  ;;  %v11767_v29 = vpop.f32.mrf.mxu0  ;;  %v12948_v24 = vld [vmem:[#allocation5 + $0xb40] ss:$12 sps:$4 sm:$0xff]  }
 0x2f6   :  { %5524 = vst [vmem:[#allocation8 + $0xa0] sm:$0xff] %v5446_v16  ;;  %7339 = vmatprep.mubr.bf16.mxu1 %v14585_v30  ;;  %12015 = vmatpush3.bf16.msra.mxu0 %v12962_v58  ;;  %5549 = vst [vmem:[#allocation8 + $0x168] sm:$0xff] %v5471_v38  ;;  %v5472_v63 = vadd.f32 %v5373_v4, %v5237_v6  ;;  %v5398_v44 = vsel %vm5347_vm2, %v5295_v11, %v5298_v22  ;;  %v5017_v33 = vpop.f32.mrf.mxu1  ;;  %v5240_v60 = vld [vmem:[#allocation8 + $0x188] sm:$0xff]  ;;  %v5243_v16 = vld [vmem:[#allocation8 + $0x1a0] sm:$0xff] }
 0x2f7   :  { %v11768_v10 = vadd.f32 %v11767_v29, %v11766_v61  ;;  %8423 = vmatpush2.bf16.msra.mxu1 %v12941_v51  ;;  %12016 = vmatprep.subr.bf16.mxu0 %v12972_v21  ;;  %v5449_v1 = vadd.f32 %v5398_v44, %v5214_v13  ;;  %v5369_v49 = vsel %vm5347_vm2, %v5320_v39, %v5323_v34  ;;  %v5324_v25 = vrot.slane %v5017_v33, 3  ;;  %v11769_v45 = vpop.f32.mrf.mxu0  ;;  %v14605_v11 = vld [vmem:[#allocation2 + $0x94] ss:$8 sps:$4 sm:$0xff]   ;;  %v5245_v6 = vld [vmem:[#allocation8 + $0x1b0] sm:$0xff]  ;;  %v14621_v13 = vld [vmem:[#allocation2 + $0x90] ss:$8 sps:$4 sm:$0xff]  }
 0x2f8   :  { %8424 = vmatprep.subr.bf16.mxu1 %v12950_v59  ;;  %5550 = vst [vmem:[#allocation8 + $0x170] sm:$0xff] %v5472_v63  ;;  %v5474_v12 = vadd.f32 %v5369_v49, %v5239_v41  ;;  %v5019_v18 = vpop.f32.mrf.mxu1  ;;  %v5220_v61 = vld [vmem:[#allocation8 + $0xe8] sm:$0xff]  ;;  %v5246_v44 = vld [vmem:[#allocation8 + $0x1b8] sm:$0xff]  ;;  %v5223_v41 = vld [vmem:[#allocation8 + $0x100] sm:$0xff] }
 0x2f9   :  { %v5301_v62 = vrot.slane %v11768_v10, 3  ;;  %5527 = vst [vmem:[#allocation8 + $0xb8] sm:$0xff] %v5449_v1  ;;  %v5370_v56 = vsel %vm5347_vm2, %v5321_v54, %v5324_v25  ;;  %v5326_v7 = vrot.slane %v5019_v18, 3  ;;  %v11770_v8 = vpop.f32.mrf.mxu0 }
 0x2fa   :  { %12017 = vmatpush3.bf16.msra.mxu0 %v12973_v26  ;;  %5552 = vst [vmem:[#allocation8 + $0x180] sm:$0xff] %v5474_v12  ;;  %v5475_v15 = vadd.f32 %v5370_v56, %v5240_v60  ;;  %v5021_v39 = vpop.f32.mrf.mxu1  ;;  %v11771_v42 = vadd.f32 %v11770_v8, %v11769_v45  ;;  %v5248_v12 = vld [vmem:[#allocation8 + $0x1c8] sm:$0xff] }
 0x2fb   :  { %v5395_v57 = vsel %vm5347_vm2, %v5298_v22, %v5301_v62  ;;  %8425 = vmatpush2.bf16.msra.mxu1 %v12948_v24  ;;  %12096 = vmatprep.subr.bf16.mxu0 %v12986_v48  ;;  %v5366_v28 = vsel %vm5347_vm2, %v5323_v34, %v5326_v7  ;;  %v5327_v0 = vrot.slane %v5021_v39, 3  ;;  %v11772_v19 = vpop.f32.mrf.mxu0  ;;  %v14625_v48 = vld [vmem:[#allocation2 + $0xa4] ss:$8 sps:$4 sm:$0xff]  }
 0x2fc   :  { %v5452_v58 = vadd.f32 %v5395_v57, %v5217_v27  ;;  %7455 = vmatmul.mubr.bf16.gmra.mxu0 %v14521_v32  ;;  %9562 = vmatprep.subr.bf16.mxu1 %v12957_v31  ;;  %5553 = vst [vmem:[#allocation8 + $0x188] sm:$0xff] %v5475_v15  ;;  %v5477_v36 = vadd.f32 %v5366_v28, %v5242_v5  ;;  %v5304_v51 = vrot.slane %v11771_v42, 3  ;;  %v5025_v21 = vpop.f32.mrf.mxu1  ;;  %v5249_v15 = vld [vmem:[#allocation8 + $0x1d0] sm:$0xff] }
 0x2fd   :  { %7340 = vmatmul.mubr.bf16.gmra.mxu1 %v14601_v20  ;;  %7462 = vmatprep.mubr.bf16.mxu0 %v14525_v3  ;;  %v5367_v47 = vsel %vm5347_vm2, %v5324_v25, %v5327_v0  ;;  %v5329_v46 = vrot.slane %v5025_v21, 3  ;;  %v11773_v54 = vpop.f32.mrf.mxu0 }
 0x2fe   :  { %5530 = vst [vmem:[#allocation8 + $0xd0] sm:$0xff] %v5452_v58  ;;  %7349 = vmatprep.mubr.bf16.mxu1 %v14605_v11  ;;  %5555 = vst [vmem:[#allocation8 + $0x198] sm:$0xff] %v5477_v36  ;;  %v5478_v32 = vadd.f32 %v5367_v47, %v5243_v16  ;;  %v5392_v59 = vsel %vm5347_vm2, %v5301_v62, %v5304_v51  ;;  %v5027_v38 = vpop.f32.mrf.mxu1  ;;  %v11774_v22 = vadd.f32 %v11773_v54, %v11772_v19  ;;  %v5251_v19 = vld [vmem:[#allocation8 + $0x1e0] sm:$0xff]  ;;  %v5252_v54 = vld [vmem:[#allocation8 + $0x1e8] sm:$0xff] }
 0x2ff   :  { %v5455_v17 = vadd.f32 %v5392_v59, %v5220_v61  ;;  %v5363_v3 = vsel %vm5347_vm2, %v5326_v7, %v5329_v46  ;;  %v5330_v4 = vrot.slane %v5027_v38, 3  ;;  %v11775_v34 = vpop.f32.mrf.mxu0  ;;  %v14645_v38 = vld [vmem:[#allocation2 + $0xb4] ss:$8 sps:$4 sm:$0xff]  }
 0x300   :  { %5556 = vst [vmem:[#allocation8 + $0x1a0] sm:$0xff] %v5478_v32  ;;  %v5480_v29 = vadd.f32 %v5363_v3, %v5245_v6  ;;  %v5307_v26 = vrot.slane %v11774_v22, 3  ;;  %v5029_v63 = vpop.f32.mrf.mxu1 }
 0x301   :  { %5533 = vst [vmem:[#allocation8 + $0xe8] sm:$0xff] %v5455_v17  ;;  %v5364_v33 = vsel %vm5347_vm2, %v5327_v0, %v5330_v4  ;;  %v5332_v10 = vrot.slane %v5029_v63, 3  ;;  %v11776_v24 = vpop.f32.mrf.mxu0  ;;  %v5229_v17 = vld [vmem:[#allocation8 + $0x130] sm:$0xff] }
 0x302   :  { %5558 = vst [vmem:[#allocation8 + $0x1b0] sm:$0xff] %v5480_v29  ;;  %v5481_v1 = vadd.f32 %v5364_v33, %v5246_v44  ;;  %v5389_v49 = vsel %vm5347_vm2, %v5304_v51, %v5307_v26  ;;  %v5031_v25 = vpop.f32.mrf.mxu1  ;;  %v11777_v45 = vadd.f32 %v11776_v24, %v11775_v34  ;;  %v5254_v29 = vld [vmem:[#allocation8 + $0x1f8] sm:$0xff] }
 0x303   :  { %v5458_v31 = vadd.f32 %v5389_v49, %v5223_v41  ;;  %v5360_v62 = vsel %vm5347_vm2, %v5329_v46, %v5332_v10  ;;  %v5333_v18 = vrot.slane %v5031_v25, 3  ;;  %v11778_v60 = vpop.f32.mrf.mxu0  ;;  %v14641_v46 = vld [vmem:[#allocation2 + $0xa0] ss:$8 sps:$4 sm:$0xff]  }
 0x304   :  { %7463 = vmatmul.mubr.bf16.gmra.mxu0 %v14541_v52  ;;  %5559 = vst [vmem:[#allocation8 + $0x1b8] sm:$0xff] %v5481_v1  ;;  %v5483_v56 = vadd.f32 %v5360_v62, %v5248_v12  ;;  %v5310_v7 = vrot.slane %v11777_v45, 3  ;;  %v5035_v8 = vpop.f32.mrf.mxu1  ;;  %v5226_v52 = vld [vmem:[#allocation8 + $0x118] sm:$0xff]  ;;  %v5255_v1 = vld [vmem:[#allocation8 + $0x200] sm:$0xff] }
 0x305   :  { %7350 = vmatmul.mubr.bf16.gmra.mxu1 %v14621_v13  ;;  %7470 = vmatprep.mubr.bf16.mxu0 %v14545_v9  ;;  %5536 = vst [vmem:[#allocation8 + $0x100] sm:$0xff] %v5458_v31  ;;  %v5361_v27 = vsel %vm5347_vm2, %v5330_v4, %v5333_v18  ;;  %v5335_v57 = vrot.slane %v5035_v8, 3  ;;  %v11779_v39 = vpop.f32.mrf.mxu0 }
 0x306   :  { %7359 = vmatprep.mubr.bf16.mxu1 %v14625_v48  ;;  %5561 = vst [vmem:[#allocation8 + $0x1c8] sm:$0xff] %v5483_v56  ;;  %v5484_v42 = vadd.f32 %v5361_v27, %v5249_v15  ;;  %v5386_v58 = vsel %vm5347_vm2, %v5307_v26, %v5310_v7  ;;  %v5037_v5 = vpop.f32.mrf.mxu1  ;;  %v11780_v28 = vadd.f32 %v11779_v39, %v11778_v60  ;;  %v5257_v60 = vld [vmem:[#allocation8 + $0x210] sm:$0xff]  ;;  %v5258_v39 = vld [vmem:[#allocation8 + $0x218] sm:$0xff] }
 0x307   :  { %v5461_v0 = vadd.f32 %v5386_v58, %v5226_v52  ;;  %v5357_v9 = vsel %vm5347_vm2, %v5332_v10, %v5335_v57  ;;  %v5336_v36 = vrot.slane %v5037_v5, 3  ;;  %v11781_v51 = vpop.f32.mrf.mxu0  ;;  %v14665_v5 = vld [vmem:[#allocation2 + $0xc4] ss:$8 sps:$4 sm:$0xff]  }
 0x308   :  { %5562 = vst [vmem:[#allocation8 + $0x1d0] sm:$0xff] %v5484_v42  ;;  %v5486_v21 = vadd.f32 %v5357_v9, %v5251_v19  ;;  %v5313_v16 = vrot.slane %v11780_v28, 3  ;;  %v5039_v47 = vpop.f32.mrf.mxu1 }
 0x309   :  { %5539 = vst [vmem:[#allocation8 + $0x118] sm:$0xff] %v5461_v0  ;;  %v5358_v32 = vsel %vm5347_vm2, %v5333_v18, %v5336_v36  ;;  %v5338_v61 = vrot.slane %v5039_v47, 3  ;;  %v11782_v59 = vpop.f32.mrf.mxu0  ;;  %v5235_v0 = vld [vmem:[#allocation8 + $0x160] sm:$0xff] }
 0x30a   :  { %5564 = vst [vmem:[#allocation8 + $0x1e0] sm:$0xff] %v5486_v21  ;;  %v5487_v22 = vadd.f32 %v5358_v32, %v5252_v54  ;;  %v5383_v6 = vsel %vm5347_vm2, %v5310_v7, %v5313_v16  ;;  %v5041_v3 = vpop.f32.mrf.mxu1  ;;  %v11783_v4 = vadd.f32 %v11782_v59, %v11781_v51  ;;  %v5260_v21 = vld [vmem:[#allocation8 + $0x228] sm:$0xff] }
 0x30b   :  { %v5464_v34 = vadd.f32 %v5383_v6, %v5229_v17  ;;  %v5354_v26 = vsel %vm5347_vm2, %v5335_v57, %v5338_v61  ;;  %v5339_v63 = vrot.slane %v5041_v3, 3  ;;  %v11784_v44 = vpop.f32.mrf.mxu0  ;;  %v14661_v57 = vld [vmem:[#allocation2 + $0xb0] ss:$8 sps:$4 sm:$0xff]   ;;  %v5261_v3 = vld [vmem:[#allocation8 + $0x230] sm:$0xff] }
 0x30c   :  { %7471 = vmatmul.mubr.bf16.gmra.mxu0 %v14561_v50  ;;  %5565 = vst [vmem:[#allocation8 + $0x1e8] sm:$0xff] %v5487_v22  ;;  %v5489_v33 = vadd.f32 %v5354_v26, %v5254_v29  ;;  %v5316_v10 = vrot.slane %v11783_v4, 3  ;;  %v5045_v24 = vpop.f32.mrf.mxu1  ;;  %v5232_v50 = vld [vmem:[#allocation8 + $0x148] sm:$0xff]  ;;  %v5238_v26 = vld [vmem:[#allocation8 + $0x178] sm:$0xff] }
 0x30d   :  { %7360 = vmatmul.mubr.bf16.gmra.mxu1 %v14641_v46  ;;  %7478 = vmatprep.mubr.bf16.mxu0 %v14565_v2  ;;  %5542 = vst [vmem:[#allocation8 + $0x130] sm:$0xff] %v5464_v34  ;;  %v5355_v41 = vsel %vm5347_vm2, %v5336_v36, %v5339_v63  ;;  %v5341_v49 = vrot.slane %v5045_v24, 3  ;;  %v11785_v25 = vpop.f32.mrf.mxu0  ;;  %v14692_v24 = vld [vmem:[#allocation2 + $0xc0] ss:$8 sps:$4 sm:$0xff]  }
 0x30e   :  { %7369 = vmatprep.mubr.bf16.mxu1 %v14645_v38  ;;  %5567 = vst [vmem:[#allocation8 + $0x1f8] sm:$0xff] %v5489_v33  ;;  %v5490_v45 = vadd.f32 %v5355_v41, %v5255_v1  ;;  %v5380_v31 = vsel %vm5347_vm2, %v5313_v16, %v5316_v10  ;;  %v5047_v12 = vpop.f32.mrf.mxu1  ;;  %v11786_v62 = vadd.f32 %v11785_v25, %v11784_v44  ;;  %v5263_v16 = vld [vmem:[#allocation8 + $0x240] sm:$0xff]  ;;  %v14695_v25 = vld [vmem:[#allocation2 + $0x4] ss:$8 sps:$4 sm:$0xff]  }
 0x30f   :  { %v5467_v18 = vadd.f32 %v5380_v31, %v5232_v50  ;;  %v5351_v2 = vsel %vm5347_vm2, %v5338_v61, %v5341_v49  ;;  %v5342_v56 = vrot.slane %v5047_v12, 3  ;;  %v11787_v7 = vpop.f32.mrf.mxu0 }
 0x310   :  { %5568 = vst [vmem:[#allocation8 + $0x200] sm:$0xff] %v5490_v45  ;;  %v5492_v8 = vadd.f32 %v5351_v2, %v5257_v60  ;;  %v5319_v15 = vrot.slane %v11786_v62, 3  ;;  %v5049_v27 = vpop.f32.mrf.mxu1  ;;  %v5241_v45 = vld [vmem:[#allocation8 + $0x190] sm:$0xff]  ;;  %v6434_v60 = vld [vmem:[#allocation8 + $0x258] sm:$0xff] }
 0x311   :  { %5545 = vst [vmem:[#allocation8 + $0x148] sm:$0xff] %v5467_v18  ;;  %v5352_v42 = vsel %vm5347_vm2, %v5339_v63, %v5342_v56  ;;  %v5344_v52 = vrot.slane %v5049_v27, 3  ;;  %v11788_v58 = vpop.f32.mrf.mxu0 }
 0x312   :  { %5570 = vst [vmem:[#allocation8 + $0x210] sm:$0xff] %v5492_v8  ;;  %v5493_v28 = vadd.f32 %v5352_v42, %v5258_v39  ;;  %v5377_v19 = vsel %vm5347_vm2, %v5316_v10, %v5319_v15  ;;  %v5051_v9 = vpop.f32.mrf.mxu1  ;;  %v11789_v36 = vadd.f32 %v11788_v58, %v11787_v7  ;;  %v6435_v39 = vld [vmem:[#allocation8 + $0x260] sm:$0xff] }
 0x313   :  { %v5470_v51 = vadd.f32 %v5377_v19, %v5235_v0  ;;  %v5348_v47 = vsel %vm5347_vm2, %v5341_v49, %v5344_v52  ;;  %v5423_v54 = vsel %vm5347_vm2, %v5344_v52, %v5269_v37  ;;  %v5345_v32 = vrot.slane %v5051_v9, 3  ;;  %v11790_v61 = vpop.f32.mrf.mxu0 }
 0x314   :  { %7479 = vmatmul.mubr.bf16.gmra.mxu0 %v14581_v35  ;;  %5571 = vst [vmem:[#allocation8 + $0x218] sm:$0xff] %v5493_v28  ;;  %v5495_v59 = vadd.f32 %v5348_v47, %v5260_v21  ;;  %v5498_v22 = vadd.f32 %v5423_v54, %v5263_v16  ;;  %v5322_v17 = vrot.slane %v11789_v36, 3  ;;  %v14676_v6 = vpop.f32.mrf.mxu1  ;;  %v6359_v36 = vld [vmem:[#allocation8] sm:$0xff] }
 0x315   :  { %7370 = vmatmul.mubr.bf16.gmra.mxu1 %v14661_v57  ;;  %7486 = vmatprep.mubr.bf16.mxu0 %v14585_v30  ;;  %5548 = vst [vmem:[#allocation8 + $0x160] sm:$0xff] %v5470_v51  ;;  %v5349_v37 = vsel %vm5347_vm2, %v5342_v56, %v5345_v32  ;;  %v5424_v35 = vsel %vm5347_vm2, %v5345_v32, %v5270_v55  ;;  %v11791_v4 = vpop.f32.mrf.mxu0  ;;  %v6437_v1 = vrot.slane %v14676_v6, 4 }
 0x316   :  { %7379 = vmatprep.mubr.bf16.mxu1 %v14665_v5  ;;  %5573 = vst [vmem:[#allocation8 + $0x228] sm:$0xff] %v5495_v59  ;;  %5576 = vst [vmem:[#allocation8 + $0x240] sm:$0xff] %v5498_v22  ;;  %v5496_v34 = vadd.f32 %v5349_v37, %v5261_v3  ;;  %v5499_v29 = vadd.f32 %v5424_v35, %v5264_v43  ;;  %v5374_v30 = vsel %vm5347_vm2, %v5319_v15, %v5322_v17  ;;  %v14689_v44 = vpop.f32.mrf.mxu1  ;;  %v6360_v59 = vld [vmem:[#allocation8 + $0x8] sm:$0xff]  ;;  %v12955_v43 = vld [vmem:[#allocation5 + $0xca8] ss:$12 sps:$4 sm:$0xff]  }
 0x317   :  { %v11792_v63 = vadd.f32 %v11791_v4, %v11790_v61  ;;  %v5473_v33 = vadd.f32 %v5374_v30, %v5238_v26  ;;  %v11793_v10 = vpop.f32.mrf.mxu0  ;;  %v6438_v18 = vrot.slane %v14689_v44, 4  ;;  %v14716_v61 = vld [vmem:[#allocation2] ss:$8 sps:$4 sm:$0xff]   ;;  %v14720_v37 = vld [vmem:[#allocation2 + $0x14] ss:$8 sps:$4 sm:$0xff]  }
 0x318   :  { %5574 = vst [vmem:[#allocation8 + $0x230] sm:$0xff] %v5496_v34  ;;  %5577 = vst [vmem:[#allocation8 + $0x248] sm:$0xff] %v5499_v29  ;;  %v6097_v55 = vpop.f32.mrf.mxu1  ;;  %v5247_v35 = vld [vmem:[#allocation8 + $0x1c0] sm:$0xff]  ;;  %v12965_v30 = vld [vmem:[#allocation5 + $0xc94] ss:$12 sps:$4 sm:$0xff]  }
 0x319   :  { %v5325_v53 = vrot.slane %v11792_v63, 3  ;;  %5551 = vst [vmem:[#allocation8 + $0x178] sm:$0xff] %v5473_v33  ;;  %v6440_v41 = vrot.slane %v6097_v55, 4  ;;  %v11794_v49 = vpop.f32.mrf.mxu0  ;;  %v6362_v33 = vld [vmem:[#allocation8 + $0x18] sm:$0xff] }
 0x31a   :  { %v11795_v31 = vadd.f32 %v11794_v49, %v11793_v10  ;;  %v6099_v12 = vpop.f32.mrf.mxu1 }
 0x31b   :  { %v5371_v50 = vsel %vm5347_vm2, %v5322_v17, %v5325_v53  ;;  %v6588_v2 = vsel %vm6515_vm3, %v6437_v1, %v6440_v41  ;;  %v6441_v56 = vrot.slane %v6099_v12, 4  ;;  %v11796_v7 = vpop.f32.mrf.mxu0 }
 0x31c   :  { %v5476_v62 = vadd.f32 %v5371_v50, %v5241_v45  ;;  %7487 = vmatmul.mubr.bf16.gmra.mxu0 %v14601_v20  ;;  %v6669_v8 = vadd.f32 %v6588_v2, %v6434_v60  ;;  %v5328_v15 = vrot.slane %v11795_v31, 3  ;;  %v6103_v27 = vpop.f32.mrf.mxu1  ;;  %v5244_v20 = vld [vmem:[#allocation8 + $0x1a8] sm:$0xff]  ;;  %v6363_v50 = vld [vmem:[#allocation8 + $0x20] sm:$0xff] }
 0x31d   :  { %7380 = vmatmul.mubr.bf16.gmra.mxu1 %v14692_v24  ;;  %7494 = vmatprep.mubr.bf16.mxu0 %v14605_v11  ;;  %v6589_v42 = vsel %vm6515_vm3, %v6438_v18, %v6441_v56  ;;  %v6443_v52 = vrot.slane %v6103_v27, 4  ;;  %v11797_v58 = vpop.f32.mrf.mxu0  ;;  %v12963_v60 = vld [vmem:[#allocation5 + $0xc90] ss:$12 sps:$4 sm:$0xff]   ;;  %v6365_v27 = vld [vmem:[#allocation8 + $0x30] sm:$0xff] }
 0x31e   :  { %5554 = vst [vmem:[#allocation8 + $0x190] sm:$0xff] %v5476_v62  ;;  %8426 = vmatprep.mubr.bf16.mxu1 %v14695_v25  ;;  %6747 = vst [vmem:[#allocation8 + $0x258] sm:$0xff] %v6669_v8  ;;  %v5368_v28 = vsel %vm5347_vm2, %v5325_v53, %v5328_v15  ;;  %v6670_v0 = vadd.f32 %v6589_v42, %v6435_v39  ;;  %v11798_v19 = vadd.f32 %v11797_v58, %v11796_v7  ;;  %v6105_v9 = vpop.f32.mrf.mxu1 }
 0x31f   :  { %v5479_v11 = vadd.f32 %v5368_v28, %v5244_v20  ;;  %v6585_v51 = vsel %vm6515_vm3, %v6440_v41, %v6443_v52  ;;  %v6444_v21 = vrot.slane %v6105_v9, 4  ;;  %v11799_v16 = vpop.f32.mrf.mxu0 }
 0x320   :  { %6748 = vst [vmem:[#allocation8 + $0x260] sm:$0xff] %v6670_v0  ;;  %v6594_v47 = vadd.f32 %v6585_v51, %v6359_v36  ;;  %v5331_v54 = vrot.slane %v11798_v19, 3  ;;  %v6107_v32 = vpop.f32.mrf.mxu1  ;;  %v14736_v0 = vld [vmem:[#allocation2 + $0x10] ss:$8 sps:$4 sm:$0xff]   ;;  %v12966_v51 = vld [vmem:[#allocation5 + $0xc78] ss:$12 sps:$4 sm:$0xff]  }
 0x321   :  { %5557 = vst [vmem:[#allocation8 + $0x1a8] sm:$0xff] %v5479_v11  ;;  %v6586_v22 = vsel %vm6515_vm3, %v6441_v56, %v6444_v21  ;;  %v6446_v17 = vrot.slane %v6107_v32, 4  ;;  %v11800_v3 = vpop.f32.mrf.mxu0  ;;  %v6366_v19 = vld [vmem:[#allocation8 + $0x38] sm:$0xff] }
 0x322   :  { %6672 = vst [vmem:[#allocation8] sm:$0xff] %v6594_v47  ;;  %v5365_v4 = vsel %vm5347_vm2, %v5328_v15, %v5331_v54  ;;  %v6595_v34 = vadd.f32 %v6586_v22, %v6360_v59  ;;  %v11801_v29 = vadd.f32 %v11800_v3, %v11799_v16  ;;  %v6109_v26 = vpop.f32.mrf.mxu1  ;;  %v5253_v16 = vld [vmem:[#allocation8 + $0x1f0] sm:$0xff]  ;;  %v12976_v22 = vld [vmem:[#allocation5 + $0xc64] ss:$12 sps:$4 sm:$0xff]  }
 0x323   :  { %v5482_v63 = vadd.f32 %v5365_v4, %v5247_v35  ;;  %v6582_v10 = vsel %vm6515_vm3, %v6443_v52, %v6446_v17  ;;  %v6447_v53 = vrot.slane %v6109_v26, 4  ;;  %v11802_v55 = vpop.f32.mrf.mxu0  ;;  %v6368_v3 = vld [vmem:[#allocation8 + $0x48] sm:$0xff] }
 0x324   :  { %7495 = vmatmul.mubr.bf16.gmra.mxu0 %v14621_v13  ;;  %6673 = vst [vmem:[#allocation8 + $0x8] sm:$0xff] %v6595_v34  ;;  %v6597_v41 = vadd.f32 %v6582_v10, %v6362_v33  ;;  %v5334_v49 = vrot.slane %v11801_v29, 3  ;;  %v6113_v45 = vpop.f32.mrf.mxu1  ;;  %v5250_v13 = vld [vmem:[#allocation8 + $0x1d8] sm:$0xff] }
 0x325   :  { %8427 = vmatmul.mubr.bf16.vlgmr.msra.gmra.mxu1 %v14716_v61  ;;  %7502 = vmatprep.mubr.bf16.mxu0 %v14625_v48  ;;  %5560 = vst [vmem:[#allocation8 + $0x1c0] sm:$0xff] %v5482_v63  ;;  %v6583_v31 = vsel %vm6515_vm3, %v6444_v21, %v6447_v53  ;;  %v6449_v12 = vrot.slane %v6113_v45, 4  ;;  %v11803_v62 = vpop.f32.mrf.mxu0  ;;  %v12968_v48 = vld [vmem:[#allocation5 + $0xc7c] ss:$12 sps:$4 sm:$0xff]  }
 0x326   :  { %9563 = vmatpush1.bf16.msra.mxu1 %v12955_v43  ;;  %8436 = vmatprep.mubr.bf16.mxu1 %v14720_v37  ;;  %6675 = vst [vmem:[#allocation8 + $0x18] sm:$0xff] %v6597_v41  ;;  %v5362_v2 = vsel %vm5347_vm2, %v5331_v54, %v5334_v49  ;;  %v6598_v56 = vadd.f32 %v6583_v31, %v6363_v50  ;;  %v6115_v8 = vpop.f32.mrf.mxu1  ;;  %v14740_v21 = vld [vmem:[#allocation2 + $0x24] ss:$8 sps:$4 sm:$0xff]   ;;  %v6371_v31 = vld [vmem:[#allocation8 + $0x60] sm:$0xff] }
 0x327   :  { %v11804_v7 = vadd.f32 %v11803_v62, %v11802_v55  ;;  %9564 = vmatprep.subr.bf16.mxu1 %v12965_v30  ;;  %v5485_v15 = vadd.f32 %v5362_v2, %v5250_v13  ;;  %v6579_v39 = vsel %vm6515_vm3, %v6446_v17, %v6449_v12  ;;  %v6450_v42 = vrot.slane %v6115_v8, 4  ;;  %v11805_v52 = vpop.f32.mrf.mxu0  ;;  %v6369_v30 = vld [vmem:[#allocation8 + $0x50] sm:$0xff]  ;;  %v6372_v8 = vld [vmem:[#allocation8 + $0x68] sm:$0xff] }
 0x328   :  { %6676 = vst [vmem:[#allocation8 + $0x20] sm:$0xff] %v6598_v56  ;;  %v6600_v58 = vadd.f32 %v6579_v39, %v6365_v27  ;;  %v6117_v28 = vpop.f32.mrf.mxu1  ;;  %v14760_v39 = vld [vmem:[#allocation2 + $0x34] ss:$8 sps:$4 sm:$0xff]  }
 0x329   :  { %v5337_v20 = vrot.slane %v11804_v7, 3  ;;  %5563 = vst [vmem:[#allocation8 + $0x1d8] sm:$0xff] %v5485_v15  ;;  %v6580_v9 = vsel %vm6515_vm3, %v6447_v53, %v6450_v42  ;;  %v6452_v11 = vrot.slane %v6117_v28, 4  ;;  %v11806_v36 = vpop.f32.mrf.mxu0  ;;  %v12974_v53 = vld [vmem:[#allocation5 + $0xc60] ss:$12 sps:$4 sm:$0xff]  }
 0x32a   :  { %9565 = vmatpush1.bf16.msra.mxu1 %v12963_v60  ;;  %6678 = vst [vmem:[#allocation8 + $0x30] sm:$0xff] %v6600_v58  ;;  %v6601_v54 = vadd.f32 %v6580_v9, %v6366_v19  ;;  %v11807_v32 = vadd.f32 %v11806_v36, %v11805_v52  ;;  %v6119_v59 = vpop.f32.mrf.mxu1  ;;  %v14756_v7 = vld [vmem:[#allocation2 + $0x20] ss:$8 sps:$4 sm:$0xff]   ;;  %v5259_v52 = vld [vmem:[#allocation8 + $0x220] sm:$0xff]  ;;  %v12989_v9 = vld [vmem:[#allocation5 + $0xc34] ss:$12 sps:$4 sm:$0xff]  }
 0x32b   :  { %v5359_v47 = vsel %vm5347_vm2, %v5334_v49, %v5337_v20  ;;  %9566 = vmatprep.subr.bf16.mxu1 %v12968_v48  ;;  %v6576_v43 = vsel %vm6515_vm3, %v6449_v12, %v6452_v11  ;;  %v6453_v35 = vrot.slane %v6119_v59, 4  ;;  %v11808_v4 = vpop.f32.mrf.mxu0  ;;  %v6374_v36 = vld [vmem:[#allocation8 + $0x78] sm:$0xff] }
 0x32c   :  { %v5488_v17 = vadd.f32 %v5359_v47, %v5253_v16  ;;  %7503 = vmatmul.mubr.bf16.gmra.mxu0 %v14641_v46  ;;  %6679 = vst [vmem:[#allocation8 + $0x38] sm:$0xff] %v6601_v54  ;;  %v6603_v34 = vadd.f32 %v6576_v43, %v6368_v3  ;;  %v5340_v29 = vrot.slane %v11807_v32, 3  ;;  %v6123_v26 = vpop.f32.mrf.mxu1  ;;  %v5256_v46 = vld [vmem:[#allocation8 + $0x208] sm:$0xff] }
 0x32d   :  { %8437 = vmatmul.mubr.bf16.gmra.mxu1 %v14736_v0  ;;  %7510 = vmatprep.mubr.bf16.mxu0 %v14645_v38  ;;  %v6577_v63 = vsel %vm6515_vm3, %v6450_v42, %v6453_v35  ;;  %v6455_v33 = vrot.slane %v6123_v26, 4  ;;  %v11809_v10 = vpop.f32.mrf.mxu0  ;;  %v12982_v38 = vld [vmem:[#allocation5 + $0xc4c] ss:$12 sps:$4 sm:$0xff]   ;;  %v12980_v42 = vld [vmem:[#allocation5 + $0xc48] ss:$12 sps:$4 sm:$0xff]  }
 0x32e   :  { %5566 = vst [vmem:[#allocation8 + $0x1f0] sm:$0xff] %v5488_v17  ;;  %9567 = vmatpush1.bf16.msra.mxu1 %v12966_v51  ;;  %8446 = vmatprep.mubr.bf16.mxu1 %v14740_v21  ;;  %6681 = vst [vmem:[#allocation8 + $0x48] sm:$0xff] %v6603_v34  ;;  %v5356_v55 = vsel %vm5347_vm2, %v5337_v20, %v5340_v29  ;;  %v6604_v41 = vadd.f32 %v6577_v63, %v6369_v30  ;;  %v6125_v45 = vpop.f32.mrf.mxu1  ;;  %v12996_v30 = vld [vmem:[#allocation5 + $0xc1c] ss:$12 sps:$4 sm:$0xff]  }
 0x32f   :  { %v11810_v49 = vadd.f32 %v11809_v10, %v11808_v4  ;;  %9568 = vmatprep.subr.bf16.mxu1 %v12976_v22  ;;  %v5491_v50 = vadd.f32 %v5356_v55, %v5256_v46  ;;  %v6573_v12 = vsel %vm6515_vm3, %v6452_v11, %v6455_v33  ;;  %v6456_v62 = vrot.slane %v6125_v45, 4  ;;  %v11811_v60 = vpop.f32.mrf.mxu0  ;;  %v6375_v22 = vld [vmem:[#allocation8 + $0x80] sm:$0xff]  ;;  %v5265_v4 = vld [vmem:[#allocation8 + $0x250] sm:$0xff] }
 0x330   :  { %6682 = vst [vmem:[#allocation8 + $0x50] sm:$0xff] %v6604_v41  ;;  %v6606_v13 = vadd.f32 %v6573_v12, %v6371_v31  ;;  %v6127_v56 = vpop.f32.mrf.mxu1  ;;  %v6377_v10 = vld [vmem:[#allocation8 + $0x90] sm:$0xff]  ;;  %v14782_v45 = vld [vmem:[#allocation2 + $0x30] ss:$8 sps:$4 sm:$0xff]  }
 0x331   :  { %v5343_v2 = vrot.slane %v11810_v49, 3  ;;  %5569 = vst [vmem:[#allocation8 + $0x208] sm:$0xff] %v5491_v50  ;;  %v6574_v48 = vsel %vm6515_vm3, %v6453_v35, %v6456_v62  ;;  %v6458_v15 = vrot.slane %v6127_v56, 4  ;;  %v11812_v27 = vpop.f32.mrf.mxu0  ;;  %v12987_v35 = vld [vmem:[#allocation5 + $0xc30] ss:$12 sps:$4 sm:$0xff]  }
 0x332   :  { %9569 = vmatpush1.bf16.msra.mxu1 %v12974_v53  ;;  %6684 = vst [vmem:[#allocation8 + $0x60] sm:$0xff] %v6606_v13  ;;  %v6607_v20 = vadd.f32 %v6574_v48, %v6372_v8  ;;  %v11813_v28 = vadd.f32 %v11812_v27, %v11811_v60  ;;  %v6129_v19 = vpop.f32.mrf.mxu1  ;;  %v14786_v12 = vld [vmem:[#allocation2 + $0x44] ss:$8 sps:$4 sm:$0xff]   ;;  %v13000_v56 = vld [vmem:[#allocation5 + $0xc04] ss:$12 sps:$4 sm:$0xff]  }
 0x333   :  { %v5353_v58 = vsel %vm5347_vm2, %v5340_v29, %v5343_v2  ;;  %9570 = vmatprep.subr.bf16.mxu1 %v12982_v38  ;;  %v6570_v51 = vsel %vm6515_vm3, %v6455_v33, %v6458_v15  ;;  %v6459_v16 = vrot.slane %v6129_v19, 4  ;;  %v11830_v47 = vpop.f32.mrf.mxu0  ;;  %v6380_v8 = vld [vmem:[#allocation8 + $0xa8] sm:$0xff] }
 0x334   :  { %v5494_v11 = vadd.f32 %v5353_v58, %v5259_v52  ;;  %7511 = vmatmul.mubr.bf16.gmra.mxu0 %v14661_v57  ;;  %6685 = vst [vmem:[#allocation8 + $0x68] sm:$0xff] %v6607_v20  ;;  %v6609_v54 = vadd.f32 %v6570_v51, %v6374_v36  ;;  %v5346_v32 = vrot.slane %v11813_v28, 3  ;;  %v6133_v59 = vpop.f32.mrf.mxu1  ;;  %v5262_v57 = vld [vmem:[#allocation8 + $0x238] sm:$0xff]  ;;  %v6381_v28 = vld [vmem:[#allocation8 + $0xb0] sm:$0xff]  ;;  %v6436_v51 = vld [vmem:[#allocation8 + $0x268] sm:$0xff] }
 0x335   :  { %8447 = vmatmul.mubr.bf16.gmra.mxu1 %v14756_v7  ;;  %7518 = vmatprep.mubr.bf16.mxu0 %v14665_v5  ;;  %v6571_v17 = vsel %vm6515_vm3, %v6456_v62, %v6459_v16  ;;  %v6461_v3 = vrot.slane %v6133_v59, 4  ;;  %v11831_v43 = vpop.f32.mrf.mxu0  ;;  %v12994_v62 = vld [vmem:[#allocation5 + $0xc18] ss:$12 sps:$4 sm:$0xff]  }
 0x336   :  { %5572 = vst [vmem:[#allocation8 + $0x220] sm:$0xff] %v5494_v11  ;;  %8456 = vmatprep.mubr.bf16.mxu1 %v14760_v39  ;;  %9571 = vmatpush1.bf16.msra.mxu1 %v12980_v42  ;;  %6687 = vst [vmem:[#allocation8 + $0x78] sm:$0xff] %v6609_v54  ;;  %v5350_v34 = vsel %vm5347_vm2, %v5343_v2, %v5346_v32  ;;  %v5425_v5 = vsel %vm5347_vm2, %v5346_v32, %v5271_v23  ;;  %v6135_v26 = vpop.f32.mrf.mxu1  ;;  %v6378_v23 = vld [vmem:[#allocation8 + $0x98] sm:$0xff]  ;;  %v13007_v54 = vld [vmem:[#allocation5 + $0xd6c] ss:$12 sps:$4 sm:$0xff]  }
 0x337   :  { %v6610_v29 = vadd.f32 %v6571_v17, %v6375_v22  ;;  %9572 = vmatprep.subr.bf16.mxu1 %v12989_v9  ;;  %v5497_v63 = vadd.f32 %v5350_v34, %v5262_v57  ;;  %v5500_v33 = vadd.f32 %v5425_v5, %v5265_v4  ;;  %v6567_v53 = vsel %vm6515_vm3, %v6458_v15, %v6461_v3  ;;  %v11833_v55 = vpop.f32.mrf.mxu0  ;;  %v6383_v59 = vld [vmem:[#allocation8 + $0xc0] sm:$0xff]  ;;  %v14803_v4 = vld [vmem:[#allocation2 + $0x40] ss:$8 sps:$4 sm:$0xff]  }
 0x338   :  { %v6462_v46 = vrot.slane %v6135_v26, 4  ;;  %v6612_v41 = vadd.f32 %v6567_v53, %v6377_v10  ;;  %v14780_v49 = vadd.f32 %v11831_v43, %v11830_v47  ;;  %v6137_v40 = vpop.f32.mrf.mxu1  ;;  %v14805_v34 = vld [vmem:[#allocation5 + $0xcb0] ss:$12 sps:$4 sm:$0xff]   ;;  %v6361_v10 = vld [vmem:[#allocation8 + $0x10] sm:$0xff] }
 0x339   :  { %6688 = vst [vmem:[#allocation8 + $0x80] sm:$0xff] %v6610_v29  ;;  %5575 = vst [vmem:[#allocation8 + $0x238] sm:$0xff] %v5497_v63  ;;  %v6464_v50 = vrot.slane %v6137_v40, 4  ;;  %v11834_v31 = vpop.f32.mrf.mxu0  ;;  %v6384_v5 = vld [vmem:[#allocation8 + $0xc8] sm:$0xff]  ;;  %v13005_v40 = vld [vmem:[#allocation5 + $0xd68] ss:$12 sps:$4 sm:$0xff]  }
 0x33a   :  { %5578 = vst [vmem:[#allocation8 + $0x250] sm:$0xff] %v5500_v33  ;;  %v6568_v38 = vsel %vm6515_vm3, %v6459_v16, %v6462_v46  ;;  %9573 = vmatpush1.bf16.msra.mxu1 %v12987_v35  ;;  %6690 = vst [vmem:[#allocation8 + $0x90] sm:$0xff] %v6612_v41  ;;  %v6139_v13 = vpop.f32.mrf.mxu1  ;;  %v11835_v2 = vadd.f32 %v11834_v31, %v11833_v55  ;;  %v6439_v42 = vrot.slane %v14780_v49, 4  ;;  %v14809_v63 = vld [vmem:[#allocation2 + $0x54] ss:$8 sps:$4 sm:$0xff]  }
 0x33b   :  { %v6613_v60 = vadd.f32 %v6568_v38, %v6378_v23  ;;  %9574 = vmatprep.subr.bf16.mxu1 %v12996_v30  ;;  %v6564_v48 = vsel %vm6515_vm3, %v6461_v3, %v6464_v50  ;;  %v6465_v15 = vrot.slane %v6139_v13, 4  ;;  %v11836_v27 = vpop.f32.mrf.mxu0  ;;  %v14813_v41 = vld [vmem:[#allocation5 + $0xd58] ss:$12 sps:$4 sm:$0xff]   ;;  %v6386_v38 = vld [vmem:[#allocation8 + $0xd8] sm:$0xff] }
 0x33c   :  { %7519 = vmatmul.mubr.bf16.gmra.mxu0 %v14692_v24  ;;  %v6615_v52 = vadd.f32 %v6564_v48, %v6380_v8  ;;  %v6442_v58 = vrot.slane %v11835_v2, 4  ;;  %v6143_v20 = vpop.f32.mrf.mxu1  ;;  %v12998_v24 = vld [vmem:[#allocation5 + $0xc00] ss:$12 sps:$4 sm:$0xff]   ;;  %v14820_v8 = vld [vmem:[#allocation5 + $0xc98] ss:$12 sps:$4 sm:$0xff]  }
 0x33d   :  { %6691 = vst [vmem:[#allocation8 + $0x98] sm:$0xff] %v6613_v60  ;;  %8457 = vmatmul.mubr.bf16.gmra.mxu1 %v14782_v45  ;;  %8589 = vmatprep.mubr.bf16.mxu0 %v14695_v25  ;;  %v6565_v19 = vsel %vm6515_vm3, %v6462_v46, %v6465_v15  ;;  %v6467_v9 = vrot.slane %v6143_v20, 4  ;;  %v11837_v11 = vpop.f32.mrf.mxu0  ;;  %v13014_v60 = vld [vmem:[#allocation5 + $0xd54] ss:$12 sps:$4 sm:$0xff]   ;;  %v6387_v48 = vld [vmem:[#allocation8 + $0xe0] sm:$0xff]  ;;  %v6364_v20 = vld [vmem:[#allocation8 + $0x28] sm:$0xff] }
 0x33e   :  { %8466 = vmatprep.mubr.bf16.mxu1 %v14786_v12  ;;  %9575 = vmatpush1.bf16.msra.mxu1 %v12994_v62  ;;  %6693 = vst [vmem:[#allocation8 + $0xa8] sm:$0xff] %v6615_v52  ;;  %v6616_v36 = vadd.f32 %v6565_v19, %v6381_v28  ;;  %v6590_v16 = vsel %vm6515_vm3, %v6439_v42, %v6442_v58  ;;  %v6145_v47 = vpop.f32.mrf.mxu1 }
 0x33f   :  { %v11838_v25 = vadd.f32 %v11837_v11, %v11836_v27  ;;  %9576 = vmatprep.subr.bf16.mxu1 %v13000_v56  ;;  %v6671_v32 = vadd.f32 %v6590_v16, %v6436_v51  ;;  %v6561_v22 = vsel %vm6515_vm3, %v6464_v50, %v6467_v9  ;;  %v6468_v17 = vrot.slane %v6145_v47, 4  ;;  %v11839_v3 = vpop.f32.mrf.mxu0  ;;  %v13012_v11 = vld [vmem:[#allocation5 + $0xd50] ss:$12 sps:$4 sm:$0xff]  }
 0x340   :  { %6694 = vst [vmem:[#allocation8 + $0xb0] sm:$0xff] %v6616_v36  ;;  %v6618_v43 = vadd.f32 %v6561_v22, %v6383_v59  ;;  %v6147_v57 = vpop.f32.mrf.mxu1  ;;  %v6389_v36 = vld [vmem:[#allocation8 + $0xf0] sm:$0xff]  ;;  %v13021_v47 = vld [vmem:[#allocation5 + $0xd3c] ss:$12 sps:$4 sm:$0xff]  }
 0x341   :  { %v6445_v35 = vrot.slane %v11838_v25, 4  ;;  %6749 = vst [vmem:[#allocation8 + $0x268] sm:$0xff] %v6671_v32  ;;  %v6562_v29 = vsel %vm6515_vm3, %v6465_v15, %v6468_v17  ;;  %v6470_v26 = vrot.slane %v6147_v57, 4  ;;  %v11840_v30 = vpop.f32.mrf.mxu0  ;;  %v14833_v59 = vld [vmem:[#allocation2 + $0x50] ss:$8 sps:$4 sm:$0xff]  }
 0x342   :  { %9577 = vmatpush1.bf16.msra.mxu1 %v12998_v24  ;;  %6696 = vst [vmem:[#allocation8 + $0xc0] sm:$0xff] %v6618_v43  ;;  %v6619_v33 = vadd.f32 %v6562_v29, %v6384_v5  ;;  %v6149_v46 = vpop.f32.mrf.mxu1  ;;  %v11841_v55 = vadd.f32 %v11840_v30, %v11839_v3  ;;  %v6390_v22 = vld [vmem:[#allocation8 + $0xf8] sm:$0xff]  ;;  %v6367_v29 = vld [vmem:[#allocation8 + $0x40] sm:$0xff] }
 0x343   :  { %v6587_v53 = vsel %vm6515_vm3, %v6442_v58, %v6445_v35  ;;  %9578 = vmatprep.subr.bf16.mxu1 %v13007_v54  ;;  %v6558_v50 = vsel %vm6515_vm3, %v6467_v9, %v6470_v26  ;;  %v6471_v31 = vrot.slane %v6149_v46, 4  ;;  %v11842_v62 = vpop.f32.mrf.mxu0  ;;  %v14841_v57 = vld [vmem:[#allocation5 + $0xc80] ss:$12 sps:$4 sm:$0xff]  }
 0x344   :  { %v6596_v23 = vadd.f32 %v6587_v53, %v6361_v10  ;;  %8590 = vmatmul.mubr.bf16.vlgmr.msra.gmra.mxu0 %v14716_v61  ;;  %6697 = vst [vmem:[#allocation8 + $0xc8] sm:$0xff] %v6619_v33  ;;  %v6621_v13 = vadd.f32 %v6558_v50, %v6386_v38  ;;  %v6448_v2 = vrot.slane %v11841_v55, 4  ;;  %v6153_v56 = vpop.f32.mrf.mxu1  ;;  %v14826_v61 = vld [vmem:[#allocation5 + $0xd40] ss:$12 sps:$4 sm:$0xff]   ;;  %v13019_v10 = vld [vmem:[#allocation5 + $0xd38] ss:$12 sps:$4 sm:$0xff]  }
 0x345   :  { %8467 = vmatmul.mubr.bf16.gmra.mxu1 %v14803_v4  ;;  %12097 = vmatpush3.bf16.msra.mxu0 %v14805_v34  ;;  %v6559_v15 = vsel %vm6515_vm3, %v6468_v17, %v6471_v31  ;;  %v6473_v27 = vrot.slane %v6153_v56, 4  ;;  %v11843_v52 = vpop.f32.mrf.mxu0  ;;  %v14845_v53 = vld [vmem:[#allocation5 + $0xd28] ss:$12 sps:$4 sm:$0xff]   ;;  %v6392_v55 = vld [vmem:[#allocation8 + $0x108] sm:$0xff] }
 0x346   :  { %6674 = vst [vmem:[#allocation8 + $0x10] sm:$0xff] %v6596_v23  ;;  %8476 = vmatprep.mubr.bf16.mxu1 %v14809_v63  ;;  %8597 = vmatprep.mubr.bf16.mxu0 %v14720_v37  ;;  %6699 = vst [vmem:[#allocation8 + $0xd8] sm:$0xff] %v6621_v13  ;;  %v6622_v58 = vadd.f32 %v6559_v15, %v6387_v48  ;;  %v6584_v28 = vsel %vm6515_vm3, %v6445_v35, %v6448_v2  ;;  %v6155_v19 = vpop.f32.mrf.mxu1  ;;  %v14838_v35 = vld [vmem:[#allocation2 + $0x64] ss:$8 sps:$4 sm:$0xff]   ;;  %v13028_v50 = vld [vmem:[#allocation5 + $0xd24] ss:$12 sps:$4 sm:$0xff]  }
 0x347   :  { %v11844_v9 = vadd.f32 %v11843_v52, %v11842_v62  ;;  %12098 = vmatprep.subr.bf16.mxu0 %v14813_v41  ;;  %9579 = vmatpush2.bf16.msra.mxu1 %v13005_v40  ;;  %v6599_v24 = vadd.f32 %v6584_v28, %v6364_v20  ;;  %v6555_v51 = vsel %vm6515_vm3, %v6470_v26, %v6473_v27  ;;  %v6474_v37 = vrot.slane %v6155_v19, 4  ;;  %v11845_v16 = vpop.f32.mrf.mxu0  ;;  %v6393_v13 = vld [vmem:[#allocation8 + $0x110] sm:$0xff]  ;;  %v13026_v20 = vld [vmem:[#allocation5 + $0xd20] ss:$12 sps:$4 sm:$0xff]   ;;  %v14861_v28 = vld [vmem:[#allocation5 + $0xd10] ss:$12 sps:$4 sm:$0xff]  }
 0x348   :  { %9580 = vmatprep.subr.bf16.mxu1 %v13014_v60  ;;  %6700 = vst [vmem:[#allocation8 + $0xe0] sm:$0xff] %v6622_v58  ;;  %v6624_v25 = vadd.f32 %v6555_v51, %v6389_v36  ;;  %v6157_v32 = vpop.f32.mrf.mxu1  ;;  %v13032_v51 = vld [vmem:[#allocation5 + $0xd0c] ss:$12 sps:$4 sm:$0xff]  }
 0x349   :  { %v6451_v54 = vrot.slane %v11844_v9, 4  ;;  %12099 = vmatpush3.bf16.msra.mxu0 %v14820_v8  ;;  %6677 = vst [vmem:[#allocation8 + $0x28] sm:$0xff] %v6599_v24  ;;  %v6556_v17 = vsel %vm6515_vm3, %v6471_v31, %v6474_v37  ;;  %v6476_v3 = vrot.slane %v6157_v32, 4  ;;  %v11846_v43 = vpop.f32.mrf.mxu0  ;;  %v6395_v9 = vld [vmem:[#allocation8 + $0x120] sm:$0xff] }
 0x34a   :  { %12100 = vmatprep.subr.bf16.mxu0 %v14826_v61  ;;  %6702 = vst [vmem:[#allocation8 + $0xf0] sm:$0xff] %v6624_v25  ;;  %v6625_v5 = vadd.f32 %v6556_v17, %v6390_v22  ;;  %v6159_v30 = vpop.f32.mrf.mxu1  ;;  %v11847_v33 = vadd.f32 %v11846_v43, %v11845_v16  ;;  %v14865_v25 = vld [vmem:[#allocation2 + $0x60] ss:$8 sps:$4 sm:$0xff]   ;;  %v14869_v43 = vld [vmem:[#allocation2 + $0x74] ss:$8 sps:$4 sm:$0xff]  }
 0x34b   :  { %v6581_v26 = vsel %vm6515_vm3, %v6448_v2, %v6451_v54  ;;  %9581 = vmatpush2.bf16.msra.mxu1 %v13012_v11  ;;  %v6552_v40 = vsel %vm6515_vm3, %v6473_v27, %v6476_v3  ;;  %v6477_v23 = vrot.slane %v6159_v30, 4  ;;  %v6370_v27 = vld [vmem:[#allocation8 + $0x58] sm:$0xff] }
 0x34c   :  { %v6602_v46 = vadd.f32 %v6581_v26, %v6367_v29  ;;  %v11848_v38 = vpop.f32.mrf.mxu0  ;;  %8598 = vmatmul.mubr.bf16.gmra.mxu0 %v14736_v0  ;;  %9582 = vmatprep.subr.bf16.mxu1 %v13021_v47  ;;  %6703 = vst [vmem:[#allocation8 + $0xf8] sm:$0xff] %v6625_v5  ;;  %v6627_v31 = vadd.f32 %v6552_v40, %v6392_v55  ;;  %v6454_v62 = vrot.slane %v11847_v33, 4  ;;  %v14856_v0 = vld [vmem:[#allocation5 + $0xc68] ss:$12 sps:$4 sm:$0xff]   ;;  %v6398_v40 = vld [vmem:[#allocation8 + $0x138] sm:$0xff] }
 0x34d   :  { %v6163_v60 = vpop.f32.mrf.mxu1  ;;  %8477 = vmatmul.mubr.bf16.gmra.mxu1 %v14833_v59  ;;  %8605 = vmatprep.mubr.bf16.mxu0 %v14740_v21  ;;  %v6553_v2 = vsel %vm6515_vm3, %v6474_v37, %v6477_v23  ;;  %v6373_v29 = vld [vmem:[#allocation8 + $0x70] sm:$0xff] }
 0x34e   :  { %6680 = vst [vmem:[#allocation8 + $0x40] sm:$0xff] %v6602_v46  ;;  %v6479_v56 = vrot.slane %v6163_v60, 4  ;;  %v11849_v48 = vpop.f32.mrf.mxu0  ;;  %8486 = vmatprep.mubr.bf16.mxu1 %v14838_v35  ;;  %12101 = vmatpush3.bf16.msra.mxu0 %v14841_v57  ;;  %6705 = vst [vmem:[#allocation8 + $0x108] sm:$0xff] %v6627_v31  ;;  %v6628_v15 = vadd.f32 %v6553_v2, %v6393_v13  ;;  %v6578_v52 = vsel %vm6515_vm3, %v6451_v54, %v6454_v62  ;;  %v6396_v54 = vld [vmem:[#allocation8 + $0x128] sm:$0xff]  ;;  %v14877_v46 = vld [vmem:[#allocation5 + $0xcf8] ss:$12 sps:$4 sm:$0xff]  }
 0x34f   :  { %v6165_v21 = vpop.f32.mrf.mxu1  ;;  %v11850_v58 = vadd.f32 %v11849_v48, %v11848_v38  ;;  %9583 = vmatpush2.bf16.msra.mxu1 %v13019_v10  ;;  %12102 = vmatprep.subr.bf16.mxu0 %v14845_v53  ;;  %v6605_v19 = vadd.f32 %v6578_v52, %v6370_v27  ;;  %v13030_v10 = vld [vmem:[#allocation5 + $0xd08] ss:$12 sps:$4 sm:$0xff]   ;;  %v6376_v52 = vld [vmem:[#allocation8 + $0x88] sm:$0xff] }
 0x350   :  { %v6549_v11 = vsel %vm6515_vm3, %v6476_v3, %v6479_v56  ;;  %v6480_v24 = vrot.slane %v6165_v21, 4  ;;  %v11851_v36 = vpop.f32.mrf.mxu0  ;;  %9584 = vmatprep.subr.bf16.mxu1 %v13028_v50  ;;  %6706 = vst [vmem:[#allocation8 + $0x110] sm:$0xff] %v6628_v15  ;;  %v14872_v3 = vld [vmem:[#allocation5 + $0xc50] ss:$12 sps:$4 sm:$0xff]   ;;  %v13039_v31 = vld [vmem:[#allocation5 + $0xcf4] ss:$12 sps:$4 sm:$0xff]  }
 0x351   :  { %v6630_v37 = vadd.f32 %v6549_v11, %v6395_v9  ;;  %v6457_v16 = vrot.slane %v11850_v58, 4  ;;  %v6167_v47 = vpop.f32.mrf.mxu1  ;;  %6683 = vst [vmem:[#allocation8 + $0x58] sm:$0xff] %v6605_v19  ;;  %v6399_v2 = vld [vmem:[#allocation8 + $0x140] sm:$0xff]  ;;  %v14893_v19 = vld [vmem:[#allocation5 + $0xce0] ss:$12 sps:$4 sm:$0xff]   ;;  %v6401_v11 = vld [vmem:[#allocation8 + $0x150] sm:$0xff] }
 0x352   :  { %v6550_v32 = vsel %vm6515_vm3, %v6477_v23, %v6480_v24  ;;  %v6482_v22 = vrot.slane %v6167_v47, 4  ;;  %v11852_v17 = vpop.f32.mrf.mxu0  ;;  %12103 = vmatpush3.bf16.msra.mxu0 %v14856_v0 }
 0x353   :  { %6708 = vst [vmem:[#allocation8 + $0x120] sm:$0xff] %v6630_v37  ;;  %v6631_v5 = vadd.f32 %v6550_v32, %v6396_v54  ;;  %v6575_v26 = vsel %vm6515_vm3, %v6454_v62, %v6457_v16  ;;  %v6169_v30 = vpop.f32.mrf.mxu1  ;;  %v11853_v33 = vadd.f32 %v11852_v17, %v11851_v36  ;;  %9585 = vmatpush2.bf16.msra.mxu1 %v13026_v20  ;;  %v13037_v20 = vld [vmem:[#allocation5 + $0xcf0] ss:$12 sps:$4 sm:$0xff]   ;;  %v14897_v32 = vld [vmem:[#allocation2 + $0x70] ss:$8 sps:$4 sm:$0xff]  }
 0x354   :  { %12104 = vmatprep.subr.bf16.mxu0 %v14861_v28  ;;  %v6608_v55 = vadd.f32 %v6575_v26, %v6373_v29  ;;  %v6546_v23 = vsel %vm6515_vm3, %v6479_v56, %v6482_v22  ;;  %v6483_v38 = vrot.slane %v6169_v30, 4  ;;  %v11854_v50 = vpop.f32.mrf.mxu0  ;;  %8606 = vmatmul.mubr.bf16.gmra.mxu0 %v14756_v7  ;;  %v14888_v7 = vld [vmem:[#allocation5 + $0xc38] ss:$12 sps:$4 sm:$0xff]   ;;  %v13046_v37 = vld [vmem:[#allocation5 + $0xcdc] ss:$12 sps:$4 sm:$0xff]  }
 0x355   :  { %9586 = vmatprep.subr.bf16.mxu1 %v13032_v51  ;;  %6709 = vst [vmem:[#allocation8 + $0x128] sm:$0xff] %v6631_v5  ;;  %v6633_v62 = vadd.f32 %v6546_v23, %v6398_v40  ;;  %v6460_v60 = vrot.slane %v11853_v33, 4  ;;  %v6173_v13 = vpop.f32.mrf.mxu1  ;;  %8487 = vmatmul.mubr.bf16.gmra.mxu1 %v14865_v25  ;;  %v6402_v17 = vld [vmem:[#allocation8 + $0x158] sm:$0xff] }
 0x356   :  { %8613 = vmatprep.mubr.bf16.mxu0 %v14760_v39  ;;  %6686 = vst [vmem:[#allocation8 + $0x70] sm:$0xff] %v6608_v55  ;;  %v6547_v48 = vsel %vm6515_vm3, %v6480_v24, %v6483_v38  ;;  %v6485_v56 = vrot.slane %v6173_v13, 4  ;;  %v11855_v15 = vpop.f32.mrf.mxu0  ;;  %8496 = vmatprep.mubr.bf16.mxu1 %v14869_v43  ;;  %v14901_v30 = vld [vmem:[#allocation2 + $0x84] ss:$8 sps:$4 sm:$0xff]  }
 0x357   :  { %12105 = vmatpush3.bf16.msra.mxu0 %v14872_v3  ;;  %6711 = vst [vmem:[#allocation8 + $0x138] sm:$0xff] %v6633_v62  ;;  %v6634_v27 = vadd.f32 %v6547_v48, %v6399_v2  ;;  %v6572_v21 = vsel %vm6515_vm3, %v6457_v16, %v6460_v60  ;;  %v6175_v39 = vpop.f32.mrf.mxu1  ;;  %v11856_v58 = vadd.f32 %v11855_v15, %v11854_v50  ;;  %v13044_v50 = vld [vmem:[#allocation5 + $0xcd8] ss:$12 sps:$4 sm:$0xff]   ;;  %v6404_v62 = vld [vmem:[#allocation8 + $0x168] sm:$0xff] }
 0x358   :  { %9587 = vmatpush2.bf16.msra.mxu1 %v13030_v10  ;;  %12106 = vmatprep.subr.bf16.mxu0 %v14877_v46  ;;  %v6611_v9 = vadd.f32 %v6572_v21, %v6376_v52  ;;  %v6543_v24 = vsel %vm6515_vm3, %v6482_v22, %v6485_v56  ;;  %v6486_v36 = vrot.slane %v6175_v39, 4  ;;  %v11857_v51 = vpop.f32.mrf.mxu0  ;;  %v14904_v22 = vld [vmem:[#allocation5 + $0xc20] ss:$12 sps:$4 sm:$0xff]   ;;  %v6379_v10 = vld [vmem:[#allocation8 + $0xa0] sm:$0xff]  ;;  %v6405_v21 = vld [vmem:[#allocation8 + $0x170] sm:$0xff] }
 0x359   :  { %9588 = vmatprep.subr.bf16.mxu1 %v13039_v31  ;;  %6712 = vst [vmem:[#allocation8 + $0x140] sm:$0xff] %v6634_v27  ;;  %v6636_v47 = vadd.f32 %v6543_v24, %v6401_v11  ;;  %v6463_v16 = vrot.slane %v11856_v58, 4  ;;  %v6177_v54 = vpop.f32.mrf.mxu1  ;;  %v13053_v15 = vld [vmem:[#allocation5 + $0xcc4] ss:$12 sps:$4 sm:$0xff]  }
 0x35a   :  { %6689 = vst [vmem:[#allocation8 + $0x88] sm:$0xff] %v6611_v9  ;;  %v6544_v5 = vsel %vm6515_vm3, %v6483_v38, %v6486_v36  ;;  %v6488_v29 = vrot.slane %v6177_v54, 4  ;;  %v11858_v26 = vpop.f32.mrf.mxu0  ;;  %v14909_v38 = vld [vmem:[#allocation5 + $0xcc8] ss:$12 sps:$4 sm:$0xff]   ;;  %v6382_v9 = vld [vmem:[#allocation8 + $0xb8] sm:$0xff] }
 0x35b   :  { %12107 = vmatpush3.bf16.msra.mxu0 %v14888_v7  ;;  %6714 = vst [vmem:[#allocation8 + $0x150] sm:$0xff] %v6636_v47  ;;  %v6637_v33 = vadd.f32 %v6544_v5, %v6402_v17  ;;  %v6569_v55 = vsel %vm6515_vm3, %v6460_v60, %v6463_v16  ;;  %v6179_v40 = vpop.f32.mrf.mxu1  ;;  %v11859_v23 = vadd.f32 %v11858_v26, %v11857_v51  ;;  %v13051_v51 = vld [vmem:[#allocation5 + $0xcc0] ss:$12 sps:$4 sm:$0xff]  }
 0x35c   :  { %9589 = vmatpush2.bf16.msra.mxu1 %v13037_v20  ;;  %12108 = vmatprep.subr.bf16.mxu0 %v14893_v19  ;;  %v6614_v31 = vadd.f32 %v6569_v55, %v6379_v10  ;;  %v6540_v13 = vsel %vm6515_vm3, %v6485_v56, %v6488_v29  ;;  %v6489_v2 = vrot.slane %v6179_v40, 4  ;;  %v11860_v48 = vpop.f32.mrf.mxu0  ;;  %v14927_v10 = vld [vmem:[#allocation2 + $0x80] ss:$8 sps:$4 sm:$0xff]  }
 0x35d   :  { %8614 = vmatmul.mubr.bf16.gmra.mxu0 %v14782_v45  ;;  %9590 = vmatprep.subr.bf16.mxu1 %v13046_v37  ;;  %6715 = vst [vmem:[#allocation8 + $0x158] sm:$0xff] %v6637_v33  ;;  %v6639_v60 = vadd.f32 %v6540_v13, %v6404_v62  ;;  %v6466_v27 = vrot.slane %v11859_v23, 4  ;;  %v6183_v52 = vpop.f32.mrf.mxu1  ;;  %v14920_v45 = vld [vmem:[#allocation5 + $0xc08] ss:$12 sps:$4 sm:$0xff]  }
 0x35e   :  { %8497 = vmatmul.mubr.bf16.gmra.mxu1 %v14897_v32  ;;  %8621 = vmatprep.mubr.bf16.mxu0 %v14786_v12  ;;  %6692 = vst [vmem:[#allocation8 + $0xa0] sm:$0xff] %v6614_v31  ;;  %v6541_v39 = vsel %vm6515_vm3, %v6486_v36, %v6489_v2  ;;  %v6491_v56 = vrot.slane %v6183_v52, 4  ;;  %v11861_v58 = vpop.f32.mrf.mxu0  ;;  %v6407_v37 = vld [vmem:[#allocation8 + $0x180] sm:$0xff]  ;;  %v6385_v31 = vld [vmem:[#allocation8 + $0xd0] sm:$0xff] }
 0x35f   :  { %8506 = vmatprep.mubr.bf16.mxu1 %v14901_v30  ;;  %12109 = vmatpush3.bf16.msra.mxu0 %v14904_v22  ;;  %6717 = vst [vmem:[#allocation8 + $0x168] sm:$0xff] %v6639_v60  ;;  %v6640_v20 = vadd.f32 %v6541_v39, %v6405_v21  ;;  %v6566_v11 = vsel %vm6515_vm3, %v6463_v16, %v6466_v27  ;;  %v6185_v12 = vpop.f32.mrf.mxu1  ;;  %v6408_v16 = vld [vmem:[#allocation8 + $0x188] sm:$0xff]  ;;  %v6410_v60 = vld [vmem:[#allocation8 + $0x198] sm:$0xff] }
 0x360   :  { %v11862_v24 = vadd.f32 %v11861_v58, %v11860_v48  ;;  %9591 = vmatpush2.bf16.msra.mxu1 %v13044_v50  ;;  %12110 = vmatprep.subr.bf16.mxu0 %v14909_v38  ;;  %v6617_v36 = vadd.f32 %v6566_v11, %v6382_v9  ;;  %v6537_v47 = vsel %vm6515_vm3, %v6488_v29, %v6491_v56  ;;  %v6492_v54 = vrot.slane %v6185_v12, 4  ;;  %v11863_v17 = vpop.f32.mrf.mxu0  ;;  %v14931_v50 = vld [vmem:[#allocation2 + $0x94] ss:$8 sps:$4 sm:$0xff]   ;;  %v13113_v39 = vld [vmem:[#allocation5 + $0xd70] ss:$12 sps:$4 sm:$0xff]  }
 0x361   :  { %9592 = vmatprep.subr.bf16.mxu1 %v13053_v15  ;;  %6718 = vst [vmem:[#allocation8 + $0x170] sm:$0xff] %v6640_v20  ;;  %v6642_v5 = vadd.f32 %v6537_v47, %v6407_v37  ;;  %v6187_v33 = vpop.f32.mrf.mxu1 }
 0x362   :  { %v6469_v26 = vrot.slane %v11862_v24, 4  ;;  %6695 = vst [vmem:[#allocation8 + $0xb8] sm:$0xff] %v6617_v36  ;;  %v6538_v55 = vsel %vm6515_vm3, %v6489_v2, %v6492_v54  ;;  %v6494_v40 = vrot.slane %v6187_v33, 4  ;;  %v11864_v23 = vpop.f32.mrf.mxu0  ;;  %v6388_v24 = vld [vmem:[#allocation8 + $0xe8] sm:$0xff] }
 0x363   :  { %12111 = vmatpush3.bf16.msra.mxu0 %v14920_v45  ;;  %6720 = vst [vmem:[#allocation8 + $0x180] sm:$0xff] %v6642_v5  ;;  %v6643_v29 = vadd.f32 %v6538_v55, %v6408_v16  ;;  %v6189_v13 = vpop.f32.mrf.mxu1  ;;  %v11865_v48 = vadd.f32 %v11864_v23, %v11863_v17  ;;  %v6413_v17 = vld [vmem:[#allocation8 + $0x1b0] sm:$0xff]  ;;  %v14948_v23 = vld [vmem:[#allocation2 + $0x90] ss:$8 sps:$4 sm:$0xff]  }
 0x364   :  { %v6563_v62 = vsel %vm6515_vm3, %v6466_v27, %v6469_v26  ;;  %9593 = vmatpush2.bf16.msra.mxu1 %v13051_v51  ;;  %v6534_v2 = vsel %vm6515_vm3, %v6491_v56, %v6494_v40  ;;  %v6495_v52 = vrot.slane %v6189_v13, 4  ;;  %v11866_v21 = vpop.f32.mrf.mxu0  ;;  %v6411_v27 = vld [vmem:[#allocation8 + $0x1a0] sm:$0xff]  ;;  %v14952_v13 = vld [vmem:[#allocation2 + $0xa4] ss:$8 sps:$4 sm:$0xff]  }
 0x365   :  { %v6620_v15 = vadd.f32 %v6563_v62, %v6385_v31  ;;  %8622 = vmatmul.mubr.bf16.gmra.mxu0 %v14803_v4  ;;  %12190 = vmatprep.subr.bf16.mxu1 %v13113_v39  ;;  %6721 = vst [vmem:[#allocation8 + $0x188] sm:$0xff] %v6643_v29  ;;  %v6645_v58 = vadd.f32 %v6534_v2, %v6410_v60  ;;  %v6472_v20 = vrot.slane %v11865_v48, 4  ;;  %v6193_v9 = vpop.f32.mrf.mxu1  ;;  %v6414_v29 = vld [vmem:[#allocation8 + $0x1b8] sm:$0xff]  ;;  %v6416_v39 = vld [vmem:[#allocation8 + $0x1c8] sm:$0xff] }
 0x366   :  { %8507 = vmatmul.mubr.bf16.gmra.mxu1 %v14927_v10  ;;  %8629 = vmatprep.mubr.bf16.mxu0 %v14809_v63  ;;  %v6535_v11 = vsel %vm6515_vm3, %v6492_v54, %v6495_v52  ;;  %v6497_v56 = vrot.slane %v6193_v9, 4  ;;  %v11867_v12 = vpop.f32.mrf.mxu0 }
 0x367   :  { %6698 = vst [vmem:[#allocation8 + $0xd0] sm:$0xff] %v6620_v15  ;;  %8516 = vmatprep.mubr.bf16.mxu1 %v14931_v50  ;;  %6723 = vst [vmem:[#allocation8 + $0x198] sm:$0xff] %v6645_v58  ;;  %v6646_v4 = vadd.f32 %v6535_v11, %v6411_v27  ;;  %v6560_v51 = vsel %vm6515_vm3, %v6469_v26, %v6472_v20  ;;  %v6195_v36 = vpop.f32.mrf.mxu1  ;;  %v11868_v37 = vadd.f32 %v11867_v12, %v11866_v21 }
 0x368   :  { %v6623_v47 = vadd.f32 %v6560_v51, %v6388_v24  ;;  %v6531_v63 = vsel %vm6515_vm3, %v6494_v40, %v6497_v56  ;;  %v6498_v5 = vrot.slane %v6195_v36, 4  ;;  %v11869_v33 = vpop.f32.mrf.mxu0  ;;  %v6391_v40 = vld [vmem:[#allocation8 + $0x100] sm:$0xff] }
 0x369   :  { %6724 = vst [vmem:[#allocation8 + $0x1a0] sm:$0xff] %v6646_v4  ;;  %v6648_v54 = vadd.f32 %v6531_v63, %v6413_v17  ;;  %v6475_v16 = vrot.slane %v11868_v37, 4  ;;  %v6197_v55 = vpop.f32.mrf.mxu1  ;;  %v6419_v63 = vld [vmem:[#allocation8 + $0x1e0] sm:$0xff] }
 0x36a   :  { %6701 = vst [vmem:[#allocation8 + $0xe8] sm:$0xff] %v6623_v47  ;;  %v6532_v26 = vsel %vm6515_vm3, %v6495_v52, %v6498_v5  ;;  %v6500_v31 = vrot.slane %v6197_v55, 4  ;;  %v11870_v62 = vpop.f32.mrf.mxu0 }
 0x36b   :  { %6726 = vst [vmem:[#allocation8 + $0x1b0] sm:$0xff] %v6648_v54  ;;  %v6649_v48 = vadd.f32 %v6532_v26, %v6414_v29  ;;  %v6557_v15 = vsel %vm6515_vm3, %v6472_v20, %v6475_v16  ;;  %v6199_v60 = vpop.f32.mrf.mxu1  ;;  %v11871_v2 = vadd.f32 %v11870_v62, %v11869_v33  ;;  %v6417_v20 = vld [vmem:[#allocation8 + $0x1d0] sm:$0xff]  ;;  %v6420_v62 = vld [vmem:[#allocation8 + $0x1e8] sm:$0xff] }
 0x36c   :  { %v6626_v21 = vadd.f32 %v6557_v15, %v6391_v40  ;;  %v6528_v58 = vsel %vm6515_vm3, %v6497_v56, %v6500_v31  ;;  %v6501_v9 = vrot.slane %v6199_v60, 4  ;;  %v11872_v27 = vpop.f32.mrf.mxu0  ;;  %v14968_v26 = vld [vmem:[#allocation2 + $0xa0] ss:$8 sps:$4 sm:$0xff]   ;;  %v14972_v15 = vld [vmem:[#allocation2 + $0xb4] ss:$8 sps:$4 sm:$0xff]  }
 0x36d   :  { %8630 = vmatmul.mubr.bf16.gmra.mxu0 %v14833_v59  ;;  %6727 = vst [vmem:[#allocation8 + $0x1b8] sm:$0xff] %v6649_v48  ;;  %v6651_v52 = vadd.f32 %v6528_v58, %v6416_v39  ;;  %v6478_v11 = vrot.slane %v11871_v2, 4  ;;  %v6203_v12 = vpop.f32.mrf.mxu1  ;;  %v6394_v59 = vld [vmem:[#allocation8 + $0x118] sm:$0xff] }
 0x36e   :  { %8517 = vmatmul.mubr.bf16.gmra.mxu1 %v14948_v23  ;;  %8637 = vmatprep.mubr.bf16.mxu0 %v14838_v35  ;;  %6704 = vst [vmem:[#allocation8 + $0x100] sm:$0xff] %v6626_v21  ;;  %v6529_v4 = vsel %vm6515_vm3, %v6498_v5, %v6501_v9  ;;  %v6503_v24 = vrot.slane %v6203_v12, 4  ;;  %v11873_v51 = vpop.f32.mrf.mxu0 }
 0x36f   :  { %8526 = vmatprep.mubr.bf16.mxu1 %v14952_v13  ;;  %6729 = vst [vmem:[#allocation8 + $0x1c8] sm:$0xff] %v6651_v52  ;;  %v6652_v56 = vadd.f32 %v6529_v4, %v6417_v20  ;;  %v6554_v36 = vsel %vm6515_vm3, %v6475_v16, %v6478_v11  ;;  %v6205_v37 = vpop.f32.mrf.mxu1  ;;  %v11874_v47 = vadd.f32 %v11873_v51, %v11872_v27  ;;  %v6422_v27 = vld [vmem:[#allocation8 + $0x1f8] sm:$0xff] }
 0x370   :  { %v6629_v17 = vadd.f32 %v6554_v36, %v6394_v59  ;;  %v6525_v35 = vsel %vm6515_vm3, %v6500_v31, %v6503_v24  ;;  %v6504_v33 = vrot.slane %v6205_v37, 4  ;;  %v11875_v54 = vpop.f32.mrf.mxu0  ;;  %v6397_v31 = vld [vmem:[#allocation8 + $0x130] sm:$0xff] }
 0x371   :  { %6730 = vst [vmem:[#allocation8 + $0x1d0] sm:$0xff] %v6652_v56  ;;  %v6654_v5 = vadd.f32 %v6525_v35, %v6419_v63  ;;  %v6481_v55 = vrot.slane %v11874_v47, 4  ;;  %v6207_v29 = vpop.f32.mrf.mxu1  ;;  %v6425_v35 = vld [vmem:[#allocation8 + $0x210] sm:$0xff] }
 0x372   :  { %6707 = vst [vmem:[#allocation8 + $0x118] sm:$0xff] %v6629_v17  ;;  %v6526_v16 = vsel %vm6515_vm3, %v6501_v9, %v6504_v33  ;;  %v6506_v48 = vrot.slane %v6207_v29, 4  ;;  %v11876_v40 = vpop.f32.mrf.mxu0 }
 0x373   :  { %6732 = vst [vmem:[#allocation8 + $0x1e0] sm:$0xff] %v6654_v5  ;;  %v6655_v60 = vadd.f32 %v6526_v16, %v6420_v62  ;;  %v6551_v2 = vsel %vm6515_vm3, %v6478_v11, %v6481_v55  ;;  %v6209_v21 = vpop.f32.mrf.mxu1  ;;  %v11877_v39 = vadd.f32 %v11876_v40, %v11875_v54  ;;  %v6423_v11 = vld [vmem:[#allocation8 + $0x200] sm:$0xff]  ;;  %v6426_v40 = vld [vmem:[#allocation8 + $0x218] sm:$0xff] }
 0x374   :  { %v6632_v58 = vadd.f32 %v6551_v2, %v6397_v31  ;;  %v6522_v52 = vsel %vm6515_vm3, %v6503_v24, %v6506_v48  ;;  %v6507_v12 = vrot.slane %v6209_v21, 4  ;;  %v11878_v20 = vpop.f32.mrf.mxu0  ;;  %v14988_v16 = vld [vmem:[#allocation2 + $0xb0] ss:$8 sps:$4 sm:$0xff]   ;;  %v14992_v2 = vld [vmem:[#allocation2 + $0xc4] ss:$8 sps:$4 sm:$0xff]  }
 0x375   :  { %8638 = vmatmul.mubr.bf16.gmra.mxu0 %v14865_v25  ;;  %6733 = vst [vmem:[#allocation8 + $0x1e8] sm:$0xff] %v6655_v60  ;;  %v6657_v9 = vadd.f32 %v6522_v52, %v6422_v27  ;;  %v6484_v4 = vrot.slane %v11877_v39, 4  ;;  %v6213_v51 = vpop.f32.mrf.mxu1  ;;  %v6400_v25 = vld [vmem:[#allocation8 + $0x148] sm:$0xff] }
 0x376   :  { %8527 = vmatmul.mubr.bf16.gmra.mxu1 %v14968_v26  ;;  %8645 = vmatprep.mubr.bf16.mxu0 %v14869_v43  ;;  %6710 = vst [vmem:[#allocation8 + $0x130] sm:$0xff] %v6632_v58  ;;  %v6523_v56 = vsel %vm6515_vm3, %v6504_v33, %v6507_v12  ;;  %v6509_v59 = vrot.slane %v6213_v51, 4  ;;  %v11879_v36 = vpop.f32.mrf.mxu0 }
 0x377   :  { %8536 = vmatprep.mubr.bf16.mxu1 %v14972_v15  ;;  %6735 = vst [vmem:[#allocation8 + $0x1f8] sm:$0xff] %v6657_v9  ;;  %v6658_v24 = vadd.f32 %v6523_v56, %v6423_v11  ;;  %v6548_v37 = vsel %vm6515_vm3, %v6481_v55, %v6484_v4  ;;  %v6215_v47 = vpop.f32.mrf.mxu1  ;;  %v11880_v17 = vadd.f32 %v11879_v36, %v11878_v20  ;;  %v6428_v20 = vld [vmem:[#allocation8 + $0x228] sm:$0xff] }
 0x378   :  { %v6635_v63 = vadd.f32 %v6548_v37, %v6400_v25  ;;  %v6519_v43 = vsel %vm6515_vm3, %v6506_v48, %v6509_v59  ;;  %v6510_v54 = vrot.slane %v6215_v47, 4  ;;  %v11881_v5 = vpop.f32.mrf.mxu0  ;;  %v6403_v48 = vld [vmem:[#allocation8 + $0x160] sm:$0xff] }
 0x379   :  { %6736 = vst [vmem:[#allocation8 + $0x200] sm:$0xff] %v6658_v24  ;;  %v6660_v33 = vadd.f32 %v6519_v43, %v6425_v35  ;;  %v6487_v29 = vrot.slane %v11880_v17, 4  ;;  %v6217_v62 = vpop.f32.mrf.mxu1 }
 0x37a   :  { %6713 = vst [vmem:[#allocation8 + $0x148] sm:$0xff] %v6635_v63  ;;  %v6520_v55 = vsel %vm6515_vm3, %v6507_v12, %v6510_v54  ;;  %v6512_v60 = vrot.slane %v6217_v62, 4  ;;  %v11882_v31 = vpop.f32.mrf.mxu0 }
 0x37b   :  { %6738 = vst [vmem:[#allocation8 + $0x210] sm:$0xff] %v6660_v33  ;;  %v6661_v21 = vadd.f32 %v6520_v55, %v6426_v40  ;;  %v6545_v39 = vsel %vm6515_vm3, %v6484_v4, %v6487_v29  ;;  %v6219_v58 = vpop.f32.mrf.mxu1  ;;  %v11883_v27 = vadd.f32 %v11882_v31, %v11881_v5  ;;  %v6429_v4 = vld [vmem:[#allocation8 + $0x230] sm:$0xff]  ;;  %v6431_v33 = vld [vmem:[#allocation8 + $0x240] sm:$0xff] }
 0x37c   :  { %v6638_v52 = vadd.f32 %v6545_v39, %v6403_v48  ;;  %v6516_v9 = vsel %vm6515_vm3, %v6509_v59, %v6512_v60  ;;  %v6513_v51 = vrot.slane %v6219_v58, 4  ;;  %v11884_v11 = vpop.f32.mrf.mxu0  ;;  %v15014_v5 = vld [vmem:[#allocation2 + $0xc0] ss:$8 sps:$4 sm:$0xff]   ;;  %v15021_v55 = vld [vmem:[#allocation2 + $0x4] ss:$8 sps:$4 sm:$0xff]  }
 0x37d   :  { %8646 = vmatmul.mubr.bf16.gmra.mxu0 %v14897_v32  ;;  %6739 = vst [vmem:[#allocation8 + $0x218] sm:$0xff] %v6661_v21  ;;  %v6663_v12 = vadd.f32 %v6516_v9, %v6428_v20  ;;  %v6490_v56 = vrot.slane %v11883_v27, 4  ;;  %v14999_v36 = vpop.f32.mrf.mxu1  ;;  %v6406_v32 = vld [vmem:[#allocation8 + $0x178] sm:$0xff]  ;;  %v6432_v39 = vld [vmem:[#allocation8 + $0x248] sm:$0xff] }
 0x37e   :  { %8537 = vmatmul.mubr.bf16.gmra.mxu1 %v14988_v16  ;;  %8653 = vmatprep.mubr.bf16.mxu0 %v14901_v30  ;;  %6716 = vst [vmem:[#allocation8 + $0x160] sm:$0xff] %v6638_v52  ;;  %v6517_v24 = vsel %vm6515_vm3, %v6510_v54, %v6513_v51  ;;  %v11885_v25 = vpop.f32.mrf.mxu0  ;;  %v6591_v30 = vsel %vm6515_vm3, %v6512_v60, %v6437_v1  ;;  %v7605_v62 = vrot.slane %v14999_v36, 4  ;;  %v6409_v60 = vld [vmem:[#allocation8 + $0x190] sm:$0xff] }
 0x37f   :  { %8546 = vmatprep.mubr.bf16.mxu1 %v14992_v2  ;;  %6741 = vst [vmem:[#allocation8 + $0x228] sm:$0xff] %v6663_v12  ;;  %v6664_v59 = vadd.f32 %v6517_v24, %v6429_v4  ;;  %v6542_v37 = vsel %vm6515_vm3, %v6487_v29, %v6490_v56  ;;  %v11886_v47 = vadd.f32 %v11885_v25, %v11884_v11  ;;  %v15008_v17 = vpop.f32.mrf.mxu1 }
 0x380   :  { %v6641_v63 = vadd.f32 %v6542_v37, %v6406_v32  ;;  %v11887_v35 = vpop.f32.mrf.mxu0  ;;  %v6592_v29 = vsel %vm6515_vm3, %v6513_v51, %v6438_v18  ;;  %v6666_v1 = vadd.f32 %v6591_v30, %v6431_v33  ;;  %v7606_v44 = vrot.slane %v15008_v17, 4 }
 0x381   :  { %6742 = vst [vmem:[#allocation8 + $0x230] sm:$0xff] %v6664_v59  ;;  %v6493_v43 = vrot.slane %v11886_v47, 4  ;;  %v7265_v54 = vpop.f32.mrf.mxu1  ;;  %v6667_v20 = vadd.f32 %v6592_v29, %v6432_v39  ;;  %v15042_v29 = vld [vmem:[#allocation2] ss:$8 sps:$4 sm:$0xff]  }
 0x382   :  { %6719 = vst [vmem:[#allocation8 + $0x178] sm:$0xff] %v6641_v63  ;;  %v7608_v6 = vrot.slane %v7265_v54, 4  ;;  %v11888_v40 = vpop.f32.mrf.mxu0 }
 0x383   :  { %v6539_v31 = vsel %vm6515_vm3, %v6490_v56, %v6493_v43  ;;  %v11889_v21 = vadd.f32 %v11888_v40, %v11887_v35  ;;  %v7267_v48 = vpop.f32.mrf.mxu1  ;;  %v7603_v40 = vld [vmem:[#allocation8 + $0x260] sm:$0xff] }
 0x384   :  { %v6644_v58 = vadd.f32 %v6539_v31, %v6409_v60  ;;  %v7755_v18 = vsel %vm6515_vm3, %v7605_v62, %v7608_v6  ;;  %v7609_v27 = vrot.slane %v7267_v48, 4  ;;  %v11890_v52 = vpop.f32.mrf.mxu0  ;;  %v15046_v31 = vld [vmem:[#allocation2 + $0x14] ss:$8 sps:$4 sm:$0xff]  }
 0x385   :  { %8654 = vmatmul.mubr.bf16.gmra.mxu0 %v14927_v10  ;;  %v7833_v9 = vadd.f32 %v7755_v18, %v6666_v1  ;;  %v6496_v51 = vrot.slane %v11889_v21, 4  ;;  %v7271_v11 = vpop.f32.mrf.mxu1  ;;  %v6412_v10 = vld [vmem:[#allocation8 + $0x1a8] sm:$0xff]  ;;  %v6415_v21 = vld [vmem:[#allocation8 + $0x1c0] sm:$0xff] }
 0x386   :  { %8547 = vmatmul.mubr.bf16.gmra.mxu1 %v15014_v5  ;;  %8661 = vmatprep.mubr.bf16.mxu0 %v14931_v50  ;;  %6722 = vst [vmem:[#allocation8 + $0x190] sm:$0xff] %v6644_v58  ;;  %v7756_v12 = vsel %vm6515_vm3, %v7606_v44, %v7609_v27  ;;  %v7611_v56 = vrot.slane %v7271_v11, 4  ;;  %v11891_v4 = vpop.f32.mrf.mxu0  ;;  %v7602_v50 = vld [vmem:[#allocation8 + $0x258] sm:$0xff] }
 0x387   :  { %9594 = vmatprep.mubr.bf16.mxu1 %v15021_v55  ;;  %7911 = vst [vmem:[#allocation8 + $0x240] sm:$0xff] %v7833_v9  ;;  %v6536_v24 = vsel %vm6515_vm3, %v6493_v43, %v6496_v51  ;;  %v7834_v25 = vadd.f32 %v7756_v12, %v6667_v20  ;;  %v11892_v59 = vadd.f32 %v11891_v4, %v11890_v52  ;;  %v7273_v32 = vpop.f32.mrf.mxu1  ;;  %v7527_v52 = vld [vmem:[#allocation8] sm:$0xff] }
 0x388   :  { %v6647_v37 = vadd.f32 %v6536_v24, %v6412_v10  ;;  %v7752_v47 = vsel %vm6515_vm3, %v7608_v6, %v7611_v56  ;;  %v7612_v30 = vrot.slane %v7273_v32, 4  ;;  %v11893_v63 = vpop.f32.mrf.mxu0  ;;  %v7597_v36 = vld [vmem:[#allocation8 + $0x230] sm:$0xff] }
 0x389   :  { %7912 = vst [vmem:[#allocation8 + $0x248] sm:$0xff] %v7834_v25  ;;  %v7836_v35 = vadd.f32 %v7752_v47, %v7602_v50  ;;  %v6499_v54 = vrot.slane %v11892_v59, 4  ;;  %v7275_v33 = vpop.f32.mrf.mxu1  ;;  %v7530_v50 = vld [vmem:[#allocation8 + $0x18] sm:$0xff] }
 0x38a   :  { %6725 = vst [vmem:[#allocation8 + $0x1a8] sm:$0xff] %v6647_v37  ;;  %v7753_v43 = vsel %vm6515_vm3, %v7609_v27, %v7612_v30  ;;  %v7614_v1 = vrot.slane %v7275_v33, 4  ;;  %v11894_v60 = vpop.f32.mrf.mxu0 }
 0x38b   :  { %7914 = vst [vmem:[#allocation8 + $0x258] sm:$0xff] %v7836_v35  ;;  %v6533_v6 = vsel %vm6515_vm3, %v6496_v51, %v6499_v54  ;;  %v7837_v48 = vadd.f32 %v7753_v43, %v7603_v40  ;;  %v11895_v39 = vadd.f32 %v11894_v60, %v11893_v63  ;;  %v7277_v58 = vpop.f32.mrf.mxu1  ;;  %v7528_v51 = vld [vmem:[#allocation8 + $0x8] sm:$0xff]  ;;  %v15064_v40 = vld [vmem:[#allocation2 + $0x10] ss:$8 sps:$4 sm:$0xff]  }
 0x38c   :  { %v6650_v18 = vadd.f32 %v6533_v6, %v6415_v21  ;;  %v7749_v20 = vsel %vm6515_vm3, %v7611_v56, %v7614_v1  ;;  %v7615_v9 = vrot.slane %v7277_v58, 4  ;;  %v11896_v11 = vpop.f32.mrf.mxu0  ;;  %v15069_v21 = vld [vmem:[#allocation2 + $0x24] ss:$8 sps:$4 sm:$0xff]  }
 0x38d   :  { %8662 = vmatmul.mubr.bf16.gmra.mxu0 %v14948_v23  ;;  %7915 = vst [vmem:[#allocation8 + $0x260] sm:$0xff] %v7837_v48  ;;  %v7761_v27 = vadd.f32 %v7749_v20, %v7527_v52  ;;  %v6502_v12 = vrot.slane %v11895_v39, 4  ;;  %v7281_v4 = vpop.f32.mrf.mxu1  ;;  %v6418_v23 = vld [vmem:[#allocation8 + $0x1d8] sm:$0xff]  ;;  %v7533_v52 = vld [vmem:[#allocation8 + $0x30] sm:$0xff] }
 0x38e   :  { %9595 = vmatmul.mubr.bf16.vlgmr.msra.gmra.mxu1 %v15042_v29  ;;  %8669 = vmatprep.mubr.bf16.mxu0 %v14952_v13  ;;  %6728 = vst [vmem:[#allocation8 + $0x1c0] sm:$0xff] %v6650_v18  ;;  %v7750_v10 = vsel %vm6515_vm3, %v7612_v30, %v7615_v9  ;;  %v7617_v24 = vrot.slane %v7281_v4, 4  ;;  %v11897_v56 = vpop.f32.mrf.mxu0 }
 0x38f   :  { %12198 = vmatpush3.bf16.msra.mxu1 %v14805_v34  ;;  %9604 = vmatprep.mubr.bf16.mxu1 %v15046_v31  ;;  %7839 = vst [vmem:[#allocation8] sm:$0xff] %v7761_v27  ;;  %v6530_v25 = vsel %vm6515_vm3, %v6499_v54, %v6502_v12  ;;  %v7762_v59 = vadd.f32 %v7750_v10, %v7528_v51  ;;  %v7283_v37 = vpop.f32.mrf.mxu1  ;;  %v7531_v54 = vld [vmem:[#allocation8 + $0x20] sm:$0xff] }
 0x390   :  { %v11898_v32 = vadd.f32 %v11897_v56, %v11896_v11  ;;  %12191 = vmatprep.subr.bf16.mxu1 %v14813_v41  ;;  %v6653_v13 = vadd.f32 %v6530_v25, %v6418_v23  ;;  %v7746_v47 = vsel %vm6515_vm3, %v7614_v1, %v7617_v24  ;;  %v7618_v30 = vrot.slane %v7283_v37, 4  ;;  %v11899_v34 = vpop.f32.mrf.mxu0  ;;  %v6421_v1 = vld [vmem:[#allocation8 + $0x1f0] sm:$0xff] }
 0x391   :  { %7840 = vst [vmem:[#allocation8 + $0x8] sm:$0xff] %v7762_v59  ;;  %v7764_v63 = vadd.f32 %v7746_v47, %v7530_v50  ;;  %v7285_v33 = vpop.f32.mrf.mxu1  ;;  %v7536_v59 = vld [vmem:[#allocation8 + $0x48] sm:$0xff] }
 0x392   :  { %v6505_v35 = vrot.slane %v11898_v32, 4  ;;  %6731 = vst [vmem:[#allocation8 + $0x1d8] sm:$0xff] %v6653_v13  ;;  %v7747_v43 = vsel %vm6515_vm3, %v7615_v9, %v7618_v30  ;;  %v7620_v60 = vrot.slane %v7285_v33, 4  ;;  %v11900_v41 = vpop.f32.mrf.mxu0  ;;  %v15092_v33 = vld [vmem:[#allocation2 + $0x34] ss:$8 sps:$4 sm:$0xff]  }
 0x393   :  { %12199 = vmatpush3.bf16.msra.mxu1 %v14820_v8  ;;  %7842 = vst [vmem:[#allocation8 + $0x18] sm:$0xff] %v7764_v63  ;;  %v7765_v48 = vadd.f32 %v7747_v43, %v7531_v54  ;;  %v11901_v39 = vadd.f32 %v11900_v41, %v11899_v34  ;;  %v7287_v58 = vpop.f32.mrf.mxu1  ;;  %v7537_v34 = vld [vmem:[#allocation8 + $0x50] sm:$0xff]  ;;  %v6427_v54 = vld [vmem:[#allocation8 + $0x220] sm:$0xff] }
 0x394   :  { %v6527_v6 = vsel %vm6515_vm3, %v6502_v12, %v6505_v35  ;;  %12192 = vmatprep.subr.bf16.mxu1 %v14826_v61  ;;  %v7743_v20 = vsel %vm6515_vm3, %v7617_v24, %v7620_v60  ;;  %v7621_v9 = vrot.slane %v7287_v58, 4  ;;  %v11902_v11 = vpop.f32.mrf.mxu0  ;;  %v7534_v12 = vld [vmem:[#allocation8 + $0x38] sm:$0xff] }
 0x395   :  { %v6656_v18 = vadd.f32 %v6527_v6, %v6421_v1  ;;  %8670 = vmatmul.mubr.bf16.gmra.mxu0 %v14968_v26  ;;  %7843 = vst [vmem:[#allocation8 + $0x20] sm:$0xff] %v7765_v48  ;;  %v7767_v8 = vadd.f32 %v7743_v20, %v7533_v52  ;;  %v6508_v27 = vrot.slane %v11901_v39, 4  ;;  %v7291_v4 = vpop.f32.mrf.mxu1  ;;  %v6424_v26 = vld [vmem:[#allocation8 + $0x208] sm:$0xff]  ;;  %v7539_v48 = vld [vmem:[#allocation8 + $0x60] sm:$0xff] }
 0x396   :  { %9605 = vmatmul.mubr.bf16.gmra.mxu1 %v15064_v40  ;;  %8677 = vmatprep.mubr.bf16.mxu0 %v14972_v15  ;;  %v7744_v61 = vsel %vm6515_vm3, %v7618_v30, %v7621_v9  ;;  %v7623_v51 = vrot.slane %v7291_v4, 4  ;;  %v11903_v10 = vpop.f32.mrf.mxu0  ;;  %v15088_v30 = vld [vmem:[#allocation2 + $0x20] ss:$8 sps:$4 sm:$0xff]  }
 0x397   :  { %6734 = vst [vmem:[#allocation8 + $0x1f0] sm:$0xff] %v6656_v18  ;;  %9614 = vmatprep.mubr.bf16.mxu1 %v15069_v21  ;;  %12200 = vmatpush3.bf16.msra.mxu1 %v14841_v57  ;;  %7845 = vst [vmem:[#allocation8 + $0x30] sm:$0xff] %v7767_v8  ;;  %v6524_v24 = vsel %vm6515_vm3, %v6505_v35, %v6508_v27  ;;  %v7768_v56 = vadd.f32 %v7744_v61, %v7534_v12  ;;  %v7293_v25 = vpop.f32.mrf.mxu1  ;;  %v7542_v61 = vld [vmem:[#allocation8 + $0x78] sm:$0xff] }
 0x398   :  { %v11904_v23 = vadd.f32 %v11903_v10, %v11902_v11  ;;  %12193 = vmatprep.subr.bf16.mxu1 %v14845_v53  ;;  %v6659_v15 = vadd.f32 %v6524_v24, %v6424_v26  ;;  %v7740_v32 = vsel %vm6515_vm3, %v7620_v60, %v7623_v51  ;;  %v7624_v37 = vrot.slane %v7293_v25, 4  ;;  %v11905_v13 = vpop.f32.mrf.mxu0  ;;  %v7543_v25 = vld [vmem:[#allocation8 + $0x80] sm:$0xff] }
 0x399   :  { %7846 = vst [vmem:[#allocation8 + $0x38] sm:$0xff] %v7768_v56  ;;  %v7770_v50 = vadd.f32 %v7740_v32, %v7536_v59  ;;  %v7295_v47 = vpop.f32.mrf.mxu1  ;;  %v15118_v32 = vld [vmem:[#allocation2 + $0x44] ss:$8 sps:$4 sm:$0xff]  }
 0x39a   :  { %v6511_v57 = vrot.slane %v11904_v23, 4  ;;  %6737 = vst [vmem:[#allocation8 + $0x208] sm:$0xff] %v6659_v15  ;;  %v7741_v63 = vsel %vm6515_vm3, %v7621_v9, %v7624_v37  ;;  %v7626_v35 = vrot.slane %v7295_v47, 4  ;;  %v11906_v53 = vpop.f32.mrf.mxu0  ;;  %v7540_v9 = vld [vmem:[#allocation8 + $0x68] sm:$0xff]  ;;  %v15114_v23 = vld [vmem:[#allocation2 + $0x30] ss:$8 sps:$4 sm:$0xff]  }
 0x39b   :  { %12201 = vmatpush3.bf16.msra.mxu1 %v14856_v0  ;;  %7848 = vst [vmem:[#allocation8 + $0x48] sm:$0xff] %v7770_v50  ;;  %v7771_v60 = vadd.f32 %v7741_v63, %v7537_v34  ;;  %v11907_v41 = vadd.f32 %v11906_v53, %v11905_v13  ;;  %v7297_v1 = vpop.f32.mrf.mxu1  ;;  %v7545_v47 = vld [vmem:[#allocation8 + $0x90] sm:$0xff] }
 0x39c   :  { %v6521_v43 = vsel %vm6515_vm3, %v6508_v27, %v6511_v57  ;;  %12194 = vmatprep.subr.bf16.mxu1 %v14861_v28  ;;  %v7737_v39 = vsel %vm6515_vm3, %v7623_v51, %v7626_v35  ;;  %v7627_v58 = vrot.slane %v7297_v1, 4  ;;  %v11924_v18 = vpop.f32.mrf.mxu0 }
 0x39d   :  { %v6662_v6 = vadd.f32 %v6521_v43, %v6427_v54  ;;  %8678 = vmatmul.mubr.bf16.gmra.mxu0 %v14988_v16  ;;  %7849 = vst [vmem:[#allocation8 + $0x50] sm:$0xff] %v7771_v60  ;;  %v7773_v0 = vadd.f32 %v7737_v39, %v7539_v48  ;;  %v6514_v52 = vrot.slane %v11907_v41, 4  ;;  %v7301_v20 = vpop.f32.mrf.mxu1  ;;  %v6430_v16 = vld [vmem:[#allocation8 + $0x238] sm:$0xff] }
 0x39e   :  { %9615 = vmatmul.mubr.bf16.gmra.mxu1 %v15088_v30  ;;  %8685 = vmatprep.mubr.bf16.mxu0 %v14992_v2  ;;  %v7738_v28 = vsel %vm6515_vm3, %v7624_v37, %v7627_v58  ;;  %v7629_v11 = vrot.slane %v7301_v20, 4  ;;  %v11925_v8 = vpop.f32.mrf.mxu0  ;;  %v7546_v43 = vld [vmem:[#allocation8 + $0x98] sm:$0xff] }
 0x39f   :  { %6740 = vst [vmem:[#allocation8 + $0x220] sm:$0xff] %v6662_v6  ;;  %9624 = vmatprep.mubr.bf16.mxu1 %v15092_v33  ;;  %12202 = vmatpush3.bf16.msra.mxu1 %v14872_v3  ;;  %7851 = vst [vmem:[#allocation8 + $0x60] sm:$0xff] %v7773_v0  ;;  %v6518_v27 = vsel %vm6515_vm3, %v6511_v57, %v6514_v52  ;;  %v7774_v4 = vadd.f32 %v7738_v28, %v7540_v9  ;;  %v7303_v12 = vpop.f32.mrf.mxu1  ;;  %v15143_v28 = vld [vmem:[#allocation2 + $0x40] ss:$8 sps:$4 sm:$0xff]  }
 0x3a0   :  { %12195 = vmatprep.subr.bf16.mxu1 %v14877_v46  ;;  %v6665_v2 = vadd.f32 %v6518_v27, %v6430_v16  ;;  %v7734_v51 = vsel %vm6515_vm3, %v7626_v35, %v7629_v11  ;;  %v7630_v10 = vrot.slane %v7303_v12, 4  ;;  %v11927_v26 = vpop.f32.mrf.mxu0  ;;  %v15112_v56 = vadd.f32 %v11925_v8, %v11924_v18  ;;  %v15147_v27 = vld [vmem:[#allocation2 + $0x54] ss:$8 sps:$4 sm:$0xff]  }
 0x3a1   :  { %7852 = vst [vmem:[#allocation8 + $0x68] sm:$0xff] %v7774_v4  ;;  %v7776_v24 = vadd.f32 %v7734_v51, %v7542_v61  ;;  %v7305_v3 = vpop.f32.mrf.mxu1  ;;  %v6593_v37 = vsel %vm6515_vm3, %v6514_v52, %v6439_v42  ;;  %v7604_v12 = vld [vmem:[#allocation8 + $0x268] sm:$0xff] }
 0x3a2   :  { %6743 = vst [vmem:[#allocation8 + $0x238] sm:$0xff] %v6665_v2  ;;  %v7735_v15 = vsel %vm6515_vm3, %v7627_v58, %v7630_v10  ;;  %v7632_v46 = vrot.slane %v7305_v3, 4  ;;  %v11928_v59 = vpop.f32.mrf.mxu0  ;;  %v7607_v49 = vrot.slane %v15112_v56, 4  ;;  %v7548_v58 = vld [vmem:[#allocation8 + $0xa8] sm:$0xff] }
 0x3a3   :  { %12203 = vmatpush3.bf16.msra.mxu1 %v14888_v7  ;;  %7854 = vst [vmem:[#allocation8 + $0x78] sm:$0xff] %v7776_v24  ;;  %v7777_v13 = vadd.f32 %v7735_v15, %v7543_v25  ;;  %v7307_v50 = vpop.f32.mrf.mxu1  ;;  %v11929_v57 = vadd.f32 %v11928_v59, %v11927_v26  ;;  %v6433_v7 = vld [vmem:[#allocation8 + $0x250] sm:$0xff]  ;;  %v7551_v26 = vld [vmem:[#allocation8 + $0xc0] sm:$0xff]  ;;  %v7552_v59 = vld [vmem:[#allocation8 + $0xc8] sm:$0xff] }
 0x3a4   :  { %12196 = vmatprep.subr.bf16.mxu1 %v14893_v19  ;;  %v7731_v34 = vsel %vm6515_vm3, %v7629_v11, %v7632_v46  ;;  %v7633_v63 = vrot.slane %v7307_v50, 4  ;;  %v11930_v35 = vpop.f32.mrf.mxu0  ;;  %v6668_v19 = vadd.f32 %v6593_v37, %v6433_v7  ;;  %v7549_v11 = vld [vmem:[#allocation8 + $0xb0] sm:$0xff]  ;;  %v7554_v7 = vld [vmem:[#allocation8 + $0xd8] sm:$0xff] }
 0x3a5   :  { %8686 = vmatmul.mubr.bf16.gmra.mxu0 %v15014_v5  ;;  %7855 = vst [vmem:[#allocation8 + $0x80] sm:$0xff] %v7777_v13  ;;  %v7779_v53 = vadd.f32 %v7731_v34, %v7545_v47  ;;  %v7610_v42 = vrot.slane %v11929_v57, 4  ;;  %v7311_v54 = vpop.f32.mrf.mxu1 }
 0x3a6   :  { %9625 = vmatmul.mubr.bf16.gmra.mxu1 %v15114_v23  ;;  %9757 = vmatprep.mubr.bf16.mxu0 %v15021_v55  ;;  %v7732_v60 = vsel %vm6515_vm3, %v7630_v10, %v7633_v63  ;;  %v7635_v41 = vrot.slane %v7311_v54, 4  ;;  %v11931_v1 = vpop.f32.mrf.mxu0 }
 0x3a7   :  { %9634 = vmatprep.mubr.bf16.mxu1 %v15118_v32  ;;  %12204 = vmatpush3.bf16.msra.mxu1 %v14904_v22  ;;  %7857 = vst [vmem:[#allocation8 + $0x90] sm:$0xff] %v7779_v53  ;;  %v7780_v5 = vadd.f32 %v7732_v60, %v7546_v43  ;;  %v7757_v6 = vsel %vm6515_vm3, %v7607_v49, %v7610_v42  ;;  %v7313_v48 = vpop.f32.mrf.mxu1  ;;  %v15164_v60 = vld [vmem:[#allocation2 + $0x50] ss:$8 sps:$4 sm:$0xff]  }
 0x3a8   :  { %v11932_v55 = vadd.f32 %v11931_v1, %v11930_v35  ;;  %12197 = vmatprep.subr.bf16.mxu1 %v14909_v38  ;;  %v7835_v39 = vadd.f32 %v7757_v6, %v6668_v19  ;;  %v7728_v18 = vsel %vm6515_vm3, %v7632_v46, %v7635_v41  ;;  %v7636_v0 = vrot.slane %v7313_v48, 4  ;;  %v11933_v52 = vpop.f32.mrf.mxu0  ;;  %v15168_v48 = vld [vmem:[#allocation2 + $0x64] ss:$8 sps:$4 sm:$0xff]  }
 0x3a9   :  { %7858 = vst [vmem:[#allocation8 + $0x98] sm:$0xff] %v7780_v5  ;;  %v7782_v22 = vadd.f32 %v7728_v18, %v7548_v58  ;;  %v7315_v9 = vpop.f32.mrf.mxu1 }
 0x3aa   :  { %v7613_v20 = vrot.slane %v11932_v55, 4  ;;  %7913 = vst [vmem:[#allocation8 + $0x250] sm:$0xff] %v7835_v39  ;;  %v7729_v8 = vsel %vm6515_vm3, %v7633_v63, %v7636_v0  ;;  %v7638_v16 = vrot.slane %v7315_v9, 4  ;;  %v11934_v38 = vpop.f32.mrf.mxu0  ;;  %v7532_v39 = vld [vmem:[#allocation8 + $0x28] sm:$0xff] }
 0x3ab   :  { %12205 = vmatpush3.bf16.msra.mxu1 %v14920_v45  ;;  %7860 = vst [vmem:[#allocation8 + $0xa8] sm:$0xff] %v7782_v22  ;;  %v7783_v4 = vadd.f32 %v7729_v8, %v7549_v11  ;;  %v7317_v61 = vpop.f32.mrf.mxu1  ;;  %v11935_v51 = vadd.f32 %v11934_v38, %v11933_v52  ;;  %v7557_v22 = vld [vmem:[#allocation8 + $0xf0] sm:$0xff] }
 0x3ac   :  { %v7754_v2 = vsel %vm6515_vm3, %v7610_v42, %v7613_v20  ;;  %v7725_v24 = vsel %vm6515_vm3, %v7635_v41, %v7638_v16  ;;  %v7639_v3 = vrot.slane %v7317_v61, 4  ;;  %v11936_v25 = vpop.f32.mrf.mxu0  ;;  %v7555_v41 = vld [vmem:[#allocation8 + $0xe0] sm:$0xff] }
 0x3ad   :  { %v7838_v10 = vadd.f32 %v7754_v2, %v7604_v12  ;;  %9758 = vmatmul.mubr.bf16.vlgmr.msra.gmra.mxu0 %v15042_v29  ;;  %7861 = vst [vmem:[#allocation8 + $0xb0] sm:$0xff] %v7783_v4  ;;  %v7785_v15 = vadd.f32 %v7725_v24, %v7551_v26  ;;  %v7616_v45 = vrot.slane %v11935_v51, 4  ;;  %v7321_v46 = vpop.f32.mrf.mxu1  ;;  %v7529_v29 = vld [vmem:[#allocation8 + $0x10] sm:$0xff]  ;;  %v7558_v4 = vld [vmem:[#allocation8 + $0xf8] sm:$0xff]  ;;  %v8710_v56 = vld [vmem:[#allocation8 + $0x80] sm:$0xff] }
 0x3ae   :  { %9635 = vmatmul.mubr.bf16.gmra.mxu1 %v15143_v28  ;;  %9765 = vmatprep.mubr.bf16.mxu0 %v15046_v31  ;;  %v7726_v37 = vsel %vm6515_vm3, %v7636_v0, %v7639_v3  ;;  %v7641_v13 = vrot.slane %v7321_v46, 4  ;;  %v11937_v50 = vpop.f32.mrf.mxu0 }
 0x3af   :  { %7916 = vst [vmem:[#allocation8 + $0x268] sm:$0xff] %v7838_v10  ;;  %9644 = vmatprep.mubr.bf16.mxu1 %v15147_v27  ;;  %7863 = vst [vmem:[#allocation8 + $0xc0] sm:$0xff] %v7785_v15  ;;  %v7786_v57 = vadd.f32 %v7726_v37, %v7552_v59  ;;  %v7751_v47 = vsel %vm6515_vm3, %v7613_v20, %v7616_v45  ;;  %v7323_v34 = vpop.f32.mrf.mxu1  ;;  %v11938_v63 = vadd.f32 %v11937_v50, %v11936_v25  ;;  %v7560_v25 = vld [vmem:[#allocation8 + $0x108] sm:$0xff]  ;;  %v7561_v50 = vld [vmem:[#allocation8 + $0x110] sm:$0xff] }
 0x3b0   :  { %v7763_v35 = vadd.f32 %v7751_v47, %v7529_v29  ;;  %v7722_v31 = vsel %vm6515_vm3, %v7638_v16, %v7641_v13  ;;  %v7642_v53 = vrot.slane %v7323_v34, 4  ;;  %v11939_v42 = vpop.f32.mrf.mxu0  ;;  %v15188_v34 = vld [vmem:[#allocation2 + $0x74] ss:$8 sps:$4 sm:$0xff]  }
 0x3b1   :  { %7864 = vst [vmem:[#allocation8 + $0xc8] sm:$0xff] %v7786_v57  ;;  %v7788_v54 = vadd.f32 %v7722_v31, %v7554_v7  ;;  %v7619_v19 = vrot.slane %v11938_v63, 4  ;;  %v7325_v43 = vpop.f32.mrf.mxu1 }
 0x3b2   :  { %7841 = vst [vmem:[#allocation8 + $0x10] sm:$0xff] %v7763_v35  ;;  %v7723_v1 = vsel %vm6515_vm3, %v7639_v3, %v7642_v53  ;;  %v7644_v5 = vrot.slane %v7325_v43, 4  ;;  %v11940_v6 = vpop.f32.mrf.mxu0  ;;  %v7538_v35 = vld [vmem:[#allocation8 + $0x58] sm:$0xff] }
 0x3b3   :  { %7866 = vst [vmem:[#allocation8 + $0xd8] sm:$0xff] %v7788_v54  ;;  %v7789_v55 = vadd.f32 %v7723_v1, %v7555_v41  ;;  %v7748_v58 = vsel %vm6515_vm3, %v7616_v45, %v7619_v19  ;;  %v7327_v18 = vpop.f32.mrf.mxu1  ;;  %v11941_v0 = vadd.f32 %v11940_v6, %v11939_v42  ;;  %v7563_v54 = vld [vmem:[#allocation8 + $0x120] sm:$0xff] }
 0x3b4   :  { %v7766_v52 = vadd.f32 %v7748_v58, %v7532_v39  ;;  %v7719_v20 = vsel %vm6515_vm3, %v7641_v13, %v7644_v5  ;;  %v7645_v9 = vrot.slane %v7327_v18, 4  ;;  %v11942_v11 = vpop.f32.mrf.mxu0  ;;  %v15184_v13 = vld [vmem:[#allocation2 + $0x60] ss:$8 sps:$4 sm:$0xff]  }
 0x3b5   :  { %9766 = vmatmul.mubr.bf16.gmra.mxu0 %v15064_v40  ;;  %7867 = vst [vmem:[#allocation8 + $0xe0] sm:$0xff] %v7789_v55  ;;  %v7791_v8 = vadd.f32 %v7719_v20, %v7557_v22  ;;  %v7622_v16 = vrot.slane %v11941_v0, 4  ;;  %v7331_v38 = vpop.f32.mrf.mxu1  ;;  %v7535_v40 = vld [vmem:[#allocation8 + $0x40] sm:$0xff]  ;;  %v7564_v55 = vld [vmem:[#allocation8 + $0x128] sm:$0xff] }
 0x3b6   :  { %9645 = vmatmul.mubr.bf16.gmra.mxu1 %v15164_v60  ;;  %9773 = vmatprep.mubr.bf16.mxu0 %v15069_v21  ;;  %7844 = vst [vmem:[#allocation8 + $0x28] sm:$0xff] %v7766_v52  ;;  %v7720_v12 = vsel %vm6515_vm3, %v7642_v53, %v7645_v9  ;;  %v7647_v2 = vrot.slane %v7331_v38, 4  ;;  %v11943_v61 = vpop.f32.mrf.mxu0 }
 0x3b7   :  { %9654 = vmatprep.mubr.bf16.mxu1 %v15168_v48  ;;  %7869 = vst [vmem:[#allocation8 + $0xf0] sm:$0xff] %v7791_v8  ;;  %v7792_v51 = vadd.f32 %v7720_v12, %v7558_v4  ;;  %v7745_v10 = vsel %vm6515_vm3, %v7619_v19, %v7622_v16  ;;  %v7333_v26 = vpop.f32.mrf.mxu1  ;;  %v11944_v24 = vadd.f32 %v11943_v61, %v11942_v11  ;;  %v7566_v11 = vld [vmem:[#allocation8 + $0x138] sm:$0xff]  ;;  %v7567_v61 = vld [vmem:[#allocation8 + $0x140] sm:$0xff] }
 0x3b8   :  { %v7769_v3 = vadd.f32 %v7745_v10, %v7535_v40  ;;  %v7716_v21 = vsel %vm6515_vm3, %v7644_v5, %v7647_v2  ;;  %v7648_v15 = vrot.slane %v7333_v26, 4  ;;  %v11945_v45 = vpop.f32.mrf.mxu0  ;;  %v15208_v26 = vld [vmem:[#allocation2 + $0x84] ss:$8 sps:$4 sm:$0xff]  }
 0x3b9   :  { %7870 = vst [vmem:[#allocation8 + $0xf8] sm:$0xff] %v7792_v51  ;;  %v7794_v46 = vadd.f32 %v7716_v21, %v7560_v25  ;;  %v7625_v59 = vrot.slane %v11944_v24, 4  ;;  %v7335_v37 = vpop.f32.mrf.mxu1 }
 0x3ba   :  { %7847 = vst [vmem:[#allocation8 + $0x40] sm:$0xff] %v7769_v3  ;;  %v7717_v57 = vsel %vm6515_vm3, %v7645_v9, %v7648_v15  ;;  %v7650_v29 = vrot.slane %v7335_v37, 4  ;;  %v11946_v47 = vpop.f32.mrf.mxu0  ;;  %v7544_v3 = vld [vmem:[#allocation8 + $0x88] sm:$0xff] }
 0x3bb   :  { %7872 = vst [vmem:[#allocation8 + $0x108] sm:$0xff] %v7794_v46  ;;  %v7795_v63 = vadd.f32 %v7717_v57, %v7561_v50  ;;  %v7742_v7 = vsel %vm6515_vm3, %v7622_v16, %v7625_v59  ;;  %v7337_v31 = vpop.f32.mrf.mxu1  ;;  %v11947_v53 = vadd.f32 %v11946_v47, %v11945_v45  ;;  %v7569_v46 = vld [vmem:[#allocation8 + $0x150] sm:$0xff] }
 0x3bc   :  { %v7772_v42 = vadd.f32 %v7742_v7, %v7538_v35  ;;  %v7713_v19 = vsel %vm6515_vm3, %v7647_v2, %v7650_v29  ;;  %v7651_v43 = vrot.slane %v7337_v31, 4  ;;  %v11948_v41 = vpop.f32.mrf.mxu0  ;;  %v15204_v2 = vld [vmem:[#allocation2 + $0x70] ss:$8 sps:$4 sm:$0xff]  }
 0x3bd   :  { %9774 = vmatmul.mubr.bf16.gmra.mxu0 %v15088_v30  ;;  %7873 = vst [vmem:[#allocation8 + $0x110] sm:$0xff] %v7795_v63  ;;  %v7797_v1 = vadd.f32 %v7713_v19, %v7563_v54  ;;  %v7628_v5 = vrot.slane %v11947_v53, 4  ;;  %v7341_v6 = vpop.f32.mrf.mxu1  ;;  %v7541_v30 = vld [vmem:[#allocation8 + $0x70] sm:$0xff]  ;;  %v7570_v63 = vld [vmem:[#allocation8 + $0x158] sm:$0xff] }
 0x3be   :  { %9655 = vmatmul.mubr.bf16.gmra.mxu1 %v15184_v13  ;;  %9781 = vmatprep.mubr.bf16.mxu0 %v15092_v33  ;;  %7850 = vst [vmem:[#allocation8 + $0x58] sm:$0xff] %v7772_v42  ;;  %v7714_v39 = vsel %vm6515_vm3, %v7648_v15, %v7651_v43  ;;  %v7653_v58 = vrot.slane %v7341_v6, 4  ;;  %v11949_v18 = vpop.f32.mrf.mxu0 }
 0x3bf   :  { %9664 = vmatprep.mubr.bf16.mxu1 %v15188_v34  ;;  %7875 = vst [vmem:[#allocation8 + $0x120] sm:$0xff] %v7797_v1  ;;  %v7798_v0 = vadd.f32 %v7714_v39, %v7564_v55  ;;  %v7739_v52 = vsel %vm6515_vm3, %v7625_v59, %v7628_v5  ;;  %v7343_v22 = vpop.f32.mrf.mxu1  ;;  %v11950_v20 = vadd.f32 %v11949_v18, %v11948_v41  ;;  %v7572_v41 = vld [vmem:[#allocation8 + $0x168] sm:$0xff]  ;;  %v7573_v18 = vld [vmem:[#allocation8 + $0x170] sm:$0xff] }
 0x3c0   :  { %v7775_v9 = vadd.f32 %v7739_v52, %v7541_v30  ;;  %v7710_v33 = vsel %vm6515_vm3, %v7650_v29, %v7653_v58  ;;  %v7654_v8 = vrot.slane %v7343_v22, 4  ;;  %v11951_v16 = vpop.f32.mrf.mxu0  ;;  %v15228_v22 = vld [vmem:[#allocation2 + $0x94] ss:$8 sps:$4 sm:$0xff]  }
 0x3c1   :  { %7876 = vst [vmem:[#allocation8 + $0x128] sm:$0xff] %v7798_v0  ;;  %v7800_v38 = vadd.f32 %v7710_v33, %v7566_v11  ;;  %v7631_v4 = vrot.slane %v11950_v20, 4  ;;  %v7345_v12 = vpop.f32.mrf.mxu1 }
 0x3c2   :  { %7853 = vst [vmem:[#allocation8 + $0x70] sm:$0xff] %v7775_v9  ;;  %v7711_v51 = vsel %vm6515_vm3, %v7651_v43, %v7654_v8  ;;  %v7656_v40 = vrot.slane %v7345_v12, 4  ;;  %v11952_v10 = vpop.f32.mrf.mxu0  ;;  %v7550_v9 = vld [vmem:[#allocation8 + $0xb8] sm:$0xff] }
 0x3c3   :  { %7878 = vst [vmem:[#allocation8 + $0x138] sm:$0xff] %v7800_v38  ;;  %v7801_v24 = vadd.f32 %v7711_v51, %v7567_v61  ;;  %v7736_v25 = vsel %vm6515_vm3, %v7628_v5, %v7631_v4  ;;  %v7347_v21 = vpop.f32.mrf.mxu1  ;;  %v11953_v15 = vadd.f32 %v11952_v10, %v11951_v16  ;;  %v7575_v38 = vld [vmem:[#allocation8 + $0x180] sm:$0xff] }
 0x3c4   :  { %v7778_v45 = vadd.f32 %v7736_v25, %v7544_v3  ;;  %v7707_v59 = vsel %vm6515_vm3, %v7653_v58, %v7656_v40  ;;  %v7657_v37 = vrot.slane %v7347_v21, 4  ;;  %v11954_v50 = vpop.f32.mrf.mxu0  ;;  %v15224_v58 = vld [vmem:[#allocation2 + $0x80] ss:$8 sps:$4 sm:$0xff]  }
 0x3c5   :  { %9782 = vmatmul.mubr.bf16.gmra.mxu0 %v15114_v23  ;;  %7879 = vst [vmem:[#allocation8 + $0x140] sm:$0xff] %v7801_v24  ;;  %v7803_v57 = vadd.f32 %v7707_v59, %v7569_v46  ;;  %v7634_v29 = vrot.slane %v11953_v15, 4  ;;  %v7351_v47 = vpop.f32.mrf.mxu1  ;;  %v7547_v23 = vld [vmem:[#allocation8 + $0xa0] sm:$0xff]  ;;  %v7576_v24 = vld [vmem:[#allocation8 + $0x188] sm:$0xff] }
 0x3c6   :  { %9665 = vmatmul.mubr.bf16.gmra.mxu1 %v15204_v2  ;;  %9789 = vmatprep.mubr.bf16.mxu0 %v15118_v32  ;;  %7856 = vst [vmem:[#allocation8 + $0x88] sm:$0xff] %v7778_v45  ;;  %v7708_v35 = vsel %vm6515_vm3, %v7654_v8, %v7657_v37  ;;  %v7659_v7 = vrot.slane %v7351_v47, 4  ;;  %v11955_v31 = vpop.f32.mrf.mxu0 }
 0x3c7   :  { %9674 = vmatprep.mubr.bf16.mxu1 %v15208_v26  ;;  %7881 = vst [vmem:[#allocation8 + $0x150] sm:$0xff] %v7803_v57  ;;  %v7804_v53 = vadd.f32 %v7708_v35, %v7570_v63  ;;  %v7733_v42 = vsel %vm6515_vm3, %v7631_v4, %v7634_v29  ;;  %v7353_v54 = vpop.f32.mrf.mxu1  ;;  %v11956_v19 = vadd.f32 %v11955_v31, %v11954_v50  ;;  %v7578_v50 = vld [vmem:[#allocation8 + $0x198] sm:$0xff]  ;;  %v7579_v31 = vld [vmem:[#allocation8 + $0x1a0] sm:$0xff] }
 0x3c8   :  { %v7781_v43 = vadd.f32 %v7733_v42, %v7547_v23  ;;  %v7704_v32 = vsel %vm6515_vm3, %v7656_v40, %v7659_v7  ;;  %v7660_v1 = vrot.slane %v7353_v54, 4  ;;  %v11957_v5 = vpop.f32.mrf.mxu0  ;;  %v15248_v54 = vld [vmem:[#allocation2 + $0xa4] ss:$8 sps:$4 sm:$0xff]  }
 0x3c9   :  { %7882 = vst [vmem:[#allocation8 + $0x158] sm:$0xff] %v7804_v53  ;;  %v7806_v6 = vadd.f32 %v7704_v32, %v7572_v41  ;;  %v7637_v55 = vrot.slane %v11956_v19, 4  ;;  %v7355_v39 = vpop.f32.mrf.mxu1 }
 0x3ca   :  { %7859 = vst [vmem:[#allocation8 + $0xa0] sm:$0xff] %v7781_v43  ;;  %v7705_v0 = vsel %vm6515_vm3, %v7657_v37, %v7660_v1  ;;  %v7662_v30 = vrot.slane %v7355_v39, 4  ;;  %v11958_v52 = vpop.f32.mrf.mxu0  ;;  %v7556_v43 = vld [vmem:[#allocation8 + $0xe8] sm:$0xff] }
 0x3cb   :  { %7884 = vst [vmem:[#allocation8 + $0x168] sm:$0xff] %v7806_v6  ;;  %v7807_v20 = vadd.f32 %v7705_v0, %v7573_v18  ;;  %v7730_v11 = vsel %vm6515_vm3, %v7634_v29, %v7637_v55  ;;  %v7357_v33 = vpop.f32.mrf.mxu1  ;;  %v11959_v8 = vadd.f32 %v11958_v52, %v11957_v5  ;;  %v7581_v6 = vld [vmem:[#allocation8 + $0x1b0] sm:$0xff] }
 0x3cc   :  { %v7784_v16 = vadd.f32 %v7730_v11, %v7550_v9  ;;  %v7701_v4 = vsel %vm6515_vm3, %v7659_v7, %v7662_v30  ;;  %v7663_v12 = vrot.slane %v7357_v33, 4  ;;  %v11960_v61 = vpop.f32.mrf.mxu0  ;;  %v15244_v7 = vld [vmem:[#allocation2 + $0x90] ss:$8 sps:$4 sm:$0xff]  }
 0x3cd   :  { %9790 = vmatmul.mubr.bf16.gmra.mxu0 %v15143_v28  ;;  %7885 = vst [vmem:[#allocation8 + $0x170] sm:$0xff] %v7807_v20  ;;  %v7809_v51 = vadd.f32 %v7701_v4, %v7575_v38  ;;  %v7640_v40 = vrot.slane %v11959_v8, 4  ;;  %v7361_v10 = vpop.f32.mrf.mxu1  ;;  %v7553_v28 = vld [vmem:[#allocation8 + $0xd0] sm:$0xff]  ;;  %v7582_v20 = vld [vmem:[#allocation8 + $0x1b8] sm:$0xff] }
 0x3ce   :  { %9675 = vmatmul.mubr.bf16.gmra.mxu1 %v15224_v58  ;;  %9797 = vmatprep.mubr.bf16.mxu0 %v15147_v27  ;;  %7862 = vst [vmem:[#allocation8 + $0xb8] sm:$0xff] %v7784_v16  ;;  %v7702_v3 = vsel %vm6515_vm3, %v7660_v1, %v7663_v12  ;;  %v7665_v25 = vrot.slane %v7361_v10, 4  ;;  %v11961_v21 = vpop.f32.mrf.mxu0 }
 0x3cf   :  { %9684 = vmatprep.mubr.bf16.mxu1 %v15228_v22  ;;  %7887 = vst [vmem:[#allocation8 + $0x180] sm:$0xff] %v7809_v51  ;;  %v7810_v15 = vadd.f32 %v7702_v3, %v7576_v24  ;;  %v7727_v45 = vsel %vm6515_vm3, %v7637_v55, %v7640_v40  ;;  %v7363_v46 = vpop.f32.mrf.mxu1  ;;  %v11962_v59 = vadd.f32 %v11961_v21, %v11960_v61  ;;  %v7584_v61 = vld [vmem:[#allocation8 + $0x1c8] sm:$0xff]  ;;  %v7585_v21 = vld [vmem:[#allocation8 + $0x1d0] sm:$0xff] }
 0x3d0   :  { %v7787_v37 = vadd.f32 %v7727_v45, %v7553_v28  ;;  %v7698_v27 = vsel %vm6515_vm3, %v7662_v30, %v7665_v25  ;;  %v7666_v57 = vrot.slane %v7363_v46, 4  ;;  %v11963_v29 = vpop.f32.mrf.mxu0  ;;  %v15268_v46 = vld [vmem:[#allocation2 + $0xb4] ss:$8 sps:$4 sm:$0xff]  }
 0x3d1   :  { %7888 = vst [vmem:[#allocation8 + $0x188] sm:$0xff] %v7810_v15  ;;  %v7812_v47 = vadd.f32 %v7698_v27, %v7578_v50  ;;  %v7643_v63 = vrot.slane %v11962_v59, 4  ;;  %v7365_v35 = vpop.f32.mrf.mxu1 }
 0x3d2   :  { %7865 = vst [vmem:[#allocation8 + $0xd0] sm:$0xff] %v7787_v37  ;;  %v7699_v53 = vsel %vm6515_vm3, %v7663_v12, %v7666_v57  ;;  %v7668_v23 = vrot.slane %v7365_v35, 4  ;;  %v11964_v42 = vpop.f32.mrf.mxu0  ;;  %v7562_v37 = vld [vmem:[#allocation8 + $0x118] sm:$0xff] }
 0x3d3   :  { %7890 = vst [vmem:[#allocation8 + $0x198] sm:$0xff] %v7812_v47  ;;  %v7813_v19 = vadd.f32 %v7699_v53, %v7579_v31  ;;  %v7724_v41 = vsel %vm6515_vm3, %v7640_v40, %v7643_v63  ;;  %v7367_v32 = vpop.f32.mrf.mxu1  ;;  %v11965_v1 = vadd.f32 %v11964_v42, %v11963_v29  ;;  %v7587_v47 = vld [vmem:[#allocation8 + $0x1e0] sm:$0xff] }
 0x3d4   :  { %v7790_v5 = vadd.f32 %v7724_v41, %v7556_v43  ;;  %v7695_v55 = vsel %vm6515_vm3, %v7665_v25, %v7668_v23  ;;  %v7669_v39 = vrot.slane %v7367_v32, 4  ;;  %v11966_v18 = vpop.f32.mrf.mxu0  ;;  %v15264_v25 = vld [vmem:[#allocation2 + $0xa0] ss:$8 sps:$4 sm:$0xff]  }
 0x3d5   :  { %9798 = vmatmul.mubr.bf16.gmra.mxu0 %v15164_v60  ;;  %7891 = vst [vmem:[#allocation8 + $0x1a0] sm:$0xff] %v7813_v19  ;;  %v7815_v0 = vadd.f32 %v7695_v55, %v7581_v6  ;;  %v7646_v30 = vrot.slane %v11965_v1, 4  ;;  %v7371_v52 = vpop.f32.mrf.mxu1  ;;  %v7559_v60 = vld [vmem:[#allocation8 + $0x100] sm:$0xff]  ;;  %v7588_v19 = vld [vmem:[#allocation8 + $0x1e8] sm:$0xff] }
 0x3d6   :  { %9685 = vmatmul.mubr.bf16.gmra.mxu1 %v15244_v7  ;;  %9805 = vmatprep.mubr.bf16.mxu0 %v15168_v48  ;;  %7868 = vst [vmem:[#allocation8 + $0xe8] sm:$0xff] %v7790_v5  ;;  %v7696_v9 = vsel %vm6515_vm3, %v7666_v57, %v7669_v39  ;;  %v7671_v11 = vrot.slane %v7371_v52, 4  ;;  %v11967_v33 = vpop.f32.mrf.mxu0 }
 0x3d7   :  { %9694 = vmatprep.mubr.bf16.mxu1 %v15248_v54  ;;  %7893 = vst [vmem:[#allocation8 + $0x1b0] sm:$0xff] %v7815_v0  ;;  %v7816_v8 = vadd.f32 %v7696_v9, %v7582_v20  ;;  %v7721_v16 = vsel %vm6515_vm3, %v7643_v63, %v7646_v30  ;;  %v7373_v38 = vpop.f32.mrf.mxu1  ;;  %v11968_v4 = vadd.f32 %v11967_v33, %v11966_v18  ;;  %v7590_v18 = vld [vmem:[#allocation8 + $0x1f8] sm:$0xff]  ;;  %v7591_v33 = vld [vmem:[#allocation8 + $0x200] sm:$0xff] }
 0x3d8   :  { %v7793_v12 = vadd.f32 %v7721_v16, %v7559_v60  ;;  %v7692_v48 = vsel %vm6515_vm3, %v7668_v23, %v7671_v11  ;;  %v7672_v51 = vrot.slane %v7373_v38, 4  ;;  %v11969_v40 = vpop.f32.mrf.mxu0  ;;  %v15288_v38 = vld [vmem:[#allocation2 + $0xc4] ss:$8 sps:$4 sm:$0xff]  }
 0x3d9   :  { %7894 = vst [vmem:[#allocation8 + $0x1b8] sm:$0xff] %v7816_v8  ;;  %v7818_v10 = vadd.f32 %v7692_v48, %v7584_v61  ;;  %v7649_v24 = vrot.slane %v11968_v4, 4  ;;  %v7375_v3 = vpop.f32.mrf.mxu1 }
 0x3da   :  { %7871 = vst [vmem:[#allocation8 + $0x100] sm:$0xff] %v7793_v12  ;;  %v7693_v15 = vsel %vm6515_vm3, %v7669_v39, %v7672_v51  ;;  %v7674_v28 = vrot.slane %v7375_v3, 4  ;;  %v11970_v45 = vpop.f32.mrf.mxu0  ;;  %v7568_v12 = vld [vmem:[#allocation8 + $0x148] sm:$0xff] }
 0x3db   :  { %7896 = vst [vmem:[#allocation8 + $0x1c8] sm:$0xff] %v7818_v10  ;;  %v7819_v59 = vadd.f32 %v7693_v15, %v7585_v21  ;;  %v7718_v50 = vsel %vm6515_vm3, %v7646_v30, %v7649_v24  ;;  %v7377_v27 = vpop.f32.mrf.mxu1  ;;  %v11971_v57 = vadd.f32 %v11970_v45, %v11969_v40  ;;  %v7593_v10 = vld [vmem:[#allocation8 + $0x210] sm:$0xff] }
 0x3dc   :  { %v7796_v29 = vadd.f32 %v7718_v50, %v7562_v37  ;;  %v7689_v63 = vsel %vm6515_vm3, %v7671_v11, %v7674_v28  ;;  %v7675_v35 = vrot.slane %v7377_v27, 4  ;;  %v11972_v31 = vpop.f32.mrf.mxu0  ;;  %v15284_v11 = vld [vmem:[#allocation2 + $0xb0] ss:$8 sps:$4 sm:$0xff]  }
 0x3dd   :  { %9806 = vmatmul.mubr.bf16.gmra.mxu0 %v15184_v13  ;;  %7897 = vst [vmem:[#allocation8 + $0x1d0] sm:$0xff] %v7819_v59  ;;  %v7821_v53 = vadd.f32 %v7689_v63, %v7587_v47  ;;  %v7652_v23 = vrot.slane %v11971_v57, 4  ;;  %v7381_v42 = vpop.f32.mrf.mxu1  ;;  %v7565_v13 = vld [vmem:[#allocation8 + $0x130] sm:$0xff]  ;;  %v7594_v27 = vld [vmem:[#allocation8 + $0x218] sm:$0xff]  ;;  %v7571_v63 = vld [vmem:[#allocation8 + $0x160] sm:$0xff] }
 0x3de   :  { %9695 = vmatmul.mubr.bf16.gmra.mxu1 %v15264_v25  ;;  %9813 = vmatprep.mubr.bf16.mxu0 %v15188_v34  ;;  %7874 = vst [vmem:[#allocation8 + $0x118] sm:$0xff] %v7796_v29  ;;  %v7690_v43 = vsel %vm6515_vm3, %v7672_v51, %v7675_v35  ;;  %v7677_v41 = vrot.slane %v7381_v42, 4  ;;  %v11973_v32 = vpop.f32.mrf.mxu0  ;;  %v15315_v42 = vld [vmem:[#allocation2 + $0xc0] ss:$8 sps:$4 sm:$0xff]  }
 0x3df   :  { %9704 = vmatprep.mubr.bf16.mxu1 %v15268_v46  ;;  %7899 = vst [vmem:[#allocation8 + $0x1e0] sm:$0xff] %v7821_v53  ;;  %v7822_v1 = vadd.f32 %v7690_v43, %v7588_v19  ;;  %v7715_v5 = vsel %vm6515_vm3, %v7649_v24, %v7652_v23  ;;  %v7383_v6 = vpop.f32.mrf.mxu1  ;;  %v11974_v55 = vadd.f32 %v11973_v32, %v11972_v31  ;;  %v7596_v24 = vld [vmem:[#allocation8 + $0x228] sm:$0xff]  ;;  %v7574_v32 = vld [vmem:[#allocation8 + $0x178] sm:$0xff] }
 0x3e0   :  { %v7799_v39 = vadd.f32 %v7715_v5, %v7565_v13  ;;  %v7686_v34 = vsel %vm6515_vm3, %v7674_v28, %v7677_v41  ;;  %v7678_v0 = vrot.slane %v7383_v6, 4  ;;  %v11975_v30 = vpop.f32.mrf.mxu0 }
 0x3e1   :  { %7900 = vst [vmem:[#allocation8 + $0x1e8] sm:$0xff] %v7822_v1  ;;  %v7824_v52 = vadd.f32 %v7686_v34, %v7590_v18  ;;  %v7655_v20 = vrot.slane %v11974_v55, 4  ;;  %v7385_v9 = vpop.f32.mrf.mxu1 }
 0x3e2   :  { %7877 = vst [vmem:[#allocation8 + $0x130] sm:$0xff] %v7799_v39  ;;  %v7687_v8 = vsel %vm6515_vm3, %v7675_v35, %v7678_v0  ;;  %v7680_v60 = vrot.slane %v7385_v9, 4  ;;  %v11976_v16 = vpop.f32.mrf.mxu0  ;;  %v8766_v39 = vld [vmem:[#allocation8 + $0x240] sm:$0xff]  ;;  %v8767_v9 = vld [vmem:[#allocation8 + $0x248] sm:$0xff] }
 0x3e3   :  { %7902 = vst [vmem:[#allocation8 + $0x1f8] sm:$0xff] %v7824_v52  ;;  %v7825_v4 = vadd.f32 %v7687_v8, %v7591_v33  ;;  %v7712_v61 = vsel %vm6515_vm3, %v7652_v23, %v7655_v20  ;;  %v7387_v48 = vpop.f32.mrf.mxu1  ;;  %v11977_v51 = vadd.f32 %v11976_v16, %v11975_v30 }
 0x3e4   :  { %v7802_v40 = vadd.f32 %v7712_v61, %v7568_v12  ;;  %v7683_v3 = vsel %vm6515_vm3, %v7677_v41, %v7680_v60  ;;  %v7758_v21 = vsel %vm6515_vm3, %v7680_v60, %v7605_v62  ;;  %v7681_v15 = vrot.slane %v7387_v48, 4  ;;  %v11978_v28 = vpop.f32.mrf.mxu0  ;;  %v8769_v48 = vld [vmem:[#allocation8 + $0x258] sm:$0xff] }
 0x3e5   :  { %9814 = vmatmul.mubr.bf16.gmra.mxu0 %v15204_v2  ;;  %7903 = vst [vmem:[#allocation8 + $0x200] sm:$0xff] %v7825_v4  ;;  %v7827_v45 = vadd.f32 %v7683_v3, %v7593_v10  ;;  %v7830_v59 = vadd.f32 %v7758_v21, %v7596_v24  ;;  %v7658_v37 = vrot.slane %v11977_v51, 4  ;;  %v15299_v50 = vpop.f32.mrf.mxu1 }
 0x3e6   :  { %9705 = vmatmul.mubr.bf16.gmra.mxu1 %v15284_v11  ;;  %9821 = vmatprep.mubr.bf16.mxu0 %v15208_v26  ;;  %7880 = vst [vmem:[#allocation8 + $0x148] sm:$0xff] %v7802_v40  ;;  %v7684_v62 = vsel %vm6515_vm3, %v7678_v0, %v7681_v15  ;;  %v7759_v2 = vsel %vm6515_vm3, %v7681_v15, %v7606_v44  ;;  %v11979_v57 = vpop.f32.mrf.mxu0  ;;  %v8772_v19 = vrot.slane %v15299_v50, 5 }
 0x3e7   :  { %9714 = vmatprep.mubr.bf16.mxu1 %v15288_v38  ;;  %7905 = vst [vmem:[#allocation8 + $0x210] sm:$0xff] %v7827_v45  ;;  %7908 = vst [vmem:[#allocation8 + $0x228] sm:$0xff] %v7830_v59  ;;  %v7828_v29 = vadd.f32 %v7684_v62, %v7594_v27  ;;  %v7831_v47 = vadd.f32 %v7759_v2, %v7597_v36  ;;  %v7709_v26 = vsel %vm6515_vm3, %v7655_v20, %v7658_v37  ;;  %v15312_v31 = vpop.f32.mrf.mxu1  ;;  %v7580_v59 = vld [vmem:[#allocation8 + $0x1a8] sm:$0xff] }
 0x3e8   :  { %v11980_v35 = vadd.f32 %v11979_v57, %v11978_v28  ;;  %v7805_v53 = vadd.f32 %v7709_v26, %v7571_v63  ;;  %v11981_v23 = vpop.f32.mrf.mxu0  ;;  %v8773_v55 = vrot.slane %v15312_v31, 5  ;;  %v8694_v57 = vld [vmem:[#allocation8] sm:$0xff]  ;;  %v15505_v31 = vld [vmem:[#allocation7] sm:$0x7] }
 0x3e9   :  { %7906 = vst [vmem:[#allocation8 + $0x218] sm:$0xff] %v7828_v29  ;;  %7909 = vst [vmem:[#allocation8 + $0x230] sm:$0xff] %v7831_v47  ;;  %v8432_v44 = vpop.f32.mrf.mxu1 }
 0x3ea   :  { %v7661_v17 = vrot.slane %v11980_v35, 4  ;;  %7883 = vst [vmem:[#allocation8 + $0x160] sm:$0xff] %v7805_v53  ;;  %v8775_v43 = vrot.slane %v8432_v44, 5  ;;  %v11982_v41 = vpop.f32.mrf.mxu0 }
 0x3eb   :  { %v11983_v13 = vadd.f32 %v11982_v41, %v11981_v23  ;;  %v8434_v5 = vpop.f32.mrf.mxu1  ;;  %v8695_v23 = vld [vmem:[#allocation8 + $0x8] sm:$0xff]  ;;  %v7583_v41 = vld [vmem:[#allocation8 + $0x1c0] sm:$0xff] }
 0x3ec   :  { %v7706_v1 = vsel %vm6515_vm3, %v7658_v37, %v7661_v17  ;;  %v8923_v18 = vsel %vm8850_vm4, %v8772_v19, %v8775_v43  ;;  %v8776_v34 = vrot.slane %v8434_v5, 5  ;;  %v11984_v0 = vpop.f32.mrf.mxu0  ;;  %v8697_v5 = vld [vmem:[#allocation8 + $0x18] sm:$0xff] }
 0x3ed   :  { %v7808_v6 = vadd.f32 %v7706_v1, %v7574_v32  ;;  %9822 = vmatmul.mubr.bf16.gmra.mxu0 %v15224_v58  ;;  %v9001_v30 = vadd.f32 %v8923_v18, %v8766_v39  ;;  %v7664_v52 = vrot.slane %v11983_v13, 4  ;;  %v8438_v20 = vpop.f32.mrf.mxu1  ;;  %v7577_v58 = vld [vmem:[#allocation8 + $0x190] sm:$0xff] }
 0x3ee   :  { %9715 = vmatmul.mubr.bf16.gmra.mxu1 %v15315_v42  ;;  %9829 = vmatprep.mubr.bf16.mxu0 %v15228_v22  ;;  %v8924_v33 = vsel %vm8850_vm4, %v8773_v55, %v8776_v34  ;;  %v8778_v8 = vrot.slane %v8438_v20, 5  ;;  %v11985_v60 = vpop.f32.mrf.mxu0 }
 0x3ef   :  { %7886 = vst [vmem:[#allocation8 + $0x178] sm:$0xff] %v7808_v6  ;;  %9845 = vmatprep.mubr.bf16.mxu1 %v15268_v46  ;;  %9079 = vst [vmem:[#allocation8 + $0x240] sm:$0xff] %v9001_v30  ;;  %v7703_v16 = vsel %vm6515_vm3, %v7661_v17, %v7664_v52  ;;  %v9002_v4 = vadd.f32 %v8924_v33, %v8767_v9  ;;  %v11986_v12 = vadd.f32 %v11985_v60, %v11984_v0  ;;  %v8440_v61 = vpop.f32.mrf.mxu1  ;;  %v8770_v46 = vld [vmem:[#allocation8 + $0x260] sm:$0xff]  ;;  %v7586_v9 = vld [vmem:[#allocation8 + $0x1d8] sm:$0xff] }
 0x3f0   :  { %v7811_v22 = vadd.f32 %v7703_v16, %v7577_v58  ;;  %v8920_v51 = vsel %vm8850_vm4, %v8775_v43, %v8778_v8  ;;  %v8779_v40 = vrot.slane %v8440_v61, 5  ;;  %v11987_v10 = vpop.f32.mrf.mxu0 }
 0x3f1   :  { %9080 = vst [vmem:[#allocation8 + $0x248] sm:$0xff] %v9002_v4  ;;  %v9004_v24 = vadd.f32 %v8920_v51, %v8769_v48  ;;  %v7667_v3 = vrot.slane %v11986_v12, 4  ;;  %v8442_v21 = vpop.f32.mrf.mxu1  ;;  %v8700_v4 = vld [vmem:[#allocation8 + $0x30] sm:$0xff] }
 0x3f2   :  { %7889 = vst [vmem:[#allocation8 + $0x190] sm:$0xff] %v7811_v22  ;;  %v8921_v15 = vsel %vm8850_vm4, %v8776_v34, %v8779_v40  ;;  %v8781_v28 = vrot.slane %v8442_v21, 5  ;;  %v11988_v45 = vpop.f32.mrf.mxu0 }
 0x3f3   :  { %9082 = vst [vmem:[#allocation8 + $0x258] sm:$0xff] %v9004_v24  ;;  %v7700_v37 = vsel %vm6515_vm3, %v7664_v52, %v7667_v3  ;;  %v9005_v27 = vadd.f32 %v8921_v15, %v8770_v46  ;;  %v11989_v36 = vadd.f32 %v11988_v45, %v11987_v10  ;;  %v8444_v62 = vpop.f32.mrf.mxu1  ;;  %v8701_v10 = vld [vmem:[#allocation8 + $0x38] sm:$0xff]  ;;  %v7589_v46 = vld [vmem:[#allocation8 + $0x1f0] sm:$0xff] }
 0x3f4   :  { %v7814_v2 = vadd.f32 %v7700_v37, %v7580_v59  ;;  %v8917_v29 = vsel %vm8850_vm4, %v8778_v8, %v8781_v28  ;;  %v8782_v47 = vrot.slane %v8444_v62, 5  ;;  %v11990_v63 = vpop.f32.mrf.mxu0  ;;  %v8703_v37 = vld [vmem:[#allocation8 + $0x48] sm:$0xff] }
 0x3f5   :  { %9830 = vmatmul.mubr.bf16.gmra.mxu0 %v15244_v7  ;;  %9083 = vst [vmem:[#allocation8 + $0x260] sm:$0xff] %v9005_v27  ;;  %v8929_v26 = vadd.f32 %v8917_v29, %v8694_v57  ;;  %v7670_v35 = vrot.slane %v11989_v36, 4  ;;  %v8448_v53 = vpop.f32.mrf.mxu1  ;;  %v8704_v29 = vld [vmem:[#allocation8 + $0x50] sm:$0xff] }
 0x3f6   :  { %9846 = vmatmul.mubr.bf16.vlgmr.msra.gmra.mxu1 %v15284_v11  ;;  %9837 = vmatprep.mubr.bf16.mxu0 %v15248_v54  ;;  %7892 = vst [vmem:[#allocation8 + $0x1a8] sm:$0xff] %v7814_v2  ;;  %v8918_v17 = vsel %vm8850_vm4, %v8779_v40, %v8782_v47  ;;  %v8784_v44 = vrot.slane %v8448_v53, 5  ;;  %v11991_v43 = vpop.f32.mrf.mxu0 }
 0x3f7   :  { %9853 = vmatprep.mubr.bf16.mxu1 %v15288_v38  ;;  %9007 = vst [vmem:[#allocation8] sm:$0xff] %v8929_v26  ;;  %v7697_v7 = vsel %vm6515_vm3, %v7667_v3, %v7670_v35  ;;  %v8930_v32 = vadd.f32 %v8918_v17, %v8695_v23  ;;  %v11992_v1 = vadd.f32 %v11991_v43, %v11990_v63  ;;  %v8450_v13 = vpop.f32.mrf.mxu1  ;;  %v8698_v38 = vld [vmem:[#allocation8 + $0x20] sm:$0xff] }
 0x3f8   :  { %v7817_v11 = vadd.f32 %v7697_v7, %v7583_v41  ;;  %v8914_v54 = vsel %vm8850_vm4, %v8781_v28, %v8784_v44  ;;  %v8785_v6 = vrot.slane %v8450_v13, 5  ;;  %v11993_v39 = vpop.f32.mrf.mxu0  ;;  %v8706_v41 = vld [vmem:[#allocation8 + $0x60] sm:$0xff] }
 0x3f9   :  { %9008 = vst [vmem:[#allocation8 + $0x8] sm:$0xff] %v8930_v32  ;;  %v8932_v18 = vadd.f32 %v8914_v54, %v8697_v5  ;;  %v7673_v34 = vrot.slane %v11992_v1, 4  ;;  %v8452_v0 = vpop.f32.mrf.mxu1  ;;  %v8707_v54 = vld [vmem:[#allocation8 + $0x68] sm:$0xff] }
 0x3fa   :  { %7895 = vst [vmem:[#allocation8 + $0x1c0] sm:$0xff] %v7817_v11  ;;  %v8915_v30 = vsel %vm8850_vm4, %v8782_v47, %v8785_v6  ;;  %v8787_v52 = vrot.slane %v8452_v0, 5  ;;  %v11994_v20 = vpop.f32.mrf.mxu0  ;;  %v7598_v0 = vld [vmem:[#allocation8 + $0x238] sm:$0xff] }
 0x3fb   :  { %9010 = vst [vmem:[#allocation8 + $0x18] sm:$0xff] %v8932_v18  ;;  %v7694_v33 = vsel %vm6515_vm3, %v7670_v35, %v7673_v34  ;;  %v8933_v8 = vadd.f32 %v8915_v30, %v8698_v38  ;;  %v11995_v60 = vadd.f32 %v11994_v20, %v11993_v39  ;;  %v8454_v58 = vpop.f32.mrf.mxu1  ;;  %v7592_v35 = vld [vmem:[#allocation8 + $0x208] sm:$0xff] }
 0x3fc   :  { %v7820_v16 = vadd.f32 %v7694_v33, %v7586_v9  ;;  %v8911_v12 = vsel %vm8850_vm4, %v8784_v44, %v8787_v52  ;;  %v8788_v61 = vrot.slane %v8454_v58, 5  ;;  %v11996_v22 = vpop.f32.mrf.mxu0 }
 0x3fd   :  { %9838 = vmatmul.mubr.bf16.gmra.mxu0 %v15264_v25  ;;  %9011 = vst [vmem:[#allocation8 + $0x20] sm:$0xff] %v8933_v8  ;;  %v8935_v48 = vadd.f32 %v8911_v12, %v8700_v4  ;;  %v7676_v51 = vrot.slane %v11995_v60, 4  ;;  %v8458_v40 = vpop.f32.mrf.mxu1  ;;  %v8709_v8 = vld [vmem:[#allocation8 + $0x78] sm:$0xff] }
 0x3fe   :  { %9854 = vmatmul.mubr.bf16.gmra.mxu1 %v15315_v42  ;;  %7898 = vst [vmem:[#allocation8 + $0x1d8] sm:$0xff] %v7820_v16  ;;  %v8912_v24 = vsel %vm8850_vm4, %v8785_v6, %v8788_v61  ;;  %v8790_v3 = vrot.slane %v8458_v40, 5  ;;  %v11997_v21 = vpop.f32.mrf.mxu0 }
 0x3ff   :  { %9013 = vst [vmem:[#allocation8 + $0x30] sm:$0xff] %v8935_v48  ;;  %v7691_v15 = vsel %vm6515_vm3, %v7673_v34, %v7676_v51  ;;  %v8936_v28 = vadd.f32 %v8912_v24, %v8701_v10  ;;  %v11998_v25 = vadd.f32 %v11997_v21, %v11996_v22  ;;  %v8460_v45 = vpop.f32.mrf.mxu1  ;;  %v7595_v34 = vld [vmem:[#allocation8 + $0x220] sm:$0xff]  ;;  %v8712_v24 = vld [vmem:[#allocation8 + $0x90] sm:$0xff] }
 0x400   :  { %v7823_v59 = vadd.f32 %v7691_v15, %v7589_v46  ;;  %v8908_v42 = vsel %vm8850_vm4, %v8787_v52, %v8790_v3  ;;  %v8791_v27 = vrot.slane %v8460_v45, 5  ;;  %v11999_v36 = vpop.f32.mrf.mxu0 }
 0x401   :  { %9014 = vst [vmem:[#allocation8 + $0x38] sm:$0xff] %v8936_v28  ;;  %v8938_v62 = vadd.f32 %v8908_v42, %v8703_v37  ;;  %v7679_v2 = vrot.slane %v11998_v25, 4  ;;  %v8462_v57 = vpop.f32.mrf.mxu1 }
 0x402   :  { %7901 = vst [vmem:[#allocation8 + $0x1f0] sm:$0xff] %v7823_v59  ;;  %v8909_v47 = vsel %vm8850_vm4, %v8788_v61, %v8791_v27  ;;  %v8793_v63 = vrot.slane %v8462_v57, 5  ;;  %v12000_v26 = vpop.f32.mrf.mxu0  ;;  %v8713_v59 = vld [vmem:[#allocation8 + $0x98] sm:$0xff] }
 0x403   :  { %9016 = vst [vmem:[#allocation8 + $0x48] sm:$0xff] %v8938_v62  ;;  %v7688_v53 = vsel %vm6515_vm3, %v7676_v51, %v7679_v2  ;;  %v8939_v23 = vadd.f32 %v8909_v47, %v8704_v29  ;;  %v12001_v17 = vadd.f32 %v12000_v26, %v11999_v36  ;;  %v8464_v44 = vpop.f32.mrf.mxu1  ;;  %v8768_v62 = vld [vmem:[#allocation8 + $0x250] sm:$0xff] }
 0x404   :  { %v7826_v43 = vadd.f32 %v7688_v53, %v7592_v35  ;;  %v8905_v7 = vsel %vm8850_vm4, %v8790_v3, %v8793_v63  ;;  %v8794_v32 = vrot.slane %v8464_v44, 5  ;;  %v12018_v1 = vpop.f32.mrf.mxu0 }
 0x405   :  { %9017 = vst [vmem:[#allocation8 + $0x50] sm:$0xff] %v8939_v23  ;;  %v8941_v13 = vadd.f32 %v8905_v7, %v8706_v41  ;;  %v7682_v11 = vrot.slane %v12001_v17, 4  ;;  %v8468_v5 = vpop.f32.mrf.mxu1 }
 0x406   :  { %7904 = vst [vmem:[#allocation8 + $0x208] sm:$0xff] %v7826_v43  ;;  %v8906_v6 = vsel %vm8850_vm4, %v8791_v27, %v8794_v32  ;;  %v8796_v39 = vrot.slane %v8468_v5, 5  ;;  %v12019_v18 = vpop.f32.mrf.mxu0  ;;  %v8716_v43 = vld [vmem:[#allocation8 + $0xb0] sm:$0xff] }
 0x407   :  { %9019 = vst [vmem:[#allocation8 + $0x60] sm:$0xff] %v8941_v13  ;;  %v7685_v38 = vsel %vm6515_vm3, %v7679_v2, %v7682_v11  ;;  %v7760_v30 = vsel %vm6515_vm3, %v7682_v11, %v7607_v49  ;;  %v8942_v52 = vadd.f32 %v8906_v6, %v8707_v54  ;;  %v8470_v20 = vpop.f32.mrf.mxu1  ;;  %v15383_v12 = vadd.f32 %v12019_v18, %v12018_v1  ;;  %v8771_v13 = vld [vmem:[#allocation8 + $0x268] sm:$0xff] }
 0x408   :  { %v7829_v9 = vadd.f32 %v7685_v38, %v7595_v34  ;;  %v7832_v33 = vadd.f32 %v7760_v30, %v7598_v0  ;;  %v8902_v60 = vsel %vm8850_vm4, %v8793_v63, %v8796_v39  ;;  %v8797_v58 = vrot.slane %v8470_v20, 5  ;;  %v12021_v16 = vpop.f32.mrf.mxu0  ;;  %v8715_v63 = vld [vmem:[#allocation8 + $0xa8] sm:$0xff] }
 0x409   :  { %9020 = vst [vmem:[#allocation8 + $0x68] sm:$0xff] %v8942_v52  ;;  %v8944_v4 = vadd.f32 %v8902_v60, %v8709_v8  ;;  %v8472_v61 = vpop.f32.mrf.mxu1  ;;  %v8774_v15 = vrot.slane %v15383_v12, 5  ;;  %v8719_v20 = vld [vmem:[#allocation8 + $0xc8] sm:$0xff] }
 0x40a   :  { %7907 = vst [vmem:[#allocation8 + $0x220] sm:$0xff] %v7829_v9  ;;  %7910 = vst [vmem:[#allocation8 + $0x238] sm:$0xff] %v7832_v33  ;;  %v8903_v49 = vsel %vm8850_vm4, %v8794_v32, %v8797_v58  ;;  %v8799_v22 = vrot.slane %v8472_v61, 5  ;;  %v12022_v48 = vpop.f32.mrf.mxu0 }
 0x40b   :  { %9022 = vst [vmem:[#allocation8 + $0x78] sm:$0xff] %v8944_v4  ;;  %v8945_v51 = vadd.f32 %v8903_v49, %v8710_v56  ;;  %v8474_v40 = vpop.f32.mrf.mxu1  ;;  %v12023_v10 = vadd.f32 %v12022_v48, %v12021_v16  ;;  %v8721_v49 = vld [vmem:[#allocation8 + $0xd8] sm:$0xff] }
 0x40c   :  { %v8899_v3 = vsel %vm8850_vm4, %v8796_v39, %v8799_v22  ;;  %v8800_v21 = vrot.slane %v8474_v40, 5  ;;  %v12024_v46 = vpop.f32.mrf.mxu0  ;;  %v8718_v39 = vld [vmem:[#allocation8 + $0xc0] sm:$0xff] }
 0x40d   :  { %9023 = vst [vmem:[#allocation8 + $0x80] sm:$0xff] %v8945_v51  ;;  %v8947_v28 = vadd.f32 %v8899_v3, %v8712_v24  ;;  %v8777_v25 = vrot.slane %v12023_v10, 5  ;;  %v8478_v45 = vpop.f32.mrf.mxu1  ;;  %v8722_v3 = vld [vmem:[#allocation8 + $0xe0] sm:$0xff] }
 0x40e   :  { %v8900_v37 = vsel %vm8850_vm4, %v8797_v58, %v8800_v21  ;;  %v8802_v42 = vrot.slane %v8478_v45, 5  ;;  %v12025_v27 = vpop.f32.mrf.mxu0  ;;  %v8696_v58 = vld [vmem:[#allocation8 + $0x10] sm:$0xff]  ;;  %v8699_v45 = vld [vmem:[#allocation8 + $0x28] sm:$0xff] }
 0x40f   :  { %9025 = vst [vmem:[#allocation8 + $0x90] sm:$0xff] %v8947_v28  ;;  %v8948_v36 = vadd.f32 %v8900_v37, %v8713_v59  ;;  %v8925_v2 = vsel %vm8850_vm4, %v8774_v15, %v8777_v25  ;;  %v8480_v57 = vpop.f32.mrf.mxu1  ;;  %v12026_v29 = vadd.f32 %v12025_v27, %v12024_v46 }
 0x410   :  { %v9003_v47 = vadd.f32 %v8925_v2, %v8768_v62  ;;  %v8896_v26 = vsel %vm8850_vm4, %v8799_v22, %v8802_v42  ;;  %v8803_v35 = vrot.slane %v8480_v57, 5  ;;  %v12027_v53 = vpop.f32.mrf.mxu0 }
 0x411   :  { %9026 = vst [vmem:[#allocation8 + $0x98] sm:$0xff] %v8948_v36  ;;  %v8950_v23 = vadd.f32 %v8896_v26, %v8715_v63  ;;  %v8780_v17 = vrot.slane %v12026_v29, 5  ;;  %v8482_v44 = vpop.f32.mrf.mxu1  ;;  %v8724_v36 = vld [vmem:[#allocation8 + $0xf0] sm:$0xff]  ;;  %v8725_v26 = vld [vmem:[#allocation8 + $0xf8] sm:$0xff] }
 0x412   :  { %9081 = vst [vmem:[#allocation8 + $0x250] sm:$0xff] %v9003_v47  ;;  %v8897_v41 = vsel %vm8850_vm4, %v8800_v21, %v8803_v35  ;;  %v8805_v7 = vrot.slane %v8482_v44, 5  ;;  %v12028_v32 = vpop.f32.mrf.mxu0  ;;  %v8702_v44 = vld [vmem:[#allocation8 + $0x40] sm:$0xff] }
 0x413   :  { %9028 = vst [vmem:[#allocation8 + $0xa8] sm:$0xff] %v8950_v23  ;;  %v8951_v1 = vadd.f32 %v8897_v41, %v8716_v43  ;;  %v8922_v11 = vsel %vm8850_vm4, %v8777_v25, %v8780_v17  ;;  %v8484_v5 = vpop.f32.mrf.mxu1  ;;  %v12029_v54 = vadd.f32 %v12028_v32, %v12027_v53 }
 0x414   :  { %v9006_v6 = vadd.f32 %v8922_v11, %v8771_v13  ;;  %v8893_v18 = vsel %vm8850_vm4, %v8802_v42, %v8805_v7  ;;  %v8806_v34 = vrot.slane %v8484_v5, 5  ;;  %v12030_v0 = vpop.f32.mrf.mxu0 }
 0x415   :  { %9029 = vst [vmem:[#allocation8 + $0xb0] sm:$0xff] %v8951_v1  ;;  %v8953_v38 = vadd.f32 %v8893_v18, %v8718_v39  ;;  %v8783_v30 = vrot.slane %v12029_v54, 5  ;;  %v8488_v52 = vpop.f32.mrf.mxu1  ;;  %v8727_v1 = vld [vmem:[#allocation8 + $0x108] sm:$0xff]  ;;  %v8728_v18 = vld [vmem:[#allocation8 + $0x110] sm:$0xff] }
 0x416   :  { %9084 = vst [vmem:[#allocation8 + $0x268] sm:$0xff] %v9006_v6  ;;  %v8894_v9 = vsel %vm8850_vm4, %v8803_v35, %v8806_v34  ;;  %v8808_v33 = vrot.slane %v8488_v52, 5  ;;  %v12031_v8 = vpop.f32.mrf.mxu0  ;;  %v8705_v52 = vld [vmem:[#allocation8 + $0x58] sm:$0xff] }
 0x417   :  { %9031 = vst [vmem:[#allocation8 + $0xc0] sm:$0xff] %v8953_v38  ;;  %v8954_v60 = vadd.f32 %v8894_v9, %v8719_v20  ;;  %v8919_v16 = vsel %vm8850_vm4, %v8780_v17, %v8783_v30  ;;  %v8490_v4 = vpop.f32.mrf.mxu1  ;;  %v12032_v61 = vadd.f32 %v12031_v8, %v12030_v0 }
 0x418   :  { %v8931_v56 = vadd.f32 %v8919_v16, %v8696_v58  ;;  %v8890_v22 = vsel %vm8850_vm4, %v8805_v7, %v8808_v33  ;;  %v8809_v48 = vrot.slane %v8490_v4, 5  ;;  %v12033_v51 = vpop.f32.mrf.mxu0 }
 0x419   :  { %9032 = vst [vmem:[#allocation8 + $0xc8] sm:$0xff] %v8954_v60  ;;  %v8956_v40 = vadd.f32 %v8890_v22, %v8721_v49  ;;  %v8786_v10 = vrot.slane %v12032_v61, 5  ;;  %v8492_v24 = vpop.f32.mrf.mxu1  ;;  %v8730_v60 = vld [vmem:[#allocation8 + $0x120] sm:$0xff]  ;;  %v8731_v22 = vld [vmem:[#allocation8 + $0x128] sm:$0xff] }
 0x41a   :  { %9009 = vst [vmem:[#allocation8 + $0x10] sm:$0xff] %v8931_v56  ;;  %v8891_v21 = vsel %vm8850_vm4, %v8806_v34, %v8809_v48  ;;  %v8811_v46 = vrot.slane %v8492_v24, 5  ;;  %v12034_v28 = vpop.f32.mrf.mxu0  ;;  %v8708_v24 = vld [vmem:[#allocation8 + $0x70] sm:$0xff] }
 0x41b   :  { %9034 = vst [vmem:[#allocation8 + $0xd8] sm:$0xff] %v8956_v40  ;;  %v8957_v25 = vadd.f32 %v8891_v21, %v8722_v3  ;;  %v8916_v59 = vsel %vm8850_vm4, %v8783_v30, %v8786_v10  ;;  %v8494_v37 = vpop.f32.mrf.mxu1  ;;  %v12035_v42 = vadd.f32 %v12034_v28, %v12033_v51 }
 0x41c   :  { %v8934_v27 = vadd.f32 %v8916_v59, %v8699_v45  ;;  %v8887_v62 = vsel %vm8850_vm4, %v8808_v33, %v8811_v46  ;;  %v8812_v2 = vrot.slane %v8494_v37, 5 }
 0x41d   :  { %v12036_v57 = vpop.f32.mrf.mxu0  ;;  %9035 = vst [vmem:[#allocation8 + $0xe0] sm:$0xff] %v8957_v25  ;;  %v8959_v29 = vadd.f32 %v8887_v62, %v8724_v36  ;;  %v8789_v47 = vrot.slane %v12035_v42, 5  ;;  %v8733_v25 = vld [vmem:[#allocation8 + $0x138] sm:$0xff]  ;;  %v8734_v62 = vld [vmem:[#allocation8 + $0x140] sm:$0xff] }
 0x41e   :  { %v8498_v63 = vpop.f32.mrf.mxu1  ;;  %9012 = vst [vmem:[#allocation8 + $0x28] sm:$0xff] %v8934_v27  ;;  %v8888_v35 = vsel %vm8850_vm4, %v8809_v48, %v8812_v2 }
 0x41f   :  { %v8814_v53 = vrot.slane %v8498_v63, 5  ;;  %v12037_v23 = vpop.f32.mrf.mxu0  ;;  %9037 = vst [vmem:[#allocation8 + $0xf0] sm:$0xff] %v8959_v29  ;;  %v8960_v17 = vadd.f32 %v8888_v35, %v8725_v26  ;;  %v8913_v43 = vsel %vm8850_vm4, %v8786_v10, %v8789_v47  ;;  %v8711_v63 = vld [vmem:[#allocation8 + $0x88] sm:$0xff] }
 0x420   :  { %v8500_v41 = vpop.f32.mrf.mxu1  ;;  %v12038_v7 = vadd.f32 %v12037_v23, %v12036_v57  ;;  %v8937_v32 = vadd.f32 %v8913_v43, %v8702_v44 }
 0x421   :  { %v8884_v13 = vsel %vm8850_vm4, %v8811_v46, %v8814_v53  ;;  %v8815_v11 = vrot.slane %v8500_v41, 5  ;;  %v12039_v5 = vpop.f32.mrf.mxu0  ;;  %9038 = vst [vmem:[#allocation8 + $0xf8] sm:$0xff] %v8960_v17  ;;  %v8736_v17 = vld [vmem:[#allocation8 + $0x150] sm:$0xff] }
 0x422   :  { %v8962_v54 = vadd.f32 %v8884_v13, %v8727_v1  ;;  %v8792_v6 = vrot.slane %v12038_v7, 5  ;;  %v8502_v39 = vpop.f32.mrf.mxu1  ;;  %9015 = vst [vmem:[#allocation8 + $0x40] sm:$0xff] %v8937_v32  ;;  %v8737_v13 = vld [vmem:[#allocation8 + $0x158] sm:$0xff] }
 0x423   :  { %v8885_v34 = vsel %vm8850_vm4, %v8812_v2, %v8815_v11  ;;  %v8817_v0 = vrot.slane %v8502_v39, 5  ;;  %v12040_v38 = vpop.f32.mrf.mxu0  ;;  %v8714_v39 = vld [vmem:[#allocation8 + $0xa0] sm:$0xff] }
 0x424   :  { %9040 = vst [vmem:[#allocation8 + $0x108] sm:$0xff] %v8962_v54  ;;  %v8963_v30 = vadd.f32 %v8885_v34, %v8728_v18  ;;  %v8910_v20 = vsel %vm8850_vm4, %v8789_v47, %v8792_v6  ;;  %v8504_v9 = vpop.f32.mrf.mxu1  ;;  %v12041_v33 = vadd.f32 %v12040_v38, %v12039_v5 }
 0x425   :  { %v8940_v8 = vadd.f32 %v8910_v20, %v8705_v52  ;;  %v8881_v58 = vsel %vm8850_vm4, %v8814_v53, %v8817_v0  ;;  %v8818_v16 = vrot.slane %v8504_v9, 5  ;;  %v12042_v4 = vpop.f32.mrf.mxu0 }
 0x426   :  { %9041 = vst [vmem:[#allocation8 + $0x110] sm:$0xff] %v8963_v30  ;;  %v8965_v61 = vadd.f32 %v8881_v58, %v8730_v60  ;;  %v8795_v56 = vrot.slane %v12041_v33, 5  ;;  %v8508_v49 = vpop.f32.mrf.mxu1  ;;  %v8739_v30 = vld [vmem:[#allocation8 + $0x168] sm:$0xff]  ;;  %v8740_v58 = vld [vmem:[#allocation8 + $0x170] sm:$0xff] }
 0x427   :  { %9018 = vst [vmem:[#allocation8 + $0x58] sm:$0xff] %v8940_v8  ;;  %v8882_v48 = vsel %vm8850_vm4, %v8815_v11, %v8818_v16  ;;  %v8820_v51 = vrot.slane %v8508_v49, 5  ;;  %v12043_v40 = vpop.f32.mrf.mxu0  ;;  %v8717_v49 = vld [vmem:[#allocation8 + $0xb8] sm:$0xff] }
 0x428   :  { %9043 = vst [vmem:[#allocation8 + $0x120] sm:$0xff] %v8965_v61  ;;  %v8966_v10 = vadd.f32 %v8882_v48, %v8731_v22  ;;  %v8907_v3 = vsel %vm8850_vm4, %v8792_v6, %v8795_v56  ;;  %v8510_v21 = vpop.f32.mrf.mxu1  ;;  %v12044_v46 = vadd.f32 %v12043_v40, %v12042_v4 }
 0x429   :  { %v8943_v28 = vadd.f32 %v8907_v3, %v8708_v24  ;;  %v8878_v45 = vsel %vm8850_vm4, %v8817_v0, %v8820_v51  ;;  %v8821_v59 = vrot.slane %v8510_v21, 5  ;;  %v12045_v37 = vpop.f32.mrf.mxu0 }
 0x42a   :  { %9044 = vst [vmem:[#allocation8 + $0x128] sm:$0xff] %v8966_v10  ;;  %v8968_v42 = vadd.f32 %v8878_v45, %v8733_v25  ;;  %v8798_v27 = vrot.slane %v12044_v46, 5  ;;  %v8512_v36 = vpop.f32.mrf.mxu1  ;;  %v8742_v10 = vld [vmem:[#allocation8 + $0x180] sm:$0xff]  ;;  %v8743_v45 = vld [vmem:[#allocation8 + $0x188] sm:$0xff] }
 0x42b   :  { %9021 = vst [vmem:[#allocation8 + $0x70] sm:$0xff] %v8943_v28  ;;  %v8879_v2 = vsel %vm8850_vm4, %v8818_v16, %v8821_v59  ;;  %v8823_v57 = vrot.slane %v8512_v36, 5  ;;  %v12046_v29 = vpop.f32.mrf.mxu0  ;;  %v8720_v36 = vld [vmem:[#allocation8 + $0xd0] sm:$0xff] }
 0x42c   :  { %9046 = vst [vmem:[#allocation8 + $0x138] sm:$0xff] %v8968_v42  ;;  %v8969_v47 = vadd.f32 %v8879_v2, %v8734_v62  ;;  %v8904_v26 = vsel %vm8850_vm4, %v8795_v56, %v8798_v27  ;;  %v8514_v35 = vpop.f32.mrf.mxu1  ;;  %v12047_v53 = vadd.f32 %v12046_v29, %v12045_v37 }
 0x42d   :  { %v8946_v23 = vadd.f32 %v8904_v26, %v8711_v63  ;;  %v8875_v44 = vsel %vm8850_vm4, %v8820_v51, %v8823_v57  ;;  %v8824_v43 = vrot.slane %v8514_v35, 5  ;;  %v12048_v41 = vpop.f32.mrf.mxu0 }
 0x42e   :  { %9047 = vst [vmem:[#allocation8 + $0x140] sm:$0xff] %v8969_v47  ;;  %v8971_v7 = vadd.f32 %v8875_v44, %v8736_v17  ;;  %v8801_v32 = vrot.slane %v12047_v53, 5  ;;  %v8518_v1 = vpop.f32.mrf.mxu1  ;;  %v8745_v47 = vld [vmem:[#allocation8 + $0x198] sm:$0xff]  ;;  %v8746_v44 = vld [vmem:[#allocation8 + $0x1a0] sm:$0xff] }
 0x42f   :  { %9024 = vst [vmem:[#allocation8 + $0x88] sm:$0xff] %v8946_v23  ;;  %v8876_v11 = vsel %vm8850_vm4, %v8821_v59, %v8824_v43  ;;  %v8826_v5 = vrot.slane %v8518_v1, 5  ;;  %v12049_v54 = vpop.f32.mrf.mxu0  ;;  %v8723_v1 = vld [vmem:[#allocation8 + $0xe8] sm:$0xff] }
 0x430   :  { %9049 = vst [vmem:[#allocation8 + $0x150] sm:$0xff] %v8971_v7  ;;  %v8972_v6 = vadd.f32 %v8876_v11, %v8737_v13  ;;  %v8901_v18 = vsel %vm8850_vm4, %v8798_v27, %v8801_v32  ;;  %v8520_v34 = vpop.f32.mrf.mxu1  ;;  %v12050_v0 = vadd.f32 %v12049_v54, %v12048_v41 }
 0x431   :  { %v8949_v38 = vadd.f32 %v8901_v18, %v8714_v39  ;;  %v8872_v52 = vsel %vm8850_vm4, %v8823_v57, %v8826_v5  ;;  %v8827_v20 = vrot.slane %v8520_v34, 5  ;;  %v12051_v9 = vpop.f32.mrf.mxu0 }
 0x432   :  { %9050 = vst [vmem:[#allocation8 + $0x158] sm:$0xff] %v8972_v6  ;;  %v8974_v33 = vadd.f32 %v8872_v52, %v8739_v30  ;;  %v8804_v8 = vrot.slane %v12050_v0, 5  ;;  %v8522_v60 = vpop.f32.mrf.mxu1  ;;  %v8748_v6 = vld [vmem:[#allocation8 + $0x1b0] sm:$0xff]  ;;  %v8749_v52 = vld [vmem:[#allocation8 + $0x1b8] sm:$0xff] }
 0x433   :  { %9027 = vst [vmem:[#allocation8 + $0xa0] sm:$0xff] %v8949_v38  ;;  %v8873_v16 = vsel %vm8850_vm4, %v8824_v43, %v8827_v20  ;;  %v8829_v4 = vrot.slane %v8522_v60, 5  ;;  %v12052_v61 = vpop.f32.mrf.mxu0  ;;  %v8726_v60 = vld [vmem:[#allocation8 + $0x100] sm:$0xff] }
 0x434   :  { %9052 = vst [vmem:[#allocation8 + $0x168] sm:$0xff] %v8974_v33  ;;  %v8975_v56 = vadd.f32 %v8873_v16, %v8740_v58  ;;  %v8898_v22 = vsel %vm8850_vm4, %v8801_v32, %v8804_v8  ;;  %v8524_v48 = vpop.f32.mrf.mxu1  ;;  %v12053_v51 = vadd.f32 %v12052_v61, %v12051_v9 }
 0x435   :  { %v8952_v40 = vadd.f32 %v8898_v22, %v8717_v49  ;;  %v8869_v24 = vsel %vm8850_vm4, %v8826_v5, %v8829_v4  ;;  %v8830_v3 = vrot.slane %v8524_v48, 5  ;;  %v12054_v21 = vpop.f32.mrf.mxu0 }
 0x436   :  { %9053 = vst [vmem:[#allocation8 + $0x170] sm:$0xff] %v8975_v56  ;;  %v8977_v46 = vadd.f32 %v8869_v24, %v8742_v10  ;;  %v8807_v28 = vrot.slane %v12053_v51, 5  ;;  %v8528_v25 = vpop.f32.mrf.mxu1  ;;  %v8751_v56 = vld [vmem:[#allocation8 + $0x1c8] sm:$0xff]  ;;  %v8752_v24 = vld [vmem:[#allocation8 + $0x1d0] sm:$0xff] }
 0x437   :  { %9030 = vst [vmem:[#allocation8 + $0xb8] sm:$0xff] %v8952_v40  ;;  %v8870_v59 = vsel %vm8850_vm4, %v8827_v20, %v8830_v3  ;;  %v8832_v37 = vrot.slane %v8528_v25, 5  ;;  %v12055_v42 = vpop.f32.mrf.mxu0  ;;  %v8729_v25 = vld [vmem:[#allocation8 + $0x118] sm:$0xff] }
 0x438   :  { %9055 = vst [vmem:[#allocation8 + $0x180] sm:$0xff] %v8977_v46  ;;  %v8978_v27 = vadd.f32 %v8870_v59, %v8743_v45  ;;  %v8895_v62 = vsel %vm8850_vm4, %v8804_v8, %v8807_v28  ;;  %v8530_v2 = vpop.f32.mrf.mxu1  ;;  %v12056_v57 = vadd.f32 %v12055_v42, %v12054_v21 }
 0x439   :  { %v8955_v29 = vadd.f32 %v8895_v62, %v8720_v36  ;;  %v8866_v63 = vsel %vm8850_vm4, %v8829_v4, %v8832_v37  ;;  %v8833_v26 = vrot.slane %v8530_v2, 5  ;;  %v12057_v35 = vpop.f32.mrf.mxu0 }
 0x43a   :  { %9056 = vst [vmem:[#allocation8 + $0x188] sm:$0xff] %v8978_v27  ;;  %v8980_v53 = vadd.f32 %v8866_v63, %v8745_v47  ;;  %v8810_v23 = vrot.slane %v12056_v57, 5  ;;  %v8532_v17 = vpop.f32.mrf.mxu1  ;;  %v8754_v27 = vld [vmem:[#allocation8 + $0x1e0] sm:$0xff]  ;;  %v8755_v63 = vld [vmem:[#allocation8 + $0x1e8] sm:$0xff] }
 0x43b   :  { %9033 = vst [vmem:[#allocation8 + $0xd0] sm:$0xff] %v8955_v29  ;;  %v8867_v43 = vsel %vm8850_vm4, %v8830_v3, %v8833_v26  ;;  %v8835_v41 = vrot.slane %v8532_v17, 5  ;;  %v12058_v7 = vpop.f32.mrf.mxu0  ;;  %v8732_v17 = vld [vmem:[#allocation8 + $0x130] sm:$0xff] }
 0x43c   :  { %9058 = vst [vmem:[#allocation8 + $0x198] sm:$0xff] %v8980_v53  ;;  %v8981_v32 = vadd.f32 %v8867_v43, %v8746_v44  ;;  %v8892_v13 = vsel %vm8850_vm4, %v8807_v28, %v8810_v23  ;;  %v8534_v11 = vpop.f32.mrf.mxu1  ;;  %v12059_v5 = vadd.f32 %v12058_v7, %v12057_v35 }
 0x43d   :  { %v8958_v54 = vadd.f32 %v8892_v13, %v8723_v1  ;;  %v8863_v39 = vsel %vm8850_vm4, %v8832_v37, %v8835_v41  ;;  %v8836_v18 = vrot.slane %v8534_v11, 5  ;;  %v12060_v34 = vpop.f32.mrf.mxu0 }
 0x43e   :  { %9059 = vst [vmem:[#allocation8 + $0x1a0] sm:$0xff] %v8981_v32  ;;  %v8983_v0 = vadd.f32 %v8863_v39, %v8748_v6  ;;  %v8813_v38 = vrot.slane %v12059_v5, 5  ;;  %v8538_v30 = vpop.f32.mrf.mxu1  ;;  %v8757_v32 = vld [vmem:[#allocation8 + $0x1f8] sm:$0xff]  ;;  %v8758_v39 = vld [vmem:[#allocation8 + $0x200] sm:$0xff] }
 0x43f   :  { %9036 = vst [vmem:[#allocation8 + $0xe8] sm:$0xff] %v8958_v54  ;;  %v8864_v20 = vsel %vm8850_vm4, %v8833_v26, %v8836_v18  ;;  %v8838_v9 = vrot.slane %v8538_v30, 5  ;;  %v12061_v33 = vpop.f32.mrf.mxu0  ;;  %v8735_v30 = vld [vmem:[#allocation8 + $0x148] sm:$0xff] }
 0x440   :  { %9061 = vst [vmem:[#allocation8 + $0x1b0] sm:$0xff] %v8983_v0  ;;  %v8984_v8 = vadd.f32 %v8864_v20, %v8749_v52  ;;  %v8889_v58 = vsel %vm8850_vm4, %v8810_v23, %v8813_v38  ;;  %v8540_v16 = vpop.f32.mrf.mxu1  ;;  %v12062_v4 = vadd.f32 %v12061_v33, %v12060_v34 }
 0x441   :  { %v8961_v61 = vadd.f32 %v8889_v58, %v8726_v60  ;;  %v8860_v49 = vsel %vm8850_vm4, %v8835_v41, %v8838_v9  ;;  %v8839_v22 = vrot.slane %v8540_v16, 5  ;;  %v12063_v48 = vpop.f32.mrf.mxu0  ;;  %v8763_v60 = vld [vmem:[#allocation8 + $0x228] sm:$0xff] }
 0x442   :  { %9062 = vst [vmem:[#allocation8 + $0x1b8] sm:$0xff] %v8984_v8  ;;  %v8986_v51 = vadd.f32 %v8860_v49, %v8751_v56  ;;  %v8816_v40 = vrot.slane %v12062_v4, 5  ;;  %v8542_v10 = vpop.f32.mrf.mxu1  ;;  %v8760_v8 = vld [vmem:[#allocation8 + $0x210] sm:$0xff] }
 0x443   :  { %9039 = vst [vmem:[#allocation8 + $0x100] sm:$0xff] %v8961_v61  ;;  %v8861_v3 = vsel %vm8850_vm4, %v8836_v18, %v8839_v22  ;;  %v8841_v21 = vrot.slane %v8542_v10, 5  ;;  %v12064_v46 = vpop.f32.mrf.mxu0 }
 0x444   :  { %9064 = vst [vmem:[#allocation8 + $0x1c8] sm:$0xff] %v8986_v51  ;;  %v8987_v28 = vadd.f32 %v8861_v3, %v8752_v24  ;;  %v8886_v45 = vsel %vm8850_vm4, %v8813_v38, %v8816_v40  ;;  %v8544_v59 = vpop.f32.mrf.mxu1  ;;  %v12065_v37 = vadd.f32 %v12064_v46, %v12063_v48  ;;  %v8761_v51 = vld [vmem:[#allocation8 + $0x218] sm:$0xff]  ;;  %v10335_v24 = vsub.s32 0, %v13544_v14  ;;  %v8738_v46 = vld [vmem:[#allocation8 + $0x160] sm:$0xff] }
 0x445   :  { %v8964_v42 = vadd.f32 %v8886_v45, %v8729_v25  ;;  %v8857_v36 = vsel %vm8850_vm4, %v8838_v9, %v8841_v21  ;;  %v8842_v62 = vrot.slane %v8544_v59, 5  ;;  %v12066_v2 = vpop.f32.mrf.mxu0 }
 0x446   :  { %9065 = vst [vmem:[#allocation8 + $0x1d0] sm:$0xff] %v8987_v28  ;;  %v8989_v57 = vadd.f32 %v8857_v36, %v8754_v27  ;;  %v8819_v29 = vrot.slane %v12065_v37, 5  ;;  %v8548_v47 = vpop.f32.mrf.mxu1  ;;  %v10339_v27 = vsub.s32 1, %v13544_v14 }
 0x447   :  { %9042 = vst [vmem:[#allocation8 + $0x118] sm:$0xff] %v8964_v42  ;;  %v8858_v26 = vsel %vm8850_vm4, %v8839_v22, %v8842_v62  ;;  %v8844_v35 = vrot.slane %v8548_v47, 5  ;;  %v12067_v53 = vpop.f32.mrf.mxu0  ;;  %v15513_v47 = vrot.slane %v15505_v31, %v10335_v24 }
 0x448   :  { %9067 = vst [vmem:[#allocation8 + $0x1e0] sm:$0xff] %v8989_v57  ;;  %v8990_v23 = vadd.f32 %v8858_v26, %v8755_v63  ;;  %v8883_v44 = vsel %vm8850_vm4, %v8816_v40, %v8819_v29  ;;  %v8550_v43 = vpop.f32.mrf.mxu1  ;;  %v12068_v41 = vadd.f32 %v12067_v53, %v12066_v2  ;;  %v8764_v40 = vld [vmem:[#allocation8 + $0x230] sm:$0xff]  ;;  %v8741_v57 = vld [vmem:[#allocation8 + $0x178] sm:$0xff] }
 0x449   :  { %v8967_v7 = vadd.f32 %v8883_v44, %v8732_v17  ;;  %v8854_v1 = vsel %vm8850_vm4, %v8841_v21, %v8844_v35  ;;  %v8845_v13 = vrot.slane %v8550_v43, 5  ;;  %v12069_v11 = vpop.f32.mrf.mxu0 }
 0x44a   :  { %9068 = vst [vmem:[#allocation8 + $0x1e8] sm:$0xff] %v8990_v23  ;;  %v8992_v5 = vadd.f32 %v8854_v1, %v8757_v32  ;;  %v8822_v54 = vrot.slane %v12068_v41, 5  ;;  %v8552_v6 = vpop.f32.mrf.mxu1  ;;  %v9934_v23 = vld [vmem:[#allocation8 + $0x240] sm:$0xff]  ;;  %v15521_v32 = vrot.slane %v15505_v31, %v10339_v27 }
 0x44b   :  { %9045 = vst [vmem:[#allocation8 + $0x130] sm:$0xff] %v8967_v7  ;;  %v8855_v18 = vsel %vm8850_vm4, %v8842_v62, %v8845_v13  ;;  %v8847_v34 = vrot.slane %v8552_v6, 5  ;;  %v12070_v0 = vpop.f32.mrf.mxu0 }
 0x44c   :  { %9070 = vst [vmem:[#allocation8 + $0x1f8] sm:$0xff] %v8992_v5  ;;  %v8993_v38 = vadd.f32 %v8855_v18, %v8758_v39  ;;  %v8880_v52 = vsel %vm8850_vm4, %v8819_v29, %v8822_v54  ;;  %v8554_v20 = vpop.f32.mrf.mxu1  ;;  %v12071_v9 = vadd.f32 %v12070_v0, %v12069_v11  ;;  %v8744_v39 = vld [vmem:[#allocation8 + $0x190] sm:$0xff] }
 0x44d   :  { %v8970_v33 = vadd.f32 %v8880_v52, %v8735_v30  ;;  %v8851_v58 = vsel %vm8850_vm4, %v8844_v35, %v8847_v34  ;;  %v8926_v16 = vsel %vm8850_vm4, %v8847_v34, %v8772_v19  ;;  %v8848_v4 = vrot.slane %v8554_v20, 5  ;;  %v12072_v61 = vpop.f32.mrf.mxu0  ;;  %v9937_v52 = vld [vmem:[#allocation8 + $0x258] sm:$0xff] }
 0x44e   :  { %9071 = vst [vmem:[#allocation8 + $0x200] sm:$0xff] %v8993_v38  ;;  %v8995_v56 = vadd.f32 %v8851_v58, %v8760_v8  ;;  %v8998_v49 = vadd.f32 %v8926_v16, %v8763_v60  ;;  %v8825_v22 = vrot.slane %v12071_v9, 5  ;;  %v15492_v48 = vpop.f32.mrf.mxu1 }
 0x44f   :  { %9048 = vst [vmem:[#allocation8 + $0x148] sm:$0xff] %v8970_v33  ;;  %v8852_v10 = vsel %vm8850_vm4, %v8845_v13, %v8848_v4  ;;  %v8927_v50 = vsel %vm8850_vm4, %v8848_v4, %v8773_v55  ;;  %v12073_v19 = vpop.f32.mrf.mxu0  ;;  %v9940_v36 = vrot.slane %v15492_v48, 6  ;;  %v9935_v13 = vld [vmem:[#allocation8 + $0x248] sm:$0xff] }
 0x450   :  { %9073 = vst [vmem:[#allocation8 + $0x210] sm:$0xff] %v8995_v56  ;;  %9076 = vst [vmem:[#allocation8 + $0x228] sm:$0xff] %v8998_v49  ;;  %v8996_v3 = vadd.f32 %v8852_v10, %v8761_v51  ;;  %v8999_v21 = vadd.f32 %v8927_v50, %v8764_v40  ;;  %v8877_v28 = vsel %vm8850_vm4, %v8822_v54, %v8825_v22  ;;  %v15503_v45 = vpop.f32.mrf.mxu1  ;;  %v8747_v10 = vld [vmem:[#allocation8 + $0x1a8] sm:$0xff] }
 0x451   :  { %v12074_v25 = vadd.f32 %v12073_v19, %v12072_v61  ;;  %v8973_v59 = vadd.f32 %v8877_v28, %v8738_v46  ;;  %v12075_v37 = vpop.f32.mrf.mxu0  ;;  %v9941_v53 = vrot.slane %v15503_v45, 6  ;;  %v9938_v19 = vld [vmem:[#allocation8 + $0x260] sm:$0xff] }
 0x452   :  { %9074 = vst [vmem:[#allocation8 + $0x218] sm:$0xff] %v8996_v3  ;;  %9077 = vst [vmem:[#allocation8 + $0x230] sm:$0xff] %v8999_v21  ;;  %v9600_v42 = vpop.f32.mrf.mxu1  ;;  %v9862_v46 = vld [vmem:[#allocation8] sm:$0xff] }
 0x453   :  { %v8828_v55 = vrot.slane %v12074_v25, 5  ;;  %9051 = vst [vmem:[#allocation8 + $0x160] sm:$0xff] %v8973_v59  ;;  %v9943_v62 = vrot.slane %v9600_v42, 6  ;;  %v12076_v2 = vpop.f32.mrf.mxu0 }
 0x454   :  { %v12077_v63 = vadd.f32 %v12076_v2, %v12075_v37  ;;  %v9602_v26 = vpop.f32.mrf.mxu1 }
 0x455   :  { %v8874_v29 = vsel %vm8850_vm4, %v8825_v22, %v8828_v55  ;;  %v10091_v17 = vsel %vm10018_vm5, %v9940_v36, %v9943_v62  ;;  %v9944_v44 = vrot.slane %v9602_v26, 6  ;;  %v12078_v43 = vpop.f32.mrf.mxu0 }
 0x456   :  { %v8976_v35 = vadd.f32 %v8874_v29, %v8741_v57  ;;  %v10169_v41 = vadd.f32 %v10091_v17, %v9934_v23  ;;  %v8831_v7 = vrot.slane %v12077_v63, 5  ;;  %v9606_v1 = vpop.f32.mrf.mxu1  ;;  %v9863_v23 = vld [vmem:[#allocation8 + $0x8] sm:$0xff] }
 0x457   :  { %v10092_v11 = vsel %vm10018_vm5, %v9941_v53, %v9944_v44  ;;  %v9946_v5 = vrot.slane %v9606_v1, 6  ;;  %v12079_v54 = vpop.f32.mrf.mxu0 }
 0x458   :  { %9054 = vst [vmem:[#allocation8 + $0x178] sm:$0xff] %v8976_v35  ;;  %v10420_v6 = vadd.f32 %v15513_v47, %v10169_v41  ;;  %v8871_v18 = vsel %vm8850_vm4, %v8828_v55, %v8831_v7  ;;  %v10170_v34 = vadd.f32 %v10092_v11, %v9935_v13  ;;  %v12080_v0 = vadd.f32 %v12079_v54, %v12078_v43  ;;  %v9608_v38 = vpop.f32.mrf.mxu1  ;;  %v9865_v11 = vld [vmem:[#allocation8 + $0x18] sm:$0xff] }
 0x459   :  { %v8979_v30 = vadd.f32 %v8871_v18, %v8744_v39  ;;  %v10088_v20 = vsel %vm10018_vm5, %v9943_v62, %v9946_v5  ;;  %v9947_v9 = vrot.slane %v9608_v38, 6  ;;  %v12081_v33 = vpop.f32.mrf.mxu0 }
 0x45a   :  { %v10498_v8 = vmax.f32 %v10420_v6, 0.6994055  ;;  %v10421_v60 = vadd.f32 %v15521_v32, %v10170_v34  ;;  %v10172_v58 = vadd.f32 %v10088_v20, %v9937_v52  ;;  %v8834_v16 = vrot.slane %v12080_v0, 5  ;;  %v9610_v4 = vpop.f32.mrf.mxu1 }
 0x45b   :  { %9057 = vst [vmem:[#allocation8 + $0x190] sm:$0xff] %v8979_v30  ;;  %v10089_v61 = vsel %vm10018_vm5, %v9944_v44, %v9947_v9  ;;  %v9949_v56 = vrot.slane %v9610_v4, 6  ;;  %v12082_v49 = vpop.f32.mrf.mxu0 }
 0x45c   :  { %v10576_v22 = vmin.f32 %v10498_v8, 0.9202163  ;;  %v10499_v51 = vmax.f32 %v10421_v60, 0.6994055  ;;  %v10423_v40 = vadd.f32 %v15513_v47, %v10172_v58  ;;  %v8868_v50 = vsel %vm8850_vm4, %v8831_v7, %v8834_v16  ;;  %v9612_v24 = vpop.f32.mrf.mxu1  ;;  %v8750_v7 = vld [vmem:[#allocation8 + $0x1c0] sm:$0xff]  ;;  %v8753_v60 = vld [vmem:[#allocation8 + $0x1d8] sm:$0xff] }
 0x45d   :  { %v8982_v3 = vadd.f32 %v8868_v50, %v8747_v10  ;;  %v10173_v21 = vadd.f32 %v10089_v61, %v9938_v19  ;;  %v10085_v28 = vsel %vm10018_vm5, %v9946_v5, %v9949_v56  ;;  %v12083_v25 = vadd.f32 %v12082_v49, %v12081_v33  ;;  %v12084_v59 = vpop.f32.mrf.mxu0  ;;  %v9866_v49 = vld [vmem:[#allocation8 + $0x20] sm:$0xff] }
 0x45e   :  { %10654 = vst [vmem:[#allocation8 + $0x240] sm:$0xff] %v10576_v22  ;;  %v10577_v37 = vmin.f32 %v10499_v51, 0.9202163  ;;  %v10501_v55 = vmax.f32 %v10423_v40, 0.6994055  ;;  %v10097_v42 = vadd.f32 %v10085_v28, %v9862_v46  ;;  %v9950_v27 = vrot.slane %v9612_v24, 6  ;;  %v9616_v62 = vpop.f32.mrf.mxu1 }
 0x45f   :  { %9060 = vst [vmem:[#allocation8 + $0x1a8] sm:$0xff] %v8982_v3  ;;  %v10424_v2 = vadd.f32 %v15521_v32, %v10173_v21  ;;  %v8837_v57 = vrot.slane %v12083_v25, 5  ;;  %v9952_v29 = vrot.slane %v9616_v62, 6  ;;  %v12085_v63 = vpop.f32.mrf.mxu0  ;;  %v9868_v51 = vld [vmem:[#allocation8 + $0x30] sm:$0xff] }
 0x460   :  { %10655 = vst [vmem:[#allocation8 + $0x248] sm:$0xff] %v10577_v37  ;;  %v10579_v26 = vmin.f32 %v10501_v55, 0.9202163  ;;  %v10348_v35 = vadd.f32 %v15513_v47, %v10097_v42  ;;  %v10086_v17 = vsel %vm10018_vm5, %v9947_v9, %v9950_v27  ;;  %v12086_v44 = vadd.f32 %v12085_v63, %v12084_v59  ;;  %v9618_v43 = vpop.f32.mrf.mxu1  ;;  %v8756_v62 = vld [vmem:[#allocation8 + $0x1f0] sm:$0xff]  ;;  %v9869_v63 = vld [vmem:[#allocation8 + $0x38] sm:$0xff] }
 0x461   :  { %v10502_v41 = vmax.f32 %v10424_v2, 0.6994055  ;;  %v8865_v1 = vsel %vm8850_vm4, %v8834_v16, %v8837_v57  ;;  %v10098_v13 = vadd.f32 %v10086_v17, %v9863_v23  ;;  %v10082_v5 = vsel %vm10018_vm5, %v9949_v56, %v9952_v29  ;;  %v12087_v54 = vpop.f32.mrf.mxu0 }
 0x462   :  { %10657 = vst [vmem:[#allocation8 + $0x258] sm:$0xff] %v10579_v26  ;;  %v10426_v6 = vmax.f32 %v10348_v35, 0.6994055  ;;  %v8985_v39 = vadd.f32 %v8865_v1, %v8750_v7  ;;  %v10100_v18 = vadd.f32 %v10082_v5, %v9865_v11  ;;  %v8840_v34 = vrot.slane %v12086_v44, 5  ;;  %v9620_v0 = vpop.f32.mrf.mxu1  ;;  %v9871_v35 = vld [vmem:[#allocation8 + $0x48] sm:$0xff] }
 0x463   :  { %v10580_v38 = vmin.f32 %v10502_v41, 0.9202163  ;;  %v10349_v30 = vadd.f32 %v15521_v32, %v10098_v13  ;;  %v9953_v52 = vrot.slane %v9618_v43, 6  ;;  %v9955_v20 = vrot.slane %v9620_v0, 6  ;;  %v12088_v9 = vpop.f32.mrf.mxu0 }
 0x464   :  { %v10504_v33 = vmin.f32 %v10426_v6, 0.9202163  ;;  %9063 = vst [vmem:[#allocation8 + $0x1c0] sm:$0xff] %v8985_v39  ;;  %v10351_v8 = vadd.f32 %v15513_v47, %v10100_v18  ;;  %v8862_v58 = vsel %vm8850_vm4, %v8837_v57, %v8840_v34  ;;  %v12089_v16 = vadd.f32 %v12088_v9, %v12087_v54  ;;  %v9622_v4 = vpop.f32.mrf.mxu1  ;;  %v9872_v9 = vld [vmem:[#allocation8 + $0x50] sm:$0xff] }
 0x465   :  { %10658 = vst [vmem:[#allocation8 + $0x260] sm:$0xff] %v10580_v38  ;;  %v10427_v61 = vmax.f32 %v10349_v30, 0.6994055  ;;  %v8988_v56 = vadd.f32 %v8862_v58, %v8753_v60  ;;  %v10083_v22 = vsel %vm10018_vm5, %v9950_v27, %v9953_v52  ;;  %v10079_v40 = vsel %vm10018_vm5, %v9952_v29, %v9955_v20  ;;  %v12090_v10 = vpop.f32.mrf.mxu0 }
 0x466   :  { %10582 = vst [vmem:[#allocation8] sm:$0xff] %v10504_v33  ;;  %v10429_v50 = vmax.f32 %v10351_v8, 0.6994055  ;;  %v10101_v19 = vadd.f32 %v10083_v22, %v9866_v49  ;;  %v10103_v24 = vadd.f32 %v10079_v40, %v9868_v51  ;;  %v8843_v3 = vrot.slane %v12089_v16, 5  ;;  %v9626_v21 = vpop.f32.mrf.mxu1 }
 0x467   :  { %v10505_v46 = vmin.f32 %v10427_v61, 0.9202163  ;;  %9066 = vst [vmem:[#allocation8 + $0x1d8] sm:$0xff] %v8988_v56  ;;  %v9956_v28 = vrot.slane %v9622_v4, 6  ;;  %v9958_v25 = vrot.slane %v9626_v21, 6  ;;  %v12091_v59 = vpop.f32.mrf.mxu0  ;;  %v10343_v37 = vsub.s32 2, %v13544_v14 }
 0x468   :  { %v10507_v55 = vmin.f32 %v10429_v50, 0.9202163  ;;  %v10352_v42 = vadd.f32 %v15521_v32, %v10101_v19  ;;  %v10354_v27 = vadd.f32 %v15513_v47, %v10103_v24  ;;  %v8859_v2 = vsel %vm8850_vm4, %v8840_v34, %v8843_v3  ;;  %v9628_v57 = vpop.f32.mrf.mxu1  ;;  %v9874_v56 = vld [vmem:[#allocation8 + $0x60] sm:$0xff] }
 0x469   :  { %10583 = vst [vmem:[#allocation8 + $0x8] sm:$0xff] %v10505_v46  ;;  %v8991_v29 = vadd.f32 %v8859_v2, %v8756_v62  ;;  %v10080_v26 = vsel %vm10018_vm5, %v9953_v52, %v9956_v28  ;;  %v10076_v23 = vsel %vm10018_vm5, %v9955_v20, %v9958_v25  ;;  %v12092_v17 = vadd.f32 %v12091_v59, %v12090_v10  ;;  %v12093_v44 = vpop.f32.mrf.mxu0  ;;  %v8759_v52 = vld [vmem:[#allocation8 + $0x208] sm:$0xff]  ;;  %v8765_v59 = vld [vmem:[#allocation8 + $0x238] sm:$0xff] }
 0x46a   :  { %10585 = vst [vmem:[#allocation8 + $0x18] sm:$0xff] %v10507_v55  ;;  %v10430_v43 = vmax.f32 %v10352_v42, 0.6994055  ;;  %v10432_v41 = vmax.f32 %v10354_v27, 0.6994055  ;;  %v10104_v7 = vadd.f32 %v10080_v26, %v9869_v63  ;;  %v10106_v1 = vadd.f32 %v10076_v23, %v9871_v35  ;;  %v9630_v13 = vpop.f32.mrf.mxu1  ;;  %v9875_v42 = vld [vmem:[#allocation8 + $0x68] sm:$0xff] }
 0x46b   :  { %9069 = vst [vmem:[#allocation8 + $0x1f0] sm:$0xff] %v8991_v29  ;;  %v8846_v11 = vrot.slane %v12092_v17, 5  ;;  %v9959_v5 = vrot.slane %v9628_v57, 6  ;;  %v9961_v54 = vrot.slane %v9630_v13, 6  ;;  %v12094_v6 = vpop.f32.mrf.mxu0  ;;  %v15566_v39 = vrot.slane %v15505_v31, %v10343_v37  ;;  %v9877_v23 = vld [vmem:[#allocation8 + $0x78] sm:$0xff] }
 0x46c   :  { %v10508_v18 = vmin.f32 %v10430_v43, 0.9202163  ;;  %v10510_v34 = vmin.f32 %v10432_v41, 0.9202163  ;;  %v10355_v0 = vadd.f32 %v15521_v32, %v10104_v7  ;;  %v10357_v38 = vadd.f32 %v15513_v47, %v10106_v1  ;;  %v9632_v30 = vpop.f32.mrf.mxu1 }
 0x46d   :  { %v8856_v20 = vsel %vm8850_vm4, %v8843_v3, %v8846_v11  ;;  %v10077_v33 = vsel %vm10018_vm5, %v9956_v28, %v9959_v5  ;;  %v10073_v8 = vsel %vm10018_vm5, %v9958_v25, %v9961_v54  ;;  %v12095_v31 = vadd.f32 %v12094_v6, %v12093_v44  ;;  %v12112_v60 = vpop.f32.mrf.mxu0  ;;  %v8762_v25 = vld [vmem:[#allocation8 + $0x220] sm:$0xff] }
 0x46e   :  { %10586 = vst [vmem:[#allocation8 + $0x20] sm:$0xff] %v10508_v18  ;;  %10588 = vst [vmem:[#allocation8 + $0x30] sm:$0xff] %v10510_v34  ;;  %v10433_v58 = vmax.f32 %v10355_v0, 0.6994055  ;;  %v10435_v16 = vmax.f32 %v10357_v38, 0.6994055  ;;  %v8994_v4 = vadd.f32 %v8856_v20, %v8759_v52  ;;  %v10107_v61 = vadd.f32 %v10077_v33, %v9872_v9  ;;  %v9636_v49 = vpop.f32.mrf.mxu1 }
 0x46f   :  { %v10109_v22 = vadd.f32 %v10073_v8, %v9874_v56  ;;  %v8849_v51 = vrot.slane %v12095_v31, 5  ;;  %v9962_v40 = vrot.slane %v9632_v30, 6  ;;  %v9964_v10 = vrot.slane %v9636_v49, 6  ;;  %v12113_v50 = vpop.f32.mrf.mxu0  ;;  %v9880_v52 = vld [vmem:[#allocation8 + $0x90] sm:$0xff]  ;;  %v9881_v8 = vld [vmem:[#allocation8 + $0x98] sm:$0xff] }
 0x470   :  { %v10511_v19 = vmin.f32 %v10433_v58, 0.9202163  ;;  %v10513_v24 = vmin.f32 %v10435_v16, 0.9202163  ;;  %9072 = vst [vmem:[#allocation8 + $0x208] sm:$0xff] %v8994_v4  ;;  %v10358_v3 = vadd.f32 %v15521_v32, %v10107_v61  ;;  %v9638_v21 = vpop.f32.mrf.mxu1  ;;  %v15577_v46 = vadd.f32 %v12113_v50, %v12112_v60 }
 0x471   :  { %v10360_v28 = vadd.f32 %v15513_v47, %v10109_v22  ;;  %v8853_v37 = vsel %vm8850_vm4, %v8846_v11, %v8849_v51  ;;  %v8928_v55 = vsel %vm8850_vm4, %v8849_v51, %v8774_v15  ;;  %v10074_v27 = vsel %vm10018_vm5, %v9959_v5, %v9962_v40  ;;  %v12115_v62 = vpop.f32.mrf.mxu0  ;;  %v9878_v5 = vld [vmem:[#allocation8 + $0x80] sm:$0xff] }
 0x472   :  { %10589 = vst [vmem:[#allocation8 + $0x38] sm:$0xff] %v10511_v19  ;;  %10591 = vst [vmem:[#allocation8 + $0x48] sm:$0xff] %v10513_v24  ;;  %v10436_v2 = vmax.f32 %v10358_v3, 0.6994055  ;;  %v8997_v57 = vadd.f32 %v8853_v37, %v8762_v25  ;;  %v9000_v29 = vadd.f32 %v8928_v55, %v8765_v59  ;;  %v10110_v63 = vadd.f32 %v10074_v27, %v9875_v42  ;;  %v9640_v26 = vpop.f32.mrf.mxu1  ;;  %v9883_v59 = vld [vmem:[#allocation8 + $0xa8] sm:$0xff]  ;;  %v9884_v27 = vld [vmem:[#allocation8 + $0xb0] sm:$0xff] }
 0x473   :  { %v10438_v35 = vmax.f32 %v10360_v28, 0.6994055  ;;  %v10070_v12 = vsel %vm10018_vm5, %v9961_v54, %v9964_v10  ;;  %v9965_v17 = vrot.slane %v9638_v21, 6  ;;  %v9942_v15 = vrot.slane %v15577_v46, 6  ;;  %v12116_v44 = vpop.f32.mrf.mxu0 }
 0x474   :  { %v10514_v43 = vmin.f32 %v10436_v2, 0.9202163  ;;  %9075 = vst [vmem:[#allocation8 + $0x220] sm:$0xff] %v8997_v57  ;;  %9078 = vst [vmem:[#allocation8 + $0x238] sm:$0xff] %v9000_v29  ;;  %v10361_v41 = vadd.f32 %v15521_v32, %v10110_v63  ;;  %v10112_v7 = vadd.f32 %v10070_v12, %v9877_v23  ;;  %v9967_v1 = vrot.slane %v9640_v26, 6  ;;  %v9642_v13 = vpop.f32.mrf.mxu1 }
 0x475   :  { %v10516_v11 = vmin.f32 %v10438_v35, 0.9202163  ;;  %v10071_v6 = vsel %vm10018_vm5, %v9962_v40, %v9965_v17  ;;  %v9968_v18 = vrot.slane %v9642_v13, 6  ;;  %v12117_v34 = vadd.f32 %v12116_v44, %v12115_v62  ;;  %v12118_v54 = vpop.f32.mrf.mxu0  ;;  %v9936_v40 = vld [vmem:[#allocation8 + $0x250] sm:$0xff] }
 0x476   :  { %10592 = vst [vmem:[#allocation8 + $0x50] sm:$0xff] %v10514_v43  ;;  %v10439_v0 = vmax.f32 %v10361_v41, 0.6994055  ;;  %v10363_v38 = vadd.f32 %v15513_v47, %v10112_v7  ;;  %v10113_v30 = vadd.f32 %v10071_v6, %v9878_v5  ;;  %v10067_v20 = vsel %vm10018_vm5, %v9964_v10, %v9967_v1  ;;  %v9646_v9 = vpop.f32.mrf.mxu1 }
 0x477   :  { %10594 = vst [vmem:[#allocation8 + $0x60] sm:$0xff] %v10516_v11  ;;  %v10115_v33 = vadd.f32 %v10067_v20, %v9880_v52  ;;  %v10068_v31 = vsel %vm10018_vm5, %v9965_v17, %v9968_v18  ;;  %v9945_v60 = vrot.slane %v12117_v34, 6  ;;  %v9970_v58 = vrot.slane %v9646_v9, 6  ;;  %v12119_v16 = vpop.f32.mrf.mxu0 }
 0x478   :  { %v10517_v4 = vmin.f32 %v10439_v0, 0.9202163  ;;  %v10441_v61 = vmax.f32 %v10363_v38, 0.6994055  ;;  %v10364_v56 = vadd.f32 %v15521_v32, %v10113_v30  ;;  %v10116_v49 = vadd.f32 %v10068_v31, %v9881_v8  ;;  %v9648_v22 = vpop.f32.mrf.mxu1 }
 0x479   :  { %v10366_v51 = vadd.f32 %v15513_v47, %v10115_v33  ;;  %v10093_v10 = vsel %vm10018_vm5, %v9942_v15, %v9945_v60  ;;  %v10064_v50 = vsel %vm10018_vm5, %v9967_v1, %v9970_v58  ;;  %v9971_v19 = vrot.slane %v9648_v22, 6  ;;  %v12121_v24 = vpop.f32.mrf.mxu0 }
 0x47a   :  { %10595 = vst [vmem:[#allocation8 + $0x68] sm:$0xff] %v10517_v4  ;;  %v10519_v3 = vmin.f32 %v10441_v61, 0.9202163  ;;  %v10442_v21 = vmax.f32 %v10364_v56, 0.6994055  ;;  %v10367_v28 = vadd.f32 %v15521_v32, %v10116_v49  ;;  %v10171_v25 = vadd.f32 %v10093_v10, %v9936_v40  ;;  %v9650_v37 = vpop.f32.mrf.mxu1  ;;  %v9864_v10 = vld [vmem:[#allocation8 + $0x10] sm:$0xff] }
 0x47b   :  { %v10444_v55 = vmax.f32 %v10366_v51, 0.6994055  ;;  %v10118_v42 = vadd.f32 %v10064_v50, %v9883_v59  ;;  %v10065_v62 = vsel %vm10018_vm5, %v9968_v18, %v9971_v19  ;;  %v12120_v2 = vadd.f32 %v12119_v16, %v12118_v54  ;;  %v12122_v57 = vpop.f32.mrf.mxu0  ;;  %v9939_v18 = vld [vmem:[#allocation8 + $0x268] sm:$0xff]  ;;  %v9886_v54 = vld [vmem:[#allocation8 + $0xc0] sm:$0xff] }
 0x47c   :  { %10597 = vst [vmem:[#allocation8 + $0x78] sm:$0xff] %v10519_v3  ;;  %v10520_v29 = vmin.f32 %v10442_v21, 0.9202163  ;;  %v10445_v63 = vmax.f32 %v10367_v28, 0.6994055  ;;  %v10422_v26 = vadd.f32 %v15566_v39, %v10171_v25  ;;  %v10119_v35 = vadd.f32 %v10065_v62, %v9884_v27  ;;  %v9652_v23 = vpop.f32.mrf.mxu1  ;;  %v9887_v16 = vld [vmem:[#allocation8 + $0xc8] sm:$0xff] }
 0x47d   :  { %v10522_v12 = vmin.f32 %v10444_v55, 0.9202163  ;;  %v10369_v17 = vadd.f32 %v15513_v47, %v10118_v42  ;;  %v9948_v44 = vrot.slane %v12120_v2, 6  ;;  %v9973_v43 = vrot.slane %v9650_v37, 6  ;;  %v12124_v41 = vpop.f32.mrf.mxu0  ;;  %v9889_v55 = vld [vmem:[#allocation8 + $0xd8] sm:$0xff]  ;;  %v9890_v62 = vld [vmem:[#allocation8 + $0xe0] sm:$0xff] }
 0x47e   :  { %10598 = vst [vmem:[#allocation8 + $0x80] sm:$0xff] %v10520_v29  ;;  %v10523_v7 = vmin.f32 %v10445_v63, 0.9202163  ;;  %v10500_v1 = vmax.f32 %v10422_v26, 0.6994055  ;;  %v10370_v13 = vadd.f32 %v15521_v32, %v10119_v35  ;;  %v9974_v11 = vrot.slane %v9652_v23, 6  ;;  %v9656_v5 = vpop.f32.mrf.mxu1 }
 0x47f   :  { %10600 = vst [vmem:[#allocation8 + $0x90] sm:$0xff] %v10522_v12  ;;  %v10447_v6 = vmax.f32 %v10369_v17, 0.6994055  ;;  %v10090_v34 = vsel %vm10018_vm5, %v9945_v60, %v9948_v44  ;;  %v10061_v0 = vsel %vm10018_vm5, %v9970_v58, %v9973_v43  ;;  %v12123_v38 = vadd.f32 %v12122_v57, %v12121_v24  ;;  %v12125_v30 = vpop.f32.mrf.mxu0 }
 0x480   :  { %10601 = vst [vmem:[#allocation8 + $0x98] sm:$0xff] %v10523_v7  ;;  %v10578_v52 = vmin.f32 %v10500_v1, 0.9202163  ;;  %v10448_v20 = vmax.f32 %v10370_v13, 0.6994055  ;;  %v10174_v9 = vadd.f32 %v10090_v34, %v9939_v18  ;;  %v10121_v33 = vadd.f32 %v10061_v0, %v9886_v54  ;;  %v15617_v8 = vpop.f32.mrf.mxu1  ;;  %v9892_v1 = vld [vmem:[#allocation8 + $0xf0] sm:$0xff] }
 0x481   :  { %v10525_v31 = vmin.f32 %v10447_v6, 0.9202163  ;;  %v10062_v4 = vsel %vm10018_vm5, %v9971_v19, %v9974_v11  ;;  %v9951_v61 = vrot.slane %v12123_v38, 6  ;;  %v9976_v60 = vrot.slane %v9656_v5, 6  ;;  %v12127_v56 = vpop.f32.mrf.mxu0 }
 0x482   :  { %10656 = vst [vmem:[#allocation8 + $0x250] sm:$0xff] %v10578_v52  ;;  %v10526_v49 = vmin.f32 %v10448_v20, 0.9202163  ;;  %v10425_v58 = vadd.f32 %v15566_v39, %v10174_v9  ;;  %v10372_v22 = vadd.f32 %v15513_v47, %v10121_v33  ;;  %v10122_v51 = vadd.f32 %v10062_v4, %v9887_v16  ;;  %v15623_v40 = vpop.f32.mrf.mxu1 }
 0x483   :  { %10603 = vst [vmem:[#allocation8 + $0xa8] sm:$0xff] %v10525_v31  ;;  %v10087_v50 = vsel %vm10018_vm5, %v9948_v44, %v9951_v61  ;;  %v10058_v19 = vsel %vm10018_vm5, %v9973_v43, %v9976_v60  ;;  %v9977_v24 = vrot.slane %v15617_v8, 6  ;;  %v15630_v3 = vadd.f32 %v12125_v30, %v12124_v41  ;;  %v12128_v21 = vpop.f32.mrf.mxu0  ;;  %v9867_v41 = vld [vmem:[#allocation8 + $0x28] sm:$0xff] }
 0x484   :  { %10604 = vst [vmem:[#allocation8 + $0xb0] sm:$0xff] %v10526_v49  ;;  %v10503_v28 = vmax.f32 %v10425_v58, 0.6994055  ;;  %v10450_v25 = vmax.f32 %v10372_v22, 0.6994055  ;;  %v10373_v59 = vadd.f32 %v15521_v32, %v10122_v51  ;;  %v10099_v37 = vadd.f32 %v10087_v50, %v9864_v10  ;;  %v15633_v42 = vpop.f32.mrf.mxu1  ;;  %v9895_v10 = vld [vmem:[#allocation8 + $0x108] sm:$0xff] }
 0x485   :  { %v10124_v27 = vadd.f32 %v10058_v19, %v9889_v55  ;;  %v10059_v2 = vsel %vm10018_vm5, %v9974_v11, %v9977_v24  ;;  %v9954_v57 = vrot.slane %v15630_v3, 6  ;;  %v9979_v29 = vrot.slane %v15623_v40, 6  ;;  %v12130_v63 = vpop.f32.mrf.mxu0 }
 0x486   :  { %v10581_v26 = vmin.f32 %v10503_v28, 0.9202163  ;;  %v10528_v35 = vmin.f32 %v10450_v25, 0.9202163  ;;  %v10451_v23 = vmax.f32 %v10373_v59, 0.6994055  ;;  %v10350_v12 = vadd.f32 %v15566_v39, %v10099_v37  ;;  %v15640_v17 = vpop.f32.mrf.mxu1 }
 0x487   :  { %v10375_v44 = vadd.f32 %v15513_v47, %v10124_v27  ;;  %v10125_v43 = vadd.f32 %v10059_v2, %v9890_v62  ;;  %v10084_v7 = vsel %vm10018_vm5, %v9951_v61, %v9954_v57  ;;  %v10055_v13 = vsel %vm10018_vm5, %v9976_v60, %v9979_v29  ;;  %v12131_v11 = vpop.f32.mrf.mxu0  ;;  %v9893_v60 = vld [vmem:[#allocation8 + $0xf8] sm:$0xff] }
 0x488   :  { %10659 = vst [vmem:[#allocation8 + $0x268] sm:$0xff] %v10581_v26  ;;  %10606 = vst [vmem:[#allocation8 + $0xc0] sm:$0xff] %v10528_v35  ;;  %v10529_v5 = vmin.f32 %v10451_v23, 0.9202163  ;;  %v10428_v6 = vmax.f32 %v10350_v12, 0.6994055  ;;  %v10102_v18 = vadd.f32 %v10084_v7, %v9867_v41  ;;  %v10127_v34 = vadd.f32 %v10055_v13, %v9892_v1  ;;  %v15647_v54 = vpop.f32.mrf.mxu1 }
 0x489   :  { %v10453_v0 = vmax.f32 %v10375_v44, 0.6994055  ;;  %v10376_v38 = vadd.f32 %v15521_v32, %v10125_v43  ;;  %v9980_v30 = vrot.slane %v15633_v42, 6  ;;  %v12129_v52 = vadd.f32 %v12128_v21, %v12127_v56  ;;  %v12133_v20 = vpop.f32.mrf.mxu0  ;;  %v9870_v21 = vld [vmem:[#allocation8 + $0x40] sm:$0xff] }
 0x48a   :  { %10607 = vst [vmem:[#allocation8 + $0xc8] sm:$0xff] %v10529_v5  ;;  %v10506_v9 = vmin.f32 %v10428_v6, 0.9202163  ;;  %v10353_v33 = vadd.f32 %v15566_v39, %v10102_v18  ;;  %v10378_v8 = vadd.f32 %v15513_v47, %v10127_v34  ;;  %v9982_v31 = vrot.slane %v15640_v17, 6  ;;  %v15654_v16 = vpop.f32.mrf.mxu1  ;;  %v9898_v13 = vld [vmem:[#allocation8 + $0x120] sm:$0xff] }
 0x48b   :  { %v10531_v4 = vmin.f32 %v10453_v0, 0.9202163  ;;  %v10454_v61 = vmax.f32 %v10376_v38, 0.6994055  ;;  %v10056_v49 = vsel %vm10018_vm5, %v9977_v24, %v9980_v30  ;;  %v9957_v58 = vrot.slane %v12129_v52, 6  ;;  %v12134_v22 = vpop.f32.mrf.mxu0 }
 0x48c   :  { %10584 = vst [vmem:[#allocation8 + $0x10] sm:$0xff] %v10506_v9  ;;  %v10431_v56 = vmax.f32 %v10353_v33, 0.6994055  ;;  %v10456_v51 = vmax.f32 %v10378_v8, 0.6994055  ;;  %v10128_v40 = vadd.f32 %v10056_v49, %v9893_v60  ;;  %v10052_v50 = vsel %vm10018_vm5, %v9979_v29, %v9982_v31  ;;  %v15660_v19 = vpop.f32.mrf.mxu1  ;;  %v9896_v29 = vld [vmem:[#allocation8 + $0x110] sm:$0xff] }
 0x48d   :  { %10609 = vst [vmem:[#allocation8 + $0xd8] sm:$0xff] %v10531_v4  ;;  %v10532_v3 = vmin.f32 %v10454_v61, 0.9202163  ;;  %v10081_v28 = vsel %vm10018_vm5, %v9954_v57, %v9957_v58  ;;  %v10130_v25 = vadd.f32 %v10052_v50, %v9895_v10  ;;  %v9983_v24 = vrot.slane %v15647_v54, 6  ;;  %v12136_v59 = vpop.f32.mrf.mxu0  ;;  %v9899_v61 = vld [vmem:[#allocation8 + $0x128] sm:$0xff] }
 0x48e   :  { %v10509_v37 = vmin.f32 %v10431_v56, 0.9202163  ;;  %v10534_v55 = vmin.f32 %v10456_v51, 0.9202163  ;;  %v10379_v42 = vadd.f32 %v15521_v32, %v10128_v40  ;;  %v10105_v27 = vadd.f32 %v10081_v28, %v9870_v21  ;;  %v15666_v62 = vpop.f32.mrf.mxu1 }
 0x48f   :  { %10610 = vst [vmem:[#allocation8 + $0xe0] sm:$0xff] %v10532_v3  ;;  %v10381_v2 = vadd.f32 %v15513_v47, %v10130_v25  ;;  %v10053_v26 = vsel %vm10018_vm5, %v9980_v30, %v9983_v24  ;;  %v12132_v35 = vadd.f32 %v12131_v11, %v12130_v63  ;;  %v9985_v57 = vrot.slane %v15654_v16, 6  ;;  %v12137_v23 = vpop.f32.mrf.mxu0  ;;  %v9873_v30 = vld [vmem:[#allocation8 + $0x58] sm:$0xff] }
 0x490   :  { %10587 = vst [vmem:[#allocation8 + $0x28] sm:$0xff] %v10509_v37  ;;  %10612 = vst [vmem:[#allocation8 + $0xf0] sm:$0xff] %v10534_v55  ;;  %v10457_v12 = vmax.f32 %v10379_v42, 0.6994055  ;;  %v10356_v17 = vadd.f32 %v15566_v39, %v10105_v27  ;;  %v10131_v44 = vadd.f32 %v10053_v26, %v9896_v29  ;;  %v9986_v43 = vrot.slane %v15660_v19, 6  ;;  %v15674_v41 = vpop.f32.mrf.mxu1  ;;  %v9901_v25 = vld [vmem:[#allocation8 + $0x138] sm:$0xff] }
 0x491   :  { %v10459_v7 = vmax.f32 %v10381_v2, 0.6994055  ;;  %v9960_v1 = vrot.slane %v12132_v35, 6  ;;  %v10049_v5 = vsel %vm10018_vm5, %v9982_v31, %v9985_v57  ;;  %v12135_v63 = vadd.f32 %v12134_v22, %v12133_v20  ;;  %v15678_v11 = vpop.f32.mrf.mxu0  ;;  %v9876_v22 = vld [vmem:[#allocation8 + $0x70] sm:$0xff]  ;;  %v9902_v26 = vld [vmem:[#allocation8 + $0x140] sm:$0xff] }
 0x492   :  { %v10535_v6 = vmin.f32 %v10457_v12, 0.9202163  ;;  %v10434_v18 = vmax.f32 %v10356_v17, 0.6994055  ;;  %v10382_v34 = vadd.f32 %v15521_v32, %v10131_v44  ;;  %v10133_v54 = vadd.f32 %v10049_v5, %v9898_v13  ;;  %v15681_v0 = vpop.f32.mrf.mxu1 }
 0x493   :  { %v10537_v38 = vmin.f32 %v10459_v7, 0.9202163  ;;  %v10078_v52 = vsel %vm10018_vm5, %v9957_v58, %v9960_v1  ;;  %v10050_v9 = vsel %vm10018_vm5, %v9983_v24, %v9986_v43  ;;  %v9963_v33 = vrot.slane %v12135_v63, 6  ;;  %v15687_v8 = vpop.f32.mrf.mxu0  ;;  %v9879_v63 = vld [vmem:[#allocation8 + $0x88] sm:$0xff] }
 0x494   :  { %10613 = vst [vmem:[#allocation8 + $0xf8] sm:$0xff] %v10535_v6  ;;  %v10512_v20 = vmin.f32 %v10434_v18, 0.9202163  ;;  %v10460_v31 = vmax.f32 %v10382_v34, 0.6994055  ;;  %v10108_v16 = vadd.f32 %v10078_v52, %v9873_v30  ;;  %v10384_v4 = vadd.f32 %v15513_v47, %v10133_v54  ;;  %v15690_v60 = vpop.f32.mrf.mxu1  ;;  %v9904_v18 = vld [vmem:[#allocation8 + $0x150] sm:$0xff] }
 0x495   :  { %10615 = vst [vmem:[#allocation8 + $0x108] sm:$0xff] %v10537_v38  ;;  %v10134_v49 = vadd.f32 %v10050_v9, %v9899_v61  ;;  %v10075_v58 = vsel %vm10018_vm5, %v9960_v1, %v9963_v33  ;;  %v9988_v56 = vrot.slane %v15666_v62, 6  ;;  %v9989_v51 = vrot.slane %v15674_v41, 6  ;;  %v15696_v40 = vpop.f32.mrf.mxu0 }
 0x496   :  { %10590 = vst [vmem:[#allocation8 + $0x40] sm:$0xff] %v10512_v20  ;;  %v10538_v10 = vmin.f32 %v10460_v31, 0.9202163  ;;  %v10359_v50 = vadd.f32 %v15566_v39, %v10108_v16  ;;  %v10462_v19 = vmax.f32 %v10384_v4, 0.6994055  ;;  %v10111_v3 = vadd.f32 %v10075_v58, %v9876_v22  ;;  %v15699_v21 = vpop.f32.mrf.mxu1  ;;  %v9905_v31 = vld [vmem:[#allocation8 + $0x158] sm:$0xff] }
 0x497   :  { %v10385_v28 = vadd.f32 %v15521_v32, %v10134_v49  ;;  %v10046_v24 = vsel %vm10018_vm5, %v9985_v57, %v9988_v56  ;;  %v10047_v37 = vsel %vm10018_vm5, %v9986_v43, %v9989_v51  ;;  %v12138_v55 = vadd.f32 %v12137_v23, %v12136_v59  ;;  %v15706_v42 = vpop.f32.mrf.mxu0 }
 0x498   :  { %10616 = vst [vmem:[#allocation8 + $0x110] sm:$0xff] %v10538_v10  ;;  %v10437_v27 = vmax.f32 %v10359_v50, 0.6994055  ;;  %v10540_v62 = vmin.f32 %v10462_v19, 0.9202163  ;;  %v10362_v2 = vadd.f32 %v15566_v39, %v10111_v3  ;;  %v10136_v29 = vadd.f32 %v10046_v24, %v9901_v25  ;;  %v15709_v35 = vpop.f32.mrf.mxu1  ;;  %v9907_v19 = vld [vmem:[#allocation8 + $0x168] sm:$0xff] }
 0x499   :  { %v10463_v12 = vmax.f32 %v10385_v28, 0.6994055  ;;  %v10137_v17 = vadd.f32 %v10047_v37, %v9902_v26  ;;  %v9966_v44 = vrot.slane %v12138_v55, 6  ;;  %v9991_v57 = vrot.slane %v15681_v0, 6  ;;  %v15712_v41 = vpop.f32.mrf.mxu0  ;;  %v9882_v37 = vld [vmem:[#allocation8 + $0xa0] sm:$0xff] }
 0x49a   :  { %v10515_v43 = vmin.f32 %v10437_v27, 0.9202163  ;;  %10618 = vst [vmem:[#allocation8 + $0x120] sm:$0xff] %v10540_v62  ;;  %v10440_v59 = vmax.f32 %v10362_v2, 0.6994055  ;;  %v10387_v23 = vadd.f32 %v15513_v47, %v10136_v29  ;;  %v9992_v7 = vrot.slane %v15690_v60, 6  ;;  %v15716_v1 = vpop.f32.mrf.mxu1 }
 0x49b   :  { %v10541_v13 = vmin.f32 %v10463_v12, 0.9202163  ;;  %v10388_v5 = vadd.f32 %v15521_v32, %v10137_v17  ;;  %v10072_v6 = vsel %vm10018_vm5, %v9963_v33, %v9966_v44  ;;  %v10043_v34 = vsel %vm10018_vm5, %v9988_v56, %v9991_v57  ;;  %v15723_v54 = vpop.f32.mrf.mxu0  ;;  %v9908_v27 = vld [vmem:[#allocation8 + $0x170] sm:$0xff] }
 0x49c   :  { %10593 = vst [vmem:[#allocation8 + $0x58] sm:$0xff] %v10515_v43  ;;  %v10518_v0 = vmin.f32 %v10440_v59, 0.9202163  ;;  %v10465_v38 = vmax.f32 %v10387_v23, 0.6994055  ;;  %v10114_v30 = vadd.f32 %v10072_v6, %v9879_v63  ;;  %v10139_v52 = vadd.f32 %v10043_v34, %v9904_v18  ;;  %v15725_v9 = vpop.f32.mrf.mxu1 }
 0x49d   :  { %10619 = vst [vmem:[#allocation8 + $0x128] sm:$0xff] %v10541_v13  ;;  %v10466_v20 = vmax.f32 %v10388_v5, 0.6994055  ;;  %v10044_v16 = vsel %vm10018_vm5, %v9989_v51, %v9992_v7  ;;  %v12141_v33 = vadd.f32 %v15687_v8, %v15678_v11  ;;  %v9994_v4 = vrot.slane %v15699_v21, 6  ;;  %v15732_v61 = vpop.f32.mrf.mxu0  ;;  %v9910_v13 = vld [vmem:[#allocation8 + $0x180] sm:$0xff] }
 0x49e   :  { %10596 = vst [vmem:[#allocation8 + $0x70] sm:$0xff] %v10518_v0  ;;  %v10543_v60 = vmin.f32 %v10465_v38, 0.9202163  ;;  %v10365_v49 = vadd.f32 %v15566_v39, %v10114_v30  ;;  %v10390_v22 = vadd.f32 %v15513_v47, %v10139_v52  ;;  %v10140_v58 = vadd.f32 %v10044_v16, %v9905_v31  ;;  %v15736_v56 = vpop.f32.mrf.mxu1  ;;  %v9885_v0 = vld [vmem:[#allocation8 + $0xb8] sm:$0xff]  ;;  %v9911_v16 = vld [vmem:[#allocation8 + $0x188] sm:$0xff] }
 0x49f   :  { %v10544_v10 = vmin.f32 %v10466_v20, 0.9202163  ;;  %v9969_v50 = vrot.slane %v12141_v33, 6  ;;  %v10040_v51 = vsel %vm10018_vm5, %v9991_v57, %v9994_v4  ;;  %v9995_v11 = vrot.slane %v15709_v35, 6  ;;  %v15741_v8 = vpop.f32.mrf.mxu0 }
 0x4a0   :  { %10621 = vst [vmem:[#allocation8 + $0x138] sm:$0xff] %v10543_v60  ;;  %v10443_v3 = vmax.f32 %v10365_v49, 0.6994055  ;;  %v10468_v21 = vmax.f32 %v10390_v22, 0.6994055  ;;  %v10391_v28 = vadd.f32 %v15521_v32, %v10140_v58  ;;  %v10142_v25 = vadd.f32 %v10040_v51, %v9907_v19  ;;  %v15744_v24 = vpop.f32.mrf.mxu1 }
 0x4a1   :  { %10622 = vst [vmem:[#allocation8 + $0x140] sm:$0xff] %v10544_v10  ;;  %v10069_v55 = vsel %vm10018_vm5, %v9966_v44, %v9969_v50  ;;  %v10041_v62 = vsel %vm10018_vm5, %v9992_v7, %v9995_v11  ;;  %v12144_v2 = vadd.f32 %v15706_v42, %v15696_v40  ;;  %v9997_v29 = vrot.slane %v15716_v1, 6  ;;  %v15753_v26 = vpop.f32.mrf.mxu0 }
 0x4a2   :  { %v10521_v35 = vmin.f32 %v10443_v3, 0.9202163  ;;  %v10546_v12 = vmin.f32 %v10468_v21, 0.9202163  ;;  %v10469_v17 = vmax.f32 %v10391_v28, 0.6994055  ;;  %v10117_v57 = vadd.f32 %v10069_v55, %v9882_v37  ;;  %v15755_v43 = vpop.f32.mrf.mxu1 }
 0x4a3   :  { %v10393_v59 = vadd.f32 %v15513_v47, %v10142_v25  ;;  %v10143_v44 = vadd.f32 %v10041_v62, %v9908_v27  ;;  %v9972_v23 = vrot.slane %v12144_v2, 6  ;;  %v10037_v7 = vsel %vm10018_vm5, %v9994_v4, %v9997_v29  ;;  %v15760_v5 = vpop.f32.mrf.mxu0  ;;  %v9888_v21 = vld [vmem:[#allocation8 + $0xd0] sm:$0xff]  ;;  %v9913_v2 = vld [vmem:[#allocation8 + $0x198] sm:$0xff] }
 0x4a4   :  { %10599 = vst [vmem:[#allocation8 + $0x88] sm:$0xff] %v10521_v35  ;;  %10624 = vst [vmem:[#allocation8 + $0x150] sm:$0xff] %v10546_v12  ;;  %v10547_v40 = vmin.f32 %v10469_v17, 0.9202163  ;;  %v10368_v42 = vadd.f32 %v15566_v39, %v10117_v57  ;;  %v10145_v1 = vadd.f32 %v10037_v7, %v9910_v13  ;;  %v9998_v63 = vrot.slane %v15725_v9, 6  ;;  %v15764_v6 = vpop.f32.mrf.mxu1  ;;  %v9914_v57 = vld [vmem:[#allocation8 + $0x1a0] sm:$0xff] }
 0x4a5   :  { %v10471_v18 = vmax.f32 %v10393_v59, 0.6994055  ;;  %v10394_v34 = vadd.f32 %v15521_v32, %v10143_v44  ;;  %v10066_v38 = vsel %vm10018_vm5, %v9969_v50, %v9972_v23  ;;  %v15771_v30 = vadd.f32 %v15723_v54, %v15712_v41  ;;  %v15773_v52 = vpop.f32.mrf.mxu0 }
 0x4a6   :  { %10625 = vst [vmem:[#allocation8 + $0x158] sm:$0xff] %v10547_v40  ;;  %v10446_v20 = vmax.f32 %v10368_v42, 0.6994055  ;;  %v10120_v31 = vadd.f32 %v10066_v38, %v9885_v0  ;;  %v10396_v9 = vadd.f32 %v15513_v47, %v10145_v1  ;;  %v10038_v33 = vsel %vm10018_vm5, %v9995_v11, %v9998_v63  ;;  %v15778_v4 = vpop.f32.mrf.mxu1  ;;  %v9916_v0 = vld [vmem:[#allocation8 + $0x1b0] sm:$0xff] }
 0x4a7   :  { %v10549_v60 = vmin.f32 %v10471_v18, 0.9202163  ;;  %v10472_v49 = vmax.f32 %v10394_v34, 0.6994055  ;;  %v10146_v22 = vadd.f32 %v10038_v33, %v9911_v16  ;;  %v9975_v58 = vrot.slane %v15771_v30, 6  ;;  %v15781_v41 = vpop.f32.mrf.mxu0  ;;  %v9917_v16 = vld [vmem:[#allocation8 + $0x1b8] sm:$0xff] }
 0x4a8   :  { %v10524_v54 = vmin.f32 %v10446_v20, 0.9202163  ;;  %v10371_v10 = vadd.f32 %v15566_v39, %v10120_v31  ;;  %v10474_v50 = vmax.f32 %v10396_v9, 0.6994055  ;;  %v10000_v19 = vrot.slane %v15736_v56, 6  ;;  %v15785_v51 = vpop.f32.mrf.mxu1  ;;  %v9891_v31 = vld [vmem:[#allocation8 + $0xe8] sm:$0xff] }
 0x4a9   :  { %10627 = vst [vmem:[#allocation8 + $0x168] sm:$0xff] %v10549_v60  ;;  %v10550_v3 = vmin.f32 %v10472_v49, 0.9202163  ;;  %v10397_v11 = vadd.f32 %v15521_v32, %v10146_v22  ;;  %v10063_v28 = vsel %vm10018_vm5, %v9972_v23, %v9975_v58  ;;  %v10001_v25 = vrot.slane %v15744_v24, 6  ;;  %v15791_v37 = vpop.f32.mrf.mxu0 }
 0x4aa   :  { %10602 = vst [vmem:[#allocation8 + $0xa0] sm:$0xff] %v10524_v54  ;;  %v10449_v55 = vmax.f32 %v10371_v10, 0.6994055  ;;  %v10552_v27 = vmin.f32 %v10474_v50, 0.9202163  ;;  %v10123_v62 = vadd.f32 %v10063_v28, %v9888_v21  ;;  %v10034_v56 = vsel %vm10018_vm5, %v9997_v29, %v10000_v19  ;;  %v15795_v35 = vpop.f32.mrf.mxu1 }
 0x4ab   :  { %10628 = vst [vmem:[#allocation8 + $0x170] sm:$0xff] %v10550_v3  ;;  %v10475_v12 = vmax.f32 %v10397_v11, 0.6994055  ;;  %v10148_v17 = vadd.f32 %v10034_v56, %v9913_v2  ;;  %v10035_v59 = vsel %vm10018_vm5, %v9998_v63, %v10001_v25  ;;  %v12150_v24 = vadd.f32 %v15741_v8, %v15732_v61  ;;  %v15801_v44 = vpop.f32.mrf.mxu0  ;;  %v9919_v56 = vld [vmem:[#allocation8 + $0x1c8] sm:$0xff] }
 0x4ac   :  { %v10527_v23 = vmin.f32 %v10449_v55, 0.9202163  ;;  %10630 = vst [vmem:[#allocation8 + $0x180] sm:$0xff] %v10552_v27  ;;  %v10374_v13 = vadd.f32 %v15566_v39, %v10123_v62  ;;  %v10149_v7 = vadd.f32 %v10035_v59, %v9914_v57  ;;  %v10003_v29 = vrot.slane %v15755_v43, 6  ;;  %v15805_v40 = vpop.f32.mrf.mxu1  ;;  %v9894_v62 = vld [vmem:[#allocation8 + $0x100] sm:$0xff] }
 0x4ad   :  { %v10553_v42 = vmin.f32 %v10475_v12, 0.9202163  ;;  %v10399_v1 = vadd.f32 %v15513_v47, %v10148_v17  ;;  %v9978_v18 = vrot.slane %v12150_v24, 6  ;;  %v10004_v63 = vrot.slane %v15764_v6, 6  ;;  %v15809_v34 = vpop.f32.mrf.mxu0 }
 0x4ae   :  { %10605 = vst [vmem:[#allocation8 + $0xb8] sm:$0xff] %v10527_v23  ;;  %v10452_v61 = vmax.f32 %v10374_v13, 0.6994055  ;;  %v10400_v8 = vadd.f32 %v15521_v32, %v10149_v7  ;;  %v10031_v38 = vsel %vm10018_vm5, %v10000_v19, %v10003_v29  ;;  %v12153_v43 = vadd.f32 %v15760_v5, %v15753_v26  ;;  %v15816_v30 = vpop.f32.mrf.mxu1 }
 0x4af   :  { %10631 = vst [vmem:[#allocation8 + $0x188] sm:$0xff] %v10553_v42  ;;  %v10477_v20 = vmax.f32 %v10399_v1, 0.6994055  ;;  %v10060_v6 = vsel %vm10018_vm5, %v9975_v58, %v9978_v18  ;;  %v10151_v9 = vadd.f32 %v10031_v38, %v9916_v0  ;;  %v10032_v33 = vsel %vm10018_vm5, %v10001_v25, %v10004_v63  ;;  %v15822_v60 = vpop.f32.mrf.mxu0 }
 0x4b0   :  { %v10530_v49 = vmin.f32 %v10452_v61, 0.9202163  ;;  %v10478_v22 = vmax.f32 %v10400_v8, 0.6994055  ;;  %v10126_v54 = vadd.f32 %v10060_v6, %v9891_v31  ;;  %v10152_v10 = vadd.f32 %v10032_v33, %v9917_v16  ;;  %v15824_v26 = vpop.f32.mrf.mxu1  ;;  %v9920_v8 = vld [vmem:[#allocation8 + $0x1d0] sm:$0xff] }
 0x4b1   :  { %v10555_v5 = vmin.f32 %v10477_v20, 0.9202163  ;;  %v10402_v50 = vadd.f32 %v15513_v47, %v10151_v9  ;;  %v9981_v19 = vrot.slane %v12153_v43, 6  ;;  %v10006_v3 = vrot.slane %v15778_v4, 6  ;;  %v15828_v58 = vpop.f32.mrf.mxu0  ;;  %v9897_v43 = vld [vmem:[#allocation8 + $0x118] sm:$0xff]  ;;  %v9922_v20 = vld [vmem:[#allocation8 + $0x1e0] sm:$0xff] }
 0x4b2   :  { %10608 = vst [vmem:[#allocation8 + $0xd0] sm:$0xff] %v10530_v49  ;;  %v10556_v11 = vmin.f32 %v10478_v22, 0.9202163  ;;  %v10377_v21 = vadd.f32 %v15566_v39, %v10126_v54  ;;  %v10403_v28 = vadd.f32 %v15521_v32, %v10152_v10  ;;  %v10007_v25 = vrot.slane %v15785_v51, 6  ;;  %v15833_v55 = vpop.f32.mrf.mxu1 }
 0x4b3   :  { %10633 = vst [vmem:[#allocation8 + $0x198] sm:$0xff] %v10555_v5  ;;  %v10480_v27 = vmax.f32 %v10402_v50, 0.6994055  ;;  %v10057_v2 = vsel %vm10018_vm5, %v9978_v18, %v9981_v19  ;;  %v10028_v4 = vsel %vm10018_vm5, %v10003_v29, %v10006_v3  ;;  %v15841_v12 = vadd.f32 %v15781_v41, %v15773_v52  ;;  %v15843_v17 = vpop.f32.mrf.mxu0 }
 0x4b4   :  { %10634 = vst [vmem:[#allocation8 + $0x1a0] sm:$0xff] %v10556_v11  ;;  %v10455_v51 = vmax.f32 %v10377_v21, 0.6994055  ;;  %v10481_v57 = vmax.f32 %v10403_v28, 0.6994055  ;;  %v10129_v59 = vadd.f32 %v10057_v2, %v9894_v62  ;;  %v10154_v24 = vadd.f32 %v10028_v4, %v9919_v56  ;;  %v15845_v23 = vpop.f32.mrf.mxu1  ;;  %v9923_v28 = vld [vmem:[#allocation8 + $0x1e8] sm:$0xff] }
 0x4b5   :  { %v10558_v13 = vmin.f32 %v10480_v27, 0.9202163  ;;  %v10029_v7 = vsel %vm10018_vm5, %v10004_v63, %v10007_v25  ;;  %v9984_v42 = vrot.slane %v15841_v12, 6  ;;  %v10009_v29 = vrot.slane %v15795_v35, 6  ;;  %v15851_v1 = vpop.f32.mrf.mxu0 }
 0x4b6   :  { %v10533_v52 = vmin.f32 %v10455_v51, 0.9202163  ;;  %v10559_v41 = vmin.f32 %v10481_v57, 0.9202163  ;;  %v10380_v18 = vadd.f32 %v15566_v39, %v10129_v59  ;;  %v10405_v61 = vadd.f32 %v15513_v47, %v10154_v24  ;;  %v15855_v0 = vpop.f32.mrf.mxu1 }
 0x4b7   :  { %10636 = vst [vmem:[#allocation8 + $0x1b0] sm:$0xff] %v10558_v13  ;;  %v10155_v38 = vadd.f32 %v10029_v7, %v9920_v8  ;;  %v10054_v63 = vsel %vm10018_vm5, %v9981_v19, %v9984_v42  ;;  %v10025_v35 = vsel %vm10018_vm5, %v10006_v3, %v10009_v29  ;;  %v10010_v31 = vrot.slane %v15805_v40, 6  ;;  %v15862_v6 = vpop.f32.mrf.mxu0  ;;  %v9900_v13 = vld [vmem:[#allocation8 + $0x130] sm:$0xff] }
 0x4b8   :  { %10611 = vst [vmem:[#allocation8 + $0xe8] sm:$0xff] %v10533_v52  ;;  %10637 = vst [vmem:[#allocation8 + $0x1b8] sm:$0xff] %v10559_v41  ;;  %v10458_v9 = vmax.f32 %v10380_v18, 0.6994055  ;;  %v10483_v16 = vmax.f32 %v10405_v61, 0.6994055  ;;  %v10132_v33 = vadd.f32 %v10054_v63, %v9897_v43  ;;  %v10157_v49 = vadd.f32 %v10025_v35, %v9922_v20  ;;  %v15864_v22 = vpop.f32.mrf.mxu1 }
 0x4b9   :  { %v10406_v54 = vadd.f32 %v15521_v32, %v10155_v38  ;;  %v10026_v10 = vsel %vm10018_vm5, %v10007_v25, %v10010_v31  ;;  %v12159_v5 = vadd.f32 %v15801_v44, %v15791_v37  ;;  %v10012_v40 = vrot.slane %v15816_v30, 6  ;;  %v15872_v50 = vpop.f32.mrf.mxu0  ;;  %v9925_v25 = vld [vmem:[#allocation8 + $0x1f8] sm:$0xff]  ;;  %v9926_v43 = vld [vmem:[#allocation8 + $0x200] sm:$0xff] }
 0x4ba   :  { %v10536_v19 = vmin.f32 %v10458_v9, 0.9202163  ;;  %v10561_v3 = vmin.f32 %v10483_v16, 0.9202163  ;;  %v10383_v11 = vadd.f32 %v15566_v39, %v10132_v33  ;;  %v10408_v21 = vadd.f32 %v15513_v47, %v10157_v49  ;;  %v15876_v27 = vpop.f32.mrf.mxu1  ;;  %v9903_v33 = vld [vmem:[#allocation8 + $0x148] sm:$0xff] }
 0x4bb   :  { %v10484_v62 = vmax.f32 %v10406_v54, 0.6994055  ;;  %v10158_v2 = vadd.f32 %v10026_v10, %v9923_v28  ;;  %v9987_v56 = vrot.slane %v12159_v5, 6  ;;  %v10022_v37 = vsel %vm10018_vm5, %v10009_v29, %v10012_v40  ;;  %v15880_v44 = vpop.f32.mrf.mxu0 }
 0x4bc   :  { %10614 = vst [vmem:[#allocation8 + $0x100] sm:$0xff] %v10536_v19  ;;  %10639 = vst [vmem:[#allocation8 + $0x1c8] sm:$0xff] %v10561_v3  ;;  %v10461_v30 = vmax.f32 %v10383_v11, 0.6994055  ;;  %v10486_v4 = vmax.f32 %v10408_v21, 0.6994055  ;;  %v10160_v12 = vadd.f32 %v10022_v37, %v9925_v25  ;;  %v15883_v57 = vpop.f32.mrf.mxu1  ;;  %v15890_v29 = vadd.f32 %v15822_v60, %v15809_v34 }
 0x4bd   :  { %v10013_v51 = vrot.slane %v15824_v26, 6  ;;  %v10562_v59 = vmin.f32 %v10484_v62, 0.9202163  ;;  %v10409_v24 = vadd.f32 %v15521_v32, %v10158_v2  ;;  %v10051_v7 = vsel %vm10018_vm5, %v9984_v42, %v9987_v56  ;;  %v15892_v52 = vpop.f32.mrf.mxu0  ;;  %v9931_v11 = vld [vmem:[#allocation8 + $0x228] sm:$0xff]  ;;  %v9929_v2 = vld [vmem:[#allocation8 + $0x218] sm:$0xff]  ;;  %v9932_v37 = vld [vmem:[#allocation8 + $0x230] sm:$0xff] }
 0x4be   :  { %v10539_v41 = vmin.f32 %v10461_v30, 0.9202163  ;;  %v10564_v18 = vmin.f32 %v10486_v4, 0.9202163  ;;  %v10135_v61 = vadd.f32 %v10051_v7, %v9900_v13  ;;  %v10411_v26 = vadd.f32 %v15513_v47, %v10160_v12  ;;  %v15895_v8 = vpop.f32.mrf.mxu1 }
 0x4bf   :  { %10640 = vst [vmem:[#allocation8 + $0x1d0] sm:$0xff] %v10562_v59  ;;  %v10487_v38 = vmax.f32 %v10409_v24, 0.6994055  ;;  %v10023_v63 = vsel %vm10018_vm5, %v10010_v31, %v10013_v51  ;;  %v9990_v42 = vrot.slane %v15890_v29, 6  ;;  %v10015_v34 = vrot.slane %v15833_v55, 6  ;;  %v12173_v54 = vpop.f32.mrf.mxu0 }
 0x4c0   :  { %10617 = vst [vmem:[#allocation8 + $0x118] sm:$0xff] %v10539_v41  ;;  %10642 = vst [vmem:[#allocation8 + $0x1e0] sm:$0xff] %v10564_v18  ;;  %v10386_v60 = vadd.f32 %v15566_v39, %v10135_v61  ;;  %v10489_v20 = vmax.f32 %v10411_v26, 0.6994055  ;;  %v10161_v35 = vadd.f32 %v10023_v63, %v9926_v43  ;;  %v10016_v9 = vrot.slane %v15845_v23, 6  ;;  %v9928_v23 = vld [vmem:[#allocation8 + $0x210] sm:$0xff]  ;;  %v12185_v21 = vpop.f32.mrf.mxu1 }
 0x4c1   :  { %v10565_v16 = vmin.f32 %v10487_v38, 0.9202163  ;;  %v10048_v49 = vsel %vm10018_vm5, %v9987_v56, %v9990_v42  ;;  %v10019_v31 = vsel %vm10018_vm5, %v10012_v40, %v10015_v34  ;;  %v10094_v55 = vsel %vm10018_vm5, %v10015_v34, %v9940_v36  ;;  %v12175_v24 = vpop.f32.mrf.mxu0  ;;  %v9906_v43 = vld [vmem:[#allocation8 + $0x160] sm:$0xff] }
 0x4c2   :  { %v10464_v10 = vmax.f32 %v10386_v60, 0.6994055  ;;  %v10567_v5 = vmin.f32 %v10489_v20, 0.9202163  ;;  %v10412_v19 = vadd.f32 %v15521_v32, %v10161_v35  ;;  %v10138_v3 = vadd.f32 %v10048_v49, %v9903_v33  ;;  %v12187_v29 = vpop.f32.mrf.mxu1 }
 0x4c3   :  { %10643 = vst [vmem:[#allocation8 + $0x1e8] sm:$0xff] %v10565_v16  ;;  %v10163_v28 = vadd.f32 %v10019_v31, %v9928_v23  ;;  %v10166_v62 = vadd.f32 %v10094_v55, %v9931_v11  ;;  %v10020_v40 = vsel %vm10018_vm5, %v10013_v51, %v10016_v9  ;;  %v10095_v48 = vsel %vm10018_vm5, %v10016_v9, %v9941_v53 }
 0x4c4   :  { %v10542_v36 = vmin.f32 %v10464_v10, 0.9202163  ;;  %10645 = vst [vmem:[#allocation8 + $0x1f8] sm:$0xff] %v10567_v5  ;;  %v10490_v56 = vmax.f32 %v10412_v19, 0.6994055  ;;  %v10389_v25 = vadd.f32 %v15566_v39, %v10138_v3  ;;  %v10164_v30 = vadd.f32 %v10020_v40, %v9929_v2  ;;  %v12188_v33 = vpop.f32.mrf.mxu1  ;;  %v9924_v40 = vld [vmem:[#allocation8 + $0x1f0] sm:$0xff] }
 0x4c5   :  { %v10414_v4 = vadd.f32 %v15513_v47, %v10163_v28  ;;  %v10417_v12 = vadd.f32 %v15513_v47, %v10166_v62  ;;  %v10167_v59 = vadd.f32 %v10095_v48, %v9932_v37  ;;  %v12165_v51 = vadd.f32 %v15843_v17, %v15828_v58 }
 0x4c6   :  { %10620 = vst [vmem:[#allocation8 + $0x130] sm:$0xff] %v10542_v36  ;;  %v10568_v45 = vmin.f32 %v10490_v56, 0.9202163  ;;  %v10467_v13 = vmax.f32 %v10389_v25, 0.6994055  ;;  %v10415_v53 = vadd.f32 %v15521_v32, %v10164_v30  ;;  %v12168_v7 = vadd.f32 %v15862_v6, %v15851_v1  ;;  %v12176_v6 = vpop.f32.mrf.mxu0  ;;  %v9915_v36 = vld [vmem:[#allocation8 + $0x1a8] sm:$0xff] }
 0x4c7   :  { %v10492_v41 = vmax.f32 %v10414_v4, 0.6994055  ;;  %v10495_v18 = vmax.f32 %v10417_v12, 0.6994055  ;;  %v10418_v61 = vadd.f32 %v15521_v32, %v10167_v59  ;;  %v9993_v26 = vrot.slane %v12165_v51, 6  ;;  %v9909_v32 = vld [vmem:[#allocation8 + $0x178] sm:$0xff] }
 0x4c8   :  { %10646 = vst [vmem:[#allocation8 + $0x200] sm:$0xff] %v10568_v45  ;;  %v10545_v47 = vmin.f32 %v10467_v13, 0.9202163  ;;  %v10493_v38 = vmax.f32 %v10415_v53, 0.6994055  ;;  %v9996_v58 = vrot.slane %v12168_v7, 6  ;;  %v12180_v17 = vadd.f32 %v15864_v22, %v15855_v0 }
 0x4c9   :  { %v10570_v63 = vmin.f32 %v10492_v41, 0.9202163  ;;  %v10573_v34 = vmin.f32 %v10495_v18, 0.9202163  ;;  %v10496_v60 = vmax.f32 %v10418_v61, 0.6994055  ;;  %v10045_v1 = vsel %vm10018_vm5, %v9990_v42, %v9993_v26 }
 0x4ca   :  { %10623 = vst [vmem:[#allocation8 + $0x148] sm:$0xff] %v10545_v47  ;;  %v10571_v20 = vmin.f32 %v10493_v38, 0.9202163  ;;  %v10141_v35 = vadd.f32 %v10045_v1, %v9906_v43  ;;  %v10042_v9 = vsel %vm10018_vm5, %v9993_v26, %v9996_v58  ;;  %v10008_v16 = vrot.slane %v12180_v17, 6  ;;  %v9927_v30 = vld [vmem:[#allocation8 + $0x208] sm:$0xff]  ;;  %v9918_v45 = vld [vmem:[#allocation8 + $0x1c0] sm:$0xff] }
 0x4cb   :  { %10648 = vst [vmem:[#allocation8 + $0x210] sm:$0xff] %v10570_v63  ;;  %10651 = vst [vmem:[#allocation8 + $0x228] sm:$0xff] %v10573_v34  ;;  %v10574_v49 = vmin.f32 %v10496_v60, 0.9202163  ;;  %v10144_v0 = vadd.f32 %v10042_v9, %v9909_v32  ;;  %v12171_v22 = vadd.f32 %v15880_v44, %v15872_v50  ;;  %v12183_v42 = vadd.f32 %v15883_v57, %v15876_v27  ;;  %v9912_v27 = vld [vmem:[#allocation8 + $0x190] sm:$0xff]  ;;  %v9921_v13 = vld [vmem:[#allocation8 + $0x1d8] sm:$0xff] }
 0x4cc   :  { %10649 = vst [vmem:[#allocation8 + $0x218] sm:$0xff] %v10571_v20  ;;  %v10392_v31 = vadd.f32 %v15566_v39, %v10141_v35  ;;  %v12174_v55 = vadd.f32 %v12173_v54, %v15892_v52  ;;  %v12186_v10 = vadd.f32 %v12185_v21, %v15895_v8  ;;  %v12177_v5 = vadd.f32 %v12176_v6, %v12175_v24  ;;  %v9930_v38 = vld [vmem:[#allocation8 + $0x220] sm:$0xff]  ;;  %v9933_v34 = vld [vmem:[#allocation8 + $0x238] sm:$0xff] }
 0x4cd   :  { %10652 = vst [vmem:[#allocation8 + $0x230] sm:$0xff] %v10574_v49  ;;  %v10395_v19 = vadd.f32 %v15566_v39, %v10144_v0  ;;  %v9999_v3 = vrot.slane %v12171_v22, 6  ;;  %v10011_v23 = vrot.slane %v12183_v42, 6  ;;  %v12189_v11 = vadd.f32 %v12188_v33, %v12187_v29 }
 0x4ce   :  { %v10470_v28 = vmax.f32 %v10392_v31, 0.6994055  ;;  %v10002_v62 = vrot.slane %v12174_v55, 6  ;;  %v10014_v50 = vrot.slane %v12186_v10, 6  ;;  %v10005_v44 = vrot.slane %v12177_v5, 6 }
 0x4cf   :  { %v10473_v2 = vmax.f32 %v10395_v19, 0.6994055  ;;  %v10039_v57 = vsel %vm10018_vm5, %v9996_v58, %v9999_v3  ;;  %v10027_v52 = vsel %vm10018_vm5, %v10008_v16, %v10011_v23  ;;  %v10017_v8 = vrot.slane %v12189_v11, 6 }
 0x4d0   :  { %v10548_v54 = vmin.f32 %v10470_v28, 0.9202163  ;;  %v10147_v21 = vadd.f32 %v10039_v57, %v9912_v27  ;;  %v10159_v48 = vadd.f32 %v10027_v52, %v9924_v40  ;;  %v10036_v56 = vsel %vm10018_vm5, %v9999_v3, %v10002_v62 }
 0x4d1   :  { %v10551_v25 = vmin.f32 %v10473_v2, 0.9202163  ;;  %v10150_v37 = vadd.f32 %v10036_v56, %v9915_v36  ;;  %v10024_v4 = vsel %vm10018_vm5, %v10011_v23, %v10014_v50  ;;  %v10030_v12 = vsel %vm10018_vm5, %v10005_v44, %v10008_v16 }
 0x4d2   :  { %10626 = vst [vmem:[#allocation8 + $0x160] sm:$0xff] %v10548_v54  ;;  %v10398_v59 = vadd.f32 %v15566_v39, %v10147_v21  ;;  %v10410_v51 = vadd.f32 %v15566_v39, %v10159_v48  ;;  %v10162_v24 = vadd.f32 %v10024_v4, %v9927_v30  ;;  %v10033_v53 = vsel %vm10018_vm5, %v10002_v62, %v10005_v44 }
 0x4d3   :  { %10629 = vst [vmem:[#allocation8 + $0x178] sm:$0xff] %v10551_v25  ;;  %v10401_v7 = vadd.f32 %v15566_v39, %v10150_v37  ;;  %v10153_v29 = vadd.f32 %v10033_v53, %v9918_v45  ;;  %v10156_v41 = vadd.f32 %v10030_v12, %v9921_v13  ;;  %v10021_v18 = vsel %vm10018_vm5, %v10014_v50, %v10017_v8 }
 0x4d4   :  { %v10476_v61 = vmax.f32 %v10398_v59, 0.6994055  ;;  %v10488_v26 = vmax.f32 %v10410_v51, 0.6994055  ;;  %v10413_v47 = vadd.f32 %v15566_v39, %v10162_v24  ;;  %v10096_v43 = vsel %vm10018_vm5, %v10017_v8, %v9942_v15 }
 0x4d5   :  { %v10479_v58 = vmax.f32 %v10401_v7, 0.6994055  ;;  %v10404_v17 = vadd.f32 %v15566_v39, %v10153_v29  ;;  %v10407_v63 = vadd.f32 %v15566_v39, %v10156_v41  ;;  %v10165_v60 = vadd.f32 %v10021_v18, %v9930_v38 }
 0x4d6   :  { %v10554_v1 = vmin.f32 %v10476_v61, 0.9202163  ;;  %v10566_v6 = vmin.f32 %v10488_v26, 0.9202163  ;;  %v10491_v20 = vmax.f32 %v10413_v47, 0.6994055  ;;  %v10168_v35 = vadd.f32 %v10096_v43, %v9933_v34 }
 0x4d7   :  { %v10557_v32 = vmin.f32 %v10479_v58, 0.9202163  ;;  %v10482_v9 = vmax.f32 %v10404_v17, 0.6994055  ;;  %v10485_v16 = vmax.f32 %v10407_v63, 0.6994055  ;;  %v10416_v33 = vadd.f32 %v15566_v39, %v10165_v60 }
 0x4d8   :  { %10632 = vst [vmem:[#allocation8 + $0x190] sm:$0xff] %v10554_v1  ;;  %10644 = vst [vmem:[#allocation8 + $0x1f0] sm:$0xff] %v10566_v6  ;;  %v10569_v14 = vmin.f32 %v10491_v20, 0.9202163  ;;  %v10419_v46 = vadd.f32 %v15566_v39, %v10168_v35 }
 0x4d9   :  { %10635 = vst [vmem:[#allocation8 + $0x1a8] sm:$0xff] %v10557_v32  ;;  %v10560_v15 = vmin.f32 %v10482_v9, 0.9202163  ;;  %v10563_v49 = vmin.f32 %v10485_v16, 0.9202163 }
 0x4da   :  { %v10494_v0 = vmax.f32 %v10416_v33, 0.6994055  ;;  %10647 = vst [vmem:[#allocation8 + $0x208] sm:$0xff] %v10569_v14  ;;  %v10497_v22 = vmax.f32 %v10419_v46, 0.6994055 }
 0x4db   :  { %10638 = vst [vmem:[#allocation8 + $0x1c0] sm:$0xff] %v10560_v15  ;;  %10641 = vst [vmem:[#allocation8 + $0x1d8] sm:$0xff] %v10563_v49 }
 0x4dc   :  { %v10572_v42 = vmin.f32 %v10494_v0, 0.9202163  ;;  %v10575_v31 = vmin.f32 %v10497_v22, 0.9202163 }
 0x4de   :  { %10650 = vst [vmem:[#allocation8 + $0x220] sm:$0xff] %v10572_v42  ;;  %10653 = vst [vmem:[#allocation8 + $0x238] sm:$0xff] %v10575_v31 }
 0x4df   :  { %13185 = shalt.err (!%p13182_p5)
}
 0x4e0   :  { %s13208_s5 = smov 384   ;;  %s13209_s6 = smov 24  }
 0x4e1   :  { %10671 = dma.vmem_to_hbm [thread:$0]  %s10666_s2, 9984, %s15973_s3, [#allocation4], %s13208_s5, %s13208_s5, %s13209_s6  }
 0x4e2   :  { %13198 = dma.done.wait [#allocation4], 9984  }
 0x4e3   :  { %13199 = vsyncadd [#allocation4], 4294957312 }
 0x4e4   :  { %10675 = vsyncpa [#allocation3], 1 }
 0x4e5   :  { %10676 = vsyncpa [#allocation6], 1 }
 0x4e6   :  { %10677 = vsyncpa [#allocation4], 1 }

</bundles_post_ra>
